<compile_context>
chip_gen: v7x
topology: tpu7x:2x2x1
jax: 0.10.0
libtpu: 0.0.40
codegen_flags: <defaults>
</compile_context>

<pallas_src>
import functools

import jax
import jax.numpy as jnp
from jax.experimental import pallas as pl
from jax.experimental.pallas import tpu as pltpu

LANE = 128
NEG_INF = -1e30


def _rup(n, m):
    return ((n + m - 1) // m) * m


# ----------------------------------------------------------------------------
# Fused conv + bias + relu + 2x2 maxpool kernel (one image per grid step)
# ----------------------------------------------------------------------------
def _conv_relu_pool_kernel(x_ref, w_ref, b_ref, o_ref, acc_ref, *,
                           K, H_out, W_out, pad_out):
    """x_ref:(1,Hin,Win,Cin_p)  w_ref:(K*K,Cin_p,Cout_p) bf16  b_ref:(1,Cout_p)
    o_ref:(1,Hp+2*pad_out,Wp+2*pad_out,Cout_p)  acc_ref:(H_out*W_out,Cout_p) f32."""
    cin_p = x_ref.shape[-1]
    HW = H_out * W_out
    Hp, Wp = H_out // 2, W_out // 2

    # conv as K*K shifted matmuls (no im2col materialization; taps read straight
    # from the VMEM-resident input block).  stride == 1.
    t = 0
    for kh in range(K):
        for kw in range(K):
            tap = x_ref[0, kh:kh + H_out, kw:kw + W_out, :]          # (H_out,W_out,Cin_p)
            tap2d = tap.reshape(HW, cin_p).astype(jnp.bfloat16)
            part = jnp.dot(tap2d, w_ref[t], preferred_element_type=jnp.float32)
            if t == 0:
                acc_ref[...] = part
            else:
                acc_ref[...] = acc_ref[...] + part
            t += 1

    # bias + relu (f32)
    acc = jnp.maximum(acc_ref[...] + b_ref[...], 0.0)                # (HW, Cout_p)

    # 2x2 max pool, floor mode.
    if H_out % 2:                                   # drop last row if odd (floor mode)
        acc = acc[: 2 * Hp * W_out, :]
    # H direction: layout-preserving reshape packs row pairs side by side.
    y = acc.reshape(Hp, 2 * W_out, acc.shape[-1])
    zh = jnp.maximum(y[:, :W_out, :], y[:, W_out:, :])               # (Hp, W_out, Cout_p)

    # zero the spatial halo for the next conv layer (if any), then write pooled
    # columns (lane-dense: last dim is the 128-padded channel dim).
    if pad_out > 0:
        o_ref[...] = jnp.zeros(o_ref.shape, o_ref.dtype)
    for w2 in range(Wp):
        col = jnp.maximum(zh[:, 2 * w2, :], zh[:, 2 * w2 + 1, :])    # (Hp, Cout_p)
        o_ref[0, pl.ds(pad_out, Hp), pad_out + w2, :] = col


def conv_relu_pool(x_pad, w_taps, b_pad, *, K, H_out, W_out, pad_out):
    N, Hin, Win, cin_p = x_pad.shape
    cout_p = w_taps.shape[-1]
    Hp, Wp = H_out // 2, W_out // 2
    Ho, Wo = Hp + 2 * pad_out, Wp + 2 * pad_out
    kernel = functools.partial(_conv_relu_pool_kernel, K=K, H_out=H_out,
                               W_out=W_out, pad_out=pad_out)
    return pl.pallas_call(
        kernel,
        out_shape=jax.ShapeDtypeStruct((N, Ho, Wo, cout_p), jnp.float32),
        grid=(N,),
        in_specs=[
            pl.BlockSpec((1, Hin, Win, cin_p), lambda n: (n, 0, 0, 0)),
            pl.BlockSpec((K * K, cin_p, cout_p), lambda n: (0, 0, 0)),
            pl.BlockSpec((1, cout_p), lambda n: (0, 0)),
        ],
        out_specs=pl.BlockSpec((1, Ho, Wo, cout_p), lambda n: (n, 0, 0, 0)),
        scratch_shapes=[pltpu.VMEM((H_out * W_out, cout_p), jnp.float32)],
        compiler_params=pltpu.CompilerParams(dimension_semantics=("parallel",)),
    )(x_pad, w_taps, b_pad)


# ----------------------------------------------------------------------------
# Fused FC head kernel: (FC -> relu)* -> FC -> softmax
# ----------------------------------------------------------------------------
def _fc_head_kernel(*refs, n_fc):
    x_ref = refs[0]
    o_ref = refs[-1]
    h = x_ref[...]                                                   # (bm, D) f32
    for i in range(n_fc):
        w_ref = refs[1 + 2 * i]                                      # bf16 (in_p, out_p)
        b_ref = refs[2 + 2 * i]                                      # f32  (1, out_p)
        h = jnp.dot(h.astype(jnp.bfloat16), w_ref[...],
                    preferred_element_type=jnp.float32) + b_ref[...]
        if i < n_fc - 1:
            h = jnp.maximum(h, 0.0)
            # TODO(synk): dropout(0.25) is identity at inference time.
    # numerically stable softmax; padded class logits carry a -1e30 bias -> exp==0.
    m = jnp.max(h, axis=-1, keepdims=True)
    e = jnp.exp(h - m)
    s = jnp.sum(e, axis=-1, keepdims=True)
    o_ref[...] = e * pl.reciprocal(s, approx=True)


def fc_head(x_flat, fc_params):
    N, D = x_flat.shape
    n_fc = len(fc_params)
    bm = N if N <= 256 else 256
    in_specs = [pl.BlockSpec((bm, D), lambda i: (i, 0))]
    args = [x_flat]
    for (w, b) in fc_params:
        in_specs.append(pl.BlockSpec(w.shape, lambda i: (0, 0)))
        in_specs.append(pl.BlockSpec(b.shape, lambda i: (0, 0)))
        args.extend([w, b])
    out_dim = fc_params[-1][0].shape[1]
    kernel = functools.partial(_fc_head_kernel, n_fc=n_fc)
    return pl.pallas_call(
        kernel,
        out_shape=jax.ShapeDtypeStruct((N, out_dim), jnp.float32),
        grid=(pl.cdiv(N, bm),),
        in_specs=in_specs,
        out_specs=pl.BlockSpec((bm, out_dim), lambda i: (i, 0)),
        compiler_params=pltpu.CompilerParams(dimension_semantics=("parallel",)),
    )(*args)


# ----------------------------------------------------------------------------
# Raw parameter init (mirrors nn.Conv2d / nn.Linear defaults and Net2.__init__)
# ----------------------------------------------------------------------------
def init_params(key, img_channel, img_width, img_height, img_label,
                conv_channels, fc_channels, kernel_size=5, stride=1):
    params = {"conv": [], "fc": []}
    cur_c, cur_w, cur_h = img_channel, img_width, img_height
    for cc in conv_channels:
        padding = (cc - 1) // 2   # NB: mirrors Net2.__init__ (uses out-channels, not kernel size)
        cur_w = ((cur_w - kernel_size + 2 * padding) // stride + 1) // 2
        cur_h = ((cur_h - kernel_size + 2 * padding) // stride + 1) // 2
        key, k1, k2 = jax.random.split(key, 3)
        fan_in = cur_c * kernel_size * kernel_size
        bound = 1.0 / (fan_in ** 0.5)
        w = jax.random.uniform(k1, (cc, cur_c, kernel_size, kernel_size),
                               jnp.float32, -bound, bound)
        b = jax.random.uniform(k2, (cc,), jnp.float32, -bound, bound)
        params["conv"].append((w, b))
        cur_c = cc
    cur = cur_c * cur_w * cur_h
    for d in list(fc_channels) + [img_label]:
        key, k1, k2 = jax.random.split(key, 3)
        bound = 1.0 / (cur ** 0.5)
        w = jax.random.uniform(k1, (d, cur), jnp.float32, -bound, bound)
        b = jax.random.uniform(k2, (d,), jnp.float32, -bound, bound)
        params["fc"].append((w, b))
        cur = d
    return params


# ----------------------------------------------------------------------------
# One-time conversion to kernel-ready (padded / permuted / bf16) parameters
# ----------------------------------------------------------------------------
def prepare_params(params, img_channel, img_width, img_height, img_label,
                   conv_channels, fc_channels, kernel_size=5, stride=1):
    if stride != 1:
        # TODO(synk): general stride not implemented in the fused conv kernel.
        raise NotImplementedError("only stride=1 is supported by the Pallas conv kernel")
    K = kernel_size
    n_conv = len(conv_channels)
    paddings = [(cc - 1) // 2 for cc in conv_channels]

    conv_meta, prepped_conv = [], []
    cur_c, cur_w, cur_h = img_channel, img_width, img_height
    for li, cc in enumerate(conv_channels):
        pad = paddings[li]
        cin_p = _rup(cur_c, LANE)
        cout_p = _rup(cc, LANE)
        w, b = params["conv"][li]
        wt = jnp.transpose(w, (2, 3, 1, 0))                      # (K,K,Cin,Cout)
        wt = jnp.pad(wt, ((0, 0), (0, 0), (0, cin_p - cur_c), (0, cout_p - cc)))
        wt = wt.reshape(K * K, cin_p, cout_p).astype(jnp.bfloat16)
        bp = jnp.pad(b, (0, cout_p - cc)).reshape(1, cout_p).astype(jnp.float32)
        H_out = (cur_h - K + 2 * pad) // stride + 1
        W_out = (cur_w - K + 2 * pad) // stride + 1
        pad_next = paddings[li + 1] if li + 1 < n_conv else 0
        conv_meta.append(dict(K=K, H_out=H_out, W_out=W_out, pad_out=pad_next))
        prepped_conv.append((wt, bp))
        cur_c, cur_h, cur_w = cc, H_out // 2, W_out // 2

    # FC weights: pre-transposed to (in, out), padded to 128-wide lanes; FC1 rows
    # permuted from torch's (C,H,W)-flatten order to our NHWC-with-padded-C order.
    c_real, Hp, Wp = cur_c, cur_h, cur_w
    cpad = _rup(c_real, LANE)
    prepped_fc = []
    dims = list(fc_channels) + [img_label]
    in_real = c_real * Hp * Wp
    for i, d in enumerate(dims):
        w, b = params["fc"][i]                                   # (d, in_real)
        d_p = _rup(d, LANE)
        if i == 0:
            wt = w.reshape(d, c_real, Hp, Wp)                    # (out, c, h, w)
            wt = jnp.transpose(wt, (2, 3, 1, 0))                 # (h, w, c, out)
            wt = jnp.pad(wt, ((0, 0), (0, 0), (0, cpad - c_real), (0, d_p - d)))
            wt = wt.reshape(Hp * Wp * cpad, d_p)
        else:
            in_p = prepped_fc[-1][0].shape[1]
            wt = jnp.pad(w.T, ((0, in_p - in_real), (0, d_p - d)))
        if i == len(dims) - 1:
            bp = jnp.concatenate([b, jnp.full((d_p - d,), NEG_INF, jnp.float32)])
        else:
            bp = jnp.pad(b, (0, d_p - d))
        prepped_fc.append((wt.astype(jnp.bfloat16),
                           bp.reshape(1, d_p).astype(jnp.float32)))
        in_real = d

    meta = dict(conv=conv_meta, img_label=img_label,
                cpad_in0=_rup(img_channel, LANE),
                pad0=paddings[0] if n_conv else 0)
    return dict(conv=prepped_conv, fc=prepped_fc), meta


# ----------------------------------------------------------------------------
# Forward pass (matches Net2.forward, inference mode)
# ----------------------------------------------------------------------------
def net2_forward(prepped, meta, x_nchw):
    x = jnp.transpose(x_nchw, (0, 2, 3, 1)).astype(jnp.float32)      # NCHW -> NHWC
    N, H, W, C = x.shape
    p0 = meta["pad0"]
    # one-time entry glue: pad channels to the 128-lane width and add conv1's halo
    x = jnp.pad(x, ((0, 0), (p0, p0), (p0, p0), (0, meta["cpad_in0"] - C)))
    for (wt, bp), m in zip(prepped["conv"], meta["conv"]):
        x = conv_relu_pool(x, wt, bp, K=m["K"], H_out=m["H_out"],
                           W_out=m["W_out"], pad_out=m["pad_out"])
    x_flat = x.reshape(x.shape[0], -1)     # NHWC-flat; FC1 rows were permuted to match
    out = fc_head(x_flat, prepped["fc"])   # (N, padded classes)
    return out[:, : meta["img_label"]]


if __name__ == "__main__":
    key = jax.random.PRNGKey(0)
    kx, kp = jax.random.split(key)

    img_channel, img_width, img_height, img_label = 4, 16, 16, 10
    conv_channels = [5, 5]          # module's padding = (5-1)//2 = 2
    fc_channels = [32]

    x = jax.random.normal(kx, (2, img_channel, img_height, img_width), jnp.float32)
    params = init_params(kp, img_channel, img_width, img_height, img_label,
                         conv_channels, fc_channels, kernel_size=5, stride=1)
    prepped, meta = prepare_params(params, img_channel, img_width, img_height,
                                   img_label, conv_channels, fc_channels,
                                   kernel_size=5, stride=1)

    fwd = jax.jit(functools.partial(net2_forward, prepped, meta))
    out = jax.block_until_ready(fwd(x))

    assert out.shape == (2, img_label), out.shape
    assert bool(jnp.all(jnp.isfinite(out)))
    # softmax rows should sum to ~1 (approx reciprocal -> slightly loose tolerance)
    assert bool(jnp.all(jnp.abs(jnp.sum(out, axis=1) - 1.0) < 5e-3))
    print("KERNEL_OK")
</pallas_src>

<mosaic_0001>
module attributes {stable_mosaic.version = 11 : i64} {
  func.func @_conv_relu_pool_kernel(%arg0: i32, %arg1: memref<1x12x12x128xf32, #tpu.memory_space<vmem>>, %arg2: memref<25x128x128xbf16, #tpu.memory_space<vmem>>, %arg3: memref<1x128xf32, #tpu.memory_space<vmem>>, %arg4: memref<1x4x4x128xf32, #tpu.memory_space<vmem>>, %arg5: memref<64x128xf32, #tpu.memory_space<vmem>>) attributes {dimension_semantics = [#tpu.dimension_semantics<parallel>], iteration_bounds = array<i64: 2>, scalar_prefetch = 0 : i64, scratch_operands = 1 : i64, tpu.core_type = #tpu.core_type<tc>, window_params = [{transform_indices = @transform_0, window_bounds = array<i64: 1, 12, 12, 128>}, {pipeline_mode = #tpu.pipeline_mode<synchronous>, transform_indices = @transform_1, window_bounds = array<i64: 25, 128, 128>}, {pipeline_mode = #tpu.pipeline_mode<synchronous>, transform_indices = @transform_2, window_bounds = array<i64: 1, 128>}, {transform_indices = @transform_3, window_bounds = array<i64: 1, 4, 4, 128>}]} {
    %c0 = arith.constant 0 : index
    %c0_0 = arith.constant 0 : index
    %c0_1 = arith.constant 0 : index
    %c0_2 = arith.constant 0 : index
    %0 = vector.load %arg1[%c0, %c0_0, %c0_1, %c0_2] : memref<1x12x12x128xf32, #tpu.memory_space<vmem>>, vector<1x8x8x128xf32>
    %1 = vector.shape_cast %0 : vector<1x8x8x128xf32> to vector<8x8x128xf32>
    %2 = vector.shape_cast %1 : vector<8x8x128xf32> to vector<64x128xf32>
    %3 = arith.truncf %2 : vector<64x128xf32> to vector<64x128xbf16>
    %c0_3 = arith.constant 0 : index
    %c0_4 = arith.constant 0 : index
    %c0_5 = arith.constant 0 : index
    %4 = vector.load %arg2[%c0_3, %c0_4, %c0_5] : memref<25x128x128xbf16, #tpu.memory_space<vmem>>, vector<1x128x128xbf16>
    %5 = vector.shape_cast %4 : vector<1x128x128xbf16> to vector<128x128xbf16>
    %cst = arith.constant dense<0.000000e+00> : vector<64x128xf32>
    %6 = tpu.matmul %3, %5, %cst {dimension_numbers = #tpu.dot_dimension_numbers<[1], [0], [0], [1], [0, 0, 1, 1], [], []>} : vector<64x128xbf16>, vector<128x128xbf16>, vector<64x128xf32> -> vector<64x128xf32>
    %c0_6 = arith.constant 0 : index
    %c0_7 = arith.constant 0 : index
    %7 = vector.load %arg5[%c0_6, %c0_7] : memref<64x128xf32, #tpu.memory_space<vmem>>, vector<64x128xf32>
    tpu.vector_store %arg5[%c0_6, %c0_7], %6 {strides = array<i32>} : memref<64x128xf32, #tpu.memory_space<vmem>>, vector<64x128xf32>,
    %c0_8 = arith.constant 0 : index
    %c0_9 = arith.constant 0 : index
    %c1 = arith.constant 1 : index
    %c0_10 = arith.constant 0 : index
    %8 = vector.load %arg1[%c0_8, %c0_9, %c1, %c0_10] : memref<1x12x12x128xf32, #tpu.memory_space<vmem>>, vector<1x8x8x128xf32>
    %9 = vector.shape_cast %8 : vector<1x8x8x128xf32> to vector<8x8x128xf32>
    %10 = vector.shape_cast %9 : vector<8x8x128xf32> to vector<64x128xf32>
    %11 = arith.truncf %10 : vector<64x128xf32> to vector<64x128xbf16>
    %c1_11 = arith.constant 1 : index
    %c0_12 = arith.constant 0 : index
    %c0_13 = arith.constant 0 : index
    %12 = vector.load %arg2[%c1_11, %c0_12, %c0_13] : memref<25x128x128xbf16, #tpu.memory_space<vmem>>, vector<1x128x128xbf16>
    %13 = vector.shape_cast %12 : vector<1x128x128xbf16> to vector<128x128xbf16>
    %cst_14 = arith.constant dense<0.000000e+00> : vector<64x128xf32>
    %14 = tpu.matmul %11, %13, %cst_14 {dimension_numbers = #tpu.dot_dimension_numbers<[1], [0], [0], [1], [0, 0, 1, 1], [], []>} : vector<64x128xbf16>, vector<128x128xbf16>, vector<64x128xf32> -> vector<64x128xf32>
    %c0_15 = arith.constant 0 : index
    %c0_16 = arith.constant 0 : index
    %15 = vector.load %arg5[%c0_15, %c0_16] : memref<64x128xf32, #tpu.memory_space<vmem>>, vector<64x128xf32>
    %16 = arith.addf %15, %14 : vector<64x128xf32>
    %c0_17 = arith.constant 0 : index
    %c0_18 = arith.constant 0 : index
    %17 = vector.load %arg5[%c0_17, %c0_18] : memref<64x128xf32, #tpu.memory_space<vmem>>, vector<64x128xf32>
    tpu.vector_store %arg5[%c0_17, %c0_18], %16 {strides = array<i32>} : memref<64x128xf32, #tpu.memory_space<vmem>>, vector<64x128xf32>,
    %c0_19 = arith.constant 0 : index
    %c0_20 = arith.constant 0 : index
    %c2 = arith.constant 2 : index
    %c0_21 = arith.constant 0 : index
    %18 = vector.load %arg1[%c0_19, %c0_20, %c2, %c0_21] : memref<1x12x12x128xf32, #tpu.memory_space<vmem>>, vector<1x8x8x128xf32>
    %19 = vector.shape_cast %18 : vector<1x8x8x128xf32> to vector<8x8x128xf32>
    %20 = vector.shape_cast %19 : vector<8x8x128xf32> to vector<64x128xf32>
    %21 = arith.truncf %20 : vector<64x128xf32> to vector<64x128xbf16>
    %c2_22 = arith.constant 2 : index
    %c0_23 = arith.constant 0 : index
    %c0_24 = arith.constant 0 : index
    %22 = vector.load %arg2[%c2_22, %c0_23, %c0_24] : memref<25x128x128xbf16, #tpu.memory_space<vmem>>, vector<1x128x128xbf16>
    %23 = vector.shape_cast %22 : vector<1x128x128xbf16> to vector<128x128xbf16>
    %cst_25 = arith.constant dense<0.000000e+00> : vector<64x128xf32>
    %24 = tpu.matmul %21, %23, %cst_25 {dimension_numbers = #tpu.dot_dimension_numbers<[1], [0], [0], [1], [0, 0, 1, 1], [], []>} : vector<64x128xbf16>, vector<128x128xbf16>, vector<64x128xf32> -> vector<64x128xf32>
    %c0_26 = arith.constant 0 : index
    %c0_27 = arith.constant 0 : index
    %25 = vector.load %arg5[%c0_26, %c0_27] : memref<64x128xf32, #tpu.memory_space<vmem>>, vector<64x128xf32>
    %26 = arith.addf %25, %24 : vector<64x128xf32>
    %c0_28 = arith.constant 0 : index
    %c0_29 = arith.constant 0 : index
    %27 = vector.load %arg5[%c0_28, %c0_29] : memref<64x128xf32, #tpu.memory_space<vmem>>, vector<64x128xf32>
    tpu.vector_store %arg5[%c0_28, %c0_29], %26 {strides = array<i32>} : memref<64x128xf32, #tpu.memory_space<vmem>>, vector<64x128xf32>,
    %c0_30 = arith.constant 0 : index
    %c0_31 = arith.constant 0 : index
    %c3 = arith.constant 3 : index
    %c0_32 = arith.constant 0 : index
    %28 = vector.load %arg1[%c0_30, %c0_31, %c3, %c0_32] : memref<1x12x12x128xf32, #tpu.memory_space<vmem>>, vector<1x8x8x128xf32>
    %29 = vector.shape_cast %28 : vector<1x8x8x128xf32> to vector<8x8x128xf32>
    %30 = vector.shape_cast %29 : vector<8x8x128xf32> to vector<64x128xf32>
    %31 = arith.truncf %30 : vector<64x128xf32> to vector<64x128xbf16>
    %c3_33 = arith.constant 3 : index
    %c0_34 = arith.constant 0 : index
    %c0_35 = arith.constant 0 : index
    %32 = vector.load %arg2[%c3_33, %c0_34, %c0_35] : memref<25x128x128xbf16, #tpu.memory_space<vmem>>, vector<1x128x128xbf16>
    %33 = vector.shape_cast %32 : vector<1x128x128xbf16> to vector<128x128xbf16>
    %cst_36 = arith.constant dense<0.000000e+00> : vector<64x128xf32>
    %34 = tpu.matmul %31, %33, %cst_36 {dimension_numbers = #tpu.dot_dimension_numbers<[1], [0], [0], [1], [0, 0, 1, 1], [], []>} : vector<64x128xbf16>, vector<128x128xbf16>, vector<64x128xf32> -> vector<64x128xf32>
    %c0_37 = arith.constant 0 : index
    %c0_38 = arith.constant 0 : index
    %35 = vector.load %arg5[%c0_37, %c0_38] : memref<64x128xf32, #tpu.memory_space<vmem>>, vector<64x128xf32>
    %36 = arith.addf %35, %34 : vector<64x128xf32>
    %c0_39 = arith.constant 0 : index
    %c0_40 = arith.constant 0 : index
    %37 = vector.load %arg5[%c0_39, %c0_40] : memref<64x128xf32, #tpu.memory_space<vmem>>, vector<64x128xf32>
    tpu.vector_store %arg5[%c0_39, %c0_40], %36 {strides = array<i32>} : memref<64x128xf32, #tpu.memory_space<vmem>>, vector<64x128xf32>,
    %c0_41 = arith.constant 0 : index
    %c0_42 = arith.constant 0 : index
    %c4 = arith.constant 4 : index
    %c0_43 = arith.constant 0 : index
    %38 = vector.load %arg1[%c0_41, %c0_42, %c4, %c0_43] : memref<1x12x12x128xf32, #tpu.memory_space<vmem>>, vector<1x8x8x128xf32>
    %39 = vector.shape_cast %38 : vector<1x8x8x128xf32> to vector<8x8x128xf32>
    %40 = vector.shape_cast %39 : vector<8x8x128xf32> to vector<64x128xf32>
    %41 = arith.truncf %40 : vector<64x128xf32> to vector<64x128xbf16>
    %c4_44 = arith.constant 4 : index
    %c0_45 = arith.constant 0 : index
    %c0_46 = arith.constant 0 : index
    %42 = vector.load %arg2[%c4_44, %c0_45, %c0_46] : memref<25x128x128xbf16, #tpu.memory_space<vmem>>, vector<1x128x128xbf16>
    %43 = vector.shape_cast %42 : vector<1x128x128xbf16> to vector<128x128xbf16>
    %cst_47 = arith.constant dense<0.000000e+00> : vector<64x128xf32>
    %44 = tpu.matmul %41, %43, %cst_47 {dimension_numbers = #tpu.dot_dimension_numbers<[1], [0], [0], [1], [0, 0, 1, 1], [], []>} : vector<64x128xbf16>, vector<128x128xbf16>, vector<64x128xf32> -> vector<64x128xf32>
    %c0_48 = arith.constant 0 : index
    %c0_49 = arith.constant 0 : index
    %45 = vector.load %arg5[%c0_48, %c0_49] : memref<64x128xf32, #tpu.memory_space<vmem>>, vector<64x128xf32>
    %46 = arith.addf %45, %44 : vector<64x128xf32>
    %c0_50 = arith.constant 0 : index
    %c0_51 = arith.constant 0 : index
    %47 = vector.load %arg5[%c0_50, %c0_51] : memref<64x128xf32, #tpu.memory_space<vmem>>, vector<64x128xf32>
    tpu.vector_store %arg5[%c0_50, %c0_51], %46 {strides = array<i32>} : memref<64x128xf32, #tpu.memory_space<vmem>>, vector<64x128xf32>,
    %c0_52 = arith.constant 0 : index
    %c1_53 = arith.constant 1 : index
    %c0_54 = arith.constant 0 : index
    %c0_55 = arith.constant 0 : index
    %48 = vector.load %arg1[%c0_52, %c1_53, %c0_54, %c0_55] : memref<1x12x12x128xf32, #tpu.memory_space<vmem>>, vector<1x8x8x128xf32>
    %49 = vector.shape_cast %48 : vector<1x8x8x128xf32> to vector<8x8x128xf32>
    %50 = vector.shape_cast %49 : vector<8x8x128xf32> to vector<64x128xf32>
    %51 = arith.truncf %50 : vector<64x128xf32> to vector<64x128xbf16>
    %c5 = arith.constant 5 : index
    %c0_56 = arith.constant 0 : index
    %c0_57 = arith.constant 0 : index
    %52 = vector.load %arg2[%c5, %c0_56, %c0_57] : memref<25x128x128xbf16, #tpu.memory_space<vmem>>, vector<1x128x128xbf16>
    %53 = vector.shape_cast %52 : vector<1x128x128xbf16> to vector<128x128xbf16>
    %cst_58 = arith.constant dense<0.000000e+00> : vector<64x128xf32>
    %54 = tpu.matmul %51, %53, %cst_58 {dimension_numbers = #tpu.dot_dimension_numbers<[1], [0], [0], [1], [0, 0, 1, 1], [], []>} : vector<64x128xbf16>, vector<128x128xbf16>, vector<64x128xf32> -> vector<64x128xf32>
    %c0_59 = arith.constant 0 : index
    %c0_60 = arith.constant 0 : index
    %55 = vector.load %arg5[%c0_59, %c0_60] : memref<64x128xf32, #tpu.memory_space<vmem>>, vector<64x128xf32>
    %56 = arith.addf %55, %54 : vector<64x128xf32>
    %c0_61 = arith.constant 0 : index
    %c0_62 = arith.constant 0 : index
    %57 = vector.load %arg5[%c0_61, %c0_62] : memref<64x128xf32, #tpu.memory_space<vmem>>, vector<64x128xf32>
    tpu.vector_store %arg5[%c0_61, %c0_62], %56 {strides = array<i32>} : memref<64x128xf32, #tpu.memory_space<vmem>>, vector<64x128xf32>,
    %c0_63 = arith.constant 0 : index
    %c1_64 = arith.constant 1 : index
    %c1_65 = arith.constant 1 : index
    %c0_66 = arith.constant 0 : index
    %58 = vector.load %arg1[%c0_63, %c1_64, %c1_65, %c0_66] : memref<1x12x12x128xf32, #tpu.memory_space<vmem>>, vector<1x8x8x128xf32>
    %59 = vector.shape_cast %58 : vector<1x8x8x128xf32> to vector<8x8x128xf32>
    %60 = vector.shape_cast %59 : vector<8x8x128xf32> to vector<64x128xf32>
    %61 = arith.truncf %60 : vector<64x128xf32> to vector<64x128xbf16>
    %c6 = arith.constant 6 : index
    %c0_67 = arith.constant 0 : index
    %c0_68 = arith.constant 0 : index
    %62 = vector.load %arg2[%c6, %c0_67, %c0_68] : memref<25x128x128xbf16, #tpu.memory_space<vmem>>, vector<1x128x128xbf16>
    %63 = vector.shape_cast %62 : vector<1x128x128xbf16> to vector<128x128xbf16>
    %cst_69 = arith.constant dense<0.000000e+00> : vector<64x128xf32>
    %64 = tpu.matmul %61, %63, %cst_69 {dimension_numbers = #tpu.dot_dimension_numbers<[1], [0], [0], [1], [0, 0, 1, 1], [], []>} : vector<64x128xbf16>, vector<128x128xbf16>, vector<64x128xf32> -> vector<64x128xf32>
    %c0_70 = arith.constant 0 : index
    %c0_71 = arith.constant 0 : index
    %65 = vector.load %arg5[%c0_70, %c0_71] : memref<64x128xf32, #tpu.memory_space<vmem>>, vector<64x128xf32>
    %66 = arith.addf %65, %64 : vector<64x128xf32>
    %c0_72 = arith.constant 0 : index
    %c0_73 = arith.constant 0 : index
    %67 = vector.load %arg5[%c0_72, %c0_73] : memref<64x128xf32, #tpu.memory_space<vmem>>, vector<64x128xf32>
    tpu.vector_store %arg5[%c0_72, %c0_73], %66 {strides = array<i32>} : memref<64x128xf32, #tpu.memory_space<vmem>>, vector<64x128xf32>,
    %c0_74 = arith.constant 0 : index
    %c1_75 = arith.constant 1 : index
    %c2_76 = arith.constant 2 : index
    %c0_77 = arith.constant 0 : index
    %68 = vector.load %arg1[%c0_74, %c1_75, %c2_76, %c0_77] : memref<1x12x12x128xf32, #tpu.memory_space<vmem>>, vector<1x8x8x128xf32>
    %69 = vector.shape_cast %68 : vector<1x8x8x128xf32> to vector<8x8x128xf32>
    %70 = vector.shape_cast %69 : vector<8x8x128xf32> to vector<64x128xf32>
    %71 = arith.truncf %70 : vector<64x128xf32> to vector<64x128xbf16>
    %c7 = arith.constant 7 : index
    %c0_78 = arith.constant 0 : index
    %c0_79 = arith.constant 0 : index
    %72 = vector.load %arg2[%c7, %c0_78, %c0_79] : memref<25x128x128xbf16, #tpu.memory_space<vmem>>, vector<1x128x128xbf16>
    %73 = vector.shape_cast %72 : vector<1x128x128xbf16> to vector<128x128xbf16>
    %cst_80 = arith.constant dense<0.000000e+00> : vector<64x128xf32>
    %74 = tpu.matmul %71, %73, %cst_80 {dimension_numbers = #tpu.dot_dimension_numbers<[1], [0], [0], [1], [0, 0, 1, 1], [], []>} : vector<64x128xbf16>, vector<128x128xbf16>, vector<64x128xf32> -> vector<64x128xf32>
    %c0_81 = arith.constant 0 : index
    %c0_82 = arith.constant 0 : index
    %75 = vector.load %arg5[%c0_81, %c0_82] : memref<64x128xf32, #tpu.memory_space<vmem>>, vector<64x128xf32>
    %76 = arith.addf %75, %74 : vector<64x128xf32>
    %c0_83 = arith.constant 0 : index
    %c0_84 = arith.constant 0 : index
    %77 = vector.load %arg5[%c0_83, %c0_84] : memref<64x128xf32, #tpu.memory_space<vmem>>, vector<64x128xf32>
    tpu.vector_store %arg5[%c0_83, %c0_84], %76 {strides = array<i32>} : memref<64x128xf32, #tpu.memory_space<vmem>>, vector<64x128xf32>,
    %c0_85 = arith.constant 0 : index
    %c1_86 = arith.constant 1 : index
    %c3_87 = arith.constant 3 : index
    %c0_88 = arith.constant 0 : index
    %78 = vector.load %arg1[%c0_85, %c1_86, %c3_87, %c0_88] : memref<1x12x12x128xf32, #tpu.memory_space<vmem>>, vector<1x8x8x128xf32>
    %79 = vector.shape_cast %78 : vector<1x8x8x128xf32> to vector<8x8x128xf32>
    %80 = vector.shape_cast %79 : vector<8x8x128xf32> to vector<64x128xf32>
    %81 = arith.truncf %80 : vector<64x128xf32> to vector<64x128xbf16>
    %c8 = arith.constant 8 : index
    %c0_89 = arith.constant 0 : index
    %c0_90 = arith.constant 0 : index
    %82 = vector.load %arg2[%c8, %c0_89, %c0_90] : memref<25x128x128xbf16, #tpu.memory_space<vmem>>, vector<1x128x128xbf16>
    %83 = vector.shape_cast %82 : vector<1x128x128xbf16> to vector<128x128xbf16>
    %cst_91 = arith.constant dense<0.000000e+00> : vector<64x128xf32>
    %84 = tpu.matmul %81, %83, %cst_91 {dimension_numbers = #tpu.dot_dimension_numbers<[1], [0], [0], [1], [0, 0, 1, 1], [], []>} : vector<64x128xbf16>, vector<128x128xbf16>, vector<64x128xf32> -> vector<64x128xf32>
    %c0_92 = arith.constant 0 : index
    %c0_93 = arith.constant 0 : index
    %85 = vector.load %arg5[%c0_92, %c0_93] : memref<64x128xf32, #tpu.memory_space<vmem>>, vector<64x128xf32>
    %86 = arith.addf %85, %84 : vector<64x128xf32>
    %c0_94 = arith.constant 0 : index
    %c0_95 = arith.constant 0 : index
    %87 = vector.load %arg5[%c0_94, %c0_95] : memref<64x128xf32, #tpu.memory_space<vmem>>, vector<64x128xf32>
    tpu.vector_store %arg5[%c0_94, %c0_95], %86 {strides = array<i32>} : memref<64x128xf32, #tpu.memory_space<vmem>>, vector<64x128xf32>,
    %c0_96 = arith.constant 0 : index
    %c1_97 = arith.constant 1 : index
    %c4_98 = arith.constant 4 : index
    %c0_99 = arith.constant 0 : index
    %88 = vector.load %arg1[%c0_96, %c1_97, %c4_98, %c0_99] : memref<1x12x12x128xf32, #tpu.memory_space<vmem>>, vector<1x8x8x128xf32>
    %89 = vector.shape_cast %88 : vector<1x8x8x128xf32> to vector<8x8x128xf32>
    %90 = vector.shape_cast %89 : vector<8x8x128xf32> to vector<64x128xf32>
    %91 = arith.truncf %90 : vector<64x128xf32> to vector<64x128xbf16>
    %c9 = arith.constant 9 : index
    %c0_100 = arith.constant 0 : index
    %c0_101 = arith.constant 0 : index
    %92 = vector.load %arg2[%c9, %c0_100, %c0_101] : memref<25x128x128xbf16, #tpu.memory_space<vmem>>, vector<1x128x128xbf16>
    %93 = vector.shape_cast %92 : vector<1x128x128xbf16> to vector<128x128xbf16>
    %cst_102 = arith.constant dense<0.000000e+00> : vector<64x128xf32>
    %94 = tpu.matmul %91, %93, %cst_102 {dimension_numbers = #tpu.dot_dimension_numbers<[1], [0], [0], [1], [0, 0, 1, 1], [], []>} : vector<64x128xbf16>, vector<128x128xbf16>, vector<64x128xf32> -> vector<64x128xf32>
    %c0_103 = arith.constant 0 : index
    %c0_104 = arith.constant 0 : index
    %95 = vector.load %arg5[%c0_103, %c0_104] : memref<64x128xf32, #tpu.memory_space<vmem>>, vector<64x128xf32>
    %96 = arith.addf %95, %94 : vector<64x128xf32>
    %c0_105 = arith.constant 0 : index
    %c0_106 = arith.constant 0 : index
    %97 = vector.load %arg5[%c0_105, %c0_106] : memref<64x128xf32, #tpu.memory_space<vmem>>, vector<64x128xf32>
    tpu.vector_store %arg5[%c0_105, %c0_106], %96 {strides = array<i32>} : memref<64x128xf32, #tpu.memory_space<vmem>>, vector<64x128xf32>,
    %c0_107 = arith.constant 0 : index
    %c2_108 = arith.constant 2 : index
    %c0_109 = arith.constant 0 : index
    %c0_110 = arith.constant 0 : index
    %98 = vector.load %arg1[%c0_107, %c2_108, %c0_109, %c0_110] : memref<1x12x12x128xf32, #tpu.memory_space<vmem>>, vector<1x8x8x128xf32>
    %99 = vector.shape_cast %98 : vector<1x8x8x128xf32> to vector<8x8x128xf32>
    %100 = vector.shape_cast %99 : vector<8x8x128xf32> to vector<64x128xf32>
    %101 = arith.truncf %100 : vector<64x128xf32> to vector<64x128xbf16>
    %c10 = arith.constant 10 : index
    %c0_111 = arith.constant 0 : index
    %c0_112 = arith.constant 0 : index
    %102 = vector.load %arg2[%c10, %c0_111, %c0_112] : memref<25x128x128xbf16, #tpu.memory_space<vmem>>, vector<1x128x128xbf16>
    %103 = vector.shape_cast %102 : vector<1x128x128xbf16> to vector<128x128xbf16>
    %cst_113 = arith.constant dense<0.000000e+00> : vector<64x128xf32>
    %104 = tpu.matmul %101, %103, %cst_113 {dimension_numbers = #tpu.dot_dimension_numbers<[1], [0], [0], [1], [0, 0, 1, 1], [], []>} : vector<64x128xbf16>, vector<128x128xbf16>, vector<64x128xf32> -> vector<64x128xf32>
    %c0_114 = arith.constant 0 : index
    %c0_115 = arith.constant 0 : index
    %105 = vector.load %arg5[%c0_114, %c0_115] : memref<64x128xf32, #tpu.memory_space<vmem>>, vector<64x128xf32>
    %106 = arith.addf %105, %104 : vector<64x128xf32>
    %c0_116 = arith.constant 0 : index
    %c0_117 = arith.constant 0 : index
    %107 = vector.load %arg5[%c0_116, %c0_117] : memref<64x128xf32, #tpu.memory_space<vmem>>, vector<64x128xf32>
    tpu.vector_store %arg5[%c0_116, %c0_117], %106 {strides = array<i32>} : memref<64x128xf32, #tpu.memory_space<vmem>>, vector<64x128xf32>,
    %c0_118 = arith.constant 0 : index
    %c2_119 = arith.constant 2 : index
    %c1_120 = arith.constant 1 : index
    %c0_121 = arith.constant 0 : index
    %108 = vector.load %arg1[%c0_118, %c2_119, %c1_120, %c0_121] : memref<1x12x12x128xf32, #tpu.memory_space<vmem>>, vector<1x8x8x128xf32>
    %109 = vector.shape_cast %108 : vector<1x8x8x128xf32> to vector<8x8x128xf32>
    %110 = vector.shape_cast %109 : vector<8x8x128xf32> to vector<64x128xf32>
    %111 = arith.truncf %110 : vector<64x128xf32> to vector<64x128xbf16>
    %c11 = arith.constant 11 : index
    %c0_122 = arith.constant 0 : index
    %c0_123 = arith.constant 0 : index
    %112 = vector.load %arg2[%c11, %c0_122, %c0_123] : memref<25x128x128xbf16, #tpu.memory_space<vmem>>, vector<1x128x128xbf16>
    %113 = vector.shape_cast %112 : vector<1x128x128xbf16> to vector<128x128xbf16>
    %cst_124 = arith.constant dense<0.000000e+00> : vector<64x128xf32>
    %114 = tpu.matmul %111, %113, %cst_124 {dimension_numbers = #tpu.dot_dimension_numbers<[1], [0], [0], [1], [0, 0, 1, 1], [], []>} : vector<64x128xbf16>, vector<128x128xbf16>, vector<64x128xf32> -> vector<64x128xf32>
    %c0_125 = arith.constant 0 : index
    %c0_126 = arith.constant 0 : index
    %115 = vector.load %arg5[%c0_125, %c0_126] : memref<64x128xf32, #tpu.memory_space<vmem>>, vector<64x128xf32>
    %116 = arith.addf %115, %114 : vector<64x128xf32>
    %c0_127 = arith.constant 0 : index
    %c0_128 = arith.constant 0 : index
    %117 = vector.load %arg5[%c0_127, %c0_128] : memref<64x128xf32, #tpu.memory_space<vmem>>, vector<64x128xf32>
    tpu.vector_store %arg5[%c0_127, %c0_128], %116 {strides = array<i32>} : memref<64x128xf32, #tpu.memory_space<vmem>>, vector<64x128xf32>,
    %c0_129 = arith.constant 0 : index
    %c2_130 = arith.constant 2 : index
    %c2_131 = arith.constant 2 : index
    %c0_132 = arith.constant 0 : index
    %118 = vector.load %arg1[%c0_129, %c2_130, %c2_131, %c0_132] : memref<1x12x12x128xf32, #tpu.memory_space<vmem>>, vector<1x8x8x128xf32>
    %119 = vector.shape_cast %118 : vector<1x8x8x128xf32> to vector<8x8x128xf32>
    %120 = vector.shape_cast %119 : vector<8x8x128xf32> to vector<64x128xf32>
    %121 = arith.truncf %120 : vector<64x128xf32> to vector<64x128xbf16>
    %c12 = arith.constant 12 : index
    %c0_133 = arith.constant 0 : index
    %c0_134 = arith.constant 0 : index
    %122 = vector.load %arg2[%c12, %c0_133, %c0_134] : memref<25x128x128xbf16, #tpu.memory_space<vmem>>, vector<1x128x128xbf16>
    %123 = vector.shape_cast %122 : vector<1x128x128xbf16> to vector<128x128xbf16>
    %cst_135 = arith.constant dense<0.000000e+00> : vector<64x128xf32>
    %124 = tpu.matmul %121, %123, %cst_135 {dimension_numbers = #tpu.dot_dimension_numbers<[1], [0], [0], [1], [0, 0, 1, 1], [], []>} : vector<64x128xbf16>, vector<128x128xbf16>, vector<64x128xf32> -> vector<64x128xf32>
    %c0_136 = arith.constant 0 : index
    %c0_137 = arith.constant 0 : index
    %125 = vector.load %arg5[%c0_136, %c0_137] : memref<64x128xf32, #tpu.memory_space<vmem>>, vector<64x128xf32>
    %126 = arith.addf %125, %124 : vector<64x128xf32>
    %c0_138 = arith.constant 0 : index
    %c0_139 = arith.constant 0 : index
    %127 = vector.load %arg5[%c0_138, %c0_139] : memref<64x128xf32, #tpu.memory_space<vmem>>, vector<64x128xf32>
    tpu.vector_store %arg5[%c0_138, %c0_139], %126 {strides = array<i32>} : memref<64x128xf32, #tpu.memory_space<vmem>>, vector<64x128xf32>,
    %c0_140 = arith.constant 0 : index
    %c2_141 = arith.constant 2 : index
    %c3_142 = arith.constant 3 : index
    %c0_143 = arith.constant 0 : index
    %128 = vector.load %arg1[%c0_140, %c2_141, %c3_142, %c0_143] : memref<1x12x12x128xf32, #tpu.memory_space<vmem>>, vector<1x8x8x128xf32>
    %129 = vector.shape_cast %128 : vector<1x8x8x128xf32> to vector<8x8x128xf32>
    %130 = vector.shape_cast %129 : vector<8x8x128xf32> to vector<64x128xf32>
    %131 = arith.truncf %130 : vector<64x128xf32> to vector<64x128xbf16>
    %c13 = arith.constant 13 : index
    %c0_144 = arith.constant 0 : index
    %c0_145 = arith.constant 0 : index
    %132 = vector.load %arg2[%c13, %c0_144, %c0_145] : memref<25x128x128xbf16, #tpu.memory_space<vmem>>, vector<1x128x128xbf16>
    %133 = vector.shape_cast %132 : vector<1x128x128xbf16> to vector<128x128xbf16>
    %cst_146 = arith.constant dense<0.000000e+00> : vector<64x128xf32>
    %134 = tpu.matmul %131, %133, %cst_146 {dimension_numbers = #tpu.dot_dimension_numbers<[1], [0], [0], [1], [0, 0, 1, 1], [], []>} : vector<64x128xbf16>, vector<128x128xbf16>, vector<64x128xf32> -> vector<64x128xf32>
    %c0_147 = arith.constant 0 : index
    %c0_148 = arith.constant 0 : index
    %135 = vector.load %arg5[%c0_147, %c0_148] : memref<64x128xf32, #tpu.memory_space<vmem>>, vector<64x128xf32>
    %136 = arith.addf %135, %134 : vector<64x128xf32>
    %c0_149 = arith.constant 0 : index
    %c0_150 = arith.constant 0 : index
    %137 = vector.load %arg5[%c0_149, %c0_150] : memref<64x128xf32, #tpu.memory_space<vmem>>, vector<64x128xf32>
    tpu.vector_store %arg5[%c0_149, %c0_150], %136 {strides = array<i32>} : memref<64x128xf32, #tpu.memory_space<vmem>>, vector<64x128xf32>,
    %c0_151 = arith.constant 0 : index
    %c2_152 = arith.constant 2 : index
    %c4_153 = arith.constant 4 : index
    %c0_154 = arith.constant 0 : index
    %138 = vector.load %arg1[%c0_151, %c2_152, %c4_153, %c0_154] : memref<1x12x12x128xf32, #tpu.memory_space<vmem>>, vector<1x8x8x128xf32>
    %139 = vector.shape_cast %138 : vector<1x8x8x128xf32> to vector<8x8x128xf32>
    %140 = vector.shape_cast %139 : vector<8x8x128xf32> to vector<64x128xf32>
    %141 = arith.truncf %140 : vector<64x128xf32> to vector<64x128xbf16>
    %c14 = arith.constant 14 : index
    %c0_155 = arith.constant 0 : index
    %c0_156 = arith.constant 0 : index
    %142 = vector.load %arg2[%c14, %c0_155, %c0_156] : memref<25x128x128xbf16, #tpu.memory_space<vmem>>, vector<1x128x128xbf16>
    %143 = vector.shape_cast %142 : vector<1x128x128xbf16> to vector<128x128xbf16>
    %cst_157 = arith.constant dense<0.000000e+00> : vector<64x128xf32>
    %144 = tpu.matmul %141, %143, %cst_157 {dimension_numbers = #tpu.dot_dimension_numbers<[1], [0], [0], [1], [0, 0, 1, 1], [], []>} : vector<64x128xbf16>, vector<128x128xbf16>, vector<64x128xf32> -> vector<64x128xf32>
    %c0_158 = arith.constant 0 : index
    %c0_159 = arith.constant 0 : index
    %145 = vector.load %arg5[%c0_158, %c0_159] : memref<64x128xf32, #tpu.memory_space<vmem>>, vector<64x128xf32>
    %146 = arith.addf %145, %144 : vector<64x128xf32>
    %c0_160 = arith.constant 0 : index
    %c0_161 = arith.constant 0 : index
    %147 = vector.load %arg5[%c0_160, %c0_161] : memref<64x128xf32, #tpu.memory_space<vmem>>, vector<64x128xf32>
    tpu.vector_store %arg5[%c0_160, %c0_161], %146 {strides = array<i32>} : memref<64x128xf32, #tpu.memory_space<vmem>>, vector<64x128xf32>,
    %c0_162 = arith.constant 0 : index
    %c3_163 = arith.constant 3 : index
    %c0_164 = arith.constant 0 : index
    %c0_165 = arith.constant 0 : index
    %148 = vector.load %arg1[%c0_162, %c3_163, %c0_164, %c0_165] : memref<1x12x12x128xf32, #tpu.memory_space<vmem>>, vector<1x8x8x128xf32>
    %149 = vector.shape_cast %148 : vector<1x8x8x128xf32> to vector<8x8x128xf32>
    %150 = vector.shape_cast %149 : vector<8x8x128xf32> to vector<64x128xf32>
    %151 = arith.truncf %150 : vector<64x128xf32> to vector<64x128xbf16>
    %c15 = arith.constant 15 : index
    %c0_166 = arith.constant 0 : index
    %c0_167 = arith.constant 0 : index
    %152 = vector.load %arg2[%c15, %c0_166, %c0_167] : memref<25x128x128xbf16, #tpu.memory_space<vmem>>, vector<1x128x128xbf16>
    %153 = vector.shape_cast %152 : vector<1x128x128xbf16> to vector<128x128xbf16>
    %cst_168 = arith.constant dense<0.000000e+00> : vector<64x128xf32>
    %154 = tpu.matmul %151, %153, %cst_168 {dimension_numbers = #tpu.dot_dimension_numbers<[1], [0], [0], [1], [0, 0, 1, 1], [], []>} : vector<64x128xbf16>, vector<128x128xbf16>, vector<64x128xf32> -> vector<64x128xf32>
    %c0_169 = arith.constant 0 : index
    %c0_170 = arith.constant 0 : index
    %155 = vector.load %arg5[%c0_169, %c0_170] : memref<64x128xf32, #tpu.memory_space<vmem>>, vector<64x128xf32>
    %156 = arith.addf %155, %154 : vector<64x128xf32>
    %c0_171 = arith.constant 0 : index
    %c0_172 = arith.constant 0 : index
    %157 = vector.load %arg5[%c0_171, %c0_172] : memref<64x128xf32, #tpu.memory_space<vmem>>, vector<64x128xf32>
    tpu.vector_store %arg5[%c0_171, %c0_172], %156 {strides = array<i32>} : memref<64x128xf32, #tpu.memory_space<vmem>>, vector<64x128xf32>,
    %c0_173 = arith.constant 0 : index
    %c3_174 = arith.constant 3 : index
    %c1_175 = arith.constant 1 : index
    %c0_176 = arith.constant 0 : index
    %158 = vector.load %arg1[%c0_173, %c3_174, %c1_175, %c0_176] : memref<1x12x12x128xf32, #tpu.memory_space<vmem>>, vector<1x8x8x128xf32>
    %159 = vector.shape_cast %158 : vector<1x8x8x128xf32> to vector<8x8x128xf32>
    %160 = vector.shape_cast %159 : vector<8x8x128xf32> to vector<64x128xf32>
    %161 = arith.truncf %160 : vector<64x128xf32> to vector<64x128xbf16>
    %c16 = arith.constant 16 : index
    %c0_177 = arith.constant 0 : index
    %c0_178 = arith.constant 0 : index
    %162 = vector.load %arg2[%c16, %c0_177, %c0_178] : memref<25x128x128xbf16, #tpu.memory_space<vmem>>, vector<1x128x128xbf16>
    %163 = vector.shape_cast %162 : vector<1x128x128xbf16> to vector<128x128xbf16>
    %cst_179 = arith.constant dense<0.000000e+00> : vector<64x128xf32>
    %164 = tpu.matmul %161, %163, %cst_179 {dimension_numbers = #tpu.dot_dimension_numbers<[1], [0], [0], [1], [0, 0, 1, 1], [], []>} : vector<64x128xbf16>, vector<128x128xbf16>, vector<64x128xf32> -> vector<64x128xf32>
    %c0_180 = arith.constant 0 : index
    %c0_181 = arith.constant 0 : index
    %165 = vector.load %arg5[%c0_180, %c0_181] : memref<64x128xf32, #tpu.memory_space<vmem>>, vector<64x128xf32>
    %166 = arith.addf %165, %164 : vector<64x128xf32>
    %c0_182 = arith.constant 0 : index
    %c0_183 = arith.constant 0 : index
    %167 = vector.load %arg5[%c0_182, %c0_183] : memref<64x128xf32, #tpu.memory_space<vmem>>, vector<64x128xf32>
    tpu.vector_store %arg5[%c0_182, %c0_183], %166 {strides = array<i32>} : memref<64x128xf32, #tpu.memory_space<vmem>>, vector<64x128xf32>,
    %c0_184 = arith.constant 0 : index
    %c3_185 = arith.constant 3 : index
    %c2_186 = arith.constant 2 : index
    %c0_187 = arith.constant 0 : index
    %168 = vector.load %arg1[%c0_184, %c3_185, %c2_186, %c0_187] : memref<1x12x12x128xf32, #tpu.memory_space<vmem>>, vector<1x8x8x128xf32>
    %169 = vector.shape_cast %168 : vector<1x8x8x128xf32> to vector<8x8x128xf32>
    %170 = vector.shape_cast %169 : vector<8x8x128xf32> to vector<64x128xf32>
    %171 = arith.truncf %170 : vector<64x128xf32> to vector<64x128xbf16>
    %c17 = arith.constant 17 : index
    %c0_188 = arith.constant 0 : index
    %c0_189 = arith.constant 0 : index
    %172 = vector.load %arg2[%c17, %c0_188, %c0_189] : memref<25x128x128xbf16, #tpu.memory_space<vmem>>, vector<1x128x128xbf16>
    %173 = vector.shape_cast %172 : vector<1x128x128xbf16> to vector<128x128xbf16>
    %cst_190 = arith.constant dense<0.000000e+00> : vector<64x128xf32>
    %174 = tpu.matmul %171, %173, %cst_190 {dimension_numbers = #tpu.dot_dimension_numbers<[1], [0], [0], [1], [0, 0, 1, 1], [], []>} : vector<64x128xbf16>, vector<128x128xbf16>, vector<64x128xf32> -> vector<64x128xf32>
    %c0_191 = arith.constant 0 : index
    %c0_192 = arith.constant 0 : index
    %175 = vector.load %arg5[%c0_191, %c0_192] : memref<64x128xf32, #tpu.memory_space<vmem>>, vector<64x128xf32>
    %176 = arith.addf %175, %174 : vector<64x128xf32>
    %c0_193 = arith.constant 0 : index
    %c0_194 = arith.constant 0 : index
    %177 = vector.load %arg5[%c0_193, %c0_194] : memref<64x128xf32, #tpu.memory_space<vmem>>, vector<64x128xf32>
    tpu.vector_store %arg5[%c0_193, %c0_194], %176 {strides = array<i32>} : memref<64x128xf32, #tpu.memory_space<vmem>>, vector<64x128xf32>,
    %c0_195 = arith.constant 0 : index
    %c3_196 = arith.constant 3 : index
    %c3_197 = arith.constant 3 : index
    %c0_198 = arith.constant 0 : index
    %178 = vector.load %arg1[%c0_195, %c3_196, %c3_197, %c0_198] : memref<1x12x12x128xf32, #tpu.memory_space<vmem>>, vector<1x8x8x128xf32>
    %179 = vector.shape_cast %178 : vector<1x8x8x128xf32> to vector<8x8x128xf32>
    %180 = vector.shape_cast %179 : vector<8x8x128xf32> to vector<64x128xf32>
    %181 = arith.truncf %180 : vector<64x128xf32> to vector<64x128xbf16>
    %c18 = arith.constant 18 : index
    %c0_199 = arith.constant 0 : index
    %c0_200 = arith.constant 0 : index
    %182 = vector.load %arg2[%c18, %c0_199, %c0_200] : memref<25x128x128xbf16, #tpu.memory_space<vmem>>, vector<1x128x128xbf16>
    %183 = vector.shape_cast %182 : vector<1x128x128xbf16> to vector<128x128xbf16>
    %cst_201 = arith.constant dense<0.000000e+00> : vector<64x128xf32>
    %184 = tpu.matmul %181, %183, %cst_201 {dimension_numbers = #tpu.dot_dimension_numbers<[1], [0], [0], [1], [0, 0, 1, 1], [], []>} : vector<64x128xbf16>, vector<128x128xbf16>, vector<64x128xf32> -> vector<64x128xf32>
    %c0_202 = arith.constant 0 : index
    %c0_203 = arith.constant 0 : index
    %185 = vector.load %arg5[%c0_202, %c0_203] : memref<64x128xf32, #tpu.memory_space<vmem>>, vector<64x128xf32>
    %186 = arith.addf %185, %184 : vector<64x128xf32>
    %c0_204 = arith.constant 0 : index
    %c0_205 = arith.constant 0 : index
    %187 = vector.load %arg5[%c0_204, %c0_205] : memref<64x128xf32, #tpu.memory_space<vmem>>, vector<64x128xf32>
    tpu.vector_store %arg5[%c0_204, %c0_205], %186 {strides = array<i32>} : memref<64x128xf32, #tpu.memory_space<vmem>>, vector<64x128xf32>,
    %c0_206 = arith.constant 0 : index
    %c3_207 = arith.constant 3 : index
    %c4_208 = arith.constant 4 : index
    %c0_209 = arith.constant 0 : index
    %188 = vector.load %arg1[%c0_206, %c3_207, %c4_208, %c0_209] : memref<1x12x12x128xf32, #tpu.memory_space<vmem>>, vector<1x8x8x128xf32>
    %189 = vector.shape_cast %188 : vector<1x8x8x128xf32> to vector<8x8x128xf32>
    %190 = vector.shape_cast %189 : vector<8x8x128xf32> to vector<64x128xf32>
    %191 = arith.truncf %190 : vector<64x128xf32> to vector<64x128xbf16>
    %c19 = arith.constant 19 : index
    %c0_210 = arith.constant 0 : index
    %c0_211 = arith.constant 0 : index
    %192 = vector.load %arg2[%c19, %c0_210, %c0_211] : memref<25x128x128xbf16, #tpu.memory_space<vmem>>, vector<1x128x128xbf16>
    %193 = vector.shape_cast %192 : vector<1x128x128xbf16> to vector<128x128xbf16>
    %cst_212 = arith.constant dense<0.000000e+00> : vector<64x128xf32>
    %194 = tpu.matmul %191, %193, %cst_212 {dimension_numbers = #tpu.dot_dimension_numbers<[1], [0], [0], [1], [0, 0, 1, 1], [], []>} : vector<64x128xbf16>, vector<128x128xbf16>, vector<64x128xf32> -> vector<64x128xf32>
    %c0_213 = arith.constant 0 : index
    %c0_214 = arith.constant 0 : index
    %195 = vector.load %arg5[%c0_213, %c0_214] : memref<64x128xf32, #tpu.memory_space<vmem>>, vector<64x128xf32>
    %196 = arith.addf %195, %194 : vector<64x128xf32>
    %c0_215 = arith.constant 0 : index
    %c0_216 = arith.constant 0 : index
    %197 = vector.load %arg5[%c0_215, %c0_216] : memref<64x128xf32, #tpu.memory_space<vmem>>, vector<64x128xf32>
    tpu.vector_store %arg5[%c0_215, %c0_216], %196 {strides = array<i32>} : memref<64x128xf32, #tpu.memory_space<vmem>>, vector<64x128xf32>,
    %c0_217 = arith.constant 0 : index
    %c4_218 = arith.constant 4 : index
    %c0_219 = arith.constant 0 : index
    %c0_220 = arith.constant 0 : index
    %198 = vector.load %arg1[%c0_217, %c4_218, %c0_219, %c0_220] : memref<1x12x12x128xf32, #tpu.memory_space<vmem>>, vector<1x8x8x128xf32>
    %199 = vector.shape_cast %198 : vector<1x8x8x128xf32> to vector<8x8x128xf32>
    %200 = vector.shape_cast %199 : vector<8x8x128xf32> to vector<64x128xf32>
    %201 = arith.truncf %200 : vector<64x128xf32> to vector<64x128xbf16>
    %c20 = arith.constant 20 : index
    %c0_221 = arith.constant 0 : index
    %c0_222 = arith.constant 0 : index
    %202 = vector.load %arg2[%c20, %c0_221, %c0_222] : memref<25x128x128xbf16, #tpu.memory_space<vmem>>, vector<1x128x128xbf16>
    %203 = vector.shape_cast %202 : vector<1x128x128xbf16> to vector<128x128xbf16>
    %cst_223 = arith.constant dense<0.000000e+00> : vector<64x128xf32>
    %204 = tpu.matmul %201, %203, %cst_223 {dimension_numbers = #tpu.dot_dimension_numbers<[1], [0], [0], [1], [0, 0, 1, 1], [], []>} : vector<64x128xbf16>, vector<128x128xbf16>, vector<64x128xf32> -> vector<64x128xf32>
    %c0_224 = arith.constant 0 : index
    %c0_225 = arith.constant 0 : index
    %205 = vector.load %arg5[%c0_224, %c0_225] : memref<64x128xf32, #tpu.memory_space<vmem>>, vector<64x128xf32>
    %206 = arith.addf %205, %204 : vector<64x128xf32>
    %c0_226 = arith.constant 0 : index
    %c0_227 = arith.constant 0 : index
    %207 = vector.load %arg5[%c0_226, %c0_227] : memref<64x128xf32, #tpu.memory_space<vmem>>, vector<64x128xf32>
    tpu.vector_store %arg5[%c0_226, %c0_227], %206 {strides = array<i32>} : memref<64x128xf32, #tpu.memory_space<vmem>>, vector<64x128xf32>,
    %c0_228 = arith.constant 0 : index
    %c4_229 = arith.constant 4 : index
    %c1_230 = arith.constant 1 : index
    %c0_231 = arith.constant 0 : index
    %208 = vector.load %arg1[%c0_228, %c4_229, %c1_230, %c0_231] : memref<1x12x12x128xf32, #tpu.memory_space<vmem>>, vector<1x8x8x128xf32>
    %209 = vector.shape_cast %208 : vector<1x8x8x128xf32> to vector<8x8x128xf32>
    %210 = vector.shape_cast %209 : vector<8x8x128xf32> to vector<64x128xf32>
    %211 = arith.truncf %210 : vector<64x128xf32> to vector<64x128xbf16>
    %c21 = arith.constant 21 : index
    %c0_232 = arith.constant 0 : index
    %c0_233 = arith.constant 0 : index
    %212 = vector.load %arg2[%c21, %c0_232, %c0_233] : memref<25x128x128xbf16, #tpu.memory_space<vmem>>, vector<1x128x128xbf16>
    %213 = vector.shape_cast %212 : vector<1x128x128xbf16> to vector<128x128xbf16>
    %cst_234 = arith.constant dense<0.000000e+00> : vector<64x128xf32>
    %214 = tpu.matmul %211, %213, %cst_234 {dimension_numbers = #tpu.dot_dimension_numbers<[1], [0], [0], [1], [0, 0, 1, 1], [], []>} : vector<64x128xbf16>, vector<128x128xbf16>, vector<64x128xf32> -> vector<64x128xf32>
    %c0_235 = arith.constant 0 : index
    %c0_236 = arith.constant 0 : index
    %215 = vector.load %arg5[%c0_235, %c0_236] : memref<64x128xf32, #tpu.memory_space<vmem>>, vector<64x128xf32>
    %216 = arith.addf %215, %214 : vector<64x128xf32>
    %c0_237 = arith.constant 0 : index
    %c0_238 = arith.constant 0 : index
    %217 = vector.load %arg5[%c0_237, %c0_238] : memref<64x128xf32, #tpu.memory_space<vmem>>, vector<64x128xf32>
    tpu.vector_store %arg5[%c0_237, %c0_238], %216 {strides = array<i32>} : memref<64x128xf32, #tpu.memory_space<vmem>>, vector<64x128xf32>,
    %c0_239 = arith.constant 0 : index
    %c4_240 = arith.constant 4 : index
    %c2_241 = arith.constant 2 : index
    %c0_242 = arith.constant 0 : index
    %218 = vector.load %arg1[%c0_239, %c4_240, %c2_241, %c0_242] : memref<1x12x12x128xf32, #tpu.memory_space<vmem>>, vector<1x8x8x128xf32>
    %219 = vector.shape_cast %218 : vector<1x8x8x128xf32> to vector<8x8x128xf32>
    %220 = vector.shape_cast %219 : vector<8x8x128xf32> to vector<64x128xf32>
    %221 = arith.truncf %220 : vector<64x128xf32> to vector<64x128xbf16>
    %c22 = arith.constant 22 : index
    %c0_243 = arith.constant 0 : index
    %c0_244 = arith.constant 0 : index
    %222 = vector.load %arg2[%c22, %c0_243, %c0_244] : memref<25x128x128xbf16, #tpu.memory_space<vmem>>, vector<1x128x128xbf16>
    %223 = vector.shape_cast %222 : vector<1x128x128xbf16> to vector<128x128xbf16>
    %cst_245 = arith.constant dense<0.000000e+00> : vector<64x128xf32>
    %224 = tpu.matmul %221, %223, %cst_245 {dimension_numbers = #tpu.dot_dimension_numbers<[1], [0], [0], [1], [0, 0, 1, 1], [], []>} : vector<64x128xbf16>, vector<128x128xbf16>, vector<64x128xf32> -> vector<64x128xf32>
    %c0_246 = arith.constant 0 : index
    %c0_247 = arith.constant 0 : index
    %225 = vector.load %arg5[%c0_246, %c0_247] : memref<64x128xf32, #tpu.memory_space<vmem>>, vector<64x128xf32>
    %226 = arith.addf %225, %224 : vector<64x128xf32>
    %c0_248 = arith.constant 0 : index
    %c0_249 = arith.constant 0 : index
    %227 = vector.load %arg5[%c0_248, %c0_249] : memref<64x128xf32, #tpu.memory_space<vmem>>, vector<64x128xf32>
    tpu.vector_store %arg5[%c0_248, %c0_249], %226 {strides = array<i32>} : memref<64x128xf32, #tpu.memory_space<vmem>>, vector<64x128xf32>,
    %c0_250 = arith.constant 0 : index
    %c4_251 = arith.constant 4 : index
    %c3_252 = arith.constant 3 : index
    %c0_253 = arith.constant 0 : index
    %228 = vector.load %arg1[%c0_250, %c4_251, %c3_252, %c0_253] : memref<1x12x12x128xf32, #tpu.memory_space<vmem>>, vector<1x8x8x128xf32>
    %229 = vector.shape_cast %228 : vector<1x8x8x128xf32> to vector<8x8x128xf32>
    %230 = vector.shape_cast %229 : vector<8x8x128xf32> to vector<64x128xf32>
    %231 = arith.truncf %230 : vector<64x128xf32> to vector<64x128xbf16>
    %c23 = arith.constant 23 : index
    %c0_254 = arith.constant 0 : index
    %c0_255 = arith.constant 0 : index
    %232 = vector.load %arg2[%c23, %c0_254, %c0_255] : memref<25x128x128xbf16, #tpu.memory_space<vmem>>, vector<1x128x128xbf16>
    %233 = vector.shape_cast %232 : vector<1x128x128xbf16> to vector<128x128xbf16>
    %cst_256 = arith.constant dense<0.000000e+00> : vector<64x128xf32>
    %234 = tpu.matmul %231, %233, %cst_256 {dimension_numbers = #tpu.dot_dimension_numbers<[1], [0], [0], [1], [0, 0, 1, 1], [], []>} : vector<64x128xbf16>, vector<128x128xbf16>, vector<64x128xf32> -> vector<64x128xf32>
    %c0_257 = arith.constant 0 : index
    %c0_258 = arith.constant 0 : index
    %235 = vector.load %arg5[%c0_257, %c0_258] : memref<64x128xf32, #tpu.memory_space<vmem>>, vector<64x128xf32>
    %236 = arith.addf %235, %234 : vector<64x128xf32>
    %c0_259 = arith.constant 0 : index
    %c0_260 = arith.constant 0 : index
    %237 = vector.load %arg5[%c0_259, %c0_260] : memref<64x128xf32, #tpu.memory_space<vmem>>, vector<64x128xf32>
    tpu.vector_store %arg5[%c0_259, %c0_260], %236 {strides = array<i32>} : memref<64x128xf32, #tpu.memory_space<vmem>>, vector<64x128xf32>,
    %c0_261 = arith.constant 0 : index
    %c4_262 = arith.constant 4 : index
    %c4_263 = arith.constant 4 : index
    %c0_264 = arith.constant 0 : index
    %238 = vector.load %arg1[%c0_261, %c4_262, %c4_263, %c0_264] : memref<1x12x12x128xf32, #tpu.memory_space<vmem>>, vector<1x8x8x128xf32>
    %239 = vector.shape_cast %238 : vector<1x8x8x128xf32> to vector<8x8x128xf32>
    %240 = vector.shape_cast %239 : vector<8x8x128xf32> to vector<64x128xf32>
    %241 = arith.truncf %240 : vector<64x128xf32> to vector<64x128xbf16>
    %c24 = arith.constant 24 : index
    %c0_265 = arith.constant 0 : index
    %c0_266 = arith.constant 0 : index
    %242 = vector.load %arg2[%c24, %c0_265, %c0_266] : memref<25x128x128xbf16, #tpu.memory_space<vmem>>, vector<1x128x128xbf16>
    %243 = vector.shape_cast %242 : vector<1x128x128xbf16> to vector<128x128xbf16>
    %cst_267 = arith.constant dense<0.000000e+00> : vector<64x128xf32>
    %244 = tpu.matmul %241, %243, %cst_267 {dimension_numbers = #tpu.dot_dimension_numbers<[1], [0], [0], [1], [0, 0, 1, 1], [], []>} : vector<64x128xbf16>, vector<128x128xbf16>, vector<64x128xf32> -> vector<64x128xf32>
    %c0_268 = arith.constant 0 : index
    %c0_269 = arith.constant 0 : index
    %245 = vector.load %arg5[%c0_268, %c0_269] : memref<64x128xf32, #tpu.memory_space<vmem>>, vector<64x128xf32>
    %246 = arith.addf %245, %244 : vector<64x128xf32>
    %c0_270 = arith.constant 0 : index
    %c0_271 = arith.constant 0 : index
    %247 = vector.load %arg5[%c0_270, %c0_271] : memref<64x128xf32, #tpu.memory_space<vmem>>, vector<64x128xf32>
    tpu.vector_store %arg5[%c0_270, %c0_271], %246 {strides = array<i32>} : memref<64x128xf32, #tpu.memory_space<vmem>>, vector<64x128xf32>,
    %c0_272 = arith.constant 0 : index
    %c0_273 = arith.constant 0 : index
    %248 = vector.load %arg5[%c0_272, %c0_273] : memref<64x128xf32, #tpu.memory_space<vmem>>, vector<64x128xf32>
    %c0_274 = arith.constant 0 : index
    %c0_275 = arith.constant 0 : index
    %249 = vector.load %arg3[%c0_274, %c0_275] : memref<1x128xf32, #tpu.memory_space<vmem>>, vector<1x128xf32>
    %250 = vector.broadcast %249 : vector<1x128xf32> to vector<64x128xf32>
    %251 = arith.addf %248, %250 : vector<64x128xf32>
    %cst_276 = arith.constant 0.000000e+00 : f32
    %252 = vector.broadcast %cst_276 : f32 to vector<64x128xf32>
    %253 = arith.maximumf %251, %252 : vector<64x128xf32>
    %254 = vector.shape_cast %253 : vector<64x128xf32> to vector<4x16x128xf32>
    %255 = vector.extract_strided_slice %254 {offsets = [0, 0, 0], sizes = [4, 8, 128], strides = [1, 1, 1]} : vector<4x16x128xf32> to vector<4x8x128xf32>
    %256 = vector.extract_strided_slice %254 {offsets = [0, 8, 0], sizes = [4, 8, 128], strides = [1, 1, 1]} : vector<4x16x128xf32> to vector<4x8x128xf32>
    %257 = arith.maximumf %255, %256 : vector<4x8x128xf32>
    %258 = vector.extract_strided_slice %257 {offsets = [0, 0, 0], sizes = [4, 1, 128], strides = [1, 1, 1]} : vector<4x8x128xf32> to vector<4x1x128xf32>
    %259 = vector.shape_cast %258 : vector<4x1x128xf32> to vector<4x128xf32>
    %260 = vector.extract_strided_slice %257 {offsets = [0, 1, 0], sizes = [4, 1, 128], strides = [1, 1, 1]} : vector<4x8x128xf32> to vector<4x1x128xf32>
    %261 = vector.shape_cast %260 : vector<4x1x128xf32> to vector<4x128xf32>
    %262 = arith.maximumf %259, %261 : vector<4x128xf32>
    %c0_277 = arith.constant 0 : index
    %c0_278 = arith.constant 0 : index
    %c0_279 = arith.constant 0 : index
    %c0_280 = arith.constant 0 : index
    %263 = vector.load %arg4[%c0_277, %c0_278, %c0_279, %c0_280] : memref<1x4x4x128xf32, #tpu.memory_space<vmem>>, vector<1x4x1x128xf32>
    %264 = vector.shape_cast %263 : vector<1x4x1x128xf32> to vector<4x128xf32>
    %265 = vector.shape_cast %262 : vector<4x128xf32> to vector<1x4x1x128xf32>
    tpu.vector_store %arg4[%c0_277, %c0_278, %c0_279, %c0_280], %265 {strides = array<i32>} : memref<1x4x4x128xf32, #tpu.memory_space<vmem>>, vector<1x4x1x128xf32>,
    %266 = vector.extract_strided_slice %257 {offsets = [0, 2, 0], sizes = [4, 1, 128], strides = [1, 1, 1]} : vector<4x8x128xf32> to vector<4x1x128xf32>
    %267 = vector.shape_cast %266 : vector<4x1x128xf32> to vector<4x128xf32>
    %268 = vector.extract_strided_slice %257 {offsets = [0, 3, 0], sizes = [4, 1, 128], strides = [1, 1, 1]} : vector<4x8x128xf32> to vector<4x1x128xf32>
    %269 = vector.shape_cast %268 : vector<4x1x128xf32> to vector<4x128xf32>
    %270 = arith.maximumf %267, %269 : vector<4x128xf32>
    %c0_281 = arith.constant 0 : index
    %c0_282 = arith.constant 0 : index
    %c1_283 = arith.constant 1 : index
    %c0_284 = arith.constant 0 : index
    %271 = vector.load %arg4[%c0_281, %c0_282, %c1_283, %c0_284] : memref<1x4x4x128xf32, #tpu.memory_space<vmem>>, vector<1x4x1x128xf32>
    %272 = vector.shape_cast %271 : vector<1x4x1x128xf32> to vector<4x128xf32>
    %273 = vector.shape_cast %270 : vector<4x128xf32> to vector<1x4x1x128xf32>
    tpu.vector_store %arg4[%c0_281, %c0_282, %c1_283, %c0_284], %273 {strides = array<i32>} : memref<1x4x4x128xf32, #tpu.memory_space<vmem>>, vector<1x4x1x128xf32>,
    %274 = vector.extract_strided_slice %257 {offsets = [0, 4, 0], sizes = [4, 1, 128], strides = [1, 1, 1]} : vector<4x8x128xf32> to vector<4x1x128xf32>
    %275 = vector.shape_cast %274 : vector<4x1x128xf32> to vector<4x128xf32>
    %276 = vector.extract_strided_slice %257 {offsets = [0, 5, 0], sizes = [4, 1, 128], strides = [1, 1, 1]} : vector<4x8x128xf32> to vector<4x1x128xf32>
    %277 = vector.shape_cast %276 : vector<4x1x128xf32> to vector<4x128xf32>
    %278 = arith.maximumf %275, %277 : vector<4x128xf32>
    %c0_285 = arith.constant 0 : index
    %c0_286 = arith.constant 0 : index
    %c2_287 = arith.constant 2 : index
    %c0_288 = arith.constant 0 : index
    %279 = vector.load %arg4[%c0_285, %c0_286, %c2_287, %c0_288] : memref<1x4x4x128xf32, #tpu.memory_space<vmem>>, vector<1x4x1x128xf32>
    %280 = vector.shape_cast %279 : vector<1x4x1x128xf32> to vector<4x128xf32>
    %281 = vector.shape_cast %278 : vector<4x128xf32> to vector<1x4x1x128xf32>
    tpu.vector_store %arg4[%c0_285, %c0_286, %c2_287, %c0_288], %281 {strides = array<i32>} : memref<1x4x4x128xf32, #tpu.memory_space<vmem>>, vector<1x4x1x128xf32>,
    %282 = vector.extract_strided_slice %257 {offsets = [0, 6, 0], sizes = [4, 1, 128], strides = [1, 1, 1]} : vector<4x8x128xf32> to vector<4x1x128xf32>
    %283 = vector.shape_cast %282 : vector<4x1x128xf32> to vector<4x128xf32>
    %284 = vector.extract_strided_slice %257 {offsets = [0, 7, 0], sizes = [4, 1, 128], strides = [1, 1, 1]} : vector<4x8x128xf32> to vector<4x1x128xf32>
    %285 = vector.shape_cast %284 : vector<4x1x128xf32> to vector<4x128xf32>
    %286 = arith.maximumf %283, %285 : vector<4x128xf32>
    %c0_289 = arith.constant 0 : index
    %c0_290 = arith.constant 0 : index
    %c3_291 = arith.constant 3 : index
    %c0_292 = arith.constant 0 : index
    %287 = vector.load %arg4[%c0_289, %c0_290, %c3_291, %c0_292] : memref<1x4x4x128xf32, #tpu.memory_space<vmem>>, vector<1x4x1x128xf32>
    %288 = vector.shape_cast %287 : vector<1x4x1x128xf32> to vector<4x128xf32>
    %289 = vector.shape_cast %286 : vector<4x128xf32> to vector<1x4x1x128xf32>
    tpu.vector_store %arg4[%c0_289, %c0_290, %c3_291, %c0_292], %289 {strides = array<i32>} : memref<1x4x4x128xf32, #tpu.memory_space<vmem>>, vector<1x4x1x128xf32>,
    return
  }
  func.func @transform_0(%arg0: i32) -> (i32, i32, i32, i32) {
    %c0_i32 = arith.constant 0 : i32
    %c0_i32_0 = arith.constant 0 : i32
    %c0_i32_1 = arith.constant 0 : i32
    %c0_i32_2 = arith.constant 0 : i32
    return %arg0, %c0_i32, %c0_i32_0, %c0_i32_1 : i32, i32, i32, i32
  }
  func.func @transform_1(%arg0: i32) -> (i32, i32, i32) {
    %c0_i32 = arith.constant 0 : i32
    %c0_i32_0 = arith.constant 0 : i32
    %c0_i32_1 = arith.constant 0 : i32
    %c0_i32_2 = arith.constant 0 : i32
    return %c0_i32, %c0_i32_0, %c0_i32_1 : i32, i32, i32
  }
  func.func @transform_2(%arg0: i32) -> (i32, i32) {
    %c0_i32 = arith.constant 0 : i32
    %c0_i32_0 = arith.constant 0 : i32
    %c0_i32_1 = arith.constant 0 : i32
    return %c0_i32, %c0_i32_0 : i32, i32
  }
  func.func @transform_3(%arg0: i32) -> (i32, i32, i32, i32) {
    %c0_i32 = arith.constant 0 : i32
    %c0_i32_0 = arith.constant 0 : i32
    %c0_i32_1 = arith.constant 0 : i32
    %c0_i32_2 = arith.constant 0 : i32
    return %arg0, %c0_i32, %c0_i32_0, %c0_i32_1 : i32, i32, i32, i32
  }
}

module attributes {stable_mosaic.version = 11 : i64} {
  func.func @_conv_relu_pool_kernel(%arg0: i32, %arg1: memref<1x20x20x128xf32, #tpu.memory_space<vmem>>, %arg2: memref<25x128x128xbf16, #tpu.memory_space<vmem>>, %arg3: memref<1x128xf32, #tpu.memory_space<vmem>>, %arg4: memref<1x12x12x128xf32, #tpu.memory_space<vmem>>, %arg5: memref<256x128xf32, #tpu.memory_space<vmem>>) attributes {dimension_semantics = [#tpu.dimension_semantics<parallel>], iteration_bounds = array<i64: 2>, scalar_prefetch = 0 : i64, scratch_operands = 1 : i64, tpu.core_type = #tpu.core_type<tc>, window_params = [{transform_indices = @transform_0, window_bounds = array<i64: 1, 20, 20, 128>}, {pipeline_mode = #tpu.pipeline_mode<synchronous>, transform_indices = @transform_1, window_bounds = array<i64: 25, 128, 128>}, {pipeline_mode = #tpu.pipeline_mode<synchronous>, transform_indices = @transform_2, window_bounds = array<i64: 1, 128>}, {transform_indices = @transform_3, window_bounds = array<i64: 1, 12, 12, 128>}]} {
    %c0 = arith.constant 0 : index
    %c0_0 = arith.constant 0 : index
    %c0_1 = arith.constant 0 : index
    %c0_2 = arith.constant 0 : index
    %0 = vector.load %arg1[%c0, %c0_0, %c0_1, %c0_2] : memref<1x20x20x128xf32, #tpu.memory_space<vmem>>, vector<1x16x16x128xf32>
    %1 = vector.shape_cast %0 : vector<1x16x16x128xf32> to vector<16x16x128xf32>
    %2 = vector.shape_cast %1 : vector<16x16x128xf32> to vector<256x128xf32>
    %3 = arith.truncf %2 : vector<256x128xf32> to vector<256x128xbf16>
    %c0_3 = arith.constant 0 : index
    %c0_4 = arith.constant 0 : index
    %c0_5 = arith.constant 0 : index
    %4 = vector.load %arg2[%c0_3, %c0_4, %c0_5] : memref<25x128x128xbf16, #tpu.memory_space<vmem>>, vector<1x128x128xbf16>
    %5 = vector.shape_cast %4 : vector<1x128x128xbf16> to vector<128x128xbf16>
    %cst = arith.constant dense<0.000000e+00> : vector<256x128xf32>
    %6 = tpu.matmul %3, %5, %cst {dimension_numbers = #tpu.dot_dimension_numbers<[1], [0], [0], [1], [0, 0, 1, 1], [], []>} : vector<256x128xbf16>, vector<128x128xbf16>, vector<256x128xf32> -> vector<256x128xf32>
    %c0_6 = arith.constant 0 : index
    %c0_7 = arith.constant 0 : index
    %7 = vector.load %arg5[%c0_6, %c0_7] : memref<256x128xf32, #tpu.memory_space<vmem>>, vector<256x128xf32>
    tpu.vector_store %arg5[%c0_6, %c0_7], %6 {strides = array<i32>} : memref<256x128xf32, #tpu.memory_space<vmem>>, vector<256x128xf32>,
    %c0_8 = arith.constant 0 : index
    %c0_9 = arith.constant 0 : index
    %c1 = arith.constant 1 : index
    %c0_10 = arith.constant 0 : index
    %8 = vector.load %arg1[%c0_8, %c0_9, %c1, %c0_10] : memref<1x20x20x128xf32, #tpu.memory_space<vmem>>, vector<1x16x16x128xf32>
    %9 = vector.shape_cast %8 : vector<1x16x16x128xf32> to vector<16x16x128xf32>
    %10 = vector.shape_cast %9 : vector<16x16x128xf32> to vector<256x128xf32>
    %11 = arith.truncf %10 : vector<256x128xf32> to vector<256x128xbf16>
    %c1_11 = arith.constant 1 : index
    %c0_12 = arith.constant 0 : index
    %c0_13 = arith.constant 0 : index
    %12 = vector.load %arg2[%c1_11, %c0_12, %c0_13] : memref<25x128x128xbf16, #tpu.memory_space<vmem>>, vector<1x128x128xbf16>
    %13 = vector.shape_cast %12 : vector<1x128x128xbf16> to vector<128x128xbf16>
    %cst_14 = arith.constant dense<0.000000e+00> : vector<256x128xf32>
    %14 = tpu.matmul %11, %13, %cst_14 {dimension_numbers = #tpu.dot_dimension_numbers<[1], [0], [0], [1], [0, 0, 1, 1], [], []>} : vector<256x128xbf16>, vector<128x128xbf16>, vector<256x128xf32> -> vector<256x128xf32>
    %c0_15 = arith.constant 0 : index
    %c0_16 = arith.constant 0 : index
    %15 = vector.load %arg5[%c0_15, %c0_16] : memref<256x128xf32, #tpu.memory_space<vmem>>, vector<256x128xf32>
    %16 = arith.addf %15, %14 : vector<256x128xf32>
    %c0_17 = arith.constant 0 : index
    %c0_18 = arith.constant 0 : index
    %17 = vector.load %arg5[%c0_17, %c0_18] : memref<256x128xf32, #tpu.memory_space<vmem>>, vector<256x128xf32>
    tpu.vector_store %arg5[%c0_17, %c0_18], %16 {strides = array<i32>} : memref<256x128xf32, #tpu.memory_space<vmem>>, vector<256x128xf32>,
    %c0_19 = arith.constant 0 : index
    %c0_20 = arith.constant 0 : index
    %c2 = arith.constant 2 : index
    %c0_21 = arith.constant 0 : index
    %18 = vector.load %arg1[%c0_19, %c0_20, %c2, %c0_21] : memref<1x20x20x128xf32, #tpu.memory_space<vmem>>, vector<1x16x16x128xf32>
    %19 = vector.shape_cast %18 : vector<1x16x16x128xf32> to vector<16x16x128xf32>
    %20 = vector.shape_cast %19 : vector<16x16x128xf32> to vector<256x128xf32>
    %21 = arith.truncf %20 : vector<256x128xf32> to vector<256x128xbf16>
    %c2_22 = arith.constant 2 : index
    %c0_23 = arith.constant 0 : index
    %c0_24 = arith.constant 0 : index
    %22 = vector.load %arg2[%c2_22, %c0_23, %c0_24] : memref<25x128x128xbf16, #tpu.memory_space<vmem>>, vector<1x128x128xbf16>
    %23 = vector.shape_cast %22 : vector<1x128x128xbf16> to vector<128x128xbf16>
    %cst_25 = arith.constant dense<0.000000e+00> : vector<256x128xf32>
    %24 = tpu.matmul %21, %23, %cst_25 {dimension_numbers = #tpu.dot_dimension_numbers<[1], [0], [0], [1], [0, 0, 1, 1], [], []>} : vector<256x128xbf16>, vector<128x128xbf16>, vector<256x128xf32> -> vector<256x128xf32>
    %c0_26 = arith.constant 0 : index
    %c0_27 = arith.constant 0 : index
    %25 = vector.load %arg5[%c0_26, %c0_27] : memref<256x128xf32, #tpu.memory_space<vmem>>, vector<256x128xf32>
    %26 = arith.addf %25, %24 : vector<256x128xf32>
    %c0_28 = arith.constant 0 : index
    %c0_29 = arith.constant 0 : index
    %27 = vector.load %arg5[%c0_28, %c0_29] : memref<256x128xf32, #tpu.memory_space<vmem>>, vector<256x128xf32>
    tpu.vector_store %arg5[%c0_28, %c0_29], %26 {strides = array<i32>} : memref<256x128xf32, #tpu.memory_space<vmem>>, vector<256x128xf32>,
    %c0_30 = arith.constant 0 : index
    %c0_31 = arith.constant 0 : index
    %c3 = arith.constant 3 : index
    %c0_32 = arith.constant 0 : index
    %28 = vector.load %arg1[%c0_30, %c0_31, %c3, %c0_32] : memref<1x20x20x128xf32, #tpu.memory_space<vmem>>, vector<1x16x16x128xf32>
    %29 = vector.shape_cast %28 : vector<1x16x16x128xf32> to vector<16x16x128xf32>
    %30 = vector.shape_cast %29 : vector<16x16x128xf32> to vector<256x128xf32>
    %31 = arith.truncf %30 : vector<256x128xf32> to vector<256x128xbf16>
    %c3_33 = arith.constant 3 : index
    %c0_34 = arith.constant 0 : index
    %c0_35 = arith.constant 0 : index
    %32 = vector.load %arg2[%c3_33, %c0_34, %c0_35] : memref<25x128x128xbf16, #tpu.memory_space<vmem>>, vector<1x128x128xbf16>
    %33 = vector.shape_cast %32 : vector<1x128x128xbf16> to vector<128x128xbf16>
    %cst_36 = arith.constant dense<0.000000e+00> : vector<256x128xf32>
    %34 = tpu.matmul %31, %33, %cst_36 {dimension_numbers = #tpu.dot_dimension_numbers<[1], [0], [0], [1], [0, 0, 1, 1], [], []>} : vector<256x128xbf16>, vector<128x128xbf16>, vector<256x128xf32> -> vector<256x128xf32>
    %c0_37 = arith.constant 0 : index
    %c0_38 = arith.constant 0 : index
    %35 = vector.load %arg5[%c0_37, %c0_38] : memref<256x128xf32, #tpu.memory_space<vmem>>, vector<256x128xf32>
    %36 = arith.addf %35, %34 : vector<256x128xf32>
    %c0_39 = arith.constant 0 : index
    %c0_40 = arith.constant 0 : index
    %37 = vector.load %arg5[%c0_39, %c0_40] : memref<256x128xf32, #tpu.memory_space<vmem>>, vector<256x128xf32>
    tpu.vector_store %arg5[%c0_39, %c0_40], %36 {strides = array<i32>} : memref<256x128xf32, #tpu.memory_space<vmem>>, vector<256x128xf32>,
    %c0_41 = arith.constant 0 : index
    %c0_42 = arith.constant 0 : index
    %c4 = arith.constant 4 : index
    %c0_43 = arith.constant 0 : index
    %38 = vector.load %arg1[%c0_41, %c0_42, %c4, %c0_43] : memref<1x20x20x128xf32, #tpu.memory_space<vmem>>, vector<1x16x16x128xf32>
    %39 = vector.shape_cast %38 : vector<1x16x16x128xf32> to vector<16x16x128xf32>
    %40 = vector.shape_cast %39 : vector<16x16x128xf32> to vector<256x128xf32>
    %41 = arith.truncf %40 : vector<256x128xf32> to vector<256x128xbf16>
    %c4_44 = arith.constant 4 : index
    %c0_45 = arith.constant 0 : index
    %c0_46 = arith.constant 0 : index
    %42 = vector.load %arg2[%c4_44, %c0_45, %c0_46] : memref<25x128x128xbf16, #tpu.memory_space<vmem>>, vector<1x128x128xbf16>
    %43 = vector.shape_cast %42 : vector<1x128x128xbf16> to vector<128x128xbf16>
    %cst_47 = arith.constant dense<0.000000e+00> : vector<256x128xf32>
    %44 = tpu.matmul %41, %43, %cst_47 {dimension_numbers = #tpu.dot_dimension_numbers<[1], [0], [0], [1], [0, 0, 1, 1], [], []>} : vector<256x128xbf16>, vector<128x128xbf16>, vector<256x128xf32> -> vector<256x128xf32>
    %c0_48 = arith.constant 0 : index
    %c0_49 = arith.constant 0 : index
    %45 = vector.load %arg5[%c0_48, %c0_49] : memref<256x128xf32, #tpu.memory_space<vmem>>, vector<256x128xf32>
    %46 = arith.addf %45, %44 : vector<256x128xf32>
    %c0_50 = arith.constant 0 : index
    %c0_51 = arith.constant 0 : index
    %47 = vector.load %arg5[%c0_50, %c0_51] : memref<256x128xf32, #tpu.memory_space<vmem>>, vector<256x128xf32>
    tpu.vector_store %arg5[%c0_50, %c0_51], %46 {strides = array<i32>} : memref<256x128xf32, #tpu.memory_space<vmem>>, vector<256x128xf32>,
    %c0_52 = arith.constant 0 : index
    %c1_53 = arith.constant 1 : index
    %c0_54 = arith.constant 0 : index
    %c0_55 = arith.constant 0 : index
    %48 = vector.load %arg1[%c0_52, %c1_53, %c0_54, %c0_55] : memref<1x20x20x128xf32, #tpu.memory_space<vmem>>, vector<1x16x16x128xf32>
    %49 = vector.shape_cast %48 : vector<1x16x16x128xf32> to vector<16x16x128xf32>
    %50 = vector.shape_cast %49 : vector<16x16x128xf32> to vector<256x128xf32>
    %51 = arith.truncf %50 : vector<256x128xf32> to vector<256x128xbf16>
    %c5 = arith.constant 5 : index
    %c0_56 = arith.constant 0 : index
    %c0_57 = arith.constant 0 : index
    %52 = vector.load %arg2[%c5, %c0_56, %c0_57] : memref<25x128x128xbf16, #tpu.memory_space<vmem>>, vector<1x128x128xbf16>
    %53 = vector.shape_cast %52 : vector<1x128x128xbf16> to vector<128x128xbf16>
    %cst_58 = arith.constant dense<0.000000e+00> : vector<256x128xf32>
    %54 = tpu.matmul %51, %53, %cst_58 {dimension_numbers = #tpu.dot_dimension_numbers<[1], [0], [0], [1], [0, 0, 1, 1], [], []>} : vector<256x128xbf16>, vector<128x128xbf16>, vector<256x128xf32> -> vector<256x128xf32>
    %c0_59 = arith.constant 0 : index
    %c0_60 = arith.constant 0 : index
    %55 = vector.load %arg5[%c0_59, %c0_60] : memref<256x128xf32, #tpu.memory_space<vmem>>, vector<256x128xf32>
    %56 = arith.addf %55, %54 : vector<256x128xf32>
    %c0_61 = arith.constant 0 : index
    %c0_62 = arith.constant 0 : index
    %57 = vector.load %arg5[%c0_61, %c0_62] : memref<256x128xf32, #tpu.memory_space<vmem>>, vector<256x128xf32>
    tpu.vector_store %arg5[%c0_61, %c0_62], %56 {strides = array<i32>} : memref<256x128xf32, #tpu.memory_space<vmem>>, vector<256x128xf32>,
    %c0_63 = arith.constant 0 : index
    %c1_64 = arith.constant 1 : index
    %c1_65 = arith.constant 1 : index
    %c0_66 = arith.constant 0 : index
    %58 = vector.load %arg1[%c0_63, %c1_64, %c1_65, %c0_66] : memref<1x20x20x128xf32, #tpu.memory_space<vmem>>, vector<1x16x16x128xf32>
    %59 = vector.shape_cast %58 : vector<1x16x16x128xf32> to vector<16x16x128xf32>
    %60 = vector.shape_cast %59 : vector<16x16x128xf32> to vector<256x128xf32>
    %61 = arith.truncf %60 : vector<256x128xf32> to vector<256x128xbf16>
    %c6 = arith.constant 6 : index
    %c0_67 = arith.constant 0 : index
    %c0_68 = arith.constant 0 : index
    %62 = vector.load %arg2[%c6, %c0_67, %c0_68] : memref<25x128x128xbf16, #tpu.memory_space<vmem>>, vector<1x128x128xbf16>
    %63 = vector.shape_cast %62 : vector<1x128x128xbf16> to vector<128x128xbf16>
    %cst_69 = arith.constant dense<0.000000e+00> : vector<256x128xf32>
    %64 = tpu.matmul %61, %63, %cst_69 {dimension_numbers = #tpu.dot_dimension_numbers<[1], [0], [0], [1], [0, 0, 1, 1], [], []>} : vector<256x128xbf16>, vector<128x128xbf16>, vector<256x128xf32> -> vector<256x128xf32>
    %c0_70 = arith.constant 0 : index
    %c0_71 = arith.constant 0 : index
    %65 = vector.load %arg5[%c0_70, %c0_71] : memref<256x128xf32, #tpu.memory_space<vmem>>, vector<256x128xf32>
    %66 = arith.addf %65, %64 : vector<256x128xf32>
    %c0_72 = arith.constant 0 : index
    %c0_73 = arith.constant 0 : index
    %67 = vector.load %arg5[%c0_72, %c0_73] : memref<256x128xf32, #tpu.memory_space<vmem>>, vector<256x128xf32>
    tpu.vector_store %arg5[%c0_72, %c0_73], %66 {strides = array<i32>} : memref<256x128xf32, #tpu.memory_space<vmem>>, vector<256x128xf32>,
    %c0_74 = arith.constant 0 : index
    %c1_75 = arith.constant 1 : index
    %c2_76 = arith.constant 2 : index
    %c0_77 = arith.constant 0 : index
    %68 = vector.load %arg1[%c0_74, %c1_75, %c2_76, %c0_77] : memref<1x20x20x128xf32, #tpu.memory_space<vmem>>, vector<1x16x16x128xf32>
    %69 = vector.shape_cast %68 : vector<1x16x16x128xf32> to vector<16x16x128xf32>
    %70 = vector.shape_cast %69 : vector<16x16x128xf32> to vector<256x128xf32>
    %71 = arith.truncf %70 : vector<256x128xf32> to vector<256x128xbf16>
    %c7 = arith.constant 7 : index
    %c0_78 = arith.constant 0 : index
    %c0_79 = arith.constant 0 : index
    %72 = vector.load %arg2[%c7, %c0_78, %c0_79] : memref<25x128x128xbf16, #tpu.memory_space<vmem>>, vector<1x128x128xbf16>
    %73 = vector.shape_cast %72 : vector<1x128x128xbf16> to vector<128x128xbf16>
    %cst_80 = arith.constant dense<0.000000e+00> : vector<256x128xf32>
    %74 = tpu.matmul %71, %73, %cst_80 {dimension_numbers = #tpu.dot_dimension_numbers<[1], [0], [0], [1], [0, 0, 1, 1], [], []>} : vector<256x128xbf16>, vector<128x128xbf16>, vector<256x128xf32> -> vector<256x128xf32>
    %c0_81 = arith.constant 0 : index
    %c0_82 = arith.constant 0 : index
    %75 = vector.load %arg5[%c0_81, %c0_82] : memref<256x128xf32, #tpu.memory_space<vmem>>, vector<256x128xf32>
    %76 = arith.addf %75, %74 : vector<256x128xf32>
    %c0_83 = arith.constant 0 : index
    %c0_84 = arith.constant 0 : index
    %77 = vector.load %arg5[%c0_83, %c0_84] : memref<256x128xf32, #tpu.memory_space<vmem>>, vector<256x128xf32>
    tpu.vector_store %arg5[%c0_83, %c0_84], %76 {strides = array<i32>} : memref<256x128xf32, #tpu.memory_space<vmem>>, vector<256x128xf32>,
    %c0_85 = arith.constant 0 : index
    %c1_86 = arith.constant 1 : index
    %c3_87 = arith.constant 3 : index
    %c0_88 = arith.constant 0 : index
    %78 = vector.load %arg1[%c0_85, %c1_86, %c3_87, %c0_88] : memref<1x20x20x128xf32, #tpu.memory_space<vmem>>, vector<1x16x16x128xf32>
    %79 = vector.shape_cast %78 : vector<1x16x16x128xf32> to vector<16x16x128xf32>
    %80 = vector.shape_cast %79 : vector<16x16x128xf32> to vector<256x128xf32>
    %81 = arith.truncf %80 : vector<256x128xf32> to vector<256x128xbf16>
    %c8 = arith.constant 8 : index
    %c0_89 = arith.constant 0 : index
    %c0_90 = arith.constant 0 : index
    %82 = vector.load %arg2[%c8, %c0_89, %c0_90] : memref<25x128x128xbf16, #tpu.memory_space<vmem>>, vector<1x128x128xbf16>
    %83 = vector.shape_cast %82 : vector<1x128x128xbf16> to vector<128x128xbf16>
    %cst_91 = arith.constant dense<0.000000e+00> : vector<256x128xf32>
    %84 = tpu.matmul %81, %83, %cst_91 {dimension_numbers = #tpu.dot_dimension_numbers<[1], [0], [0], [1], [0, 0, 1, 1], [], []>} : vector<256x128xbf16>, vector<128x128xbf16>, vector<256x128xf32> -> vector<256x128xf32>
    %c0_92 = arith.constant 0 : index
    %c0_93 = arith.constant 0 : index
    %85 = vector.load %arg5[%c0_92, %c0_93] : memref<256x128xf32, #tpu.memory_space<vmem>>, vector<256x128xf32>
    %86 = arith.addf %85, %84 : vector<256x128xf32>
    %c0_94 = arith.constant 0 : index
    %c0_95 = arith.constant 0 : index
    %87 = vector.load %arg5[%c0_94, %c0_95] : memref<256x128xf32, #tpu.memory_space<vmem>>, vector<256x128xf32>
    tpu.vector_store %arg5[%c0_94, %c0_95], %86 {strides = array<i32>} : memref<256x128xf32, #tpu.memory_space<vmem>>, vector<256x128xf32>,
    %c0_96 = arith.constant 0 : index
    %c1_97 = arith.constant 1 : index
    %c4_98 = arith.constant 4 : index
    %c0_99 = arith.constant 0 : index
    %88 = vector.load %arg1[%c0_96, %c1_97, %c4_98, %c0_99] : memref<1x20x20x128xf32, #tpu.memory_space<vmem>>, vector<1x16x16x128xf32>
    %89 = vector.shape_cast %88 : vector<1x16x16x128xf32> to vector<16x16x128xf32>
    %90 = vector.shape_cast %89 : vector<16x16x128xf32> to vector<256x128xf32>
    %91 = arith.truncf %90 : vector<256x128xf32> to vector<256x128xbf16>
    %c9 = arith.constant 9 : index
    %c0_100 = arith.constant 0 : index
    %c0_101 = arith.constant 0 : index
    %92 = vector.load %arg2[%c9, %c0_100, %c0_101] : memref<25x128x128xbf16, #tpu.memory_space<vmem>>, vector<1x128x128xbf16>
    %93 = vector.shape_cast %92 : vector<1x128x128xbf16> to vector<128x128xbf16>
    %cst_102 = arith.constant dense<0.000000e+00> : vector<256x128xf32>
    %94 = tpu.matmul %91, %93, %cst_102 {dimension_numbers = #tpu.dot_dimension_numbers<[1], [0], [0], [1], [0, 0, 1, 1], [], []>} : vector<256x128xbf16>, vector<128x128xbf16>, vector<256x128xf32> -> vector<256x128xf32>
    %c0_103 = arith.constant 0 : index
    %c0_104 = arith.constant 0 : index
    %95 = vector.load %arg5[%c0_103, %c0_104] : memref<256x128xf32, #tpu.memory_space<vmem>>, vector<256x128xf32>
    %96 = arith.addf %95, %94 : vector<256x128xf32>
    %c0_105 = arith.constant 0 : index
    %c0_106 = arith.constant 0 : index
    %97 = vector.load %arg5[%c0_105, %c0_106] : memref<256x128xf32, #tpu.memory_space<vmem>>, vector<256x128xf32>
    tpu.vector_store %arg5[%c0_105, %c0_106], %96 {strides = array<i32>} : memref<256x128xf32, #tpu.memory_space<vmem>>, vector<256x128xf32>,
    %c0_107 = arith.constant 0 : index
    %c2_108 = arith.constant 2 : index
    %c0_109 = arith.constant 0 : index
    %c0_110 = arith.constant 0 : index
    %98 = vector.load %arg1[%c0_107, %c2_108, %c0_109, %c0_110] : memref<1x20x20x128xf32, #tpu.memory_space<vmem>>, vector<1x16x16x128xf32>
    %99 = vector.shape_cast %98 : vector<1x16x16x128xf32> to vector<16x16x128xf32>
    %100 = vector.shape_cast %99 : vector<16x16x128xf32> to vector<256x128xf32>
    %101 = arith.truncf %100 : vector<256x128xf32> to vector<256x128xbf16>
    %c10 = arith.constant 10 : index
    %c0_111 = arith.constant 0 : index
    %c0_112 = arith.constant 0 : index
    %102 = vector.load %arg2[%c10, %c0_111, %c0_112] : memref<25x128x128xbf16, #tpu.memory_space<vmem>>, vector<1x128x128xbf16>
    %103 = vector.shape_cast %102 : vector<1x128x128xbf16> to vector<128x128xbf16>
    %cst_113 = arith.constant dense<0.000000e+00> : vector<256x128xf32>
    %104 = tpu.matmul %101, %103, %cst_113 {dimension_numbers = #tpu.dot_dimension_numbers<[1], [0], [0], [1], [0, 0, 1, 1], [], []>} : vector<256x128xbf16>, vector<128x128xbf16>, vector<256x128xf32> -> vector<256x128xf32>
    %c0_114 = arith.constant 0 : index
    %c0_115 = arith.constant 0 : index
    %105 = vector.load %arg5[%c0_114, %c0_115] : memref<256x128xf32, #tpu.memory_space<vmem>>, vector<256x128xf32>
    %106 = arith.addf %105, %104 : vector<256x128xf32>
    %c0_116 = arith.constant 0 : index
    %c0_117 = arith.constant 0 : index
    %107 = vector.load %arg5[%c0_116, %c0_117] : memref<256x128xf32, #tpu.memory_space<vmem>>, vector<256x128xf32>
    tpu.vector_store %arg5[%c0_116, %c0_117], %106 {strides = array<i32>} : memref<256x128xf32, #tpu.memory_space<vmem>>, vector<256x128xf32>,
    %c0_118 = arith.constant 0 : index
    %c2_119 = arith.constant 2 : index
    %c1_120 = arith.constant 1 : index
    %c0_121 = arith.constant 0 : index
    %108 = vector.load %arg1[%c0_118, %c2_119, %c1_120, %c0_121] : memref<1x20x20x128xf32, #tpu.memory_space<vmem>>, vector<1x16x16x128xf32>
    %109 = vector.shape_cast %108 : vector<1x16x16x128xf32> to vector<16x16x128xf32>
    %110 = vector.shape_cast %109 : vector<16x16x128xf32> to vector<256x128xf32>
    %111 = arith.truncf %110 : vector<256x128xf32> to vector<256x128xbf16>
    %c11 = arith.constant 11 : index
    %c0_122 = arith.constant 0 : index
    %c0_123 = arith.constant 0 : index
    %112 = vector.load %arg2[%c11, %c0_122, %c0_123] : memref<25x128x128xbf16, #tpu.memory_space<vmem>>, vector<1x128x128xbf16>
    %113 = vector.shape_cast %112 : vector<1x128x128xbf16> to vector<128x128xbf16>
    %cst_124 = arith.constant dense<0.000000e+00> : vector<256x128xf32>
    %114 = tpu.matmul %111, %113, %cst_124 {dimension_numbers = #tpu.dot_dimension_numbers<[1], [0], [0], [1], [0, 0, 1, 1], [], []>} : vector<256x128xbf16>, vector<128x128xbf16>, vector<256x128xf32> -> vector<256x128xf32>
    %c0_125 = arith.constant 0 : index
    %c0_126 = arith.constant 0 : index
    %115 = vector.load %arg5[%c0_125, %c0_126] : memref<256x128xf32, #tpu.memory_space<vmem>>, vector<256x128xf32>
    %116 = arith.addf %115, %114 : vector<256x128xf32>
    %c0_127 = arith.constant 0 : index
    %c0_128 = arith.constant 0 : index
    %117 = vector.load %arg5[%c0_127, %c0_128] : memref<256x128xf32, #tpu.memory_space<vmem>>, vector<256x128xf32>
    tpu.vector_store %arg5[%c0_127, %c0_128], %116 {strides = array<i32>} : memref<256x128xf32, #tpu.memory_space<vmem>>, vector<256x128xf32>,
    %c0_129 = arith.constant 0 : index
    %c2_130 = arith.constant 2 : index
    %c2_131 = arith.constant 2 : index
    %c0_132 = arith.constant 0 : index
    %118 = vector.load %arg1[%c0_129, %c2_130, %c2_131, %c0_132] : memref<1x20x20x128xf32, #tpu.memory_space<vmem>>, vector<1x16x16x128xf32>
    %119 = vector.shape_cast %118 : vector<1x16x16x128xf32> to vector<16x16x128xf32>
    %120 = vector.shape_cast %119 : vector<16x16x128xf32> to vector<256x128xf32>
    %121 = arith.truncf %120 : vector<256x128xf32> to vector<256x128xbf16>
    %c12 = arith.constant 12 : index
    %c0_133 = arith.constant 0 : index
    %c0_134 = arith.constant 0 : index
    %122 = vector.load %arg2[%c12, %c0_133, %c0_134] : memref<25x128x128xbf16, #tpu.memory_space<vmem>>, vector<1x128x128xbf16>
    %123 = vector.shape_cast %122 : vector<1x128x128xbf16> to vector<128x128xbf16>
    %cst_135 = arith.constant dense<0.000000e+00> : vector<256x128xf32>
    %124 = tpu.matmul %121, %123, %cst_135 {dimension_numbers = #tpu.dot_dimension_numbers<[1], [0], [0], [1], [0, 0, 1, 1], [], []>} : vector<256x128xbf16>, vector<128x128xbf16>, vector<256x128xf32> -> vector<256x128xf32>
    %c0_136 = arith.constant 0 : index
    %c0_137 = arith.constant 0 : index
    %125 = vector.load %arg5[%c0_136, %c0_137] : memref<256x128xf32, #tpu.memory_space<vmem>>, vector<256x128xf32>
    %126 = arith.addf %125, %124 : vector<256x128xf32>
    %c0_138 = arith.constant 0 : index
    %c0_139 = arith.constant 0 : index
    %127 = vector.load %arg5[%c0_138, %c0_139] : memref<256x128xf32, #tpu.memory_space<vmem>>, vector<256x128xf32>
    tpu.vector_store %arg5[%c0_138, %c0_139], %126 {strides = array<i32>} : memref<256x128xf32, #tpu.memory_space<vmem>>, vector<256x128xf32>,
    %c0_140 = arith.constant 0 : index
    %c2_141 = arith.constant 2 : index
    %c3_142 = arith.constant 3 : index
    %c0_143 = arith.constant 0 : index
    %128 = vector.load %arg1[%c0_140, %c2_141, %c3_142, %c0_143] : memref<1x20x20x128xf32, #tpu.memory_space<vmem>>, vector<1x16x16x128xf32>
    %129 = vector.shape_cast %128 : vector<1x16x16x128xf32> to vector<16x16x128xf32>
    %130 = vector.shape_cast %129 : vector<16x16x128xf32> to vector<256x128xf32>
    %131 = arith.truncf %130 : vector<256x128xf32> to vector<256x128xbf16>
    %c13 = arith.constant 13 : index
    %c0_144 = arith.constant 0 : index
    %c0_145 = arith.constant 0 : index
    %132 = vector.load %arg2[%c13, %c0_144, %c0_145] : memref<25x128x128xbf16, #tpu.memory_space<vmem>>, vector<1x128x128xbf16>
    %133 = vector.shape_cast %132 : vector<1x128x128xbf16> to vector<128x128xbf16>
    %cst_146 = arith.constant dense<0.000000e+00> : vector<256x128xf32>
    %134 = tpu.matmul %131, %133, %cst_146 {dimension_numbers = #tpu.dot_dimension_numbers<[1], [0], [0], [1], [0, 0, 1, 1], [], []>} : vector<256x128xbf16>, vector<128x128xbf16>, vector<256x128xf32> -> vector<256x128xf32>
    %c0_147 = arith.constant 0 : index
    %c0_148 = arith.constant 0 : index
    %135 = vector.load %arg5[%c0_147, %c0_148] : memref<256x128xf32, #tpu.memory_space<vmem>>, vector<256x128xf32>
    %136 = arith.addf %135, %134 : vector<256x128xf32>
    %c0_149 = arith.constant 0 : index
    %c0_150 = arith.constant 0 : index
    %137 = vector.load %arg5[%c0_149, %c0_150] : memref<256x128xf32, #tpu.memory_space<vmem>>, vector<256x128xf32>
    tpu.vector_store %arg5[%c0_149, %c0_150], %136 {strides = array<i32>} : memref<256x128xf32, #tpu.memory_space<vmem>>, vector<256x128xf32>,
    %c0_151 = arith.constant 0 : index
    %c2_152 = arith.constant 2 : index
    %c4_153 = arith.constant 4 : index
    %c0_154 = arith.constant 0 : index
    %138 = vector.load %arg1[%c0_151, %c2_152, %c4_153, %c0_154] : memref<1x20x20x128xf32, #tpu.memory_space<vmem>>, vector<1x16x16x128xf32>
    %139 = vector.shape_cast %138 : vector<1x16x16x128xf32> to vector<16x16x128xf32>
    %140 = vector.shape_cast %139 : vector<16x16x128xf32> to vector<256x128xf32>
    %141 = arith.truncf %140 : vector<256x128xf32> to vector<256x128xbf16>
    %c14 = arith.constant 14 : index
    %c0_155 = arith.constant 0 : index
    %c0_156 = arith.constant 0 : index
    %142 = vector.load %arg2[%c14, %c0_155, %c0_156] : memref<25x128x128xbf16, #tpu.memory_space<vmem>>, vector<1x128x128xbf16>
    %143 = vector.shape_cast %142 : vector<1x128x128xbf16> to vector<128x128xbf16>
    %cst_157 = arith.constant dense<0.000000e+00> : vector<256x128xf32>
    %144 = tpu.matmul %141, %143, %cst_157 {dimension_numbers = #tpu.dot_dimension_numbers<[1], [0], [0], [1], [0, 0, 1, 1], [], []>} : vector<256x128xbf16>, vector<128x128xbf16>, vector<256x128xf32> -> vector<256x128xf32>
    %c0_158 = arith.constant 0 : index
    %c0_159 = arith.constant 0 : index
    %145 = vector.load %arg5[%c0_158, %c0_159] : memref<256x128xf32, #tpu.memory_space<vmem>>, vector<256x128xf32>
    %146 = arith.addf %145, %144 : vector<256x128xf32>
    %c0_160 = arith.constant 0 : index
    %c0_161 = arith.constant 0 : index
    %147 = vector.load %arg5[%c0_160, %c0_161] : memref<256x128xf32, #tpu.memory_space<vmem>>, vector<256x128xf32>
    tpu.vector_store %arg5[%c0_160, %c0_161], %146 {strides = array<i32>} : memref<256x128xf32, #tpu.memory_space<vmem>>, vector<256x128xf32>,
    %c0_162 = arith.constant 0 : index
    %c3_163 = arith.constant 3 : index
    %c0_164 = arith.constant 0 : index
    %c0_165 = arith.constant 0 : index
    %148 = vector.load %arg1[%c0_162, %c3_163, %c0_164, %c0_165] : memref<1x20x20x128xf32, #tpu.memory_space<vmem>>, vector<1x16x16x128xf32>
    %149 = vector.shape_cast %148 : vector<1x16x16x128xf32> to vector<16x16x128xf32>
    %150 = vector.shape_cast %149 : vector<16x16x128xf32> to vector<256x128xf32>
    %151 = arith.truncf %150 : vector<256x128xf32> to vector<256x128xbf16>
    %c15 = arith.constant 15 : index
    %c0_166 = arith.constant 0 : index
    %c0_167 = arith.constant 0 : index
    %152 = vector.load %arg2[%c15, %c0_166, %c0_167] : memref<25x128x128xbf16, #tpu.memory_space<vmem>>, vector<1x128x128xbf16>
    %153 = vector.shape_cast %152 : vector<1x128x128xbf16> to vector<128x128xbf16>
    %cst_168 = arith.constant dense<0.000000e+00> : vector<256x128xf32>
    %154 = tpu.matmul %151, %153, %cst_168 {dimension_numbers = #tpu.dot_dimension_numbers<[1], [0], [0], [1], [0, 0, 1, 1], [], []>} : vector<256x128xbf16>, vector<128x128xbf16>, vector<256x128xf32> -> vector<256x128xf32>
    %c0_169 = arith.constant 0 : index
    %c0_170 = arith.constant 0 : index
    %155 = vector.load %arg5[%c0_169, %c0_170] : memref<256x128xf32, #tpu.memory_space<vmem>>, vector<256x128xf32>
    %156 = arith.addf %155, %154 : vector<256x128xf32>
    %c0_171 = arith.constant 0 : index
    %c0_172 = arith.constant 0 : index
    %157 = vector.load %arg5[%c0_171, %c0_172] : memref<256x128xf32, #tpu.memory_space<vmem>>, vector<256x128xf32>
    tpu.vector_store %arg5[%c0_171, %c0_172], %156 {strides = array<i32>} : memref<256x128xf32, #tpu.memory_space<vmem>>, vector<256x128xf32>,
    %c0_173 = arith.constant 0 : index
    %c3_174 = arith.constant 3 : index
    %c1_175 = arith.constant 1 : index
    %c0_176 = arith.constant 0 : index
    %158 = vector.load %arg1[%c0_173, %c3_174, %c1_175, %c0_176] : memref<1x20x20x128xf32, #tpu.memory_space<vmem>>, vector<1x16x16x128xf32>
    %159 = vector.shape_cast %158 : vector<1x16x16x128xf32> to vector<16x16x128xf32>
    %160 = vector.shape_cast %159 : vector<16x16x128xf32> to vector<256x128xf32>
    %161 = arith.truncf %160 : vector<256x128xf32> to vector<256x128xbf16>
    %c16 = arith.constant 16 : index
    %c0_177 = arith.constant 0 : index
    %c0_178 = arith.constant 0 : index
    %162 = vector.load %arg2[%c16, %c0_177, %c0_178] : memref<25x128x128xbf16, #tpu.memory_space<vmem>>, vector<1x128x128xbf16>
    %163 = vector.shape_cast %162 : vector<1x128x128xbf16> to vector<128x128xbf16>
    %cst_179 = arith.constant dense<0.000000e+00> : vector<256x128xf32>
    %164 = tpu.matmul %161, %163, %cst_179 {dimension_numbers = #tpu.dot_dimension_numbers<[1], [0], [0], [1], [0, 0, 1, 1], [], []>} : vector<256x128xbf16>, vector<128x128xbf16>, vector<256x128xf32> -> vector<256x128xf32>
    %c0_180 = arith.constant 0 : index
    %c0_181 = arith.constant 0 : index
    %165 = vector.load %arg5[%c0_180, %c0_181] : memref<256x128xf32, #tpu.memory_space<vmem>>, vector<256x128xf32>
    %166 = arith.addf %165, %164 : vector<256x128xf32>
    %c0_182 = arith.constant 0 : index
    %c0_183 = arith.constant 0 : index
    %167 = vector.load %arg5[%c0_182, %c0_183] : memref<256x128xf32, #tpu.memory_space<vmem>>, vector<256x128xf32>
    tpu.vector_store %arg5[%c0_182, %c0_183], %166 {strides = array<i32>} : memref<256x128xf32, #tpu.memory_space<vmem>>, vector<256x128xf32>,
    %c0_184 = arith.constant 0 : index
    %c3_185 = arith.constant 3 : index
    %c2_186 = arith.constant 2 : index
    %c0_187 = arith.constant 0 : index
    %168 = vector.load %arg1[%c0_184, %c3_185, %c2_186, %c0_187] : memref<1x20x20x128xf32, #tpu.memory_space<vmem>>, vector<1x16x16x128xf32>
    %169 = vector.shape_cast %168 : vector<1x16x16x128xf32> to vector<16x16x128xf32>
    %170 = vector.shape_cast %169 : vector<16x16x128xf32> to vector<256x128xf32>
    %171 = arith.truncf %170 : vector<256x128xf32> to vector<256x128xbf16>
    %c17 = arith.constant 17 : index
    %c0_188 = arith.constant 0 : index
    %c0_189 = arith.constant 0 : index
    %172 = vector.load %arg2[%c17, %c0_188, %c0_189] : memref<25x128x128xbf16, #tpu.memory_space<vmem>>, vector<1x128x128xbf16>
    %173 = vector.shape_cast %172 : vector<1x128x128xbf16> to vector<128x128xbf16>
    %cst_190 = arith.constant dense<0.000000e+00> : vector<256x128xf32>
    %174 = tpu.matmul %171, %173, %cst_190 {dimension_numbers = #tpu.dot_dimension_numbers<[1], [0], [0], [1], [0, 0, 1, 1], [], []>} : vector<256x128xbf16>, vector<128x128xbf16>, vector<256x128xf32> -> vector<256x128xf32>
    %c0_191 = arith.constant 0 : index
    %c0_192 = arith.constant 0 : index
    %175 = vector.load %arg5[%c0_191, %c0_192] : memref<256x128xf32, #tpu.memory_space<vmem>>, vector<256x128xf32>
    %176 = arith.addf %175, %174 : vector<256x128xf32>
    %c0_193 = arith.constant 0 : index
    %c0_194 = arith.constant 0 : index
    %177 = vector.load %arg5[%c0_193, %c0_194] : memref<256x128xf32, #tpu.memory_space<vmem>>, vector<256x128xf32>
    tpu.vector_store %arg5[%c0_193, %c0_194], %176 {strides = array<i32>} : memref<256x128xf32, #tpu.memory_space<vmem>>, vector<256x128xf32>,
    %c0_195 = arith.constant 0 : index
    %c3_196 = arith.constant 3 : index
    %c3_197 = arith.constant 3 : index
    %c0_198 = arith.constant 0 : index
    %178 = vector.load %arg1[%c0_195, %c3_196, %c3_197, %c0_198] : memref<1x20x20x128xf32, #tpu.memory_space<vmem>>, vector<1x16x16x128xf32>
    %179 = vector.shape_cast %178 : vector<1x16x16x128xf32> to vector<16x16x128xf32>
    %180 = vector.shape_cast %179 : vector<16x16x128xf32> to vector<256x128xf32>
    %181 = arith.truncf %180 : vector<256x128xf32> to vector<256x128xbf16>
    %c18 = arith.constant 18 : index
    %c0_199 = arith.constant 0 : index
    %c0_200 = arith.constant 0 : index
    %182 = vector.load %arg2[%c18, %c0_199, %c0_200] : memref<25x128x128xbf16, #tpu.memory_space<vmem>>, vector<1x128x128xbf16>
    %183 = vector.shape_cast %182 : vector<1x128x128xbf16> to vector<128x128xbf16>
    %cst_201 = arith.constant dense<0.000000e+00> : vector<256x128xf32>
    %184 = tpu.matmul %181, %183, %cst_201 {dimension_numbers = #tpu.dot_dimension_numbers<[1], [0], [0], [1], [0, 0, 1, 1], [], []>} : vector<256x128xbf16>, vector<128x128xbf16>, vector<256x128xf32> -> vector<256x128xf32>
    %c0_202 = arith.constant 0 : index
    %c0_203 = arith.constant 0 : index
    %185 = vector.load %arg5[%c0_202, %c0_203] : memref<256x128xf32, #tpu.memory_space<vmem>>, vector<256x128xf32>
    %186 = arith.addf %185, %184 : vector<256x128xf32>
    %c0_204 = arith.constant 0 : index
    %c0_205 = arith.constant 0 : index
    %187 = vector.load %arg5[%c0_204, %c0_205] : memref<256x128xf32, #tpu.memory_space<vmem>>, vector<256x128xf32>
    tpu.vector_store %arg5[%c0_204, %c0_205], %186 {strides = array<i32>} : memref<256x128xf32, #tpu.memory_space<vmem>>, vector<256x128xf32>,
    %c0_206 = arith.constant 0 : index
    %c3_207 = arith.constant 3 : index
    %c4_208 = arith.constant 4 : index
    %c0_209 = arith.constant 0 : index
    %188 = vector.load %arg1[%c0_206, %c3_207, %c4_208, %c0_209] : memref<1x20x20x128xf32, #tpu.memory_space<vmem>>, vector<1x16x16x128xf32>
    %189 = vector.shape_cast %188 : vector<1x16x16x128xf32> to vector<16x16x128xf32>
    %190 = vector.shape_cast %189 : vector<16x16x128xf32> to vector<256x128xf32>
    %191 = arith.truncf %190 : vector<256x128xf32> to vector<256x128xbf16>
    %c19 = arith.constant 19 : index
    %c0_210 = arith.constant 0 : index
    %c0_211 = arith.constant 0 : index
    %192 = vector.load %arg2[%c19, %c0_210, %c0_211] : memref<25x128x128xbf16, #tpu.memory_space<vmem>>, vector<1x128x128xbf16>
    %193 = vector.shape_cast %192 : vector<1x128x128xbf16> to vector<128x128xbf16>
    %cst_212 = arith.constant dense<0.000000e+00> : vector<256x128xf32>
    %194 = tpu.matmul %191, %193, %cst_212 {dimension_numbers = #tpu.dot_dimension_numbers<[1], [0], [0], [1], [0, 0, 1, 1], [], []>} : vector<256x128xbf16>, vector<128x128xbf16>, vector<256x128xf32> -> vector<256x128xf32>
    %c0_213 = arith.constant 0 : index
    %c0_214 = arith.constant 0 : index
    %195 = vector.load %arg5[%c0_213, %c0_214] : memref<256x128xf32, #tpu.memory_space<vmem>>, vector<256x128xf32>
    %196 = arith.addf %195, %194 : vector<256x128xf32>
    %c0_215 = arith.constant 0 : index
    %c0_216 = arith.constant 0 : index
    %197 = vector.load %arg5[%c0_215, %c0_216] : memref<256x128xf32, #tpu.memory_space<vmem>>, vector<256x128xf32>
    tpu.vector_store %arg5[%c0_215, %c0_216], %196 {strides = array<i32>} : memref<256x128xf32, #tpu.memory_space<vmem>>, vector<256x128xf32>,
    %c0_217 = arith.constant 0 : index
    %c4_218 = arith.constant 4 : index
    %c0_219 = arith.constant 0 : index
    %c0_220 = arith.constant 0 : index
    %198 = vector.load %arg1[%c0_217, %c4_218, %c0_219, %c0_220] : memref<1x20x20x128xf32, #tpu.memory_space<vmem>>, vector<1x16x16x128xf32>
    %199 = vector.shape_cast %198 : vector<1x16x16x128xf32> to vector<16x16x128xf32>
    %200 = vector.shape_cast %199 : vector<16x16x128xf32> to vector<256x128xf32>
    %201 = arith.truncf %200 : vector<256x128xf32> to vector<256x128xbf16>
    %c20 = arith.constant 20 : index
    %c0_221 = arith.constant 0 : index
    %c0_222 = arith.constant 0 : index
    %202 = vector.load %arg2[%c20, %c0_221, %c0_222] : memref<25x128x128xbf16, #tpu.memory_space<vmem>>, vector<1x128x128xbf16>
    %203 = vector.shape_cast %202 : vector<1x128x128xbf16> to vector<128x128xbf16>
    %cst_223 = arith.constant dense<0.000000e+00> : vector<256x128xf32>
    %204 = tpu.matmul %201, %203, %cst_223 {dimension_numbers = #tpu.dot_dimension_numbers<[1], [0], [0], [1], [0, 0, 1, 1], [], []>} : vector<256x128xbf16>, vector<128x128xbf16>, vector<256x128xf32> -> vector<256x128xf32>
    %c0_224 = arith.constant 0 : index
    %c0_225 = arith.constant 0 : index
    %205 = vector.load %arg5[%c0_224, %c0_225] : memref<256x128xf32, #tpu.memory_space<vmem>>, vector<256x128xf32>
    %206 = arith.addf %205, %204 : vector<256x128xf32>
    %c0_226 = arith.constant 0 : index
    %c0_227 = arith.constant 0 : index
    %207 = vector.load %arg5[%c0_226, %c0_227] : memref<256x128xf32, #tpu.memory_space<vmem>>, vector<256x128xf32>
    tpu.vector_store %arg5[%c0_226, %c0_227], %206 {strides = array<i32>} : memref<256x128xf32, #tpu.memory_space<vmem>>, vector<256x128xf32>,
    %c0_228 = arith.constant 0 : index
    %c4_229 = arith.constant 4 : index
    %c1_230 = arith.constant 1 : index
    %c0_231 = arith.constant 0 : index
    %208 = vector.load %arg1[%c0_228, %c4_229, %c1_230, %c0_231] : memref<1x20x20x128xf32, #tpu.memory_space<vmem>>, vector<1x16x16x128xf32>
    %209 = vector.shape_cast %208 : vector<1x16x16x128xf32> to vector<16x16x128xf32>
    %210 = vector.shape_cast %209 : vector<16x16x128xf32> to vector<256x128xf32>
    %211 = arith.truncf %210 : vector<256x128xf32> to vector<256x128xbf16>
    %c21 = arith.constant 21 : index
    %c0_232 = arith.constant 0 : index
    %c0_233 = arith.constant 0 : index
    %212 = vector.load %arg2[%c21, %c0_232, %c0_233] : memref<25x128x128xbf16, #tpu.memory_space<vmem>>, vector<1x128x128xbf16>
    %213 = vector.shape_cast %212 : vector<1x128x128xbf16> to vector<128x128xbf16>
    %cst_234 = arith.constant dense<0.000000e+00> : vector<256x128xf32>
    %214 = tpu.matmul %211, %213, %cst_234 {dimension_numbers = #tpu.dot_dimension_numbers<[1], [0], [0], [1], [0, 0, 1, 1], [], []>} : vector<256x128xbf16>, vector<128x128xbf16>, vector<256x128xf32> -> vector<256x128xf32>
    %c0_235 = arith.constant 0 : index
    %c0_236 = arith.constant 0 : index
    %215 = vector.load %arg5[%c0_235, %c0_236] : memref<256x128xf32, #tpu.memory_space<vmem>>, vector<256x128xf32>
    %216 = arith.addf %215, %214 : vector<256x128xf32>
    %c0_237 = arith.constant 0 : index
    %c0_238 = arith.constant 0 : index
    %217 = vector.load %arg5[%c0_237, %c0_238] : memref<256x128xf32, #tpu.memory_space<vmem>>, vector<256x128xf32>
    tpu.vector_store %arg5[%c0_237, %c0_238], %216 {strides = array<i32>} : memref<256x128xf32, #tpu.memory_space<vmem>>, vector<256x128xf32>,
    %c0_239 = arith.constant 0 : index
    %c4_240 = arith.constant 4 : index
    %c2_241 = arith.constant 2 : index
    %c0_242 = arith.constant 0 : index
    %218 = vector.load %arg1[%c0_239, %c4_240, %c2_241, %c0_242] : memref<1x20x20x128xf32, #tpu.memory_space<vmem>>, vector<1x16x16x128xf32>
    %219 = vector.shape_cast %218 : vector<1x16x16x128xf32> to vector<16x16x128xf32>
    %220 = vector.shape_cast %219 : vector<16x16x128xf32> to vector<256x128xf32>
    %221 = arith.truncf %220 : vector<256x128xf32> to vector<256x128xbf16>
    %c22 = arith.constant 22 : index
    %c0_243 = arith.constant 0 : index
    %c0_244 = arith.constant 0 : index
    %222 = vector.load %arg2[%c22, %c0_243, %c0_244] : memref<25x128x128xbf16, #tpu.memory_space<vmem>>, vector<1x128x128xbf16>
    %223 = vector.shape_cast %222 : vector<1x128x128xbf16> to vector<128x128xbf16>
    %cst_245 = arith.constant dense<0.000000e+00> : vector<256x128xf32>
    %224 = tpu.matmul %221, %223, %cst_245 {dimension_numbers = #tpu.dot_dimension_numbers<[1], [0], [0], [1], [0, 0, 1, 1], [], []>} : vector<256x128xbf16>, vector<128x128xbf16>, vector<256x128xf32> -> vector<256x128xf32>
    %c0_246 = arith.constant 0 : index
    %c0_247 = arith.constant 0 : index
    %225 = vector.load %arg5[%c0_246, %c0_247] : memref<256x128xf32, #tpu.memory_space<vmem>>, vector<256x128xf32>
    %226 = arith.addf %225, %224 : vector<256x128xf32>
    %c0_248 = arith.constant 0 : index
    %c0_249 = arith.constant 0 : index
    %227 = vector.load %arg5[%c0_248, %c0_249] : memref<256x128xf32, #tpu.memory_space<vmem>>, vector<256x128xf32>
    tpu.vector_store %arg5[%c0_248, %c0_249], %226 {strides = array<i32>} : memref<256x128xf32, #tpu.memory_space<vmem>>, vector<256x128xf32>,
    %c0_250 = arith.constant 0 : index
    %c4_251 = arith.constant 4 : index
    %c3_252 = arith.constant 3 : index
    %c0_253 = arith.constant 0 : index
    %228 = vector.load %arg1[%c0_250, %c4_251, %c3_252, %c0_253] : memref<1x20x20x128xf32, #tpu.memory_space<vmem>>, vector<1x16x16x128xf32>
    %229 = vector.shape_cast %228 : vector<1x16x16x128xf32> to vector<16x16x128xf32>
    %230 = vector.shape_cast %229 : vector<16x16x128xf32> to vector<256x128xf32>
    %231 = arith.truncf %230 : vector<256x128xf32> to vector<256x128xbf16>
    %c23 = arith.constant 23 : index
    %c0_254 = arith.constant 0 : index
    %c0_255 = arith.constant 0 : index
    %232 = vector.load %arg2[%c23, %c0_254, %c0_255] : memref<25x128x128xbf16, #tpu.memory_space<vmem>>, vector<1x128x128xbf16>
    %233 = vector.shape_cast %232 : vector<1x128x128xbf16> to vector<128x128xbf16>
    %cst_256 = arith.constant dense<0.000000e+00> : vector<256x128xf32>
    %234 = tpu.matmul %231, %233, %cst_256 {dimension_numbers = #tpu.dot_dimension_numbers<[1], [0], [0], [1], [0, 0, 1, 1], [], []>} : vector<256x128xbf16>, vector<128x128xbf16>, vector<256x128xf32> -> vector<256x128xf32>
    %c0_257 = arith.constant 0 : index
    %c0_258 = arith.constant 0 : index
    %235 = vector.load %arg5[%c0_257, %c0_258] : memref<256x128xf32, #tpu.memory_space<vmem>>, vector<256x128xf32>
    %236 = arith.addf %235, %234 : vector<256x128xf32>
    %c0_259 = arith.constant 0 : index
    %c0_260 = arith.constant 0 : index
    %237 = vector.load %arg5[%c0_259, %c0_260] : memref<256x128xf32, #tpu.memory_space<vmem>>, vector<256x128xf32>
    tpu.vector_store %arg5[%c0_259, %c0_260], %236 {strides = array<i32>} : memref<256x128xf32, #tpu.memory_space<vmem>>, vector<256x128xf32>,
    %c0_261 = arith.constant 0 : index
    %c4_262 = arith.constant 4 : index
    %c4_263 = arith.constant 4 : index
    %c0_264 = arith.constant 0 : index
    %238 = vector.load %arg1[%c0_261, %c4_262, %c4_263, %c0_264] : memref<1x20x20x128xf32, #tpu.memory_space<vmem>>, vector<1x16x16x128xf32>
    %239 = vector.shape_cast %238 : vector<1x16x16x128xf32> to vector<16x16x128xf32>
    %240 = vector.shape_cast %239 : vector<16x16x128xf32> to vector<256x128xf32>
    %241 = arith.truncf %240 : vector<256x128xf32> to vector<256x128xbf16>
    %c24 = arith.constant 24 : index
    %c0_265 = arith.constant 0 : index
    %c0_266 = arith.constant 0 : index
    %242 = vector.load %arg2[%c24, %c0_265, %c0_266] : memref<25x128x128xbf16, #tpu.memory_space<vmem>>, vector<1x128x128xbf16>
    %243 = vector.shape_cast %242 : vector<1x128x128xbf16> to vector<128x128xbf16>
    %cst_267 = arith.constant dense<0.000000e+00> : vector<256x128xf32>
    %244 = tpu.matmul %241, %243, %cst_267 {dimension_numbers = #tpu.dot_dimension_numbers<[1], [0], [0], [1], [0, 0, 1, 1], [], []>} : vector<256x128xbf16>, vector<128x128xbf16>, vector<256x128xf32> -> vector<256x128xf32>
    %c0_268 = arith.constant 0 : index
    %c0_269 = arith.constant 0 : index
    %245 = vector.load %arg5[%c0_268, %c0_269] : memref<256x128xf32, #tpu.memory_space<vmem>>, vector<256x128xf32>
    %246 = arith.addf %245, %244 : vector<256x128xf32>
    %c0_270 = arith.constant 0 : index
    %c0_271 = arith.constant 0 : index
    %247 = vector.load %arg5[%c0_270, %c0_271] : memref<256x128xf32, #tpu.memory_space<vmem>>, vector<256x128xf32>
    tpu.vector_store %arg5[%c0_270, %c0_271], %246 {strides = array<i32>} : memref<256x128xf32, #tpu.memory_space<vmem>>, vector<256x128xf32>,
    %c0_272 = arith.constant 0 : index
    %c0_273 = arith.constant 0 : index
    %248 = vector.load %arg5[%c0_272, %c0_273] : memref<256x128xf32, #tpu.memory_space<vmem>>, vector<256x128xf32>
    %c0_274 = arith.constant 0 : index
    %c0_275 = arith.constant 0 : index
    %249 = vector.load %arg3[%c0_274, %c0_275] : memref<1x128xf32, #tpu.memory_space<vmem>>, vector<1x128xf32>
    %250 = vector.broadcast %249 : vector<1x128xf32> to vector<256x128xf32>
    %251 = arith.addf %248, %250 : vector<256x128xf32>
    %cst_276 = arith.constant 0.000000e+00 : f32
    %252 = vector.broadcast %cst_276 : f32 to vector<256x128xf32>
    %253 = arith.maximumf %251, %252 : vector<256x128xf32>
    %254 = vector.shape_cast %253 : vector<256x128xf32> to vector<8x32x128xf32>
    %255 = vector.extract_strided_slice %254 {offsets = [0, 0, 0], sizes = [8, 16, 128], strides = [1, 1, 1]} : vector<8x32x128xf32> to vector<8x16x128xf32>
    %256 = vector.extract_strided_slice %254 {offsets = [0, 16, 0], sizes = [8, 16, 128], strides = [1, 1, 1]} : vector<8x32x128xf32> to vector<8x16x128xf32>
    %257 = arith.maximumf %255, %256 : vector<8x16x128xf32>
    %cst_277 = arith.constant 0.000000e+00 : f32
    %258 = vector.broadcast %cst_277 : f32 to vector<1x12x12x128xf32>
    %c0_278 = arith.constant 0 : index
    %c0_279 = arith.constant 0 : index
    %c0_280 = arith.constant 0 : index
    %c0_281 = arith.constant 0 : index
    %259 = vector.load %arg4[%c0_278, %c0_279, %c0_280, %c0_281] : memref<1x12x12x128xf32, #tpu.memory_space<vmem>>, vector<1x12x12x128xf32>
    tpu.vector_store %arg4[%c0_278, %c0_279, %c0_280, %c0_281], %258 {strides = array<i32>} : memref<1x12x12x128xf32, #tpu.memory_space<vmem>>, vector<1x12x12x128xf32>,
    %260 = vector.extract_strided_slice %257 {offsets = [0, 0, 0], sizes = [8, 1, 128], strides = [1, 1, 1]} : vector<8x16x128xf32> to vector<8x1x128xf32>
    %261 = vector.shape_cast %260 : vector<8x1x128xf32> to vector<8x128xf32>
    %262 = vector.extract_strided_slice %257 {offsets = [0, 1, 0], sizes = [8, 1, 128], strides = [1, 1, 1]} : vector<8x16x128xf32> to vector<8x1x128xf32>
    %263 = vector.shape_cast %262 : vector<8x1x128xf32> to vector<8x128xf32>
    %264 = arith.maximumf %261, %263 : vector<8x128xf32>
    %c0_282 = arith.constant 0 : index
    %c2_283 = arith.constant 2 : index
    %c2_284 = arith.constant 2 : index
    %c0_285 = arith.constant 0 : index
    %265 = vector.load %arg4[%c0_282, %c2_283, %c2_284, %c0_285] : memref<1x12x12x128xf32, #tpu.memory_space<vmem>>, vector<1x8x1x128xf32>
    %266 = vector.shape_cast %265 : vector<1x8x1x128xf32> to vector<8x128xf32>
    %267 = vector.shape_cast %264 : vector<8x128xf32> to vector<1x8x1x128xf32>
    tpu.vector_store %arg4[%c0_282, %c2_283, %c2_284, %c0_285], %267 {strides = array<i32>} : memref<1x12x12x128xf32, #tpu.memory_space<vmem>>, vector<1x8x1x128xf32>,
    %268 = vector.extract_strided_slice %257 {offsets = [0, 2, 0], sizes = [8, 1, 128], strides = [1, 1, 1]} : vector<8x16x128xf32> to vector<8x1x128xf32>
    %269 = vector.shape_cast %268 : vector<8x1x128xf32> to vector<8x128xf32>
    %270 = vector.extract_strided_slice %257 {offsets = [0, 3, 0], sizes = [8, 1, 128], strides = [1, 1, 1]} : vector<8x16x128xf32> to vector<8x1x128xf32>
    %271 = vector.shape_cast %270 : vector<8x1x128xf32> to vector<8x128xf32>
    %272 = arith.maximumf %269, %271 : vector<8x128xf32>
    %c0_286 = arith.constant 0 : index
    %c2_287 = arith.constant 2 : index
    %c3_288 = arith.constant 3 : index
    %c0_289 = arith.constant 0 : index
    %273 = vector.load %arg4[%c0_286, %c2_287, %c3_288, %c0_289] : memref<1x12x12x128xf32, #tpu.memory_space<vmem>>, vector<1x8x1x128xf32>
    %274 = vector.shape_cast %273 : vector<1x8x1x128xf32> to vector<8x128xf32>
    %275 = vector.shape_cast %272 : vector<8x128xf32> to vector<1x8x1x128xf32>
    tpu.vector_store %arg4[%c0_286, %c2_287, %c3_288, %c0_289], %275 {strides = array<i32>} : memref<1x12x12x128xf32, #tpu.memory_space<vmem>>, vector<1x8x1x128xf32>,
    %276 = vector.extract_strided_slice %257 {offsets = [0, 4, 0], sizes = [8, 1, 128], strides = [1, 1, 1]} : vector<8x16x128xf32> to vector<8x1x128xf32>
    %277 = vector.shape_cast %276 : vector<8x1x128xf32> to vector<8x128xf32>
    %278 = vector.extract_strided_slice %257 {offsets = [0, 5, 0], sizes = [8, 1, 128], strides = [1, 1, 1]} : vector<8x16x128xf32> to vector<8x1x128xf32>
    %279 = vector.shape_cast %278 : vector<8x1x128xf32> to vector<8x128xf32>
    %280 = arith.maximumf %277, %279 : vector<8x128xf32>
    %c0_290 = arith.constant 0 : index
    %c2_291 = arith.constant 2 : index
    %c4_292 = arith.constant 4 : index
    %c0_293 = arith.constant 0 : index
    %281 = vector.load %arg4[%c0_290, %c2_291, %c4_292, %c0_293] : memref<1x12x12x128xf32, #tpu.memory_space<vmem>>, vector<1x8x1x128xf32>
    %282 = vector.shape_cast %281 : vector<1x8x1x128xf32> to vector<8x128xf32>
    %283 = vector.shape_cast %280 : vector<8x128xf32> to vector<1x8x1x128xf32>
    tpu.vector_store %arg4[%c0_290, %c2_291, %c4_292, %c0_293], %283 {strides = array<i32>} : memref<1x12x12x128xf32, #tpu.memory_space<vmem>>, vector<1x8x1x128xf32>,
    %284 = vector.extract_strided_slice %257 {offsets = [0, 6, 0], sizes = [8, 1, 128], strides = [1, 1, 1]} : vector<8x16x128xf32> to vector<8x1x128xf32>
    %285 = vector.shape_cast %284 : vector<8x1x128xf32> to vector<8x128xf32>
    %286 = vector.extract_strided_slice %257 {offsets = [0, 7, 0], sizes = [8, 1, 128], strides = [1, 1, 1]} : vector<8x16x128xf32> to vector<8x1x128xf32>
    %287 = vector.shape_cast %286 : vector<8x1x128xf32> to vector<8x128xf32>
    %288 = arith.maximumf %285, %287 : vector<8x128xf32>
    %c0_294 = arith.constant 0 : index
    %c2_295 = arith.constant 2 : index
    %c5_296 = arith.constant 5 : index
    %c0_297 = arith.constant 0 : index
    %289 = vector.load %arg4[%c0_294, %c2_295, %c5_296, %c0_297] : memref<1x12x12x128xf32, #tpu.memory_space<vmem>>, vector<1x8x1x128xf32>
    %290 = vector.shape_cast %289 : vector<1x8x1x128xf32> to vector<8x128xf32>
    %291 = vector.shape_cast %288 : vector<8x128xf32> to vector<1x8x1x128xf32>
    tpu.vector_store %arg4[%c0_294, %c2_295, %c5_296, %c0_297], %291 {strides = array<i32>} : memref<1x12x12x128xf32, #tpu.memory_space<vmem>>, vector<1x8x1x128xf32>,
    %292 = vector.extract_strided_slice %257 {offsets = [0, 8, 0], sizes = [8, 1, 128], strides = [1, 1, 1]} : vector<8x16x128xf32> to vector<8x1x128xf32>
    %293 = vector.shape_cast %292 : vector<8x1x128xf32> to vector<8x128xf32>
    %294 = vector.extract_strided_slice %257 {offsets = [0, 9, 0], sizes = [8, 1, 128], strides = [1, 1, 1]} : vector<8x16x128xf32> to vector<8x1x128xf32>
    %295 = vector.shape_cast %294 : vector<8x1x128xf32> to vector<8x128xf32>
    %296 = arith.maximumf %293, %295 : vector<8x128xf32>
    %c0_298 = arith.constant 0 : index
    %c2_299 = arith.constant 2 : index
    %c6_300 = arith.constant 6 : index
    %c0_301 = arith.constant 0 : index
    %297 = vector.load %arg4[%c0_298, %c2_299, %c6_300, %c0_301] : memref<1x12x12x128xf32, #tpu.memory_space<vmem>>, vector<1x8x1x128xf32>
    %298 = vector.shape_cast %297 : vector<1x8x1x128xf32> to vector<8x128xf32>
    %299 = vector.shape_cast %296 : vector<8x128xf32> to vector<1x8x1x128xf32>
    tpu.vector_store %arg4[%c0_298, %c2_299, %c6_300, %c0_301], %299 {strides = array<i32>} : memref<1x12x12x128xf32, #tpu.memory_space<vmem>>, vector<1x8x1x128xf32>,
    %300 = vector.extract_strided_slice %257 {offsets = [0, 10, 0], sizes = [8, 1, 128], strides = [1, 1, 1]} : vector<8x16x128xf32> to vector<8x1x128xf32>
    %301 = vector.shape_cast %300 : vector<8x1x128xf32> to vector<8x128xf32>
    %302 = vector.extract_strided_slice %257 {offsets = [0, 11, 0], sizes = [8, 1, 128], strides = [1, 1, 1]} : vector<8x16x128xf32> to vector<8x1x128xf32>
    %303 = vector.shape_cast %302 : vector<8x1x128xf32> to vector<8x128xf32>
    %304 = arith.maximumf %301, %303 : vector<8x128xf32>
    %c0_302 = arith.constant 0 : index
    %c2_303 = arith.constant 2 : index
    %c7_304 = arith.constant 7 : index
    %c0_305 = arith.constant 0 : index
    %305 = vector.load %arg4[%c0_302, %c2_303, %c7_304, %c0_305] : memref<1x12x12x128xf32, #tpu.memory_space<vmem>>, vector<1x8x1x128xf32>
    %306 = vector.shape_cast %305 : vector<1x8x1x128xf32> to vector<8x128xf32>
    %307 = vector.shape_cast %304 : vector<8x128xf32> to vector<1x8x1x128xf32>
    tpu.vector_store %arg4[%c0_302, %c2_303, %c7_304, %c0_305], %307 {strides = array<i32>} : memref<1x12x12x128xf32, #tpu.memory_space<vmem>>, vector<1x8x1x128xf32>,
    %308 = vector.extract_strided_slice %257 {offsets = [0, 12, 0], sizes = [8, 1, 128], strides = [1, 1, 1]} : vector<8x16x128xf32> to vector<8x1x128xf32>
    %309 = vector.shape_cast %308 : vector<8x1x128xf32> to vector<8x128xf32>
    %310 = vector.extract_strided_slice %257 {offsets = [0, 13, 0], sizes = [8, 1, 128], strides = [1, 1, 1]} : vector<8x16x128xf32> to vector<8x1x128xf32>
    %311 = vector.shape_cast %310 : vector<8x1x128xf32> to vector<8x128xf32>
    %312 = arith.maximumf %309, %311 : vector<8x128xf32>
    %c0_306 = arith.constant 0 : index
    %c2_307 = arith.constant 2 : index
    %c8_308 = arith.constant 8 : index
    %c0_309 = arith.constant 0 : index
    %313 = vector.load %arg4[%c0_306, %c2_307, %c8_308, %c0_309] : memref<1x12x12x128xf32, #tpu.memory_space<vmem>>, vector<1x8x1x128xf32>
    %314 = vector.shape_cast %313 : vector<1x8x1x128xf32> to vector<8x128xf32>
    %315 = vector.shape_cast %312 : vector<8x128xf32> to vector<1x8x1x128xf32>
    tpu.vector_store %arg4[%c0_306, %c2_307, %c8_308, %c0_309], %315 {strides = array<i32>} : memref<1x12x12x128xf32, #tpu.memory_space<vmem>>, vector<1x8x1x128xf32>,
    %316 = vector.extract_strided_slice %257 {offsets = [0, 14, 0], sizes = [8, 1, 128], strides = [1, 1, 1]} : vector<8x16x128xf32> to vector<8x1x128xf32>
    %317 = vector.shape_cast %316 : vector<8x1x128xf32> to vector<8x128xf32>
    %318 = vector.extract_strided_slice %257 {offsets = [0, 15, 0], sizes = [8, 1, 128], strides = [1, 1, 1]} : vector<8x16x128xf32> to vector<8x1x128xf32>
    %319 = vector.shape_cast %318 : vector<8x1x128xf32> to vector<8x128xf32>
    %320 = arith.maximumf %317, %319 : vector<8x128xf32>
    %c0_310 = arith.constant 0 : index
    %c2_311 = arith.constant 2 : index
    %c9_312 = arith.constant 9 : index
    %c0_313 = arith.constant 0 : index
    %321 = vector.load %arg4[%c0_310, %c2_311, %c9_312, %c0_313] : memref<1x12x12x128xf32, #tpu.memory_space<vmem>>, vector<1x8x1x128xf32>
    %322 = vector.shape_cast %321 : vector<1x8x1x128xf32> to vector<8x128xf32>
    %323 = vector.shape_cast %320 : vector<8x128xf32> to vector<1x8x1x128xf32>
    tpu.vector_store %arg4[%c0_310, %c2_311, %c9_312, %c0_313], %323 {strides = array<i32>} : memref<1x12x12x128xf32, #tpu.memory_space<vmem>>, vector<1x8x1x128xf32>,
    return
  }
  func.func @transform_0(%arg0: i32) -> (i32, i32, i32, i32) {
    %c0_i32 = arith.constant 0 : i32
    %c0_i32_0 = arith.constant 0 : i32
    %c0_i32_1 = arith.constant 0 : i32
    %c0_i32_2 = arith.constant 0 : i32
    return %arg0, %c0_i32, %c0_i32_0, %c0_i32_1 : i32, i32, i32, i32
  }
  func.func @transform_1(%arg0: i32) -> (i32, i32, i32) {
    %c0_i32 = arith.constant 0 : i32
    %c0_i32_0 = arith.constant 0 : i32
    %c0_i32_1 = arith.constant 0 : i32
    %c0_i32_2 = arith.constant 0 : i32
    return %c0_i32, %c0_i32_0, %c0_i32_1 : i32, i32, i32
  }
  func.func @transform_2(%arg0: i32) -> (i32, i32) {
    %c0_i32 = arith.constant 0 : i32
    %c0_i32_0 = arith.constant 0 : i32
    %c0_i32_1 = arith.constant 0 : i32
    return %c0_i32, %c0_i32_0 : i32, i32
  }
  func.func @transform_3(%arg0: i32) -> (i32, i32, i32, i32) {
    %c0_i32 = arith.constant 0 : i32
    %c0_i32_0 = arith.constant 0 : i32
    %c0_i32_1 = arith.constant 0 : i32
    %c0_i32_2 = arith.constant 0 : i32
    return %arg0, %c0_i32, %c0_i32_0, %c0_i32_1 : i32, i32, i32, i32
  }
}

module attributes {stable_mosaic.version = 11 : i64} {
  func.func @_fc_head_kernel(%arg0: i32, %arg1: memref<2x2048xf32, #tpu.memory_space<vmem>>, %arg2: memref<2048x128xbf16, #tpu.memory_space<vmem>>, %arg3: memref<1x128xf32, #tpu.memory_space<vmem>>, %arg4: memref<128x128xbf16, #tpu.memory_space<vmem>>, %arg5: memref<1x128xf32, #tpu.memory_space<vmem>>, %arg6: memref<2x128xf32, #tpu.memory_space<vmem>>) attributes {dimension_semantics = [#tpu.dimension_semantics<parallel>], iteration_bounds = array<i64: 1>, scalar_prefetch = 0 : i64, scratch_operands = 0 : i64, tpu.core_type = #tpu.core_type<tc>, window_params = [{transform_indices = @transform_0, window_bounds = array<i64: 2, 2048>}, {pipeline_mode = #tpu.pipeline_mode<synchronous>, transform_indices = @transform_1, window_bounds = array<i64: 2048, 128>}, {pipeline_mode = #tpu.pipeline_mode<synchronous>, transform_indices = @transform_2, window_bounds = array<i64: 1, 128>}, {pipeline_mode = #tpu.pipeline_mode<synchronous>, transform_indices = @transform_3, window_bounds = array<i64: 128, 128>}, {pipeline_mode = #tpu.pipeline_mode<synchronous>, transform_indices = @transform_4, window_bounds = array<i64: 1, 128>}, {transform_indices = @transform_5, window_bounds = array<i64: 2, 128>}]} {
    %c0 = arith.constant 0 : index
    %c0_0 = arith.constant 0 : index
    %0 = vector.load %arg1[%c0, %c0_0] : memref<2x2048xf32, #tpu.memory_space<vmem>>, vector<2x2048xf32>
    %1 = arith.truncf %0 : vector<2x2048xf32> to vector<2x2048xbf16>
    %c0_1 = arith.constant 0 : index
    %c0_2 = arith.constant 0 : index
    %2 = vector.load %arg2[%c0_1, %c0_2] : memref<2048x128xbf16, #tpu.memory_space<vmem>>, vector<2048x128xbf16>
    %cst = arith.constant dense<0.000000e+00> : vector<2x128xf32>
    %3 = tpu.matmul %1, %2, %cst {dimension_numbers = #tpu.dot_dimension_numbers<[1], [0], [0], [1], [0, 0, 1, 1], [], []>} : vector<2x2048xbf16>, vector<2048x128xbf16>, vector<2x128xf32> -> vector<2x128xf32>
    %c0_3 = arith.constant 0 : index
    %c0_4 = arith.constant 0 : index
    %4 = vector.load %arg3[%c0_3, %c0_4] : memref<1x128xf32, #tpu.memory_space<vmem>>, vector<1x128xf32>
    %5 = vector.broadcast %4 : vector<1x128xf32> to vector<2x128xf32>
    %6 = arith.addf %3, %5 : vector<2x128xf32>
    %cst_5 = arith.constant 0.000000e+00 : f32
    %7 = vector.broadcast %cst_5 : f32 to vector<2x128xf32>
    %8 = arith.maximumf %6, %7 : vector<2x128xf32>
    %9 = arith.truncf %8 : vector<2x128xf32> to vector<2x128xbf16>
    %c0_6 = arith.constant 0 : index
    %c0_7 = arith.constant 0 : index
    %10 = vector.load %arg4[%c0_6, %c0_7] : memref<128x128xbf16, #tpu.memory_space<vmem>>, vector<128x128xbf16>
    %cst_8 = arith.constant dense<0.000000e+00> : vector<2x128xf32>
    %11 = tpu.matmul %9, %10, %cst_8 {dimension_numbers = #tpu.dot_dimension_numbers<[1], [0], [0], [1], [0, 0, 1, 1], [], []>} : vector<2x128xbf16>, vector<128x128xbf16>, vector<2x128xf32> -> vector<2x128xf32>
    %c0_9 = arith.constant 0 : index
    %c0_10 = arith.constant 0 : index
    %12 = vector.load %arg5[%c0_9, %c0_10] : memref<1x128xf32, #tpu.memory_space<vmem>>, vector<1x128xf32>
    %13 = vector.broadcast %12 : vector<1x128xf32> to vector<2x128xf32>
    %14 = arith.addf %11, %13 : vector<2x128xf32>
    %cst_11 = arith.constant dense<0xFF800000> : vector<2xf32>
    %15 = vector.multi_reduction <maximumf>, %14, %cst_11 [1] : vector<2x128xf32> to vector<2xf32>
    %16 = vector.shape_cast %15 : vector<2xf32> to vector<2x1xf32>
    %17 = vector.broadcast %16 : vector<2x1xf32> to vector<2x128xf32>
    %18 = arith.subf %14, %17 : vector<2x128xf32>
    %19 = math.exp %18 : vector<2x128xf32>
    %cst_12 = arith.constant dense<0.000000e+00> : vector<2xf32>
    %20 = vector.multi_reduction <add>, %19, %cst_12 [1] : vector<2x128xf32> to vector<2xf32>
    %21 = vector.shape_cast %20 : vector<2xf32> to vector<2x1xf32>
    %22 = tpu.reciprocal %21 {approx = true} : vector<2x1xf32> -> vector<2x1xf32>
    %23 = vector.broadcast %22 : vector<2x1xf32> to vector<2x128xf32>
    %24 = arith.mulf %19, %23 : vector<2x128xf32>
    %c0_13 = arith.constant 0 : index
    %c0_14 = arith.constant 0 : index
    %25 = vector.load %arg6[%c0_13, %c0_14] : memref<2x128xf32, #tpu.memory_space<vmem>>, vector<2x128xf32>
    tpu.vector_store %arg6[%c0_13, %c0_14], %24 {strides = array<i32>} : memref<2x128xf32, #tpu.memory_space<vmem>>, vector<2x128xf32>,
    return
  }
  func.func @transform_0(%arg0: i32) -> (i32, i32) {
    %c0_i32 = arith.constant 0 : i32
    %c0_i32_0 = arith.constant 0 : i32
    return %arg0, %c0_i32 : i32, i32
  }
  func.func @transform_1(%arg0: i32) -> (i32, i32) {
    %c0_i32 = arith.constant 0 : i32
    %c0_i32_0 = arith.constant 0 : i32
    %c0_i32_1 = arith.constant 0 : i32
    return %c0_i32, %c0_i32_0 : i32, i32
  }
  func.func @transform_2(%arg0: i32) -> (i32, i32) {
    %c0_i32 = arith.constant 0 : i32
    %c0_i32_0 = arith.constant 0 : i32
    %c0_i32_1 = arith.constant 0 : i32
    return %c0_i32, %c0_i32_0 : i32, i32
  }
  func.func @transform_3(%arg0: i32) -> (i32, i32) {
    %c0_i32 = arith.constant 0 : i32
    %c0_i32_0 = arith.constant 0 : i32
    %c0_i32_1 = arith.constant 0 : i32
    return %c0_i32, %c0_i32_0 : i32, i32
  }
  func.func @transform_4(%arg0: i32) -> (i32, i32) {
    %c0_i32 = arith.constant 0 : i32
    %c0_i32_0 = arith.constant 0 : i32
    %c0_i32_1 = arith.constant 0 : i32
    return %c0_i32, %c0_i32_0 : i32, i32
  }
  func.func @transform_5(%arg0: i32) -> (i32, i32) {
    %c0_i32 = arith.constant 0 : i32
    %c0_i32_0 = arith.constant 0 : i32
    return %arg0, %c0_i32 : i32, i32
  }
}

</mosaic_0001>

<bundles_post_ra>
// kernel: net2_forward.5
= control target key start
LH: loop header
LB: loop body
LE: loop exit
PB: predicated region body
PF: predicated region fallthrough
CT: control target
= control target key end

     0   :  { %v34_v28 = vlaneseq  ;;  %v2136_v36 = vmov 1983009808   ;;  %s2618_s0 = inlined_call_operand.vmem [shape: f32[2,2048], index: 0, kind: input, shape index: {}]   ;;  %s2619_s1 = inlined_call_operand.vmem [shape: bf16[2048,128], index: 1, kind: input, shape index: {}]   ;;  %s2620_s2 = inlined_call_operand.vmem [shape: f32[1,128], index: 2, kind: input, shape index: {}]   ;;  %s2621_s3 = inlined_call_operand.vmem [shape: bf16[128,128], index: 3, kind: input, shape index: {}]   ;;  %s2622_s4 = inlined_call_operand.vmem [shape: f32[1,128], index: 4, kind: input, shape index: {}]   ;;  %s2623_s5 = inlined_call_operand.hbm [shape: f32[2,128], index: 5, kind: output, shape index: {}]  }
   0x1   :  { %v1968_v0 = vld [vmem:[%s2619_s1 + $0x40] sm:$0xff]   ;;  %v1972_v4 = vld [vmem:[%s2619_s1 + $0x48] sm:$0xff]   ;;  %v1976_v8 = vld [vmem:[%s2619_s1 + $0x50] sm:$0xff]   ;;  %v32_v37 = vunpack.c.l.s4 %v2136_v36 }
   0x2   :  { %v1969_v1 = vld [vmem:[%s2619_s1 + $0xc0] sm:$0xff]   ;;  %1759 = vmatprep.subr.bf16.mxu0 %v1968_v0  ;;  %v1973_v5 = vld [vmem:[%s2619_s1 + $0xc8] sm:$0xff]   ;;  %v1977_v9 = vld [vmem:[%s2619_s1 + $0xd0] sm:$0xff]   ;;  %v35_v33 = vshrl.u32 %v34_v28, 7 }
   0x3   :  { %v1970_v2 = vld [vmem:[%s2619_s1] sm:$0xff]   ;;  %1781 = vmatprep.subr.bf16.mxu1 %v1969_v1  ;;  %v1974_v6 = vld [vmem:[%s2619_s1 + $0x8] sm:$0xff]   ;;  %v1978_v10 = vld [vmem:[%s2619_s1 + $0x10] sm:$0xff]   ;;  %v33_v39 = vunpack.c.0.s8 %v32_v37 }
   0x4   :  { %v1971_v3 = vld [vmem:[%s2619_s1 + $0x80] sm:$0xff]   ;;  %1760 = vmatpush3.bf16.msra.mxu0 %v1970_v2  ;;  %v1975_v7 = vld [vmem:[%s2619_s1 + $0x88] sm:$0xff]   ;;  %v1979_v11 = vld [vmem:[%s2619_s1 + $0x90] sm:$0xff]  }
   0x5   :  { %1782 = vmatpush3.bf16.msra.mxu1 %v1971_v3  ;;  %1761 = vmatprep.subr.bf16.mxu0 %v1972_v4  ;;  %v1980_v12 = vld [vmem:[%s2619_s1 + $0x58] sm:$0xff]   ;;  %v1984_v16 = vld [vmem:[%s2619_s1 + $0x60] sm:$0xff]   ;;  %v1988_v20 = vld [vmem:[%s2619_s1 + $0x68] sm:$0xff]   ;;  %v2275_v41 = vsub.s32 %v33_v39, %v35_v33 }
   0x6   :  { %1783 = vmatprep.subr.bf16.mxu1 %v1973_v5  ;;  %v1981_v13 = vld [vmem:[%s2619_s1 + $0xd8] sm:$0xff]   ;;  %v1985_v17 = vld [vmem:[%s2619_s1 + $0xe0] sm:$0xff]   ;;  %v1989_v21 = vld [vmem:[%s2619_s1 + $0xe8] sm:$0xff]  }
   0x7   :  { %v1982_v14 = vld [vmem:[%s2619_s1 + $0x18] sm:$0xff]   ;;  %v1986_v18 = vld [vmem:[%s2619_s1 + $0x20] sm:$0xff]   ;;  %v1990_v22 = vld [vmem:[%s2619_s1 + $0x28] sm:$0xff]  }
   0x8   :  { %1762 = vmatpush3.bf16.msra.mxu0 %v1974_v6  ;;  %v1983_v15 = vld [vmem:[%s2619_s1 + $0x98] sm:$0xff]   ;;  %v1987_v19 = vld [vmem:[%s2619_s1 + $0xa0] sm:$0xff]   ;;  %v1991_v23 = vld [vmem:[%s2619_s1 + $0xa8] sm:$0xff]  }
   0x9   :  { %1784 = vmatpush3.bf16.msra.mxu1 %v1975_v7  ;;  %1763 = vmatprep.subr.bf16.mxu0 %v1976_v8  ;;  %v1992_v24 = vld [vmem:[%s2619_s1 + $0x70] sm:$0xff]   ;;  %v1996_v29 = vld [vmem:[%s2619_s1 + $0x78] sm:$0xff]   ;;  %v22_v34 = vld [vmem:[%s2618_s0] sm:$0xff] }
   0xa   :  { %1785 = vmatprep.subr.bf16.mxu1 %v1977_v9  ;;  %v1993_v25 = vld [vmem:[%s2619_s1 + $0xf0] sm:$0xff]   ;;  %v1997_v30 = vld [vmem:[%s2619_s1 + $0xf8] sm:$0xff]   ;;  %v2001_v35 = vld [vmem:[%s2619_s1 + $0x140] sm:$0xff]   ;;  %v30_v40 = vcombine.high %v22_v34, %v22_v34  ;;  %v37_v42 = vrot.slane %v22_v34, %v2275_v41 }
   0xb   :  { %v1994_v26 = vld [vmem:[%s2619_s1 + $0x30] sm:$0xff]   ;;  %v1998_v31 = vld [vmem:[%s2619_s1 + $0x38] sm:$0xff]   ;;  %v2002_v38 = vld [vmem:[%s2619_s1 + $0x1c0] sm:$0xff]  }
   0xc   :  { %1764 = vmatpush3.bf16.msra.mxu0 %v1978_v10  ;;  %v1995_v27 = vld [vmem:[%s2619_s1 + $0xb0] sm:$0xff]   ;;  %v1999_v32 = vld [vmem:[%s2619_s1 + $0xb8] sm:$0xff]   ;;  %v44_v43 = vrot.slane %v30_v40, %v2275_v41  ;;  %v45_v44 = vcombine.high %v37_v42, %v37_v42  ;;  %v2003_v46 = vld [vmem:[%s2619_s1 + $0x100] sm:$0xff]   ;;  %v114_v47 = vpack.c.bf16 %v37_v42, %v37_v42 }
   0xd   :  { %1786 = vmatpush3.bf16.msra.mxu1 %v1979_v11  ;;  %1765 = vmatprep.subr.bf16.mxu0 %v1980_v12  ;;  %v2004_v49 = vld [vmem:[%s2619_s1 + $0x180] sm:$0xff]   ;;  %v2005_v52 = vld [vmem:[%s2619_s1 + $0x148] sm:$0xff]   ;;  %v2009_v56 = vld [vmem:[%s2619_s1 + $0x150] sm:$0xff]  }
   0xe   :  { %1787 = vmatprep.subr.bf16.mxu1 %v1981_v13  ;;  %v46_v45 = vcombine.high %v44_v43, %v44_v43  ;;  %v116_v48 = vpack.c.bf16 %v44_v43, %v44_v43  ;;  %v115_v50 = vpack.c.bf16 %v45_v44, %v45_v44  ;;  %v2006_v53 = vld [vmem:[%s2619_s1 + $0x1c8] sm:$0xff]   ;;  %v2010_v57 = vld [vmem:[%s2619_s1 + $0x1d0] sm:$0xff]   ;;  %v2013_v60 = vld [vmem:[%s2619_s1 + $0x158] sm:$0xff]  }
   0xf   :  { %v2007_v54 = vld [vmem:[%s2619_s1 + $0x108] sm:$0xff]   ;;  %v2011_v58 = vld [vmem:[%s2619_s1 + $0x110] sm:$0xff]   ;;  %v2014_v61 = vld [vmem:[%s2619_s1 + $0x1d8] sm:$0xff]  }
  0x10   :  { %1766 = vmatpush3.bf16.msra.mxu0 %v1982_v14  ;;  %v117_v51 = vpack.c.bf16 %v46_v45, %v46_v45  ;;  %1193 = vmatprep.mubr.bf16.mxu0 %v115_v50  ;;  %v2008_v55 = vld [vmem:[%s2619_s1 + $0x188] sm:$0xff]   ;;  %v2012_v59 = vld [vmem:[%s2619_s1 + $0x190] sm:$0xff]   ;;  %v2015_v62 = vld [vmem:[%s2619_s1 + $0x118] sm:$0xff]  }
  0x11   :  { %1788 = vmatpush3.bf16.msra.mxu1 %v1983_v15  ;;  %1767 = vmatprep.subr.bf16.mxu0 %v1984_v16  ;;  %v2016_v63 = vld [vmem:[%s2619_s1 + $0x198] sm:$0xff]   ;;  %v2017_v0 = vld [vmem:[%s2619_s1 + $0x160] sm:$0xff]   ;;  %v2021_v4 = vld [vmem:[%s2619_s1 + $0x168] sm:$0xff]  }
  0x12   :  { %1789 = vmatprep.subr.bf16.mxu1 %v1985_v17  ;;  %1233 = vmatprep.mubr.bf16.mxu1 %v117_v51  ;;  %v2018_v1 = vld [vmem:[%s2619_s1 + $0x1e0] sm:$0xff]   ;;  %v2022_v5 = vld [vmem:[%s2619_s1 + $0x1e8] sm:$0xff]   ;;  %v2025_v8 = vld [vmem:[%s2619_s1 + $0x170] sm:$0xff]  }
  0x13   :  { %v2019_v2 = vld [vmem:[%s2619_s1 + $0x120] sm:$0xff]   ;;  %v2023_v6 = vld [vmem:[%s2619_s1 + $0x128] sm:$0xff]   ;;  %v2026_v9 = vld [vmem:[%s2619_s1 + $0x1f0] sm:$0xff]  }
  0x14   :  { %1768 = vmatpush3.bf16.msra.mxu0 %v1986_v18  ;;  %v2020_v3 = vld [vmem:[%s2619_s1 + $0x1a0] sm:$0xff]   ;;  %v2024_v7 = vld [vmem:[%s2619_s1 + $0x1a8] sm:$0xff]   ;;  %v2027_v11 = vld [vmem:[%s2619_s1 + $0x130] sm:$0xff]  }
  0x15   :  { %1790 = vmatpush3.bf16.msra.mxu1 %v1987_v19  ;;  %1769 = vmatprep.subr.bf16.mxu0 %v1988_v20  ;;  %v23_v10 = vld [vmem:[%s2618_s0 + $0x8] sm:$0xff]  ;;  %v2028_v14 = vld [vmem:[%s2619_s1 + $0x1b0] sm:$0xff]   ;;  %v2029_v15 = vld [vmem:[%s2619_s1 + $0x178] sm:$0xff]  }
  0x16   :  { %1791 = vmatprep.subr.bf16.mxu1 %v1989_v21  ;;  %v54_v12 = vrot.slane %v23_v10, %v2275_v41  ;;  %v47_v13 = vcombine.high %v23_v10, %v23_v10  ;;  %v2030_v18 = vld [vmem:[%s2619_s1 + $0x1f8] sm:$0xff]   ;;  %v2041_v33 = vld [vmem:[%s2619_s1 + $0x288] sm:$0xff]   ;;  %v2042_v34 = vld [vmem:[%s2619_s1 + $0x250] sm:$0xff]  }
  0x17   :  { %v2031_v19 = vld [vmem:[%s2619_s1 + $0x138] sm:$0xff]   ;;  %v2044_v36 = vld [vmem:[%s2619_s1 + $0x210] sm:$0xff]   ;;  %v2050_v43 = vld [vmem:[%s2619_s1 + $0x260] sm:$0xff]  }
  0x18   :  { %1770 = vmatpush3.bf16.msra.mxu0 %v1990_v22  ;;  %v62_v16 = vcombine.high %v54_v12, %v54_v12  ;;  %v61_v17 = vrot.slane %v47_v13, %v2275_v41  ;;  %v2032_v22 = vld [vmem:[%s2619_s1 + $0x1b8] sm:$0xff]   ;;  %v2045_v37 = vld [vmem:[%s2619_s1 + $0x290] sm:$0xff]   ;;  %v2051_v44 = vld [vmem:[%s2619_s1 + $0x2e0] sm:$0xff]  }
  0x19   :  { %1792 = vmatpush3.bf16.msra.mxu1 %v1991_v23  ;;  %1771 = vmatprep.subr.bf16.mxu0 %v1992_v24  ;;  %v2034_v24 = vld [vmem:[%s2619_s1 + $0x240] sm:$0xff]   ;;  %v2047_v39 = vld [vmem:[%s2619_s1 + $0x2d8] sm:$0xff]   ;;  %v2057_v50 = vld [vmem:[%s2619_s1 + $0x2a8] sm:$0xff]  }
  0x1a   :  { %1793 = vmatprep.subr.bf16.mxu1 %v1993_v25  ;;  %v119_v20 = vpack.c.bf16 %v62_v16, %v62_v16  ;;  %v63_v21 = vcombine.high %v61_v17, %v61_v17  ;;  %v2035_v25 = vld [vmem:[%s2619_s1 + $0x2c0] sm:$0xff]   ;;  %v120_v28 = vpack.c.bf16 %v61_v17, %v61_v17  ;;  %v2048_v40 = vld [vmem:[%s2619_s1 + $0x218] sm:$0xff]   ;;  %v2058_v51 = vld [vmem:[%s2619_s1 + $0x270] sm:$0xff]  }
  0x1b   :  { %v2049_v42 = vld [vmem:[%s2619_s1 + $0x298] sm:$0xff]   ;;  %v2052_v45 = vld [vmem:[%s2619_s1 + $0x220] sm:$0xff]   ;;  %v2072_v10 = vld [vmem:[%s2619_s1 + $0x3c8] sm:$0xff]  }
  0x1c   :  { %1772 = vmatpush3.bf16.msra.mxu0 %v1994_v26  ;;  %v121_v23 = vpack.c.bf16 %v63_v21, %v63_v21  ;;  %v2036_v26 = vld [vmem:[%s2619_s1 + $0x200] sm:$0xff]   ;;  %v2075_v13 = vld [vmem:[%s2619_s1 + $0x350] sm:$0xff]   ;;  %v2079_v17 = vld [vmem:[%s2619_s1 + $0x358] sm:$0xff]  }
  0x1d   :  { %1794 = vmatpush3.bf16.msra.mxu1 %v1995_v27  ;;  %1773 = vmatprep.subr.bf16.mxu0 %v1996_v29  ;;  %v118_v27 = vpack.c.bf16 %v54_v12, %v54_v12  ;;  %v2037_v29 = vld [vmem:[%s2619_s1 + $0x280] sm:$0xff]   ;;  %v2074_v12 = vld [vmem:[%s2619_s1 + $0x388] sm:$0xff]   ;;  %v2078_v16 = vld [vmem:[%s2619_s1 + $0x390] sm:$0xff]  }
  0x1e   :  { %1795 = vmatprep.subr.bf16.mxu1 %v1997_v30  ;;  %v2038_v30 = vld [vmem:[%s2619_s1 + $0x248] sm:$0xff]   ;;  %v2083_v21 = vld [vmem:[%s2619_s1 + $0x360] sm:$0xff]  }
  0x20   :  { %1774 = vmatpush3.bf16.msra.mxu0 %v1998_v31  ;;  %v2039_v31 = vld [vmem:[%s2619_s1 + $0x2c8] sm:$0xff]  }
  0x21   :  { %1796 = vmatpush3.bf16.msra.mxu1 %v1999_v32  ;;  %1803 = vmatprep.subr.bf16.mxu0 %v2001_v35  ;;  %v2040_v32 = vld [vmem:[%s2619_s1 + $0x208] sm:$0xff]   ;;  %v2043_v35 = vld [vmem:[%s2619_s1 + $0x2d0] sm:$0xff]  }
  0x22   :  { %1825 = vmatprep.subr.bf16.mxu1 %v2002_v38  ;;  %v2046_v38 = vld [vmem:[%s2619_s1 + $0x258] sm:$0xff]  }
  0x23   :  { %1194 = vmatmul.mubr.bf16.vlgmr.msra.gmra.mrb[0].mxu0 %v114_v47  ;;  %v2054_v47 = vld [vmem:[%s2619_s1 + $0x268] sm:$0xff]  }
  0x24   :  { %1234 = vmatmul.mubr.bf16.vlgmr.msra.gmra.mrb[0].mxu1 %v116_v48  ;;  %1804 = vmatpush3.bf16.msra.mxu0 %v2003_v46  ;;  %v2053_v46 = vld [vmem:[%s2619_s1 + $0x2a0] sm:$0xff]   ;;  %v2055_v48 = vld [vmem:[%s2619_s1 + $0x2e8] sm:$0xff]  }
  0x25   :  { %1826 = vmatpush3.bf16.msra.mxu1 %v2004_v49  ;;  %1805 = vmatprep.subr.bf16.mxu0 %v2005_v52  ;;  %v2056_v49 = vld [vmem:[%s2619_s1 + $0x228] sm:$0xff]   ;;  %v2059_v52 = vld [vmem:[%s2619_s1 + $0x2f0] sm:$0xff]  }
  0x26   :  { %1827 = vmatprep.subr.bf16.mxu1 %v2006_v53  ;;  %1273 = vmatprep.mubr.bf16.mxu0 %v119_v20  ;;  %v24_v53 = vld [vmem:[%s2618_s0 + $0x10] sm:$0xff]  ;;  %v2082_v20 = vld [vmem:[%s2619_s1 + $0x398] sm:$0xff]  }
  0x27   :  { %1313 = vmatprep.mubr.bf16.mxu1 %v121_v23  ;;  %v2085_v23 = vld [vmem:[%s2619_s1 + $0x320] sm:$0xff]  }
  0x28   :  { %1806 = vmatpush3.bf16.msra.mxu0 %v2007_v54  ;;  %v2060_v54 = vld [vmem:[%s2619_s1 + $0x230] sm:$0xff]  }
  0x29   :  { %1828 = vmatpush3.bf16.msra.mxu1 %v2008_v55  ;;  %1807 = vmatprep.subr.bf16.mxu0 %v2009_v56  ;;  %v71_v55 = vrot.slane %v24_v53, %v2275_v41  ;;  %v64_v56 = vcombine.high %v24_v53, %v24_v53 }
  0x2a   :  { %1829 = vmatprep.subr.bf16.mxu1 %v2010_v57  ;;  %v2061_v57 = vld [vmem:[%s2619_s1 + $0x2b0] sm:$0xff]  }
  0x2c   :  { %1808 = vmatpush3.bf16.msra.mxu0 %v2011_v58  ;;  %v2062_v58 = vld [vmem:[%s2619_s1 + $0x278] sm:$0xff]  }
  0x2d   :  { %1830 = vmatpush3.bf16.msra.mxu1 %v2012_v59  ;;  %1809 = vmatprep.subr.bf16.mxu0 %v2013_v60  ;;  %v79_v59 = vcombine.high %v71_v55, %v71_v55  ;;  %v78_v60 = vrot.slane %v64_v56, %v2275_v41 }
  0x2e   :  { %1831 = vmatprep.subr.bf16.mxu1 %v2014_v61  ;;  %v2063_v61 = vld [vmem:[%s2619_s1 + $0x2f8] sm:$0xff]  }
  0x30   :  { %1810 = vmatpush3.bf16.msra.mxu0 %v2015_v62  ;;  %v2064_v62 = vld [vmem:[%s2619_s1 + $0x238] sm:$0xff]  }
  0x31   :  { %1832 = vmatpush3.bf16.msra.mxu1 %v2016_v63  ;;  %1811 = vmatprep.subr.bf16.mxu0 %v2017_v0  ;;  %v123_v63 = vpack.c.bf16 %v79_v59, %v79_v59  ;;  %v80_v0 = vcombine.high %v78_v60, %v78_v60 }
  0x32   :  { %1833 = vmatprep.subr.bf16.mxu1 %v2018_v1  ;;  %v2065_v1 = vld [vmem:[%s2619_s1 + $0x2b8] sm:$0xff]  }
  0x34   :  { %1812 = vmatpush3.bf16.msra.mxu0 %v2019_v2  ;;  %v125_v2 = vpack.c.bf16 %v80_v0, %v80_v0 }
  0x35   :  { %1834 = vmatpush3.bf16.msra.mxu1 %v2020_v3  ;;  %1813 = vmatprep.subr.bf16.mxu0 %v2021_v4  ;;  %v2067_v3 = vld [vmem:[%s2619_s1 + $0x340] sm:$0xff]  }
  0x36   :  { %1835 = vmatprep.subr.bf16.mxu1 %v2022_v5  ;;  %v2068_v4 = vld [vmem:[%s2619_s1 + $0x3c0] sm:$0xff]  }
  0x37   :  { %v2069_v5 = vld [vmem:[%s2619_s1 + $0x300] sm:$0xff]  }
  0x38   :  { %1814 = vmatpush3.bf16.msra.mxu0 %v2023_v6  ;;  %v122_v6 = vpack.c.bf16 %v71_v55, %v71_v55 }
  0x39   :  { %1836 = vmatpush3.bf16.msra.mxu1 %v2024_v7  ;;  %1815 = vmatprep.subr.bf16.mxu0 %v2025_v8  ;;  %v124_v7 = vpack.c.bf16 %v78_v60, %v78_v60  ;;  %v2070_v8 = vld [vmem:[%s2619_s1 + $0x380] sm:$0xff]  }
  0x3a   :  { %1837 = vmatprep.subr.bf16.mxu1 %v2026_v9  ;;  %v2071_v9 = vld [vmem:[%s2619_s1 + $0x348] sm:$0xff]  }
  0x3c   :  { %1816 = vmatpush3.bf16.msra.mxu0 %v2027_v11  ;;  %v2073_v11 = vld [vmem:[%s2619_s1 + $0x308] sm:$0xff]  }
  0x3d   :  { %1838 = vmatpush3.bf16.msra.mxu1 %v2028_v14  ;;  %1817 = vmatprep.subr.bf16.mxu0 %v2029_v15  ;;  %v2076_v14 = vld [vmem:[%s2619_s1 + $0x3d0] sm:$0xff]  }
  0x3e   :  { %1839 = vmatprep.subr.bf16.mxu1 %v2030_v18  ;;  %v2077_v15 = vld [vmem:[%s2619_s1 + $0x310] sm:$0xff]   ;;  %v2080_v18 = vld [vmem:[%s2619_s1 + $0x3d8] sm:$0xff]  }
  0x40   :  { %1818 = vmatpush3.bf16.msra.mxu0 %v2031_v19  ;;  %v2081_v19 = vld [vmem:[%s2619_s1 + $0x318] sm:$0xff]  }
  0x41   :  { %1840 = vmatpush3.bf16.msra.mxu1 %v2032_v22  ;;  %1847 = vmatprep.subr.bf16.mxu0 %v2034_v24  ;;  %v2084_v22 = vld [vmem:[%s2619_s1 + $0x3e0] sm:$0xff]  }
  0x42   :  { %1869 = vmatprep.subr.bf16.mxu1 %v2035_v25  ;;  %v2086_v24 = vld [vmem:[%s2619_s1 + $0x3a0] sm:$0xff]   ;;  %v2087_v25 = vld [vmem:[%s2619_s1 + $0x368] sm:$0xff]  }
  0x43   :  { %1274 = vmatmul.mubr.bf16.vlgmr.msra.gmra.mrb[4].mxu0 %v118_v27  ;;  %v2089_v27 = vld [vmem:[%s2619_s1 + $0x328] sm:$0xff]  }
  0x44   :  { %1314 = vmatmul.mubr.bf16.vlgmr.msra.gmra.mrb[4].mxu1 %v120_v28  ;;  %1848 = vmatpush3.bf16.msra.mxu0 %v2036_v26  ;;  %v2088_v26 = vld [vmem:[%s2619_s1 + $0x3e8] sm:$0xff]  }
  0x45   :  { %1870 = vmatpush3.bf16.msra.mxu1 %v2037_v29  ;;  %1849 = vmatprep.subr.bf16.mxu0 %v2038_v30  ;;  %v2090_v28 = vld [vmem:[%s2619_s1 + $0x3a8] sm:$0xff]   ;;  %v2091_v29 = vld [vmem:[%s2619_s1 + $0x370] sm:$0xff]  }
  0x46   :  { %1871 = vmatprep.subr.bf16.mxu1 %v2039_v31  ;;  %1353 = vmatprep.mubr.bf16.mxu0 %v123_v63  ;;  %v2092_v30 = vld [vmem:[%s2619_s1 + $0x3f0] sm:$0xff]  }
  0x47   :  { %1393 = vmatprep.mubr.bf16.mxu1 %v125_v2  ;;  %v2093_v31 = vld [vmem:[%s2619_s1 + $0x330] sm:$0xff]  }
  0x48   :  { %1850 = vmatpush3.bf16.msra.mxu0 %v2040_v32  ;;  %v2094_v32 = vld [vmem:[%s2619_s1 + $0x3b0] sm:$0xff]  }
  0x49   :  { %1872 = vmatpush3.bf16.msra.mxu1 %v2041_v33  ;;  %1851 = vmatprep.subr.bf16.mxu0 %v2042_v34  ;;  %v25_v33 = vld [vmem:[%s2618_s0 + $0x18] sm:$0xff] }
  0x4a   :  { %1873 = vmatprep.subr.bf16.mxu1 %v2043_v35  ;;  %v2095_v34 = vld [vmem:[%s2619_s1 + $0x378] sm:$0xff]  }
  0x4b   :  { %v2096_v35 = vld [vmem:[%s2619_s1 + $0x3f8] sm:$0xff]  }
  0x4c   :  { %1852 = vmatpush3.bf16.msra.mxu0 %v2044_v36  ;;  %v88_v36 = vrot.slane %v25_v33, %v2275_v41 }
  0x4d   :  { %1874 = vmatpush3.bf16.msra.mxu1 %v2045_v37  ;;  %1853 = vmatprep.subr.bf16.mxu0 %v2046_v38  ;;  %v81_v37 = vcombine.high %v25_v33, %v25_v33 }
  0x4e   :  { %1875 = vmatprep.subr.bf16.mxu1 %v2047_v39  ;;  %v96_v38 = vcombine.high %v88_v36, %v88_v36 }
  0x4f   :  { %v95_v39 = vrot.slane %v81_v37, %v2275_v41 }
  0x50   :  { %1854 = vmatpush3.bf16.msra.mxu0 %v2048_v40  ;;  %v127_v40 = vpack.c.bf16 %v96_v38, %v96_v38 }
  0x51   :  { %1876 = vmatpush3.bf16.msra.mxu1 %v2049_v42  ;;  %1855 = vmatprep.subr.bf16.mxu0 %v2050_v43  ;;  %v97_v42 = vcombine.high %v95_v39, %v95_v39  ;;  %v2097_v43 = vld [vmem:[%s2619_s1 + $0x338] sm:$0xff]  }
  0x52   :  { %1877 = vmatprep.subr.bf16.mxu1 %v2051_v44  ;;  %v2098_v44 = vld [vmem:[%s2619_s1 + $0x3b8] sm:$0xff]  }
  0x54   :  { %1856 = vmatpush3.bf16.msra.mxu0 %v2052_v45 }
  0x55   :  { %1878 = vmatpush3.bf16.msra.mxu1 %v2053_v46  ;;  %1857 = vmatprep.subr.bf16.mxu0 %v2054_v47 }
  0x56   :  { %1879 = vmatprep.subr.bf16.mxu1 %v2055_v48 }
  0x58   :  { %1858 = vmatpush3.bf16.msra.mxu0 %v2056_v49 }
  0x59   :  { %1880 = vmatpush3.bf16.msra.mxu1 %v2057_v50  ;;  %1859 = vmatprep.subr.bf16.mxu0 %v2058_v51 }
  0x5a   :  { %1881 = vmatprep.subr.bf16.mxu1 %v2059_v52 }
  0x5c   :  { %1860 = vmatpush3.bf16.msra.mxu0 %v2060_v54 }
  0x5d   :  { %1882 = vmatpush3.bf16.msra.mxu1 %v2061_v57  ;;  %1861 = vmatprep.subr.bf16.mxu0 %v2062_v58 }
  0x5e   :  { %1883 = vmatprep.subr.bf16.mxu1 %v2063_v61 }
  0x60   :  { %1862 = vmatpush3.bf16.msra.mxu0 %v2064_v62 }
  0x61   :  { %1884 = vmatpush3.bf16.msra.mxu1 %v2065_v1  ;;  %1891 = vmatprep.subr.bf16.mxu0 %v2067_v3 }
  0x62   :  { %1913 = vmatprep.subr.bf16.mxu1 %v2068_v4 }
  0x63   :  { %1354 = vmatmul.mubr.bf16.vlgmr.msra.gmra.mrb[8].mxu0 %v122_v6 }
  0x64   :  { %1394 = vmatmul.mubr.bf16.vlgmr.msra.gmra.mrb[8].mxu1 %v124_v7  ;;  %1892 = vmatpush3.bf16.msra.mxu0 %v2069_v5 }
  0x65   :  { %1914 = vmatpush3.bf16.msra.mxu1 %v2070_v8  ;;  %1893 = vmatprep.subr.bf16.mxu0 %v2071_v9 }
  0x66   :  { %1915 = vmatprep.subr.bf16.mxu1 %v2072_v10 }
  0x68   :  { %1894 = vmatpush3.bf16.msra.mxu0 %v2073_v11 }
  0x69   :  { %1916 = vmatpush3.bf16.msra.mxu1 %v2074_v12  ;;  %1895 = vmatprep.subr.bf16.mxu0 %v2075_v13 }
  0x6a   :  { %1917 = vmatprep.subr.bf16.mxu1 %v2076_v14 }
  0x6c   :  { %1896 = vmatpush3.bf16.msra.mxu0 %v2077_v15 }
  0x6d   :  { %1918 = vmatpush3.bf16.msra.mxu1 %v2078_v16  ;;  %1897 = vmatprep.subr.bf16.mxu0 %v2079_v17 }
  0x6e   :  { %1919 = vmatprep.subr.bf16.mxu1 %v2080_v18 }
  0x70   :  { %1898 = vmatpush3.bf16.msra.mxu0 %v2081_v19 }
  0x71   :  { %1920 = vmatpush3.bf16.msra.mxu1 %v2082_v20  ;;  %1899 = vmatprep.subr.bf16.mxu0 %v2083_v21 }
  0x72   :  { %1921 = vmatprep.subr.bf16.mxu1 %v2084_v22 }
  0x74   :  { %1900 = vmatpush3.bf16.msra.mxu0 %v2085_v23 }
  0x75   :  { %1922 = vmatpush3.bf16.msra.mxu1 %v2086_v24  ;;  %1901 = vmatprep.subr.bf16.mxu0 %v2087_v25 }
  0x76   :  { %1923 = vmatprep.subr.bf16.mxu1 %v2088_v26 }
  0x78   :  { %1902 = vmatpush3.bf16.msra.mxu0 %v2089_v27 }
  0x79   :  { %1924 = vmatpush3.bf16.msra.mxu1 %v2090_v28  ;;  %1903 = vmatprep.subr.bf16.mxu0 %v2091_v29 }
  0x7a   :  { %1925 = vmatprep.subr.bf16.mxu1 %v2092_v30 }
  0x7c   :  { %1904 = vmatpush3.bf16.msra.mxu0 %v2093_v31 }
  0x7d   :  { %1926 = vmatpush3.bf16.msra.mxu1 %v2094_v32 }
  0x7e   :  { %10 = vsyncpa [#allocation3], 0  ;;  %1905 = vmatprep.subr.bf16.mxu0 %v2095_v34  ;;  %1927 = vmatprep.subr.bf16.mxu1 %v2096_v35  ;;  %v129_v45 = vpack.c.bf16 %v97_v42, %v97_v42  ;;  %v126_v46 = vpack.c.bf16 %v88_v36, %v88_v36  ;;  %v128_v41 = vpack.c.bf16 %v95_v39, %v95_v39  ;;  %v2100_v47 = vld [vmem:[%s2621_s3] sm:$0xff]   ;;  %v2137_v48 = vmov 0.0   ;;  %v2101_v49 = vld [vmem:[%s2621_s3 + $0x8] sm:$0xff]   ;;  %s2139_s23 = smov [#allocation2]  }
  0x7f   :  { %1433 = vmatprep.mubr.bf16.mxu0 %v127_v40  ;;  %v2102_v50 = vld [vmem:[%s2621_s3 + $0x10] sm:$0xff]   ;;  %v2103_v51 = vld [vmem:[%s2621_s3 + $0x18] sm:$0xff]   ;;  %v2104_v52 = vld [vmem:[%s2621_s3 + $0x20] sm:$0xff]   ;;  %vm2138_vm0 = vmmov 0   ;;  %vm1594_vm1 = vcmask 1041408   ;;  %s1613_s24 = sshll.u32 %s2139_s23, 4  ;;  %s1614_s24 = int_to_ptr.vmem [resolvable:$true] %s1613_s24 }
  0x80   :  { %1473 = vmatprep.mubr.bf16.mxu1 %v129_v45  ;;  %1906 = vmatpush3.bf16.msra.mxu0 %v2097_v43  ;;  %v2105_v53 = vld [vmem:[%s2621_s3 + $0x28] sm:$0xff]   ;;  %v2106_v54 = vld [vmem:[%s2621_s3 + $0x30] sm:$0xff]   ;;  %v2107_v55 = vld [vmem:[%s2621_s3 + $0x38] sm:$0xff]   ;;  %p2117_p1 = scmp.lt.s32.totalorder %s1614_s24, %s1614_s24 }
  0x81   :  { %1928 = vmatpush3.bf16.msra.mxu1 %v2098_v44  ;;  %1944 = vmatprep.subr.bf16.mxu0 %v2137_v48  ;;  %v1621_v58 = vld [vmem:[%s2620_s2] ss:$0 sm:$0xff] }
  0x82   :  { %v1750_v44 = vld [vmem:[%s2622_s4] ss:$0 sm:$0xff]  ;;  %s2112_s4 = scalar_lea.vmem %s1614_s24, 32 }
  0x83   :  { %1434 = vmatmul.mubr.bf16.vlgmr.msra.gmra.mrb[12].mxu0 %v126_v46  ;;  %p2113_p0 = scmp.ne.s32.totalorder %s1614_s24, %s2112_s4  ;;  %p2118_p2 = scmp.lt.s32.totalorder %s2112_s4, %s2112_s4 }
  0x84   :  { %1474 = vmatmul.mubr.bf16.vlgmr.msra.gmra.mrb[12].mxu1 %v128_v41  ;;  %1945 = vmatpush3.bf16.msra.mxu0 %v2100_v47 }
  0x85   :  { %1946 = vmatprep.subr.bf16.mxu0 %v2137_v48  ;;  %1960 = vmatprep.mubr.msk.bf16.mxu0 %vm2138_vm0, %v2137_v48  ;;  %p2119_p3 = por %p2118_p2, %p2117_p1 }
  0x87   :  { %p2120_p4 = pnand %p2119_p3, %p2113_p0 }
  0x88   :  { %1947 = vmatpush3.bf16.msra.mxu0 %v2101_v49 }
  0x89   :  { %1948 = vmatprep.subr.bf16.mxu0 %v2137_v48 }
  0x8c   :  { %1949 = vmatpush3.bf16.msra.mxu0 %v2102_v50 }
  0x8d   :  { %1950 = vmatprep.subr.bf16.mxu0 %v2137_v48 }
  0x90   :  { %1951 = vmatpush3.bf16.msra.mxu0 %v2103_v51 }
  0x91   :  { %1952 = vmatprep.subr.bf16.mxu0 %v2137_v48 }
  0x94   :  { %1953 = vmatpush3.bf16.msra.mxu0 %v2104_v52 }
  0x95   :  { %1954 = vmatprep.subr.bf16.mxu0 %v2137_v48 }
  0x98   :  { %1955 = vmatpush3.bf16.msra.mxu0 %v2105_v53 }
  0x99   :  { %1956 = vmatprep.subr.bf16.mxu0 %v2137_v48 }
  0x9c   :  { %1957 = vmatpush3.bf16.msra.mxu0 %v2106_v54 }
  0x9d   :  { %1958 = vmatprep.subr.bf16.mxu0 %v2137_v48 }
  0xa0   :  { %1959 = vmatpush3.bf16.msra.mxu0 %v2107_v55 }
  0xf6   :  { %v1775_v56 = vpop.f32.mrb[0].mxu0 }
  0xf7   :  { %v1797_v57 = vpop.f32.mrb[0].mxu1  ;;  %v1776_v59 = vpop.f32.mrb[1].mxu0 }
  0xf8   :  { %v1798_v60 = vpop.f32.mrb[1].mxu1  ;;  %v1777_v61 = vadd.f32 %v1776_v59, %v1775_v56  ;;  %v1778_v63 = vpop.f32.mrb[2].mxu0 }
  0xf9   :  { %v1799_v62 = vadd.f32 %v1798_v60, %v1797_v57  ;;  %v1800_v0 = vpop.f32.mrb[2].mxu1  ;;  %v1779_v1 = vpop.f32.mrb[3].mxu0 }
  0xfa   :  { %v1801_v2 = vpop.f32.mrb[3].mxu1  ;;  %v1196_v3 = vadd.f32 %v1777_v61, %v1621_v58 }
  0xfc   :  { %v1236_v4 = vadd.f32 %v1799_v62, %v1196_v3 }
 0x116   :  { %v1819_v5 = vpop.f32.mrb[4].mxu0 }
 0x117   :  { %v1841_v6 = vpop.f32.mrb[4].mxu1  ;;  %v1820_v7 = vpop.f32.mrb[5].mxu0 }
 0x118   :  { %v1842_v8 = vpop.f32.mrb[5].mxu1  ;;  %v1821_v9 = vadd.f32 %v1820_v7, %v1819_v5  ;;  %v1822_v11 = vpop.f32.mrb[6].mxu0 }
 0x119   :  { %v1843_v10 = vadd.f32 %v1842_v8, %v1841_v6  ;;  %v1844_v12 = vpop.f32.mrb[6].mxu1  ;;  %v1823_v13 = vpop.f32.mrb[7].mxu0 }
 0x11a   :  { %v1845_v14 = vpop.f32.mrb[7].mxu1  ;;  %v1276_v15 = vadd.f32 %v1821_v9, %v1236_v4 }
 0x11c   :  { %v1316_v16 = vadd.f32 %v1843_v10, %v1276_v15 }
 0x136   :  { %v1863_v17 = vpop.f32.mrb[8].mxu0 }
 0x137   :  { %v1885_v18 = vpop.f32.mrb[8].mxu1  ;;  %v1864_v19 = vpop.f32.mrb[9].mxu0 }
 0x138   :  { %v1886_v20 = vpop.f32.mrb[9].mxu1  ;;  %v1865_v21 = vadd.f32 %v1864_v19, %v1863_v17  ;;  %v1866_v23 = vpop.f32.mrb[10].mxu0 }
 0x139   :  { %v1887_v22 = vadd.f32 %v1886_v20, %v1885_v18  ;;  %v1888_v24 = vpop.f32.mrb[10].mxu1  ;;  %v1867_v25 = vpop.f32.mrb[11].mxu0 }
 0x13a   :  { %v1889_v26 = vpop.f32.mrb[11].mxu1  ;;  %v1356_v27 = vadd.f32 %v1865_v21, %v1316_v16 }
 0x13c   :  { %v1396_v28 = vadd.f32 %v1887_v22, %v1356_v27 }
 0x156   :  { %v1907_v29 = vpop.f32.mrb[12].mxu0 }
 0x157   :  { %v1929_v30 = vpop.f32.mrb[12].mxu1  ;;  %v1908_v31 = vpop.f32.mrb[13].mxu0 }
 0x158   :  { %v1930_v32 = vpop.f32.mrb[13].mxu1  ;;  %v1909_v33 = vadd.f32 %v1908_v31, %v1907_v29  ;;  %v1910_v35 = vpop.f32.mrb[14].mxu0 }
 0x159   :  { %v1931_v34 = vadd.f32 %v1930_v32, %v1929_v30  ;;  %v1932_v36 = vpop.f32.mrb[14].mxu1  ;;  %v1911_v37 = vpop.f32.mrb[15].mxu0 }
 0x15a   :  { %v1933_v38 = vpop.f32.mrb[15].mxu1  ;;  %v1436_v39 = vadd.f32 %v1909_v33, %v1396_v28 }
 0x15c   :  { %v1476_v40 = vadd.f32 %v1931_v34, %v1436_v39 }
 0x15e   :  { %v1481_v42 = vmax.f32 %v1476_v40, 0.0 }
 0x160   :  { %v1482_v43 = vpack.c.bf16 %v1481_v42, %v1481_v42 }
 0x162   :  { %1961 = vmatmul.mubr.bf16.vlgmr.msra.gmra.mrb[16].mxu0 %v1482_v43 }
 0x235   :  { %v1588_v45 = vpop.f32.mrb[16].mxu0 }
 0x236   :  { %v1589_v46 = vadd.f32 %v1750_v44, %v1588_v45  ;;  %v1962_v41 = vpop.f32.mrb[17].mxu0 }
 0x237   :  { %v1591_v47 = vpop.f32.mrb[18].mxu0 }
 0x238   :  { %v1963_v48 = vpop.f32.mrb[19].mxu0  ;;  %v1595_v49 = vsel %vm1594_vm1, %v1589_v46, -inf }
 0x239   :  { %1596 = vmax.xlane.f32.xlu0 %v1595_v49 }
 0x2c6   :  { %v1597_v50 = vpop.xlane.xlu0 %1596 }
 0x2c7   :  { %v1598_v51 = vsub.f32 %v1589_v46, %v1597_v50 }
 0x2c9   :  { %v1599_v52 = vmul.f32 1.442695, %v1598_v51 }
 0x2cb   :  { %2108 = vpow2.f32 %v1599_v52 }
 0x2d5   :  { %v2109_v53 = vpop.eup %2108 }
 0x2d6   :  { %v1601_v54 = vsel %vm1594_vm1, %v2109_v53, 0.0 }
 0x2d7   :  { %1602 = vadd.xlane.f32.xlu0 %v1601_v54 }
 0x364   :  { %v1603_v55 = vpop.xlane.xlu0 %1602 }
 0x365   :  { %2110 = vrcp.f32 %v1603_v55 }
 0x36f   :  { %v2111_v56 = vpop.eup %2110 }
 0x370   :  { %v1605_v57 = vmul.f32 %v2111_v56, %v2109_v53 }
 0x372   :  { %1606 = vst [vmem:[#allocation2] sm:$0x3] %v1605_v57 }
 0x373   :  { %2123 = shalt.err (!%p2120_p4)
}
 0x374   :  { %s2124_s27 = scalar_lea.hbm %s2623_s5, 32 }
 0x375   :  { %p2125_p5 = scmp.ne.s32.totalorder %s2623_s5, %s2124_s27  ;;  %p2128_p6 = scmp.lt.u32.totalorder %s2124_s27, %s2623_s5 }
 0x377   :  { %p2130_p7 = pnand %p2128_p6, %p2125_p5 }
 0x379   :  { %2133 = shalt.err (!%p2130_p7)
}
 0x37a   :  { %1616 = dma.vmem_to_hbm [thread:$0]  %s1614_s24, 32, %s2623_s5, [#allocation3]  }
 0x37b   :  { %2134 = dma.done.wait [#allocation3], 32  }
 0x37c   :  { %2135 = vsyncadd [#allocation3], 4294967264 }
 0x37d   :  { %1620 = vsyncpa [#allocation3], 1 }

// kernel: net2_forward.4
= control target key start
LH: loop header
LB: loop body
LE: loop exit
PB: predicated region body
PF: predicated region fallthrough
CT: control target
= control target key end

     0   :  { %s6537_s12 = smov 0   ;;  %s7509_s0 = inlined_call_operand.vmem [shape: f32[2,12,12,128], index: 0, kind: input, shape index: {}]   ;;  %s7510_s1 = inlined_call_operand.vmem [shape: bf16[25,128,128], index: 1, kind: input, shape index: {}]   ;;  %s7511_s2 = inlined_call_operand.vmem [shape: f32[1,128], index: 2, kind: input, shape index: {}]   ;;  %s7512_s3 = inlined_call_operand.vmem [shape: f32[2,4,4,128], index: 3, kind: output, shape index: {}]  }
   0x1 LB: > { %s4431_s13 = sadd.s32 4294967295, %s6515_s12   ;;  %p4435_p0 = scmp.ge.s32.totalorder %s6515_s12, 1  ;;  %s6515_s12 = sphi %s6537_s12, %s13_s12  }
   0x2   : > { %p137_p1 = scmp.lt.s32.totalorder %s6515_s12, 3 }
   0x4   : > { %p138_p2 = pnand %p4435_p0, %p137_p1 }
   0x5   : > { %v6304_v0 = vld [vmem:[%s7510_s1] sm:$0xff] (!%p138_p2)   ;;  %p161_p3 = scmp.lt.s32.totalorder (!%p138_p2), %s4431_s13, 1  ;;  %v6306_v2 = vld [vmem:[%s7510_s1 + $0x8] sm:$0xff] (!%p138_p2)   ;;  %v6308_v4 = vld [vmem:[%s7510_s1 + $0x10] sm:$0xff] (!%p138_p2)  }
   0x6   : > { %141 = sbr.rel (%p138_p2) target bundleno = 656 (0x290), region = 32  ;;  %v6305_v1 = vld [vmem:[%s7510_s1 + $0x300] sm:$0xff] (!%p138_p2)   ;;  %5487 = vmatprep.subr.bf16.mxu1 (!%p138_p2), %v6304_v0  ;;  %v6307_v3 = vld [vmem:[%s7510_s1 + $0x308] sm:$0xff] (!%p138_p2)   ;;  %v6309_v5 = vld [vmem:[%s7510_s1 + $0x310] sm:$0xff] (!%p138_p2)  }
   0x7   : > { %5775 = vmatprep.subr.bf16.mxu0 (!%p138_p2), %v6305_v1  ;;  %5488 = vmatpush3.bf16.msra.mxu1 (!%p138_p2), %v6304_v0  ;;  %v6310_v6 = vld [vmem:[%s7510_s1 + $0x18] sm:$0xff] (!%p138_p2)   ;;  %v6312_v8 = vld [vmem:[%s7510_s1 + $0x20] sm:$0xff] (!%p138_p2)   ;;  %v6314_v10 = vld [vmem:[%s7510_s1 + $0x28] sm:$0xff] (!%p138_p2)  }
   0x8   : > { %5776 = vmatpush3.bf16.msra.mxu0 (!%p138_p2), %v6305_v1  ;;  %5489 = vmatprep.subr.bf16.mxu1 (!%p138_p2), %v6306_v2  ;;  %v6311_v7 = vld [vmem:[%s7510_s1 + $0x318] sm:$0xff] (!%p138_p2)   ;;  %v6313_v9 = vld [vmem:[%s7510_s1 + $0x320] sm:$0xff] (!%p138_p2)   ;;  %v6315_v13 = vld [vmem:[%s7510_s1 + $0x328] sm:$0xff] (!%p138_p2)  }
   0x9   : > { %5777 = vmatprep.subr.bf16.mxu0 (!%p138_p2), %v6307_v3  ;;  %v6316_v18 = vld [vmem:[%s7510_s1 + $0x30] sm:$0xff] (!%p138_p2)   ;;  %v6318_v20 = vld [vmem:[%s7510_s1 + $0x38] sm:$0xff] (!%p138_p2)   ;;  %v6320_v23 = vld [vmem:[%s7510_s1 + $0x40] sm:$0xff] (!%p138_p2)  }
   0xa   : > { %v6317_v19 = vld [vmem:[%s7510_s1 + $0x330] sm:$0xff] (!%p138_p2)   ;;  %v6319_v21 = vld [vmem:[%s7510_s1 + $0x338] sm:$0xff] (!%p138_p2)   ;;  %v6321_v27 = vld [vmem:[%s7510_s1 + $0x340] sm:$0xff] (!%p138_p2)  }
   0xb   : > { %5490 = vmatpush3.bf16.msra.mxu1 (!%p138_p2), %v6306_v2  ;;  %v6322_v32 = vld [vmem:[%s7510_s1 + $0x48] sm:$0xff] (!%p138_p2)   ;;  %v6324_v37 = vld [vmem:[%s7510_s1 + $0x50] sm:$0xff] (!%p138_p2)   ;;  %v6326_v51 = vld [vmem:[%s7510_s1 + $0x58] sm:$0xff] (!%p138_p2)  }
   0xc   : > { %5778 = vmatpush3.bf16.msra.mxu0 (!%p138_p2), %v6307_v3  ;;  %5491 = vmatprep.subr.bf16.mxu1 (!%p138_p2), %v6308_v4  ;;  %v6323_v35 = vld [vmem:[%s7510_s1 + $0x348] sm:$0xff] (!%p138_p2)   ;;  %v6325_v44 = vld [vmem:[%s7510_s1 + $0x350] sm:$0xff] (!%p138_p2)   ;;  %v6327_v52 = vld [vmem:[%s7510_s1 + $0x358] sm:$0xff] (!%p138_p2)  }
   0xd   : > { %s7514_s13 = smov (!%p161_p3, %s4431_s13), 1  ;;  %5779 = vmatprep.subr.bf16.mxu0 %v6309_v5  ;;  %v6328_v55 = vld [vmem:[%s7510_s1 + $0x60] sm:$0xff]   ;;  %v6330_v57 = vld [vmem:[%s7510_s1 + $0x68] sm:$0xff]   ;;  %v6332_v59 = vld [vmem:[%s7510_s1 + $0x70] sm:$0xff]  }
   0xe   : > { %s6295_s30 = smul.u32 192, %s7514_s13  ;;  %v6329_v56 = vld [vmem:[%s7510_s1 + $0x360] sm:$0xff]   ;;  %v6331_v58 = vld [vmem:[%s7510_s1 + $0x368] sm:$0xff]   ;;  %v6333_v60 = vld [vmem:[%s7510_s1 + $0x370] sm:$0xff]   ;;  %s5186_s7 = sshll.u32 %s7514_s13, 4 }
   0xf   : > { %5492 = vmatpush3.bf16.msra.mxu1 %v6308_v4  ;;  %v6334_v63 = vld [vmem:[%s7510_s1 + $0x78] sm:$0xff]   ;;  %v6336_v4 = vld [vmem:[%s7510_s1 + $0x80] sm:$0xff]   ;;  %s170_s11 = scalar_lea.vmem %s7512_s3, %s5186_s7 }
  0x10   : > { %5780 = vmatpush3.bf16.msra.mxu0 %v6309_v5  ;;  %5493 = vmatprep.subr.bf16.mxu1 %v6310_v6  ;;  %s6581_s10 = scalar_lea.vmem %s7509_s0, %s6295_s30  ;;  %v6335_v1 = vld [vmem:[%s7510_s1 + $0x378] sm:$0xff]  }
  0x11   : > { %5781 = vmatprep.subr.bf16.mxu0 %v6311_v7  ;;  %v172_v11 = vld [vmem:[%s6581_s10] sm:$0xff]  ;;  %v173_v12 = vld [vmem:[%s6581_s10 + $0x10] sm:$0xff] }
  0x12   : > { %v180_v14 = vpack.c.bf16 %v173_v12, %v172_v11  ;;  %v4767_v15 = vld [vmem:[%s6581_s10 + $0x22] sm:$0xff]  ;;  %v4768_v16 = vld [vmem:[%s6581_s10 + $0x32] sm:$0xff] }
  0x13   : > { %5494 = vmatpush3.bf16.msra.mxu1 %v6310_v6  ;;  %v6593_v17 = vpack.c.bf16 %v4768_v16, %v4767_v15  ;;  %v174_v22 = vld [vmem:[%s6581_s10 + $0x20] sm:$0xff]  ;;  %v6613_v24 = vld [vmem:[%s6581_s10 + $0x30] sm:$0xff] }
  0x14   : > { %5782 = vmatpush3.bf16.msra.mxu0 %v6311_v7  ;;  %5495 = vmatprep.subr.bf16.mxu1 %v6312_v8  ;;  %v4769_v25 = vld [vmem:[%s6581_s10 + $0x42] sm:$0xff]  ;;  %v4770_v26 = vld [vmem:[%s6581_s10 + $0x52] sm:$0xff]  ;;  %v181_v28 = vpack.c.bf16 %v6613_v24, %v174_v22 }
  0x15   : > { %5783 = vmatprep.subr.bf16.mxu0 %v6313_v9  ;;  %5503 = vmatprep.mubr.bf16.mxu1 %v180_v14  ;;  %v6622_v29 = vld [vmem:[%s6581_s10 + $0x40] sm:$0xff]  ;;  %v6624_v30 = vpack.c.bf16 %v4770_v26, %v4769_v25  ;;  %v6627_v31 = vld [vmem:[%s6581_s10 + $0x50] sm:$0xff]  ;;  %v6339_v14 = vld [vmem:[%s7510_s1 + $0x388] sm:$0xff]  }
  0x16   : > { %5791 = vmatprep.mubr.bf16.mxu0 %v6593_v17  ;;  %v4771_v33 = vld [vmem:[%s6581_s10 + $0x62] sm:$0xff]  ;;  %v4772_v34 = vld [vmem:[%s6581_s10 + $0x72] sm:$0xff]  ;;  %v182_v36 = vpack.c.bf16 %v6627_v31, %v6622_v29 }
  0x17   : > { %5496 = vmatpush3.bf16.msra.mxu1 %v6312_v8  ;;  %v6642_v38 = vpack.c.bf16 %v4772_v34, %v4771_v33  ;;  %v6645_v39 = vld [vmem:[%s6581_s10 + $0x60] sm:$0xff]  ;;  %v6648_v40 = vld [vmem:[%s6581_s10 + $0x70] sm:$0xff]  ;;  %v6342_v33 = vld [vmem:[%s7510_s1 + $0x98] sm:$0xff]  }
  0x18   : > { %5784 = vmatpush3.bf16.msra.mxu0 %v6313_v9  ;;  %5497 = vmatprep.subr.bf16.mxu1 %v6314_v10  ;;  %v4773_v41 = vld [vmem:[%s6581_s10 + $0x82] sm:$0xff]  ;;  %v2657_v42 = vpack.c.bf16 %v6645_v39, %v6627_v31  ;;  %v4774_v43 = vld [vmem:[%s6581_s10 + $0x92] sm:$0xff]  ;;  %v183_v46 = vpack.c.bf16 %v6648_v40, %v6645_v39 }
  0x19   : > { %5785 = vmatprep.subr.bf16.mxu0 %v6315_v13  ;;  %v321_v45 = vld [vmem:[%s6581_s10 + $0x1] sm:$0xff]  ;;  %v322_v47 = vld [vmem:[%s6581_s10 + $0x11] sm:$0xff]  ;;  %v2160_v48 = vpack.c.bf16 %v4774_v43, %v4773_v41 }
  0x1a   : > { %v4799_v49 = vld [vmem:[%s6581_s10 + $0x23] sm:$0xff]  ;;  %v4800_v50 = vld [vmem:[%s6581_s10 + $0x33] sm:$0xff]  ;;  %v329_v53 = vpack.c.bf16 %v322_v47, %v321_v45 }
  0x1b   : > { %5498 = vmatpush3.bf16.msra.mxu1 %v6314_v10  ;;  %v6671_v54 = vpack.c.bf16 %v4800_v50, %v4799_v49  ;;  %v6693_v61 = vld [vmem:[%s6581_s10 + $0x51] sm:$0xff]  ;;  %v6696_v62 = vld [vmem:[%s6581_s10 + $0x61] sm:$0xff] }
  0x1c   : > { %5786 = vmatpush3.bf16.msra.mxu0 %v6315_v13  ;;  %5499 = vmatprep.subr.bf16.mxu1 %v6316_v18  ;;  %v2823_v0 = vpack.c.bf16 %v6696_v62, %v6693_v61  ;;  %v323_v2 = vld [vmem:[%s6581_s10 + $0x21] sm:$0xff]  ;;  %v6708_v3 = vld [vmem:[%s6581_s10 + $0x31] sm:$0xff] }
  0x1d   : > { %5787 = vmatprep.subr.bf16.mxu0 %v6317_v19  ;;  %v4801_v5 = vld [vmem:[%s6581_s10 + $0x43] sm:$0xff]  ;;  %v4802_v6 = vld [vmem:[%s6581_s10 + $0x53] sm:$0xff]  ;;  %v330_v8 = vpack.c.bf16 %v6708_v3, %v323_v2 }
  0x1e   : > { %v6337_v7 = vld [vmem:[%s7510_s1 + $0x380] sm:$0xff]   ;;  %v6338_v9 = vld [vmem:[%s7510_s1 + $0x88] sm:$0xff]   ;;  %v6726_v12 = vpack.c.bf16 %v4802_v6, %v4801_v5  ;;  %v4804_v13 = vld [vmem:[%s6581_s10 + $0x73] sm:$0xff] }
  0x1f   : > { %5500 = vmatpush3.bf16.msra.mxu1 %v6316_v18  ;;  %v6723_v10 = vld [vmem:[%s6581_s10 + $0x41] sm:$0xff]  ;;  %v6735_v16 = vld [vmem:[%s6581_s10 + $0x71] sm:$0xff] }
  0x20   : > { %5788 = vmatpush3.bf16.msra.mxu0 %v6317_v19  ;;  %5501 = vmatprep.subr.bf16.mxu1 %v6318_v20  ;;  %v4803_v11 = vld [vmem:[%s6581_s10 + $0x63] sm:$0xff]  ;;  %v331_v15 = vpack.c.bf16 %v6693_v61, %v6723_v10  ;;  %v6340_v18 = vld [vmem:[%s7510_s1 + $0x90] sm:$0xff]   ;;  %v332_v26 = vpack.c.bf16 %v6735_v16, %v6696_v62  ;;  %v6343_v34 = vld [vmem:[%s7510_s1 + $0x398] sm:$0xff]  }
  0x21   : > { %5789 = vmatprep.subr.bf16.mxu0 %v6319_v21  ;;  %v6740_v19 = vpack.c.bf16 %v4804_v13, %v4803_v11  ;;  %v4806_v22 = vld [vmem:[%s6581_s10 + $0x93] sm:$0xff]  ;;  %v6345_v41 = vld [vmem:[%s7510_s1 + $0x3a0] sm:$0xff]   ;;  %v6346_v43 = vld [vmem:[%s7510_s1 + $0xa8] sm:$0xff]  }
  0x22   : > { %v488_v25 = vld [vmem:[%s6581_s10 + $0x12] sm:$0xff]  ;;  %v6352_v49 = vld [vmem:[%s7510_s1 + $0xc0] sm:$0xff]  }
  0x23   : > { %5502 = vmatpush3.bf16.msra.mxu1 %v6318_v20  ;;  %v4805_v20 = vld [vmem:[%s6581_s10 + $0x83] sm:$0xff]  ;;  %v6348_v45 = vld [vmem:[%s7510_s1 + $0xb0] sm:$0xff]   ;;  %v6350_v47 = vld [vmem:[%s7510_s1 + $0xb8] sm:$0xff]  }
  0x24   : > { %5790 = vmatpush3.bf16.msra.mxu0 %v6319_v21  ;;  %5511 = vmatprep.subr.bf16.mxu1 %v6320_v23  ;;  %v6341_v21 = vld [vmem:[%s7510_s1 + $0x390] sm:$0xff]   ;;  %v4833_v50 = vld [vmem:[%s6581_s10 + $0x44] sm:$0xff]  ;;  %v6358_v6 = vld [vmem:[%s7510_s1 + $0xd8] sm:$0xff]  }
  0x25   : > { %5799 = vmatprep.subr.bf16.mxu0 %v6321_v27  ;;  %v4838_v2 = vld [vmem:[%s6581_s10 + $0x94] sm:$0xff]  ;;  %v6361_v11 = vld [vmem:[%s7510_s1 + $0x3e0] sm:$0xff]  }
  0x26   : > { %5504 = vmatmul.mubr.bf16.vlgmr.msra.gmra.mrb[0].mxu1 %v181_v28  ;;  %v2326_v28 = vpack.c.bf16 %v4806_v22, %v4805_v20  ;;  %v6365_v13 = vld [vmem:[%s7510_s1 + $0x3f0] sm:$0xff]   ;;  %v6369_v20 = vld [vmem:[%s7510_s1 + $0x400] sm:$0xff]   ;;  %v6370_v22 = vld [vmem:[%s7510_s1 + $0x108] sm:$0xff]  }
  0x27   : > { %5512 = vmatpush3.bf16.msra.mxu1 %v6320_v23  ;;  %5792 = vmatmul.mubr.bf16.vlgmr.msra.gmra.mrb[0].mxu0 %v6624_v30  ;;  %v487_v23 = vld [vmem:[%s6581_s10 + $0x2] sm:$0xff]  ;;  %v6374_v39 = vld [vmem:[%s7510_s1 + $0x118] sm:$0xff]  }
  0x28   : > { %5800 = vmatpush3.bf16.msra.mxu0 %v6321_v27  ;;  %5513 = vmatprep.subr.bf16.mxu1 %v6322_v32  ;;  %v4831_v27 = vld [vmem:[%s6581_s10 + $0x24] sm:$0xff]  ;;  %v6390_v61 = vld [vmem:[%s7510_s1 + $0x158] sm:$0xff]  }
  0x29   : > { %5801 = vmatprep.subr.bf16.mxu0 %v6323_v35  ;;  %5507 = vmatprep.mubr.bf16.mxu1 %v182_v36  ;;  %v6391_v62 = vld [vmem:[%s7510_s1 + $0x458] sm:$0xff]  }
  0x2a   : > { %5795 = vmatprep.mubr.bf16.mxu0 %v6642_v38 }
  0x2b   : > { %5514 = vmatpush3.bf16.msra.mxu1 %v6322_v32  ;;  %v4832_v32 = vld [vmem:[%s6581_s10 + $0x34] sm:$0xff] }
  0x2c   : > { %5802 = vmatpush3.bf16.msra.mxu0 %v6323_v35  ;;  %5515 = vmatprep.subr.bf16.mxu1 %v6324_v37  ;;  %v495_v35 = vpack.c.bf16 %v488_v25, %v487_v23  ;;  %v6761_v36 = vpack.c.bf16 %v4832_v32, %v4831_v27  ;;  %v6371_v23 = vld [vmem:[%s7510_s1 + $0x408] sm:$0xff]   ;;  %v4869_v27 = vld [vmem:[%s6581_s10 + $0x90] sm:$0xff] }
  0x2d   : > { %5803 = vmatprep.subr.bf16.mxu0 %v6325_v44  ;;  %v820_v32 = vld [vmem:[%s6581_s10 + $0x14] sm:$0xff] }
  0x2e   : > { %5508 = vmatmul.mubr.bf16.gmra.mrb[4].mxu1 %v183_v46  ;;  %v6349_v46 = vld [vmem:[%s7510_s1 + $0x3b0] sm:$0xff]  }
  0x2f   : > { %5516 = vmatpush3.bf16.msra.mxu1 %v6324_v37  ;;  %5796 = vmatmul.mubr.bf16.gmra.mrb[4].mxu0 %v2160_v48  ;;  %v6344_v37 = vld [vmem:[%s7510_s1 + $0xa0] sm:$0xff]   ;;  %v6351_v48 = vld [vmem:[%s7510_s1 + $0x3b8] sm:$0xff]  }
  0x30   : > { %5804 = vmatpush3.bf16.msra.mxu0 %v6325_v44  ;;  %5517 = vmatprep.subr.bf16.mxu1 %v6326_v51  ;;  %v6347_v44 = vld [vmem:[%s7510_s1 + $0x3a8] sm:$0xff]  }
  0x31   : > { %5805 = vmatprep.subr.bf16.mxu0 %v6327_v52  ;;  %5527 = vmatprep.mubr.bf16.mxu1 %v329_v53 }
  0x32   : > { %5815 = vmatprep.mubr.bf16.mxu0 %v6671_v54 }
  0x33   : > { %5518 = vmatpush3.bf16.msra.mxu1 %v6326_v51  ;;  %v4834_v51 = vld [vmem:[%s6581_s10 + $0x54] sm:$0xff] }
  0x34   : > { %5806 = vmatpush3.bf16.msra.mxu0 %v6327_v52  ;;  %5519 = vmatprep.subr.bf16.mxu1 %v6328_v55  ;;  %v6353_v52 = vld [vmem:[%s7510_s1 + $0x3c0] sm:$0xff]   ;;  %v6796_v53 = vpack.c.bf16 %v4834_v51, %v4833_v50  ;;  %v6939_v50 = vld [vmem:[%s6581_s10 + $0x70] sm:$0xff] }
  0x35   : > { %5807 = vmatprep.subr.bf16.mxu0 %v6329_v56  ;;  %v6388_v51 = vld [vmem:[%s7510_s1 + $0x150] sm:$0xff]  }
  0x37   : > { %5520 = vmatpush3.bf16.msra.mxu1 %v6328_v55  ;;  %v4835_v55 = vld [vmem:[%s6581_s10 + $0x64] sm:$0xff] }
  0x38   : > { %5808 = vmatpush3.bf16.msra.mxu0 %v6329_v56  ;;  %5521 = vmatprep.subr.bf16.mxu1 %v6330_v57  ;;  %v4836_v56 = vld [vmem:[%s6581_s10 + $0x74] sm:$0xff] }
  0x39   : > { %5809 = vmatprep.subr.bf16.mxu0 %v6331_v58 }
  0x3b   : > { %5522 = vmatpush3.bf16.msra.mxu1 %v6330_v57  ;;  %v6354_v57 = vld [vmem:[%s7510_s1 + $0xc8] sm:$0xff]  }
  0x3c   : > { %5810 = vmatpush3.bf16.msra.mxu0 %v6331_v58  ;;  %5523 = vmatprep.subr.bf16.mxu1 %v6332_v59  ;;  %v6355_v58 = vld [vmem:[%s7510_s1 + $0x3c8] sm:$0xff]  }
  0x3d   : > { %5811 = vmatprep.subr.bf16.mxu0 %v6333_v60 }
  0x3f   : > { %5524 = vmatpush3.bf16.msra.mxu1 %v6332_v59  ;;  %v6356_v59 = vld [vmem:[%s7510_s1 + $0xd0] sm:$0xff]  }
  0x40   : > { %5812 = vmatpush3.bf16.msra.mxu0 %v6333_v60  ;;  %5525 = vmatprep.subr.bf16.mxu1 %v6334_v63  ;;  %v6810_v60 = vpack.c.bf16 %v4836_v56, %v4835_v55  ;;  %v4901_v56 = vld [vmem:[%s6581_s10 + $0x91] sm:$0xff] }
  0x41   : > { %5813 = vmatprep.subr.bf16.mxu0 %v6335_v1 }
  0x43   : > { %5526 = vmatpush3.bf16.msra.mxu1 %v6334_v63  ;;  %v6357_v63 = vld [vmem:[%s7510_s1 + $0x3d0] sm:$0xff]  }
  0x44   : > { %5814 = vmatpush3.bf16.msra.mxu0 %v6335_v1  ;;  %5535 = vmatprep.subr.bf16.mxu1 %v6336_v4  ;;  %v4837_v1 = vld [vmem:[%s6581_s10 + $0x84] sm:$0xff] }
  0x45   : > { %5823 = vmatprep.subr.bf16.mxu0 %v6337_v7  ;;  %v2492_v5 = vpack.c.bf16 %v4838_v2, %v4837_v1  ;;  %v4928_v1 = vld [vmem:[%s6581_s10 + $0x42] sm:$0xff] }
  0x46   : > { %5528 = vmatmul.mubr.bf16.vlgmr.msra.gmra.mrb[0].mxu1 %v330_v8  ;;  %v6392_v2 = vld [vmem:[%s7510_s1 + $0x160] sm:$0xff]  }
  0x47   : > { %5536 = vmatpush3.bf16.msra.mxu1 %v6336_v4  ;;  %5816 = vmatmul.mubr.bf16.vlgmr.msra.gmra.mrb[0].mxu0 %v6726_v12  ;;  %v654_v4 = vld [vmem:[%s6581_s10 + $0x13] sm:$0xff] }
  0x48   : > { %5824 = vmatpush3.bf16.msra.mxu0 %v6337_v7  ;;  %5537 = vmatprep.subr.bf16.mxu1 %v6338_v9  ;;  %v6359_v7 = vld [vmem:[%s7510_s1 + $0x3d8] sm:$0xff]  }
  0x49   : > { %5825 = vmatprep.subr.bf16.mxu0 %v6339_v14  ;;  %5531 = vmatprep.mubr.bf16.mxu1 %v331_v15  ;;  %v6367_v15 = vld [vmem:[%s7510_s1 + $0x3f8] sm:$0xff]  }
  0x4a   : > { %5819 = vmatprep.mubr.bf16.mxu0 %v6740_v19 }
  0x4b   : > { %5538 = vmatpush3.bf16.msra.mxu1 %v6338_v9  ;;  %v6360_v9 = vld [vmem:[%s7510_s1 + $0xe0] sm:$0xff]  }
  0x4c   : > { %5826 = vmatpush3.bf16.msra.mxu0 %v6339_v14  ;;  %5539 = vmatprep.subr.bf16.mxu1 %v6340_v18  ;;  %v6366_v14 = vld [vmem:[%s7510_s1 + $0xf8] sm:$0xff]  }
  0x4d   : > { %5827 = vmatprep.subr.bf16.mxu0 %v6341_v21 }
  0x4e   : > { %5532 = vmatmul.mubr.bf16.gmra.mrb[4].mxu1 %v332_v26  ;;  %v6372_v26 = vld [vmem:[%s7510_s1 + $0x110] sm:$0xff]  }
  0x4f   : > { %5540 = vmatpush3.bf16.msra.mxu1 %v6340_v18  ;;  %5820 = vmatmul.mubr.bf16.gmra.mrb[4].mxu0 %v2326_v28  ;;  %v6368_v18 = vld [vmem:[%s7510_s1 + $0x100] sm:$0xff]  }
  0x50   : > { %5828 = vmatpush3.bf16.msra.mxu0 %v6341_v21  ;;  %5541 = vmatprep.subr.bf16.mxu1 %v6342_v33  ;;  %v6862_v21 = vld [vmem:[%s6581_s10 + $0x80] sm:$0xff] }
  0x51   : > { %5829 = vmatprep.subr.bf16.mxu0 %v6343_v34  ;;  %5551 = vmatprep.mubr.bf16.mxu1 %v495_v35  ;;  %v2658_v25 = vpack.c.bf16 %v6862_v21, %v6648_v40  ;;  %v4870_v28 = vld [vmem:[%s6581_s10 + $0xa0] sm:$0xff] }
  0x52   : > { %5839 = vmatprep.mubr.bf16.mxu0 %v6761_v36  ;;  %v819_v40 = vld [vmem:[%s6581_s10 + $0x4] sm:$0xff]  ;;  %v2659_v31 = vpack.c.bf16 %v4870_v28, %v4869_v27  ;;  %v4933_v28 = vld [vmem:[%s6581_s10 + $0x92] sm:$0xff] }
  0x53   : > { %5542 = vmatpush3.bf16.msra.mxu1 %v6342_v33  ;;  %v827_v33 = vpack.c.bf16 %v820_v32, %v819_v40  ;;  %v6377_v35 = vld [vmem:[%s7510_s1 + $0x420] sm:$0xff]   ;;  %v6405_v40 = vld [vmem:[%s7510_s1 + $0x490] sm:$0xff]  }
  0x54   : > { %5830 = vmatpush3.bf16.msra.mxu0 %v6343_v34  ;;  %5543 = vmatprep.subr.bf16.mxu1 %v6344_v37  ;;  %v6376_v34 = vld [vmem:[%s7510_s1 + $0x120] sm:$0xff]   ;;  %v4575_v32 = vld [vmem:[%s6581_s10 + $0x11] sm:$0xff] }
  0x55   : > { %5831 = vmatprep.subr.bf16.mxu0 %v6345_v41 }
  0x57   : > { %5544 = vmatpush3.bf16.msra.mxu1 %v6344_v37  ;;  %v6381_v37 = vld [vmem:[%s7510_s1 + $0x430] sm:$0xff]  }
  0x58   : > { %5832 = vmatpush3.bf16.msra.mxu0 %v6345_v41  ;;  %5545 = vmatprep.subr.bf16.mxu1 %v6346_v43  ;;  %v6382_v41 = vld [vmem:[%s7510_s1 + $0x138] sm:$0xff]  }
  0x59   : > { %5833 = vmatprep.subr.bf16.mxu0 %v6347_v44 }
  0x5b   : > { %5546 = vmatpush3.bf16.msra.mxu1 %v6346_v43  ;;  %v6383_v43 = vld [vmem:[%s7510_s1 + $0x438] sm:$0xff]  }
  0x5c   : > { %5834 = vmatpush3.bf16.msra.mxu0 %v6347_v44  ;;  %5547 = vmatprep.subr.bf16.mxu1 %v6348_v45  ;;  %v6384_v44 = vld [vmem:[%s7510_s1 + $0x140] sm:$0xff]  }
  0x5d   : > { %5835 = vmatprep.subr.bf16.mxu0 %v6349_v46 }
  0x5f   : > { %5548 = vmatpush3.bf16.msra.mxu1 %v6348_v45  ;;  %v6385_v45 = vld [vmem:[%s7510_s1 + $0x440] sm:$0xff]  }
  0x60   : > { %5836 = vmatpush3.bf16.msra.mxu0 %v6349_v46  ;;  %5549 = vmatprep.subr.bf16.mxu1 %v6350_v47  ;;  %v6386_v46 = vld [vmem:[%s7510_s1 + $0x148] sm:$0xff]  }
  0x61   : > { %5837 = vmatprep.subr.bf16.mxu0 %v6351_v48 }
  0x63   : > { %5550 = vmatpush3.bf16.msra.mxu1 %v6350_v47  ;;  %v6387_v47 = vld [vmem:[%s7510_s1 + $0x448] sm:$0xff]  }
  0x64   : > { %5838 = vmatpush3.bf16.msra.mxu0 %v6351_v48  ;;  %5559 = vmatprep.subr.bf16.mxu1 %v6352_v49  ;;  %v6933_v48 = vld [vmem:[%s6581_s10 + $0x81] sm:$0xff] }
  0x65   : > { %5847 = vmatprep.subr.bf16.mxu0 %v6353_v52 }
  0x66   : > { %5552 = vmatmul.mubr.bf16.vlgmr.msra.gmra.mrb[0].mxu1 %v6593_v17  ;;  %v653_v17 = vld [vmem:[%s6581_s10 + $0x3] sm:$0xff] }
  0x67   : > { %5560 = vmatpush3.bf16.msra.mxu1 %v6352_v49  ;;  %5840 = vmatmul.mubr.bf16.vlgmr.msra.gmra.mrb[0].mxu0 %v6796_v53  ;;  %v661_v8 = vpack.c.bf16 %v654_v4, %v653_v17  ;;  %v6936_v49 = vld [vmem:[%s6581_s10 + $0x60] sm:$0xff]  ;;  %v6395_v4 = vld [vmem:[%s7510_s1 + $0x468] sm:$0xff]  }
  0x68   : > { %5848 = vmatpush3.bf16.msra.mxu0 %v6353_v52  ;;  %5561 = vmatprep.subr.bf16.mxu1 %v6354_v57  ;;  %v2824_v52 = vpack.c.bf16 %v6933_v48, %v6735_v16  ;;  %v3488_v55 = vpack.c.bf16 %v6939_v50, %v6936_v49  ;;  %v4543_v16 = vld [vmem:[%s6581_s10 + $0x10] sm:$0xff]  ;;  %v6393_v17 = vld [vmem:[%s7510_s1 + $0x460] sm:$0xff]  }
  0x69   : > { %5849 = vmatprep.subr.bf16.mxu0 %v6355_v58  ;;  %5555 = vmatprep.mubr.bf16.mxu1 %v6624_v30  ;;  %v2656_v30 = vpack.c.bf16 %v6622_v29, %v6613_v24  ;;  %v6362_v24 = vld [vmem:[%s7510_s1 + $0xe8] sm:$0xff]  }
  0x6a   : > { %5843 = vmatprep.mubr.bf16.mxu0 %v6810_v60  ;;  %v6363_v29 = vld [vmem:[%s7510_s1 + $0x3e8] sm:$0xff]  }
  0x6b   : > { %5562 = vmatpush3.bf16.msra.mxu1 %v6354_v57  ;;  %v4902_v57 = vld [vmem:[%s6581_s10 + $0xa1] sm:$0xff] }
  0x6c   : > { %5850 = vmatpush3.bf16.msra.mxu0 %v6355_v58  ;;  %5563 = vmatprep.subr.bf16.mxu1 %v6356_v59  ;;  %v4544_v58 = vld [vmem:[%s6581_s10 + $0x20] sm:$0xff] }
  0x6d   : > { %5851 = vmatprep.subr.bf16.mxu0 %v6357_v63 }
  0x6e   : > { %5556 = vmatmul.mubr.bf16.gmra.mrb[4].mxu1 %v6642_v38  ;;  %v6364_v38 = vld [vmem:[%s7510_s1 + $0xf0] sm:$0xff]  }
  0x6f   : > { %5564 = vmatpush3.bf16.msra.mxu1 %v6356_v59  ;;  %5844 = vmatmul.mubr.bf16.gmra.mrb[4].mxu0 %v2492_v5  ;;  %v2825_v59 = vpack.c.bf16 %v4902_v57, %v4901_v56  ;;  %v6396_v5 = vld [vmem:[%s7510_s1 + $0x170] sm:$0xff]   ;;  %v7089_v57 = vld [vmem:[%s6581_s10 + $0x61] sm:$0xff] }
  0x70   : > { %5852 = vmatpush3.bf16.msra.mxu0 %v6357_v63  ;;  %5565 = vmatprep.subr.bf16.mxu1 %v6358_v6  ;;  %v4927_v63 = vld [vmem:[%s6581_s10 + $0x32] sm:$0xff] }
  0x71   : > { %5853 = vmatprep.subr.bf16.mxu0 %v6359_v7  ;;  %5575 = vmatprep.mubr.bf16.mxu1 %v661_v8  ;;  %v6399_v8 = vld [vmem:[%s7510_s1 + $0x478] sm:$0xff]  }
  0x72   : > { %5863 = vmatprep.mubr.bf16.mxu0 %v2656_v30  ;;  %v6400_v30 = vld [vmem:[%s7510_s1 + $0x180] sm:$0xff]   ;;  %v7086_v56 = vld [vmem:[%s6581_s10 + $0x51] sm:$0xff] }
  0x73   : > { %5566 = vmatpush3.bf16.msra.mxu1 %v6358_v6  ;;  %v6397_v6 = vld [vmem:[%s7510_s1 + $0x470] sm:$0xff]  }
  0x74   : > { %5854 = vmatpush3.bf16.msra.mxu0 %v6359_v7  ;;  %5567 = vmatprep.subr.bf16.mxu1 %v6360_v9  ;;  %v6398_v7 = vld [vmem:[%s7510_s1 + $0x178] sm:$0xff]  }
  0x75   : > { %5855 = vmatprep.subr.bf16.mxu0 %v6361_v11 }
  0x77   : > { %5568 = vmatpush3.bf16.msra.mxu1 %v6360_v9  ;;  %v4545_v9 = vld [vmem:[%s6581_s10 + $0x30] sm:$0xff] }
  0x78   : > { %5856 = vmatpush3.bf16.msra.mxu0 %v6361_v11  ;;  %5569 = vmatprep.subr.bf16.mxu1 %v6362_v24  ;;  %v7001_v11 = vld [vmem:[%s6581_s10 + $0x52] sm:$0xff] }
  0x79   : > { %5857 = vmatprep.subr.bf16.mxu0 %v6363_v29 }
  0x7b   : > { %5570 = vmatpush3.bf16.msra.mxu1 %v6362_v24  ;;  %v6401_v24 = vld [vmem:[%s7510_s1 + $0x480] sm:$0xff]  }
  0x7c   : > { %5858 = vmatpush3.bf16.msra.mxu0 %v6363_v29  ;;  %5571 = vmatprep.subr.bf16.mxu1 %v6364_v38  ;;  %v7007_v29 = vld [vmem:[%s6581_s10 + $0x50] sm:$0xff] }
  0x7d   : > { %5859 = vmatprep.subr.bf16.mxu0 %v6365_v13 }
  0x7f   : > { %5572 = vmatpush3.bf16.msra.mxu1 %v6364_v38  ;;  %v6504_v38 = vld [vmem:[%s6581_s10 + $0x40] sm:$0xff] }
  0x80   : > { %5860 = vmatpush3.bf16.msra.mxu0 %v6365_v13  ;;  %5573 = vmatprep.subr.bf16.mxu1 %v6366_v14  ;;  %v995_v13 = vpack.c.bf16 %v6504_v38, %v4545_v9  ;;  %v4608_v9 = vld [vmem:[%s6581_s10 + $0x22] sm:$0xff]  ;;  %v4991_v38 = vld [vmem:[%s6581_s10 + $0x34] sm:$0xff] }
  0x81   : > { %5861 = vmatprep.subr.bf16.mxu0 %v6367_v15 }
  0x83   : > { %5574 = vmatpush3.bf16.msra.mxu1 %v6366_v14  ;;  %v7011_v14 = vld [vmem:[%s6581_s10 + $0x72] sm:$0xff] }
  0x84   : > { %5862 = vmatpush3.bf16.msra.mxu0 %v6367_v15  ;;  %5583 = vmatprep.subr.bf16.mxu1 %v6368_v18  ;;  %v6505_v15 = vld [vmem:[%s6581_s10 + $0x62] sm:$0xff] }
  0x85   : > { %5871 = vmatprep.subr.bf16.mxu0 %v6369_v20 }
  0x86   : > { %5576 = vmatmul.mubr.bf16.vlgmr.msra.gmra.mrb[0].mxu1 %v6671_v54  ;;  %v6373_v54 = vld [vmem:[%s7510_s1 + $0x410] sm:$0xff]  }
  0x87   : > { %5584 = vmatpush3.bf16.msra.mxu1 %v6368_v18  ;;  %5864 = vmatmul.mubr.bf16.vlgmr.msra.gmra.mrb[0].mxu0 %v2657_v42  ;;  %v6375_v42 = vld [vmem:[%s7510_s1 + $0x418] sm:$0xff]   ;;  %v2989_v18 = vpack.c.bf16 %v6505_v15, %v7001_v11 }
  0x88   : > { %5872 = vmatpush3.bf16.msra.mxu0 %v6369_v20  ;;  %5585 = vmatprep.subr.bf16.mxu1 %v6370_v22  ;;  %v4932_v20 = vld [vmem:[%s6581_s10 + $0x82] sm:$0xff]  ;;  %v6422_v15 = vld [vmem:[%s7510_s1 + $0x1d8] sm:$0xff]  }
  0x89   : > { %5873 = vmatprep.subr.bf16.mxu0 %v6371_v23  ;;  %5579 = vmatprep.mubr.bf16.mxu1 %v6726_v12  ;;  %v2822_v12 = vpack.c.bf16 %v6723_v10, %v6708_v3  ;;  %v6378_v3 = vld [vmem:[%s7510_s1 + $0x128] sm:$0xff]   ;;  %v7028_v27 = vpack.c.bf16 %v4932_v20, %v7011_v14 }
  0x8a   : > { %5867 = vmatprep.mubr.bf16.mxu0 %v2658_v25  ;;  %v6379_v10 = vld [vmem:[%s7510_s1 + $0x428] sm:$0xff]   ;;  %v996_v25 = vpack.c.bf16 %v6936_v49, %v7007_v29 }
  0x8b   : > { %5586 = vmatpush3.bf16.msra.mxu1 %v6370_v22  ;;  %v6402_v22 = vld [vmem:[%s7510_s1 + $0x188] sm:$0xff]  }
  0x8c   : > { %5874 = vmatpush3.bf16.msra.mxu0 %v6371_v23  ;;  %5587 = vmatprep.subr.bf16.mxu1 %v6372_v26  ;;  %v6403_v23 = vld [vmem:[%s7510_s1 + $0x488] sm:$0xff]  }
  0x8d   : > { %5875 = vmatprep.subr.bf16.mxu0 %v6373_v54 }
  0x8e   : > { %5580 = vmatmul.mubr.bf16.gmra.mrb[4].mxu1 %v6740_v19  ;;  %v6380_v19 = vld [vmem:[%s7510_s1 + $0x130] sm:$0xff]  }
  0x8f   : > { %5588 = vmatpush3.bf16.msra.mxu1 %v6372_v26  ;;  %5868 = vmatmul.mubr.bf16.gmra.mrb[4].mxu0 %v2659_v31  ;;  %v6404_v26 = vld [vmem:[%s7510_s1 + $0x190] sm:$0xff]   ;;  %v4576_v31 = vld [vmem:[%s6581_s10 + $0x21] sm:$0xff] }
  0x90   : > { %5876 = vmatpush3.bf16.msra.mxu0 %v6373_v54  ;;  %5589 = vmatprep.subr.bf16.mxu1 %v6374_v39  ;;  %v4934_v54 = vld [vmem:[%s6581_s10 + $0xa2] sm:$0xff] }
  0x91   : > { %5877 = vmatprep.subr.bf16.mxu0 %v6375_v42  ;;  %5599 = vmatprep.mubr.bf16.mxu1 %v827_v33  ;;  %v997_v33 = vpack.c.bf16 %v6862_v21, %v6939_v50  ;;  %v6408_v21 = vld [vmem:[%s7510_s1 + $0x1a0] sm:$0xff]  }
  0x92   : > { %5887 = vmatprep.mubr.bf16.mxu0 %v2822_v12  ;;  %v2991_v12 = vpack.c.bf16 %v4934_v54, %v4933_v28  ;;  %v6428_v28 = vld [vmem:[%s7510_s1 + $0x1f0] sm:$0xff]   ;;  %v5055_v50 = vld [vmem:[%s6581_s10 + $0x41] sm:$0xff] }
  0x93   : > { %5590 = vmatpush3.bf16.msra.mxu1 %v6374_v39  ;;  %v4959_v39 = vld [vmem:[%s6581_s10 + $0x33] sm:$0xff] }
  0x94   : > { %5878 = vmatpush3.bf16.msra.mxu0 %v6375_v42  ;;  %5591 = vmatprep.subr.bf16.mxu1 %v6376_v34  ;;  %v4960_v42 = vld [vmem:[%s6581_s10 + $0x43] sm:$0xff]  ;;  %v6429_v54 = vld [vmem:[%s7510_s1 + $0x4f0] sm:$0xff]  }
  0x95   : > { %5879 = vmatprep.subr.bf16.mxu0 %v6377_v35 }
  0x97   : > { %5592 = vmatpush3.bf16.msra.mxu1 %v6376_v34  ;;  %v6406_v34 = vld [vmem:[%s7510_s1 + $0x198] sm:$0xff]  }
  0x98   : > { %5880 = vmatpush3.bf16.msra.mxu0 %v6377_v35  ;;  %5593 = vmatprep.subr.bf16.mxu1 %v6378_v3  ;;  %v6407_v35 = vld [vmem:[%s7510_s1 + $0x498] sm:$0xff]  }
  0x99   : > { %5881 = vmatprep.subr.bf16.mxu0 %v6379_v10 }
  0x9b   : > { %5594 = vmatpush3.bf16.msra.mxu1 %v6378_v3  ;;  %v1160_v3 = vpack.c.bf16 %v4576_v31, %v4575_v32  ;;  %v6431_v32 = vld [vmem:[%s7510_s1 + $0x4f8] sm:$0xff]   ;;  %v6432_v31 = vld [vmem:[%s7510_s1 + $0x200] sm:$0xff]  }
  0x9c   : > { %5882 = vmatpush3.bf16.msra.mxu0 %v6379_v10  ;;  %5595 = vmatprep.subr.bf16.mxu1 %v6380_v19  ;;  %v7048_v10 = vpack.c.bf16 %v4960_v42, %v4959_v39  ;;  %v7173_v39 = vld [vmem:[%s6581_s10 + $0x54] sm:$0xff]  ;;  %v6433_v42 = vld [vmem:[%s7510_s1 + $0x500] sm:$0xff]  }
  0x9d   : > { %5883 = vmatprep.subr.bf16.mxu0 %v6381_v37 }
  0x9f   : > { %5596 = vmatpush3.bf16.msra.mxu1 %v6380_v19  ;;  %v6409_v19 = vld [vmem:[%s7510_s1 + $0x4a0] sm:$0xff]  }
  0xa0   : > { %5884 = vmatpush3.bf16.msra.mxu0 %v6381_v37  ;;  %5597 = vmatprep.subr.bf16.mxu1 %v6382_v41  ;;  %v6410_v37 = vld [vmem:[%s7510_s1 + $0x1a8] sm:$0xff]  }
  0xa1   : > { %5885 = vmatprep.subr.bf16.mxu0 %v6383_v43 }
  0xa3   : > { %5598 = vmatpush3.bf16.msra.mxu1 %v6382_v41  ;;  %v6411_v41 = vld [vmem:[%s7510_s1 + $0x4a8] sm:$0xff]  }
  0xa4   : > { %5886 = vmatpush3.bf16.msra.mxu0 %v6383_v43  ;;  %5607 = vmatprep.subr.bf16.mxu1 %v6384_v44  ;;  %v6412_v43 = vld [vmem:[%s7510_s1 + $0x1b0] sm:$0xff]  }
  0xa5   : > { %5895 = vmatprep.subr.bf16.mxu0 %v6385_v45 }
  0xa6   : > { %5600 = vmatmul.mubr.bf16.vlgmr.msra.gmra.mrb[0].mxu1 %v6761_v36  ;;  %v6389_v36 = vld [vmem:[%s7510_s1 + $0x450] sm:$0xff]  }
  0xa7   : > { %5608 = vmatpush3.bf16.msra.mxu1 %v6384_v44  ;;  %5888 = vmatmul.mubr.bf16.vlgmr.msra.gmra.mrb[0].mxu0 %v2823_v0  ;;  %v994_v0 = vpack.c.bf16 %v4544_v58, %v4543_v16  ;;  %v6413_v44 = vld [vmem:[%s7510_s1 + $0x4b0] sm:$0xff]   ;;  %v7095_v58 = vld [vmem:[%s6581_s10 + $0x83] sm:$0xff] }
  0xa8   : > { %5896 = vmatpush3.bf16.msra.mxu0 %v6385_v45  ;;  %5609 = vmatprep.subr.bf16.mxu1 %v6386_v46  ;;  %v6414_v45 = vld [vmem:[%s7510_s1 + $0x1b8] sm:$0xff]  }
  0xa9   : > { %5897 = vmatprep.subr.bf16.mxu0 %v6387_v47  ;;  %5603 = vmatprep.mubr.bf16.mxu1 %v6796_v53  ;;  %v6969_v53 = vpack.c.bf16 %v4928_v1, %v4927_v63  ;;  %v7092_v16 = vld [vmem:[%s6581_s10 + $0x73] sm:$0xff]  ;;  %v6507_v1 = vld [vmem:[%s6581_s10 + $0x63] sm:$0xff] }
  0xaa   : > { %5891 = vmatprep.mubr.bf16.mxu0 %v2824_v52  ;;  %v7080_v52 = vld [vmem:[%s6581_s10 + $0x53] sm:$0xff] }
  0xab   : > { %5610 = vmatpush3.bf16.msra.mxu1 %v6386_v46  ;;  %v6415_v46 = vld [vmem:[%s7510_s1 + $0x4b8] sm:$0xff]  }
  0xac   : > { %5898 = vmatpush3.bf16.msra.mxu0 %v6387_v47  ;;  %5611 = vmatprep.subr.bf16.mxu1 %v6388_v51  ;;  %v4577_v47 = vld [vmem:[%s6581_s10 + $0x31] sm:$0xff] }
  0xad   : > { %5899 = vmatprep.subr.bf16.mxu0 %v6389_v36 }
  0xae   : > { %5604 = vmatmul.mubr.bf16.gmra.mrb[4].mxu1 %v6810_v60  ;;  %v6394_v60 = vld [vmem:[%s7510_s1 + $0x168] sm:$0xff]  }
  0xaf   : > { %5612 = vmatpush3.bf16.msra.mxu1 %v6388_v51  ;;  %5892 = vmatmul.mubr.bf16.gmra.mrb[4].mxu0 %v2825_v59  ;;  %v6416_v51 = vld [vmem:[%s7510_s1 + $0x1c0] sm:$0xff]  }
  0xb0   : > { %5900 = vmatpush3.bf16.msra.mxu0 %v6389_v36  ;;  %5613 = vmatprep.subr.bf16.mxu1 %v6390_v61  ;;  %v6417_v36 = vld [vmem:[%s7510_s1 + $0x4c0] sm:$0xff]  }
  0xb1   : > { %5901 = vmatprep.subr.bf16.mxu0 %v6391_v62  ;;  %5623 = vmatprep.mubr.bf16.mxu1 %v994_v0  ;;  %v6506_v59 = vld [vmem:[%s6581_s10 + $0x41] sm:$0xff] }
  0xb2   : > { %5911 = vmatprep.mubr.bf16.mxu0 %v6969_v53  ;;  %v1161_v63 = vpack.c.bf16 %v6506_v59, %v4577_v47  ;;  %v6419_v0 = vld [vmem:[%s7510_s1 + $0x4c8] sm:$0xff]   ;;  %v6439_v59 = vld [vmem:[%s7510_s1 + $0x518] sm:$0xff]  }
  0xb3   : > { %5614 = vmatpush3.bf16.msra.mxu1 %v6390_v61  ;;  %v3155_v61 = vpack.c.bf16 %v6507_v1, %v7080_v52 }
  0xb4   : > { %5902 = vmatpush3.bf16.msra.mxu0 %v6391_v62  ;;  %5615 = vmatprep.subr.bf16.mxu1 %v6392_v2  ;;  %v6418_v62 = vld [vmem:[%s7510_s1 + $0x1c8] sm:$0xff]  }
  0xb5   : > { %5903 = vmatprep.subr.bf16.mxu0 %v6393_v17 }
  0xb7   : > { %5616 = vmatpush3.bf16.msra.mxu1 %v6392_v2  ;;  %v1162_v2 = vpack.c.bf16 %v7089_v57, %v7086_v56 }
  0xb8   : > { %5904 = vmatpush3.bf16.msra.mxu0 %v6393_v17  ;;  %5617 = vmatprep.subr.bf16.mxu1 %v6394_v60  ;;  %v7109_v17 = vld [vmem:[%s6581_s10 + $0x71] sm:$0xff] }
  0xb9   : > { %5905 = vmatprep.subr.bf16.mxu0 %v6395_v4 }
  0xbb   : > { %5618 = vmatpush3.bf16.msra.mxu1 %v6394_v60  ;;  %v6420_v60 = vld [vmem:[%s7510_s1 + $0x1d0] sm:$0xff]  }
  0xbc   : > { %5906 = vmatpush3.bf16.msra.mxu0 %v6395_v4  ;;  %5619 = vmatprep.subr.bf16.mxu1 %v6396_v5  ;;  %v7116_v4 = vpack.c.bf16 %v7095_v58, %v7092_v16 }
  0xbd   : > { %5907 = vmatprep.subr.bf16.mxu0 %v6397_v6 }
  0xbf   : > { %5620 = vmatpush3.bf16.msra.mxu1 %v6396_v5  ;;  %v7119_v5 = vld [vmem:[%s6581_s10 + $0x93] sm:$0xff] }
  0xc0   : > { %5908 = vmatpush3.bf16.msra.mxu0 %v6397_v6  ;;  %5621 = vmatprep.subr.bf16.mxu1 %v6398_v7  ;;  %v7122_v6 = vld [vmem:[%s6581_s10 + $0xa3] sm:$0xff] }
  0xc1   : > { %5909 = vmatprep.subr.bf16.mxu0 %v6399_v8 }
  0xc3   : > { %5622 = vmatpush3.bf16.msra.mxu1 %v6398_v7  ;;  %v6421_v7 = vld [vmem:[%s7510_s1 + $0x4d0] sm:$0xff]  }
  0xc4   : > { %5910 = vmatpush3.bf16.msra.mxu0 %v6399_v8  ;;  %5631 = vmatprep.subr.bf16.mxu1 %v6400_v30  ;;  %v1163_v8 = vpack.c.bf16 %v6933_v48, %v7109_v17 }
  0xc5   : > { %5919 = vmatprep.subr.bf16.mxu0 %v6401_v24 }
  0xc6   : > { %5624 = vmatmul.mubr.bf16.vlgmr.msra.gmra.mrb[0].mxu1 %v995_v13  ;;  %v4992_v13 = vld [vmem:[%s6581_s10 + $0x44] sm:$0xff] }
  0xc7   : > { %5632 = vmatpush3.bf16.msra.mxu1 %v6400_v30  ;;  %5912 = vmatmul.mubr.bf16.vlgmr.msra.gmra.mrb[0].mxu0 %v2989_v18  ;;  %v4607_v30 = vld [vmem:[%s6581_s10 + $0x12] sm:$0xff]  ;;  %v7142_v20 = vpack.c.bf16 %v4992_v13, %v4991_v38  ;;  %v6450_v13 = vld [vmem:[%s7510_s1 + $0x248] sm:$0xff]  }
  0xc8   : > { %5920 = vmatpush3.bf16.msra.mxu0 %v6401_v24  ;;  %5633 = vmatprep.subr.bf16.mxu1 %v6402_v22  ;;  %v3157_v24 = vpack.c.bf16 %v7122_v6, %v7119_v5  ;;  %v6423_v18 = vld [vmem:[%s7510_s1 + $0x4d8] sm:$0xff]   ;;  %v1326_v48 = vpack.c.bf16 %v4608_v9, %v4607_v30  ;;  %v6449_v30 = vld [vmem:[%s7510_s1 + $0x540] sm:$0xff]   ;;  %v5028_v38 = vld [vmem:[%s6581_s10 + $0x90] sm:$0xff] }
  0xc9   : > { %5921 = vmatprep.subr.bf16.mxu0 %v6403_v23  ;;  %5627 = vmatprep.mubr.bf16.mxu1 %v996_v25  ;;  %v6426_v25 = vld [vmem:[%s7510_s1 + $0x1e8] sm:$0xff]  }
  0xca   : > { %5915 = vmatprep.mubr.bf16.mxu0 %v7028_v27  ;;  %v7262_v9 = vld [vmem:[%s6581_s10 + $0x63] sm:$0xff] }
  0xcb   : > { %5634 = vmatpush3.bf16.msra.mxu1 %v6402_v22  ;;  %v6424_v22 = vld [vmem:[%s7510_s1 + $0x1e0] sm:$0xff]  }
  0xcc   : > { %5922 = vmatpush3.bf16.msra.mxu0 %v6403_v23  ;;  %5635 = vmatprep.subr.bf16.mxu1 %v6404_v26  ;;  %v6425_v23 = vld [vmem:[%s7510_s1 + $0x4e0] sm:$0xff]  }
  0xcd   : > { %5923 = vmatprep.subr.bf16.mxu0 %v6405_v40 }
  0xce   : > { %5628 = vmatmul.mubr.bf16.gmra.mrb[4].mxu1 %v997_v33  ;;  %v7179_v33 = vld [vmem:[%s6581_s10 + $0x62] sm:$0xff] }
  0xcf   : > { %5636 = vmatpush3.bf16.msra.mxu1 %v6404_v26  ;;  %5916 = vmatmul.mubr.bf16.gmra.mrb[4].mxu0 %v2991_v12  ;;  %v6427_v26 = vld [vmem:[%s7510_s1 + $0x4e8] sm:$0xff]  }
  0xd0   : > { %5924 = vmatpush3.bf16.msra.mxu0 %v6405_v40  ;;  %5637 = vmatprep.subr.bf16.mxu1 %v6406_v34  ;;  %v6430_v40 = vld [vmem:[%s7510_s1 + $0x1f8] sm:$0xff]   ;;  %v6508_v12 = vld [vmem:[%s6581_s10 + $0x64] sm:$0xff] }
  0xd1   : > { %5925 = vmatprep.subr.bf16.mxu0 %v6407_v35  ;;  %5647 = vmatprep.mubr.bf16.mxu1 %v1160_v3  ;;  %v7187_v3 = vld [vmem:[%s6581_s10 + $0x84] sm:$0xff] }
  0xd2   : > { %5935 = vmatprep.mubr.bf16.mxu0 %v7048_v10 }
  0xd3   : > { %5638 = vmatpush3.bf16.msra.mxu1 %v6406_v34  ;;  %v3321_v34 = vpack.c.bf16 %v6508_v12, %v7173_v39  ;;  %v6461_v12 = vld [vmem:[%s7510_s1 + $0x570] sm:$0xff]  }
  0xd4   : > { %5926 = vmatpush3.bf16.msra.mxu0 %v6407_v35  ;;  %5639 = vmatprep.subr.bf16.mxu1 %v6408_v21  ;;  %v7184_v35 = vld [vmem:[%s6581_s10 + $0x74] sm:$0xff] }
  0xd5   : > { %5927 = vmatprep.subr.bf16.mxu0 %v6409_v19 }
  0xd7   : > { %5640 = vmatpush3.bf16.msra.mxu1 %v6408_v21  ;;  %v6434_v21 = vld [vmem:[%s7510_s1 + $0x208] sm:$0xff]  }
  0xd8   : > { %5928 = vmatpush3.bf16.msra.mxu0 %v6409_v19  ;;  %5641 = vmatprep.subr.bf16.mxu1 %v6410_v37  ;;  %v6435_v19 = vld [vmem:[%s7510_s1 + $0x508] sm:$0xff]  }
  0xd9   : > { %5929 = vmatprep.subr.bf16.mxu0 %v6411_v41 }
  0xdb   : > { %5642 = vmatpush3.bf16.msra.mxu1 %v6410_v37  ;;  %v1328_v37 = vpack.c.bf16 %v7179_v33, %v7001_v11  ;;  %v4639_v11 = vld [vmem:[%s6581_s10 + $0x13] sm:$0xff] }
  0xdc   : > { %5930 = vmatpush3.bf16.msra.mxu0 %v6411_v41  ;;  %5643 = vmatprep.subr.bf16.mxu1 %v6412_v43  ;;  %v7200_v41 = vpack.c.bf16 %v7187_v3, %v7184_v35 }
  0xdd   : > { %5931 = vmatprep.subr.bf16.mxu0 %v6413_v44 }
  0xdf   : > { %5644 = vmatpush3.bf16.msra.mxu1 %v6412_v43  ;;  %v6436_v43 = vld [vmem:[%s7510_s1 + $0x210] sm:$0xff]  }
  0xe0   : > { %5932 = vmatpush3.bf16.msra.mxu0 %v6413_v44  ;;  %5645 = vmatprep.subr.bf16.mxu1 %v6414_v45  ;;  %v7206_v44 = vld [vmem:[%s6581_s10 + $0x94] sm:$0xff] }
  0xe1   : > { %5933 = vmatprep.subr.bf16.mxu0 %v6415_v46 }
  0xe3   : > { %5646 = vmatpush3.bf16.msra.mxu1 %v6414_v45  ;;  %v7209_v45 = vld [vmem:[%s6581_s10 + $0xa4] sm:$0xff] }
  0xe4   : > { %5934 = vmatpush3.bf16.msra.mxu0 %v6415_v46  ;;  %5655 = vmatprep.subr.bf16.mxu1 %v6416_v51  ;;  %v4640_v46 = vld [vmem:[%s6581_s10 + $0x23] sm:$0xff]  ;;  %v3323_v47 = vpack.c.bf16 %v7209_v45, %v7206_v44 }
  0xe5   : > { %5943 = vmatprep.subr.bf16.mxu0 %v6417_v36 }
  0xe6   : > { %5648 = vmatmul.mubr.bf16.vlgmr.msra.gmra.mrb[0].mxu1 %v1161_v63  ;;  %v1492_v63 = vpack.c.bf16 %v4640_v46, %v4639_v11  ;;  %v5059_v11 = vld [vmem:[%s6581_s10 + $0x81] sm:$0xff]  ;;  %v5060_v46 = vld [vmem:[%s6581_s10 + $0x91] sm:$0xff] }
  0xe7   : > { %5656 = vmatpush3.bf16.msra.mxu1 %v6416_v51  ;;  %5936 = vmatmul.mubr.bf16.vlgmr.msra.gmra.mrb[0].mxu0 %v3155_v61  ;;  %v5023_v51 = vld [vmem:[%s6581_s10 + $0x40] sm:$0xff] }
  0xe8   : > { %5944 = vmatpush3.bf16.msra.mxu0 %v6417_v36  ;;  %5657 = vmatprep.subr.bf16.mxu1 %v6418_v62  ;;  %v6438_v36 = vld [vmem:[%s7510_s1 + $0x218] sm:$0xff]   ;;  %v7228_v1 = vpack.c.bf16 %v7007_v29, %v5023_v51  ;;  %v6440_v61 = vld [vmem:[%s7510_s1 + $0x220] sm:$0xff]   ;;  %v6442_v29 = vld [vmem:[%s7510_s1 + $0x228] sm:$0xff]  }
  0xe9   : > { %5945 = vmatprep.subr.bf16.mxu0 %v6419_v0  ;;  %5651 = vmatprep.mubr.bf16.mxu1 %v1162_v2  ;;  %v6445_v2 = vld [vmem:[%s7510_s1 + $0x530] sm:$0xff]   ;;  %v6467_v51 = vld [vmem:[%s7510_s1 + $0x588] sm:$0xff]  }
  0xea   : > { %5939 = vmatprep.mubr.bf16.mxu0 %v7116_v4 }
  0xeb   : > { %5658 = vmatpush3.bf16.msra.mxu1 %v6418_v62  ;;  %v6441_v62 = vld [vmem:[%s7510_s1 + $0x520] sm:$0xff]  }
  0xec   : > { %5946 = vmatpush3.bf16.msra.mxu0 %v6419_v0  ;;  %5659 = vmatprep.subr.bf16.mxu1 %v6420_v60  ;;  %v6444_v0 = vld [vmem:[%s7510_s1 + $0x230] sm:$0xff]  }
  0xed   : > { %5947 = vmatprep.subr.bf16.mxu0 %v6421_v7 }
  0xee   : > { %5652 = vmatmul.mubr.bf16.gmra.mrb[4].mxu1 %v1163_v8  ;;  %v6448_v8 = vld [vmem:[%s7510_s1 + $0x240] sm:$0xff]  }
  0xef   : > { %5660 = vmatpush3.bf16.msra.mxu1 %v6420_v60  ;;  %5940 = vmatmul.mubr.bf16.gmra.mrb[4].mxu0 %v3157_v24  ;;  %v6446_v60 = vld [vmem:[%s7510_s1 + $0x238] sm:$0xff]   ;;  %v5027_v24 = vld [vmem:[%s6581_s10 + $0x80] sm:$0xff] }
  0xf0   : > { %5948 = vmatpush3.bf16.msra.mxu0 %v6421_v7  ;;  %5661 = vmatprep.subr.bf16.mxu1 %v6422_v15  ;;  %v6447_v7 = vld [vmem:[%s7510_s1 + $0x538] sm:$0xff]  }
  0xf1   : > { %5949 = vmatprep.subr.bf16.mxu0 %v6423_v18  ;;  %5671 = vmatprep.mubr.bf16.mxu1 %v1326_v48  ;;  %v7275_v48 = vpack.c.bf16 %v5028_v38, %v5027_v24  ;;  %v6473_v24 = vld [vmem:[%s7510_s1 + $0x5a0] sm:$0xff]   ;;  %v6475_v38 = vld [vmem:[%s7510_s1 + $0x5a8] sm:$0xff]  }
  0xf2   : > { %5959 = vmatprep.mubr.bf16.mxu0 %v7142_v20 }
  0xf3   : > { %5662 = vmatpush3.bf16.msra.mxu1 %v6422_v15  ;;  %v6451_v15 = vld [vmem:[%s7510_s1 + $0x548] sm:$0xff]  }
  0xf4   : > { %5950 = vmatpush3.bf16.msra.mxu0 %v6423_v18  ;;  %5663 = vmatprep.subr.bf16.mxu1 %v6424_v22  ;;  %v1494_v18 = vpack.c.bf16 %v7262_v9, %v7080_v52  ;;  %v4671_v52 = vld [vmem:[%s6581_s10 + $0x14] sm:$0xff] }
  0xf5   : > { %5951 = vmatprep.subr.bf16.mxu0 %v6425_v23 }
  0xf7   : > { %5664 = vmatpush3.bf16.msra.mxu1 %v6424_v22  ;;  %v6452_v22 = vld [vmem:[%s7510_s1 + $0x250] sm:$0xff]  }
  0xf8   : > { %5952 = vmatpush3.bf16.msra.mxu0 %v6425_v23  ;;  %5665 = vmatprep.subr.bf16.mxu1 %v6426_v25  ;;  %v5029_v23 = vld [vmem:[%s6581_s10 + $0xa0] sm:$0xff] }
  0xf9   : > { %5953 = vmatprep.subr.bf16.mxu0 %v6427_v26 }
  0xfb   : > { %5666 = vmatpush3.bf16.msra.mxu1 %v6426_v25  ;;  %v5030_v25 = vld [vmem:[%s6581_s10 + $0xb0] sm:$0xff] }
  0xfc   : > { %5954 = vmatpush3.bf16.msra.mxu0 %v6427_v26  ;;  %5667 = vmatprep.subr.bf16.mxu1 %v6428_v28  ;;  %v4672_v26 = vld [vmem:[%s6581_s10 + $0x24] sm:$0xff]  ;;  %v3490_v49 = vpack.c.bf16 %v5030_v25, %v5029_v23 }
  0xfd   : > { %5955 = vmatprep.subr.bf16.mxu0 %v6429_v54  ;;  %v6480_v23 = vld [vmem:[%s7510_s1 + $0x2c0] sm:$0xff]  }
  0xfe   : > { %v6481_v25 = vld [vmem:[%s7510_s1 + $0x5c0] sm:$0xff]  }
  0xff   : > { %5668 = vmatpush3.bf16.msra.mxu1 %v6428_v28  ;;  %v6455_v28 = vld [vmem:[%s7510_s1 + $0x558] sm:$0xff]  }
 0x100   : > { %5956 = vmatpush3.bf16.msra.mxu0 %v6429_v54  ;;  %5669 = vmatprep.subr.bf16.mxu1 %v6430_v40  ;;  %v1658_v54 = vpack.c.bf16 %v4672_v26, %v4671_v52  ;;  %v4708_v52 = vld [vmem:[%s6581_s10 + $0x70] sm:$0xff]  ;;  %v3820_v26 = vpack.c.bf16 %v7011_v14, %v7179_v33 }
 0x101   : > { %5957 = vmatprep.subr.bf16.mxu0 %v6431_v32  ;;  %v6484_v33 = vld [vmem:[%s7510_s1 + $0x2d0] sm:$0xff]  }
 0x103   : > { %5670 = vmatpush3.bf16.msra.mxu1 %v6430_v40  ;;  %v7300_v40 = vpack.c.bf16 %v7086_v56, %v5055_v50  ;;  %v6458_v56 = vld [vmem:[%s7510_s1 + $0x268] sm:$0xff]   ;;  %v5092_v50 = vld [vmem:[%s6581_s10 + $0x92] sm:$0xff] }
 0x104   : > { %5958 = vmatpush3.bf16.msra.mxu0 %v6431_v32  ;;  %5679 = vmatprep.subr.bf16.mxu1 %v6432_v31  ;;  %v6456_v32 = vld [vmem:[%s7510_s1 + $0x260] sm:$0xff]  }
 0x105   : > { %5967 = vmatprep.subr.bf16.mxu0 %v6433_v42 }
 0x106   : > { %5672 = vmatmul.mubr.bf16.vlgmr.msra.gmra.mrb[0].mxu1 %v6969_v53  ;;  %v6437_v53 = vld [vmem:[%s7510_s1 + $0x510] sm:$0xff]  }
 0x107   : > { %5680 = vmatpush3.bf16.msra.mxu1 %v6432_v31  ;;  %5960 = vmatmul.mubr.bf16.vlgmr.msra.gmra.mrb[0].mxu0 %v3321_v34  ;;  %v6457_v31 = vld [vmem:[%s7510_s1 + $0x560] sm:$0xff]   ;;  %v6462_v34 = vld [vmem:[%s7510_s1 + $0x278] sm:$0xff]  }
 0x108   : > { %5968 = vmatpush3.bf16.msra.mxu0 %v6433_v42  ;;  %5681 = vmatprep.subr.bf16.mxu1 %v6434_v21  ;;  %v6460_v42 = vld [vmem:[%s7510_s1 + $0x270] sm:$0xff]  }
 0x109   : > { %5969 = vmatprep.subr.bf16.mxu0 %v6435_v19  ;;  %5675 = vmatprep.mubr.bf16.mxu1 %v1328_v37  ;;  %v6465_v37 = vld [vmem:[%s7510_s1 + $0x580] sm:$0xff]  }
 0x10a   : > { %5963 = vmatprep.mubr.bf16.mxu0 %v7200_v41 }
 0x10b   : > { %5682 = vmatpush3.bf16.msra.mxu1 %v6434_v21  ;;  %v6463_v21 = vld [vmem:[%s7510_s1 + $0x578] sm:$0xff]  }
 0x10c   : > { %5970 = vmatpush3.bf16.msra.mxu0 %v6435_v19  ;;  %5683 = vmatprep.subr.bf16.mxu1 %v6436_v43  ;;  %v6464_v19 = vld [vmem:[%s7510_s1 + $0x280] sm:$0xff]  }
 0x10d   : > { %5971 = vmatprep.subr.bf16.mxu0 %v6437_v53 }
 0x10e   : > { %5676 = vmatmul.mubr.bf16.gmra.mrb[4].mxu1 %v7028_v27  ;;  %v6443_v27 = vld [vmem:[%s7510_s1 + $0x528] sm:$0xff]  }
 0x10f   : > { %5684 = vmatpush3.bf16.msra.mxu1 %v6436_v43  ;;  %5964 = vmatmul.mubr.bf16.gmra.mrb[4].mxu0 %v3323_v47  ;;  %v7334_v43 = vld [vmem:[%s6581_s10 + $0x64] sm:$0xff] }
 0x110   : > { %5972 = vmatpush3.bf16.msra.mxu0 %v6437_v53  ;;  %5685 = vmatprep.subr.bf16.mxu1 %v6438_v36  ;;  %v3654_v53 = vpack.c.bf16 %v7109_v17, %v7089_v57  ;;  %v6466_v47 = vld [vmem:[%s7510_s1 + $0x288] sm:$0xff]   ;;  %v1660_v57 = vpack.c.bf16 %v7334_v43, %v7173_v39  ;;  %v6469_v39 = vld [vmem:[%s7510_s1 + $0x590] sm:$0xff]  }
 0x111   : > { %5973 = vmatprep.subr.bf16.mxu0 %v6439_v59  ;;  %5695 = vmatprep.mubr.bf16.mxu1 %v1492_v63  ;;  %v5061_v63 = vld [vmem:[%s6581_s10 + $0xa1] sm:$0xff] }
 0x112   : > { %5983 = vmatprep.mubr.bf16.mxu0 %v7228_v1 }
 0x113   : > { %5686 = vmatpush3.bf16.msra.mxu1 %v6438_v36  ;;  %v7349_v36 = vpack.c.bf16 %v5060_v46, %v5059_v11  ;;  %v6488_v11 = vld [vmem:[%s7510_s1 + $0x2e0] sm:$0xff]  }
 0x114   : > { %5974 = vmatpush3.bf16.msra.mxu0 %v6439_v59  ;;  %5687 = vmatprep.subr.bf16.mxu1 %v6440_v61  ;;  %v6468_v59 = vld [vmem:[%s7510_s1 + $0x290] sm:$0xff]   ;;  %v6489_v46 = vld [vmem:[%s7510_s1 + $0x5e0] sm:$0xff]  }
 0x115   : > { %5975 = vmatprep.subr.bf16.mxu0 %v6441_v62 }
 0x117   : > { %5688 = vmatpush3.bf16.msra.mxu1 %v6440_v61  ;;  %v5062_v61 = vld [vmem:[%s6581_s10 + $0xb1] sm:$0xff] }
 0x118   : > { %5976 = vmatpush3.bf16.msra.mxu0 %v6441_v62  ;;  %5689 = vmatprep.subr.bf16.mxu1 %v6442_v29  ;;  %v4704_v62 = vld [vmem:[%s6581_s10 + $0x30] sm:$0xff] }
 0x119   : > { %5977 = vmatprep.subr.bf16.mxu0 %v6443_v27 }
 0x11b   : > { %5690 = vmatpush3.bf16.msra.mxu1 %v6442_v29  ;;  %v3656_v29 = vpack.c.bf16 %v5062_v61, %v5061_v63  ;;  %v6495_v63 = vld [vmem:[%s7510_s1 + $0x5f8] sm:$0xff]   ;;  %v6496_v61 = vld [vmem:[%s7510_s1 + $0x600] sm:$0xff]  }
 0x11c   : > { %5978 = vmatpush3.bf16.msra.mxu0 %v6443_v27  ;;  %5691 = vmatprep.subr.bf16.mxu1 %v6444_v0  ;;  %v5087_v27 = vld [vmem:[%s6581_s10 + $0x42] sm:$0xff] }
 0x11d   : > { %5979 = vmatprep.subr.bf16.mxu0 %v6445_v2 }
 0x11f   : > { %5692 = vmatpush3.bf16.msra.mxu1 %v6444_v0  ;;  %v5088_v0 = vld [vmem:[%s6581_s10 + $0x52] sm:$0xff] }
 0x120   : > { %5980 = vmatpush3.bf16.msra.mxu0 %v6445_v2  ;;  %5693 = vmatprep.subr.bf16.mxu1 %v6446_v60  ;;  %v6470_v2 = vld [vmem:[%s7510_s1 + $0x298] sm:$0xff]  }
 0x121   : > { %5981 = vmatprep.subr.bf16.mxu0 %v6447_v7 }
 0x123   : > { %5694 = vmatpush3.bf16.msra.mxu1 %v6446_v60  ;;  %v6471_v60 = vld [vmem:[%s7510_s1 + $0x598] sm:$0xff]  }
 0x124   : > { %5982 = vmatpush3.bf16.msra.mxu0 %v6447_v7  ;;  %5703 = vmatprep.subr.bf16.mxu1 %v6448_v8 }
 0x125   : > { %5991 = vmatprep.subr.bf16.mxu0 %v6449_v30 }
 0x126   : > { %5696 = vmatmul.mubr.bf16.vlgmr.msra.gmra.mrb[0].mxu1 %v7048_v10  ;;  %v6453_v10 = vld [vmem:[%s7510_s1 + $0x550] sm:$0xff]  }
 0x127   : > { %5704 = vmatpush3.bf16.msra.mxu1 %v6448_v8  ;;  %5984 = vmatmul.mubr.bf16.vlgmr.msra.gmra.mrb[0].mxu0 %v3488_v55  ;;  %v6454_v55 = vld [vmem:[%s7510_s1 + $0x258] sm:$0xff]   ;;  %v3819_v8 = vpack.c.bf16 %v5088_v0, %v5087_v27  ;;  %v3987_v27 = vpack.c.bf16 %v7119_v5, %v7095_v58  ;;  %v5151_v0 = vld [vmem:[%s6581_s10 + $0x44] sm:$0xff] }
 0x128   : > { %5992 = vmatpush3.bf16.msra.mxu0 %v6449_v30  ;;  %5705 = vmatprep.subr.bf16.mxu1 %v6450_v13  ;;  %v6472_v30 = vld [vmem:[%s7510_s1 + $0x2a0] sm:$0xff]   ;;  %v6499_v58 = vld [vmem:[%s7510_s1 + $0x618] sm:$0xff]  }
 0x129   : > { %5993 = vmatprep.subr.bf16.mxu0 %v6451_v15  ;;  %5699 = vmatprep.mubr.bf16.mxu1 %v1494_v18  ;;  %v6478_v18 = vld [vmem:[%s7510_s1 + $0x2b8] sm:$0xff]  }
 0x12a   : > { %5987 = vmatprep.mubr.bf16.mxu0 %v7275_v48 }
 0x12b   : > { %5706 = vmatpush3.bf16.msra.mxu1 %v6450_v13  ;;  %v6476_v13 = vld [vmem:[%s7510_s1 + $0x2b0] sm:$0xff]  }
 0x12c   : > { %5994 = vmatpush3.bf16.msra.mxu0 %v6451_v15  ;;  %5707 = vmatprep.subr.bf16.mxu1 %v6452_v22  ;;  %v6477_v15 = vld [vmem:[%s7510_s1 + $0x5b0] sm:$0xff]  }
 0x12d   : > { %5995 = vmatprep.subr.bf16.mxu0 %v6453_v10 }
 0x12e   : > { %5700 = vmatmul.mubr.bf16.gmra.mrb[4].mxu1 %v7116_v4  ;;  %v6459_v4 = vld [vmem:[%s7510_s1 + $0x568] sm:$0xff]  }
 0x12f   : > { %5708 = vmatpush3.bf16.msra.mxu1 %v6452_v22  ;;  %5988 = vmatmul.mubr.bf16.gmra.mrb[4].mxu0 %v3490_v49  ;;  %v6479_v22 = vld [vmem:[%s7510_s1 + $0x5b8] sm:$0xff]   ;;  %v5091_v49 = vld [vmem:[%s6581_s10 + $0x82] sm:$0xff] }
 0x130   : > { %5996 = vmatpush3.bf16.msra.mxu0 %v6453_v10  ;;  %5709 = vmatprep.subr.bf16.mxu1 %v6454_v55  ;;  %v4707_v10 = vld [vmem:[%s6581_s10 + $0x60] sm:$0xff]  ;;  %v3821_v14 = vpack.c.bf16 %v5092_v50, %v5091_v49 }
 0x131   : > { %5997 = vmatprep.subr.bf16.mxu0 %v6455_v28  ;;  %5719 = vmatprep.mubr.bf16.mxu1 %v1658_v54  ;;  %v1827_v54 = vpack.c.bf16 %v4708_v52, %v4707_v10 }
 0x132   : > { %6007 = vmatprep.mubr.bf16.mxu0 %v7300_v40 }
 0x133   : > { %5710 = vmatpush3.bf16.msra.mxu1 %v6454_v55  ;;  %v6482_v55 = vld [vmem:[%s7510_s1 + $0x2c8] sm:$0xff]  }
 0x134   : > { %5998 = vmatpush3.bf16.msra.mxu0 %v6455_v28  ;;  %5711 = vmatprep.subr.bf16.mxu1 %v6456_v32  ;;  %v6483_v28 = vld [vmem:[%s7510_s1 + $0x5c8] sm:$0xff]  }
 0x135   : > { %5999 = vmatprep.subr.bf16.mxu0 %v6457_v31 }
 0x137   : > { %5712 = vmatpush3.bf16.msra.mxu1 %v6456_v32  ;;  %v5093_v32 = vld [vmem:[%s6581_s10 + $0xa2] sm:$0xff] }
 0x138   : > { %6000 = vmatpush3.bf16.msra.mxu0 %v6457_v31  ;;  %5713 = vmatprep.subr.bf16.mxu1 %v6458_v56  ;;  %v5094_v31 = vld [vmem:[%s6581_s10 + $0xb2] sm:$0xff] }
 0x139   : > { %6001 = vmatprep.subr.bf16.mxu0 %v6459_v4 }
 0x13b   : > { %5714 = vmatpush3.bf16.msra.mxu1 %v6458_v56  ;;  %v6485_v56 = vld [vmem:[%s7510_s1 + $0x5d0] sm:$0xff]  }
 0x13c   : > { %6002 = vmatpush3.bf16.msra.mxu0 %v6459_v4  ;;  %5715 = vmatprep.subr.bf16.mxu1 %v6460_v42  ;;  %v4736_v4 = vld [vmem:[%s6581_s10 + $0x31] sm:$0xff] }
 0x13d   : > { %6003 = vmatprep.subr.bf16.mxu0 %v6461_v12 }
 0x13f   : > { %5716 = vmatpush3.bf16.msra.mxu1 %v6460_v42  ;;  %v3822_v42 = vpack.c.bf16 %v5094_v31, %v5093_v32 }
 0x140   : > { %6004 = vmatpush3.bf16.msra.mxu0 %v6461_v12  ;;  %5717 = vmatprep.subr.bf16.mxu1 %v6462_v34  ;;  %v5119_v12 = vld [vmem:[%s6581_s10 + $0x43] sm:$0xff] }
 0x141   : > { %6005 = vmatprep.subr.bf16.mxu0 %v6463_v21 }
 0x143   : > { %5718 = vmatpush3.bf16.msra.mxu1 %v6462_v34  ;;  %v5120_v34 = vld [vmem:[%s6581_s10 + $0x53] sm:$0xff] }
 0x144   : > { %6006 = vmatpush3.bf16.msra.mxu0 %v6463_v21  ;;  %5727 = vmatprep.subr.bf16.mxu1 %v6464_v19  ;;  %v6486_v21 = vld [vmem:[%s7510_s1 + $0x2d8] sm:$0xff]  }
 0x145   : > { %6015 = vmatprep.subr.bf16.mxu0 %v6465_v37 }
 0x146   : > { %5720 = vmatmul.mubr.bf16.vlgmr.msra.gmra.mrb[0].mxu1 %v7142_v20  ;;  %v4703_v20 = vld [vmem:[%s6581_s10 + $0x20] sm:$0xff] }
 0x147   : > { %5728 = vmatpush3.bf16.msra.mxu1 %v6464_v19  ;;  %6008 = vmatmul.mubr.bf16.vlgmr.msra.gmra.mrb[0].mxu0 %v3654_v53  ;;  %v1825_v7 = vpack.c.bf16 %v4704_v62, %v4703_v20  ;;  %v6487_v19 = vld [vmem:[%s7510_s1 + $0x5d8] sm:$0xff]   ;;  %v3985_v53 = vpack.c.bf16 %v5120_v34, %v5119_v12  ;;  %v3986_v20 = vpack.c.bf16 %v7092_v16, %v7262_v9  ;;  %v6497_v62 = vld [vmem:[%s7510_s1 + $0x608] sm:$0xff]   ;;  %v6498_v9 = vld [vmem:[%s7510_s1 + $0x610] sm:$0xff]  }
 0x148   : > { %6016 = vmatpush3.bf16.msra.mxu0 %v6465_v37  ;;  %5729 = vmatprep.subr.bf16.mxu1 %v6466_v47  ;;  %v5126_v16 = vld [vmem:[%s6581_s10 + $0xb3] sm:$0xff] }
 0x149   : > { %6017 = vmatprep.subr.bf16.mxu0 %v6467_v51  ;;  %5723 = vmatprep.mubr.bf16.mxu1 %v1660_v57  ;;  %v6493_v57 = vld [vmem:[%s7510_s1 + $0x5f0] sm:$0xff]  }
 0x14a   : > { %6011 = vmatprep.mubr.bf16.mxu0 %v7349_v36 }
 0x14b   : > { %5730 = vmatpush3.bf16.msra.mxu1 %v6466_v47  ;;  %v6491_v47 = vld [vmem:[%s7510_s1 + $0x5e8] sm:$0xff]  }
 0x14c   : > { %6018 = vmatpush3.bf16.msra.mxu0 %v6467_v51  ;;  %5731 = vmatprep.subr.bf16.mxu1 %v6468_v59  ;;  %v6492_v51 = vld [vmem:[%s7510_s1 + $0x2f0] sm:$0xff]  }
 0x14d   : > { %6019 = vmatprep.subr.bf16.mxu0 %v6469_v39 }
 0x14e   : > { %5724 = vmatmul.mubr.bf16.gmra.mrb[4].mxu1 %v7200_v41  ;;  %v6474_v41 = vld [vmem:[%s7510_s1 + $0x2a8] sm:$0xff]  }
 0x14f   : > { %5732 = vmatpush3.bf16.msra.mxu1 %v6468_v59  ;;  %6012 = vmatmul.mubr.bf16.gmra.mrb[4].mxu0 %v3656_v29  ;;  %v6494_v59 = vld [vmem:[%s7510_s1 + $0x2f8] sm:$0xff]  }
 0x150   : > { %6020 = vmatpush3.bf16.msra.mxu0 %v6469_v39  ;;  %5733 = vmatprep.subr.bf16.mxu1 %v6470_v2  ;;  %v4739_v39 = vld [vmem:[%s6581_s10 + $0x61] sm:$0xff] }
 0x151   : > { %6021 = vmatprep.subr.bf16.mxu0 %v6471_v60  ;;  %5743 = vmatprep.mubr.bf16.mxu1 %v1825_v7  ;;  %v1993_v29 = vpack.c.bf16 %v7109_v17, %v4739_v39  ;;  %v3988_v17 = vpack.c.bf16 %v5126_v16, %v7122_v6  ;;  %v6500_v6 = vld [vmem:[%s7510_s1 + $0x620] sm:$0xff]  }
 0x152   : > { %6031 = vmatprep.mubr.bf16.mxu0 %v3819_v8  ;;  %v4152_v8 = vpack.c.bf16 %v7184_v35, %v7334_v43  ;;  %v5183_v35 = vld [vmem:[%s7511_s2] ss:$0 sm:$0xff] }
 0x153   : > { %5734 = vmatpush3.bf16.msra.mxu1 %v6470_v2  ;;  %v5152_v2 = vld [vmem:[%s6581_s10 + $0x54] sm:$0xff] }
 0x154   : > { %6022 = vmatpush3.bf16.msra.mxu0 %v6471_v60  ;;  %5735 = vmatprep.subr.bf16.mxu1 %v6472_v30  ;;  %v4151_v5 = vpack.c.bf16 %v5152_v2, %v5151_v0  ;;  %v5158_v60 = vld [vmem:[%s6581_s10 + $0xb4] sm:$0xff] }
 0x155   : > { %6023 = vmatprep.subr.bf16.mxu0 %v6473_v24  ;;  %v4154_v7 = vpack.c.bf16 %v5158_v60, %v7209_v45 }
 0x157   : > { %5736 = vmatpush3.bf16.msra.mxu1 %v6472_v30 }
 0x158   : > { %6024 = vmatpush3.bf16.msra.mxu0 %v6473_v24  ;;  %5737 = vmatprep.subr.bf16.mxu1 %v6474_v41 }
 0x159   : > { %6025 = vmatprep.subr.bf16.mxu0 %v6475_v38 }
 0x15b   : > { %5738 = vmatpush3.bf16.msra.mxu1 %v6474_v41 }
 0x15c   : > { %6026 = vmatpush3.bf16.msra.mxu0 %v6475_v38  ;;  %5739 = vmatprep.subr.bf16.mxu1 %v6476_v13 }
 0x15d   : > { %6027 = vmatprep.subr.bf16.mxu0 %v6477_v15 }
 0x15f   : > { %5740 = vmatpush3.bf16.msra.mxu1 %v6476_v13 }
 0x160   : > { %6028 = vmatpush3.bf16.msra.mxu0 %v6477_v15  ;;  %5741 = vmatprep.subr.bf16.mxu1 %v6478_v18 }
 0x161   : > { %6029 = vmatprep.subr.bf16.mxu0 %v6479_v22 }
 0x163   : > { %5742 = vmatpush3.bf16.msra.mxu1 %v6478_v18 }
 0x164   : > { %6030 = vmatpush3.bf16.msra.mxu0 %v6479_v22  ;;  %5751 = vmatprep.subr.bf16.mxu1 %v6480_v23 }
 0x165   : > { %6039 = vmatprep.subr.bf16.mxu0 %v6481_v25 }
 0x166   : > { %5744 = vmatmul.mubr.bf16.vlgmr.msra.gmra.mrb[0].mxu1 %v7228_v1  ;;  %v4735_v1 = vld [vmem:[%s6581_s10 + $0x21] sm:$0xff] }
 0x167   : > { %5752 = vmatpush3.bf16.msra.mxu1 %v6480_v23  ;;  %6032 = vmatmul.mubr.bf16.vlgmr.msra.gmra.mrb[0].mxu0 %v3820_v26  ;;  %v1991_v37 = vpack.c.bf16 %v4736_v4, %v4735_v1 }
 0x168   : > { %6040 = vmatpush3.bf16.msra.mxu0 %v6481_v25  ;;  %5753 = vmatprep.subr.bf16.mxu1 %v6482_v55 }
 0x169   : > { %6041 = vmatprep.subr.bf16.mxu0 %v6483_v28  ;;  %5747 = vmatprep.mubr.bf16.mxu1 %v1827_v54 }
 0x16a   : > { %6035 = vmatprep.mubr.bf16.mxu0 %v3821_v14 }
 0x16b   : > { %5754 = vmatpush3.bf16.msra.mxu1 %v6482_v55 }
 0x16c   : > { %6042 = vmatpush3.bf16.msra.mxu0 %v6483_v28  ;;  %5755 = vmatprep.subr.bf16.mxu1 %v6484_v33 }
 0x16d   : > { %6043 = vmatprep.subr.bf16.mxu0 %v6485_v56 }
 0x16e   : > { %5748 = vmatmul.mubr.bf16.gmra.mrb[4].mxu1 %v7275_v48  ;;  %v6490_v48 = vld [vmem:[%s7510_s1 + $0x2e8] sm:$0xff]  }
 0x16f   : > { %5756 = vmatpush3.bf16.msra.mxu1 %v6484_v33  ;;  %6036 = vmatmul.mubr.bf16.gmra.mrb[4].mxu0 %v3822_v42 }
 0x170   : > { %6044 = vmatpush3.bf16.msra.mxu0 %v6485_v56  ;;  %5757 = vmatprep.subr.bf16.mxu1 %v6486_v21 }
 0x171   : > { %6045 = vmatprep.subr.bf16.mxu0 %v6487_v19  ;;  %5767 = vmatprep.mubr.bf16.mxu1 %v1991_v37 }
 0x172   : > { %6055 = vmatprep.mubr.bf16.mxu0 %v3985_v53 }
 0x173   : > { %5758 = vmatpush3.bf16.msra.mxu1 %v6486_v21 }
 0x174   : > { %6046 = vmatpush3.bf16.msra.mxu0 %v6487_v19  ;;  %5759 = vmatprep.subr.bf16.mxu1 %v6488_v11 }
 0x175   : > { %6047 = vmatprep.subr.bf16.mxu0 %v6489_v46 }
 0x177   : > { %5760 = vmatpush3.bf16.msra.mxu1 %v6488_v11 }
 0x178   : > { %6048 = vmatpush3.bf16.msra.mxu0 %v6489_v46  ;;  %5761 = vmatprep.subr.bf16.mxu1 %v6490_v48 }
 0x179   : > { %6049 = vmatprep.subr.bf16.mxu0 %v6491_v47 }
 0x17b   : > { %5762 = vmatpush3.bf16.msra.mxu1 %v6490_v48 }
 0x17c   : > { %6050 = vmatpush3.bf16.msra.mxu0 %v6491_v47  ;;  %5763 = vmatprep.subr.bf16.mxu1 %v6492_v51 }
 0x17d   : > { %6051 = vmatprep.subr.bf16.mxu0 %v6493_v57 }
 0x17f   : > { %5764 = vmatpush3.bf16.msra.mxu1 %v6492_v51 }
 0x180   : > { %6052 = vmatpush3.bf16.msra.mxu0 %v6493_v57  ;;  %5765 = vmatprep.subr.bf16.mxu1 %v6494_v59 }
 0x181   : > { %6053 = vmatprep.subr.bf16.mxu0 %v6495_v63 }
 0x183   : > { %5766 = vmatpush3.bf16.msra.mxu1 %v6494_v59 }
 0x184   : > { %6054 = vmatpush3.bf16.msra.mxu0 %v6495_v63  ;;  %6087 = vmatprep.subr.bf16.mxu1 %v6496_v61 }
 0x185   : > { %6063 = vmatprep.subr.bf16.mxu0 %v6496_v61 }
 0x186   : > { %5768 = vmatmul.mubr.bf16.vlgmr.msra.gmra.mrb[0].mxu1 %v7300_v40  ;;  %v4153_v40 = vpack.c.bf16 %v7206_v44, %v7187_v3  ;;  %v6502_v3 = vld [vmem:[%s7510_s1 + $0x630] sm:$0xff]   ;;  %v6503_v44 = vld [vmem:[%s7510_s1 + $0x638] sm:$0xff]  }
 0x187   : > { %6056 = vmatmul.mubr.bf16.vlgmr.msra.gmra.mrb[0].mxu0 %v3986_v20  ;;  %6095 = vmatpush3.bf16.msra.mxu1 %v6496_v61 }
 0x188   : > { %6064 = vmatpush3.bf16.msra.mxu0 %v6496_v61  ;;  %6088 = vmatprep.subr.bf16.mxu1 %v6497_v62 }
 0x189   : > { %6065 = vmatprep.subr.bf16.mxu0 %v6497_v62  ;;  %5771 = vmatprep.mubr.bf16.mxu1 %v1993_v29 }
 0x18a   : > { %6059 = vmatprep.mubr.bf16.mxu0 %v3987_v27 }
 0x18b   : > { %6096 = vmatpush3.bf16.msra.mxu1 %v6497_v62 }
 0x18c   : > { %6066 = vmatpush3.bf16.msra.mxu0 %v6497_v62  ;;  %6089 = vmatprep.subr.bf16.mxu1 %v6498_v9 }
 0x18d   : > { %6067 = vmatprep.subr.bf16.mxu0 %v6498_v9 }
 0x18e   : > { %5772 = vmatmul.mubr.bf16.gmra.mrb[4].mxu1 %v7349_v36  ;;  %v6501_v36 = vld [vmem:[%s7510_s1 + $0x628] sm:$0xff]  }
 0x18f   : > { %6060 = vmatmul.mubr.bf16.gmra.mrb[4].mxu0 %v3988_v17  ;;  %6097 = vmatpush3.bf16.msra.mxu1 %v6498_v9 }
 0x190   : > { %6068 = vmatpush3.bf16.msra.mxu0 %v6498_v9  ;;  %6090 = vmatprep.subr.bf16.mxu1 %v6499_v58 }
 0x191   : > { %6069 = vmatprep.subr.bf16.mxu0 %v6499_v58  ;;  %6079 = vmatprep.mubr.bf16.mxu0 %v4151_v5 }
 0x192   : > { %6083 = vmatprep.mubr.bf16.mxu1 %v4153_v40 }
 0x193   : > { %6098 = vmatpush3.bf16.msra.mxu1 %v6499_v58 }
 0x194   : > { %6070 = vmatpush3.bf16.msra.mxu0 %v6499_v58  ;;  %6091 = vmatprep.subr.bf16.mxu1 %v6500_v6 }
 0x195   : > { %6071 = vmatprep.subr.bf16.mxu0 %v6500_v6 }
 0x197   : > { %6099 = vmatpush3.bf16.msra.mxu1 %v6500_v6 }
 0x198   : > { %6072 = vmatpush3.bf16.msra.mxu0 %v6500_v6  ;;  %6092 = vmatprep.subr.bf16.mxu1 %v6501_v36 }
 0x199   : > { %6073 = vmatprep.subr.bf16.mxu0 %v6501_v36 }
 0x19b   : > { %6100 = vmatpush3.bf16.msra.mxu1 %v6501_v36 }
 0x19c   : > { %6074 = vmatpush3.bf16.msra.mxu0 %v6501_v36  ;;  %6093 = vmatprep.subr.bf16.mxu1 %v6502_v3 }
 0x19d   : > { %6075 = vmatprep.subr.bf16.mxu0 %v6502_v3 }
 0x19f   : > { %6101 = vmatpush3.bf16.msra.mxu1 %v6502_v3 }
 0x1a0   : > { %6076 = vmatpush3.bf16.msra.mxu0 %v6502_v3  ;;  %6094 = vmatprep.subr.bf16.mxu1 %v6503_v44 }
 0x1a1   : > { %6077 = vmatprep.subr.bf16.mxu0 %v6503_v44 }
 0x1a3   : > { %6102 = vmatpush3.bf16.msra.mxu1 %v6503_v44 }
 0x1a4   : > { %6078 = vmatpush3.bf16.msra.mxu0 %v6503_v44 }
 0x1a6   : > { %6084 = vmatmul.mubr.bf16.vlgmr.msra.gmra.mrb[8].mxu1 %v4154_v7 }
 0x1a7   : > { %6080 = vmatmul.mubr.bf16.vlgmr.msra.gmra.mrb[0].mxu0 %v4152_v8 }
 0x259   : > { %v5769_v30 = vpop.f32.mrb[0].mxu1 }
 0x25a   : > { %v2094_v24 = vpop.f32.mrb[1].mxu1 }
 0x25b   : > { %v5770_v41 = vpop.f32.mrb[2].mxu1 }
 0x25c   : > { %v2097_v38 = vpop.f32.mrb[3].mxu1 }
 0x261   : > { %v5773_v13 = vpop.f32.mrb[4].mxu1 }
 0x262   : > { %v6061_v15 = vpop.f32.mrb[4].mxu0  ;;  %v2110_v18 = vpop.f32.mrb[5].mxu1 }
 0x263   : > { %v6107_v22 = vadd.f32 %v6061_v15, %v5773_v13  ;;  %v4104_v23 = vpop.f32.mrb[5].mxu0  ;;  %v5774_v25 = vpop.f32.mrb[6].mxu1 }
 0x264   : > { %v6109_v10 = vadd.f32 %v4104_v23, %v2110_v18  ;;  %v6062_v52 = vpop.f32.mrb[6].mxu0  ;;  %v2113_v45 = vpop.f32.mrb[7].mxu1 }
 0x265   : > { %v6111_v26 = vadd.f32 %v6062_v52, %v5774_v25  ;;  %v4107_v49 = vpop.f32.mrb[7].mxu0 }
 0x266   : > { %v6113_v50 = vadd.f32 %v4107_v49, %v2113_v45 }
 0x279   : > { %v6085_v43 = vpop.f32.mrb[8].mxu1 }
 0x27a   : > { %v6081_v55 = vpop.f32.mrb[0].mxu0  ;;  %v6108_v28 = vadd.f32 %v6107_v22, %v6085_v43  ;;  %v4270_v54 = vpop.f32.mrb[9].mxu1 }
 0x27b   : > { %v6103_v14 = vadd.f32 %v6081_v55, %v5769_v30  ;;  %v4254_v33 = vpop.f32.mrb[1].mxu0  ;;  %v6110_v32 = vadd.f32 %v6109_v10, %v4270_v54  ;;  %v6086_v31 = vpop.f32.mrb[10].mxu1 }
 0x27c   : > { %v4330_v56 = vadd.f32 %v6108_v28, %v5183_v35  ;;  %v6104_v1 = vadd.f32 %v4254_v33, %v2094_v24  ;;  %v6082_v4 = vpop.f32.mrb[2].mxu0  ;;  %v6112_v42 = vadd.f32 %v6111_v26, %v6086_v31  ;;  %v4273_v12 = vpop.f32.mrb[11].mxu1 }
 0x27d   : > { %v4326_v34 = vadd.f32 %v6103_v14, %v5183_v35  ;;  %v4328_v21 = vadd.f32 %v6110_v32, %v5183_v35  ;;  %v6105_v19 = vadd.f32 %v6082_v4, %v5770_v41  ;;  %v4257_v37 = vpop.f32.mrb[3].mxu0  ;;  %v6114_v53 = vadd.f32 %v6113_v50, %v4273_v12 }
 0x27e   : > { %v4324_v11 = vadd.f32 %v6104_v1, %v5183_v35  ;;  %v4331_v46 = vadd.f32 %v6112_v42, %v5183_v35  ;;  %v6106_v48 = vadd.f32 %v4257_v37, %v2097_v38  ;;  %v4338_v57 = vmax.f32 %v4330_v56, 0.0 }
 0x27f   : > { %v4327_v47 = vadd.f32 %v6105_v19, %v5183_v35  ;;  %v4329_v51 = vadd.f32 %v6114_v53, %v5183_v35  ;;  %v4334_v61 = vmax.f32 %v4326_v34, 0.0  ;;  %v4336_v39 = vmax.f32 %v4328_v21, 0.0 }
 0x280   : > { %v4339_v59 = vmax.f32 %v4331_v46, 0.0  ;;  %v4325_v63 = vadd.f32 %v6106_v48, %v5183_v35  ;;  %v4332_v29 = vmax.f32 %v4324_v11, 0.0 }
 0x281   : > { %v4335_v20 = vmax.f32 %v4327_v47, 0.0  ;;  %v4337_v62 = vmax.f32 %v4329_v51, 0.0 }
 0x282   : > { %v4343_v27 = vmax.f32 %v4338_v57, %v4339_v59  ;;  %v4333_v16 = vmax.f32 %v4325_v63, 0.0 }
 0x283   : > { %v4341_v9 = vmax.f32 %v4334_v61, %v4335_v20  ;;  %v4342_v0 = vmax.f32 %v4336_v39, %v4337_v62 }
 0x284   : > { %v4351_v2 = vrot.slane %v4343_v27, 1  ;;  %v4340_v17 = vmax.f32 %v4332_v29, %v4333_v16 }
 0x285   : > { %v4349_v58 = vrot.slane %v4341_v9, 1  ;;  %v4350_v5 = vrot.slane %v4342_v0, 1 }
 0x286   : > { %v4359_v40 = vmax.f32 %v4343_v27, %v4351_v2  ;;  %v4348_v6 = vrot.slane %v4340_v17, 1 }
 0x287   : > { %v4357_v36 = vmax.f32 %v4341_v9, %v4349_v58  ;;  %v4358_v3 = vmax.f32 %v4342_v0, %v4350_v5 }
 0x288   : > { %4363 = vst [vmem:[%s170_s11 + $0xc] sm:$0x1] %v4359_v40  ;;  %4367 = vst [vmem:[%s170_s11 + $0xb] sm:$0x4] %v4359_v40  ;;  %v4356_v44 = vmax.f32 %v4340_v17, %v4348_v6 }
 0x289   : > { %4371 = vst [vmem:[%s170_s11 + $0xa] sm:$0x10] %v4359_v40  ;;  %4375 = vst [vmem:[%s170_s11 + $0x9] sm:$0x40] %v4359_v40 }
 0x28a   : > { %4361 = vst [vmem:[%s170_s11 + $0x4] sm:$0x1] %v4357_v36  ;;  %4365 = vst [vmem:[%s170_s11 + $0x3] sm:$0x4] %v4357_v36 }
 0x28b   : > { %4369 = vst [vmem:[%s170_s11 + $0x2] sm:$0x10] %v4357_v36  ;;  %4373 = vst [vmem:[%s170_s11 + $0x1] sm:$0x40] %v4357_v36 }
 0x28c   : > { %4362 = vst [vmem:[%s170_s11 + $0x8] sm:$0x1] %v4358_v3  ;;  %4366 = vst [vmem:[%s170_s11 + $0x7] sm:$0x4] %v4358_v3 }
 0x28d   : > { %4370 = vst [vmem:[%s170_s11 + $0x6] sm:$0x10] %v4358_v3  ;;  %4374 = vst [vmem:[%s170_s11 + $0x5] sm:$0x40] %v4358_v3 }
 0x28e   : > { %4360 = vst [vmem:[%s170_s11] sm:$0x1] %v4356_v44  ;;  %4364 = vst [vmem:[%s170_s11 - $0x1] sm:$0x4] %v4356_v44 }
 0x28f   : > { %4368 = vst [vmem:[%s170_s11 - $0x2] sm:$0x10] %v4356_v44  ;;  %4372 = vst [vmem:[%s170_s11 - $0x3] sm:$0x40] %v4356_v44 }
 0x290 PF: > { %s13_s12 = sadd.s32 1, %s6515_s12  }
 0x291   : > { %p10_p4 = scmp.ge.s32.totalorder %s13_s12, 4  }
 0x293   :  { %12 = sbr.rel (!%p10_p4) target bundleno = 1 (0x1), region = 90 }

// kernel: net2_forward.3
= control target key start
LH: loop header
LB: loop body
LE: loop exit
PB: predicated region body
PF: predicated region fallthrough
CT: control target
= control target key end

     0   :  { %s13818_s12 = smov 0   ;;  %s15757_s0 = inlined_call_operand.vmem [shape: f32[2,20,20,128], index: 0, kind: input, shape index: {}]   ;;  %s15758_s1 = inlined_call_operand.vmem [shape: bf16[25,128,128], index: 1, kind: input, shape index: {}]   ;;  %s15759_s2 = inlined_call_operand.vmem [shape: f32[1,128], index: 2, kind: input, shape index: {}]   ;;  %s15760_s3 = inlined_call_operand.vmem [shape: f32[2,12,12,128], index: 3, kind: output, shape index: {}]  }
   0x1 LB: > { %s9688_s13 = sadd.s32 4294967295, %s13795_s12   ;;  %p9692_p0 = scmp.ge.s32.totalorder %s13795_s12, 1  ;;  %s13795_s12 = sphi %s13818_s12, %s13_s12  }
   0x2   : > { %p137_p1 = scmp.lt.s32.totalorder %s13795_s12, 3 }
   0x4   : > { %p138_p2 = pnand %p9692_p0, %p137_p1 }
   0x5   : > { %v13581_v0 = vld [vmem:[%s15758_s1] sm:$0xff] (!%p138_p2)   ;;  %p161_p3 = scmp.lt.s32.totalorder (!%p138_p2), %s9688_s13, 1  ;;  %v13583_v2 = vld [vmem:[%s15758_s1 + $0x8] sm:$0xff] (!%p138_p2)   ;;  %v13585_v4 = vld [vmem:[%s15758_s1 + $0x10] sm:$0xff] (!%p138_p2)  }
   0x6   : > { %141 = sbr.rel (%p138_p2) target bundleno = 1060 (0x424), region = 32  ;;  %v13582_v1 = vld [vmem:[%s15758_s1 + $0x300] sm:$0xff] (!%p138_p2)   ;;  %11586 = vmatprep.subr.bf16.mxu1 (!%p138_p2), %v13581_v0  ;;  %v13584_v3 = vld [vmem:[%s15758_s1 + $0x308] sm:$0xff] (!%p138_p2)   ;;  %v13586_v5 = vld [vmem:[%s15758_s1 + $0x310] sm:$0xff] (!%p138_p2)  }
   0x7   : > { %12162 = vmatprep.subr.bf16.mxu0 (!%p138_p2), %v13582_v1  ;;  %11587 = vmatpush3.bf16.msra.mxu1 (!%p138_p2), %v13581_v0  ;;  %v13587_v6 = vld [vmem:[%s15758_s1 + $0x18] sm:$0xff] (!%p138_p2)   ;;  %v13589_v8 = vld [vmem:[%s15758_s1 + $0x20] sm:$0xff] (!%p138_p2)   ;;  %v13591_v10 = vld [vmem:[%s15758_s1 + $0x28] sm:$0xff] (!%p138_p2)  }
   0x8   : > { %12163 = vmatpush3.bf16.msra.mxu0 (!%p138_p2), %v13582_v1  ;;  %11588 = vmatprep.subr.bf16.mxu1 (!%p138_p2), %v13583_v2  ;;  %v13588_v7 = vld [vmem:[%s15758_s1 + $0x318] sm:$0xff] (!%p138_p2)   ;;  %v13590_v9 = vld [vmem:[%s15758_s1 + $0x320] sm:$0xff] (!%p138_p2)   ;;  %v13592_v14 = vld [vmem:[%s15758_s1 + $0x328] sm:$0xff] (!%p138_p2)  }
   0x9   : > { %12164 = vmatprep.subr.bf16.mxu0 (!%p138_p2), %v13584_v3  ;;  %v13593_v18 = vld [vmem:[%s15758_s1 + $0x30] sm:$0xff] (!%p138_p2)   ;;  %v13595_v20 = vld [vmem:[%s15758_s1 + $0x38] sm:$0xff] (!%p138_p2)   ;;  %v13597_v24 = vld [vmem:[%s15758_s1 + $0x40] sm:$0xff] (!%p138_p2)  }
   0xa   : > { %v13594_v19 = vld [vmem:[%s15758_s1 + $0x330] sm:$0xff] (!%p138_p2)   ;;  %v13596_v21 = vld [vmem:[%s15758_s1 + $0x338] sm:$0xff] (!%p138_p2)   ;;  %v13598_v27 = vld [vmem:[%s15758_s1 + $0x340] sm:$0xff] (!%p138_p2)  }
   0xb   : > { %11589 = vmatpush3.bf16.msra.mxu1 (!%p138_p2), %v13583_v2  ;;  %v13599_v34 = vld [vmem:[%s15758_s1 + $0x348] sm:$0xff] (!%p138_p2)   ;;  %v13601_v43 = vld [vmem:[%s15758_s1 + $0x350] sm:$0xff] (!%p138_p2)   ;;  %v13602_v51 = vld [vmem:[%s15758_s1 + $0x358] sm:$0xff] (!%p138_p2)  }
   0xc   : > { %12165 = vmatpush3.bf16.msra.mxu0 (!%p138_p2), %v13584_v3  ;;  %11590 = vmatprep.subr.bf16.mxu1 (!%p138_p2), %v13585_v4  ;;  %v13600_v39 = vld [vmem:[%s15758_s1 + $0x48] sm:$0xff] (!%p138_p2)   ;;  %v13603_v46 = vld [vmem:[%s15758_s1 + $0x50] sm:$0xff] (!%p138_p2)   ;;  %v13606_v55 = vld [vmem:[%s15758_s1 + $0x58] sm:$0xff] (!%p138_p2)  }
   0xd   : > { %s15762_s13 = smov (!%p161_p3, %s9688_s13), 1  ;;  %12166 = vmatprep.subr.bf16.mxu0 %v13586_v5  ;;  %v13604_v58 = vld [vmem:[%s15758_s1 + $0x360] sm:$0xff]  }
   0xe   : > { %s13570_s30 = smul.u32 480, %s15762_s13  ;;  %v13609_v0 = vld [vmem:[%s15758_s1 + $0x60] sm:$0xff]  }
   0xf   : > { %11591 = vmatpush3.bf16.msra.mxu1 %v13585_v4  ;;  %v13605_v4 = vld [vmem:[%s15758_s1 + $0x368] sm:$0xff]   ;;  %s13571_s25 = smul.u32 192, %s15762_s13 }
  0x10   : > { %12167 = vmatpush3.bf16.msra.mxu0 %v13586_v5  ;;  %11592 = vmatprep.subr.bf16.mxu1 %v13587_v6  ;;  %s13862_s10 = scalar_lea.vmem %s15757_s0, %s13570_s30 }
  0x11   : > { %12168 = vmatprep.subr.bf16.mxu0 %v13588_v7  ;;  %v172_v11 = vld [vmem:[%s13862_s10] sm:$0xff]  ;;  %v173_v12 = vld [vmem:[%s13862_s10 + $0x8] sm:$0xff]  ;;  %v10191_v13 = vld [vmem:[%s13862_s10 + $0x32] sm:$0xff]  ;;  %s15612_s28 = scalar_lea.vmem %s15760_s3, %s13571_s25 }
  0x12   : > { %v204_v15 = vpack.c.bf16 %v173_v12, %v172_v11  ;;  %v10192_v16 = vld [vmem:[%s13862_s10 + $0x3a] sm:$0xff]  ;;  %v10193_v25 = vld [vmem:[%s13862_s10 + $0x4a] sm:$0xff]  ;;  %v10194_v26 = vld [vmem:[%s13862_s10 + $0x52] sm:$0xff] }
  0x13   : > { %11593 = vmatpush3.bf16.msra.mxu1 %v13587_v6  ;;  %v13874_v17 = vpack.c.bf16 %v10192_v16, %v10191_v13  ;;  %v174_v22 = vld [vmem:[%s13862_s10 + $0x18] sm:$0xff]  ;;  %v175_v23 = vld [vmem:[%s13862_s10 + $0x20] sm:$0xff]  ;;  %v176_v28 = vld [vmem:[%s13862_s10 + $0x30] sm:$0xff]  ;;  %v13903_v33 = vpack.c.bf16 %v10194_v26, %v10193_v25 }
  0x14   : > { %12169 = vmatpush3.bf16.msra.mxu0 %v13588_v7  ;;  %11594 = vmatprep.subr.bf16.mxu1 %v13589_v8  ;;  %v177_v29 = vld [vmem:[%s13862_s10 + $0x38] sm:$0xff]  ;;  %v205_v30 = vpack.c.bf16 %v175_v23, %v174_v22  ;;  %v10195_v31 = vld [vmem:[%s13862_s10 + $0x62] sm:$0xff]  ;;  %v10196_v32 = vld [vmem:[%s13862_s10 + $0x6a] sm:$0xff] }
  0x15   : > { %12170 = vmatprep.subr.bf16.mxu0 %v13590_v9  ;;  %11602 = vmatprep.mubr.bf16.mxu1 %v204_v15  ;;  %v206_v35 = vpack.c.bf16 %v177_v29, %v176_v28  ;;  %v13908_v36 = vpack.c.bf16 %v10196_v32, %v10195_v31  ;;  %v178_v37 = vld [vmem:[%s13862_s10 + $0x48] sm:$0xff]  ;;  %v179_v38 = vld [vmem:[%s13862_s10 + $0x50] sm:$0xff]  ;;  %v10197_v40 = vld [vmem:[%s13862_s10 + $0x7a] sm:$0xff] }
  0x16   : > { %12178 = vmatprep.mubr.bf16.mxu0 %v13874_v17  ;;  %v10198_v41 = vld [vmem:[%s13862_s10 + $0x82] sm:$0xff]  ;;  %v10199_v45 = vld [vmem:[%s13862_s10 + $0x92] sm:$0xff]  ;;  %v10200_v47 = vld [vmem:[%s13862_s10 + $0x9a] sm:$0xff]  ;;  %v13929_v48 = vpack.c.bf16 %v179_v38, %v178_v37 }
  0x17   : > { %11595 = vmatpush3.bf16.msra.mxu1 %v13589_v8  ;;  %v180_v42 = vld [vmem:[%s13862_s10 + $0x60] sm:$0xff]  ;;  %v181_v44 = vld [vmem:[%s13862_s10 + $0x68] sm:$0xff]  ;;  %v13931_v49 = vpack.c.bf16 %v10198_v41, %v10197_v40  ;;  %v13938_v52 = vpack.c.bf16 %v10200_v47, %v10199_v45  ;;  %v182_v53 = vld [vmem:[%s13862_s10 + $0x78] sm:$0xff] }
  0x18   : > { %12171 = vmatpush3.bf16.msra.mxu0 %v13590_v9  ;;  %11596 = vmatprep.subr.bf16.mxu1 %v13591_v10  ;;  %v13933_v50 = vpack.c.bf16 %v181_v44, %v180_v42  ;;  %v183_v54 = vld [vmem:[%s13862_s10 + $0x80] sm:$0xff]  ;;  %v10201_v56 = vld [vmem:[%s13862_s10 + $0xaa] sm:$0xff]  ;;  %v10202_v57 = vld [vmem:[%s13862_s10 + $0xb2] sm:$0xff] }
  0x19   : > { %12172 = vmatprep.subr.bf16.mxu0 %v13592_v14  ;;  %v184_v59 = vld [vmem:[%s13862_s10 + $0x90] sm:$0xff]  ;;  %v185_v60 = vld [vmem:[%s13862_s10 + $0x98] sm:$0xff]  ;;  %v10203_v61 = vld [vmem:[%s13862_s10 + $0xc2] sm:$0xff]  ;;  %v13958_v63 = vpack.c.bf16 %v183_v54, %v182_v53  ;;  %v13963_v1 = vpack.c.bf16 %v10202_v57, %v10201_v56 }
  0x1a   : > { %v10204_v62 = vld [vmem:[%s13862_s10 + $0xca] sm:$0xff]  ;;  %v13965_v2 = vpack.c.bf16 %v185_v60, %v184_v59  ;;  %v10205_v8 = vld [vmem:[%s13862_s10 + $0xda] sm:$0xff]  ;;  %v10206_v9 = vld [vmem:[%s13862_s10 + $0xe2] sm:$0xff] }
  0x1b   : > { %11597 = vmatpush3.bf16.msra.mxu1 %v13591_v10  ;;  %v13967_v3 = vpack.c.bf16 %v10204_v62, %v10203_v61  ;;  %v186_v5 = vld [vmem:[%s13862_s10 + $0xa8] sm:$0xff]  ;;  %v187_v6 = vld [vmem:[%s13862_s10 + $0xb0] sm:$0xff]  ;;  %v188_v10 = vld [vmem:[%s13862_s10 + $0xc0] sm:$0xff] }
  0x1c   : > { %12173 = vmatpush3.bf16.msra.mxu0 %v13592_v14  ;;  %11598 = vmatprep.subr.bf16.mxu1 %v13593_v18  ;;  %v13611_v7 = vld [vmem:[%s15758_s1 + $0x68] sm:$0xff]   ;;  %v13607_v12 = vld [vmem:[%s15758_s1 + $0x370] sm:$0xff]   ;;  %v10248_v14 = vld [vmem:[%s13862_s10 + $0x3b] sm:$0xff]  ;;  %v13990_v15 = vpack.c.bf16 %v187_v6, %v186_v5 }
  0x1d   : > { %12174 = vmatprep.subr.bf16.mxu0 %v13594_v19  ;;  %v189_v11 = vld [vmem:[%s13862_s10 + $0xc8] sm:$0xff]  ;;  %v10247_v13 = vld [vmem:[%s13862_s10 + $0x33] sm:$0xff]  ;;  %v191_v23 = vld [vmem:[%s13862_s10 + $0xe0] sm:$0xff] }
  0x1e   : > { %v13613_v16 = vld [vmem:[%s15758_s1 + $0x70] sm:$0xff]   ;;  %v190_v22 = vld [vmem:[%s13862_s10 + $0xd8] sm:$0xff]  ;;  %v194_v40 = vld [vmem:[%s13862_s10 + $0x108] sm:$0xff] }
  0x1f   : > { %11599 = vmatpush3.bf16.msra.mxu1 %v13593_v18  ;;  %v13995_v18 = vpack.c.bf16 %v10206_v9, %v10205_v8  ;;  %v10250_v25 = vld [vmem:[%s13862_s10 + $0x53] sm:$0xff]  ;;  %v10252_v31 = vld [vmem:[%s13862_s10 + $0x6b] sm:$0xff]  ;;  %v14019_v32 = vpack.c.bf16 %v191_v23, %v190_v22  ;;  %v10253_v42 = vld [vmem:[%s13862_s10 + $0x7b] sm:$0xff] }
  0x20   : > { %12175 = vmatpush3.bf16.msra.mxu0 %v13594_v19  ;;  %11600 = vmatprep.subr.bf16.mxu1 %v13595_v20  ;;  %v13997_v19 = vpack.c.bf16 %v189_v11, %v188_v10  ;;  %v13615_v26 = vld [vmem:[%s15758_s1 + $0x78] sm:$0xff]   ;;  %v192_v28 = vld [vmem:[%s13862_s10 + $0xf0] sm:$0xff]  ;;  %v196_v44 = vld [vmem:[%s13862_s10 + $0x120] sm:$0xff] }
  0x21   : > { %12176 = vmatprep.subr.bf16.mxu0 %v13596_v21  ;;  %v193_v29 = vld [vmem:[%s13862_s10 + $0xf8] sm:$0xff]  ;;  %v195_v41 = vld [vmem:[%s13862_s10 + $0x110] sm:$0xff]  ;;  %v197_v45 = vld [vmem:[%s13862_s10 + $0x128] sm:$0xff] }
  0x22   : > { %v14026_v37 = vpack.c.bf16 %v193_v29, %v192_v28  ;;  %v10256_v47 = vld [vmem:[%s13862_s10 + $0x9b] sm:$0xff]  ;;  %v14045_v53 = vpack.c.bf16 %v195_v41, %v194_v40  ;;  %v10257_v60 = vld [vmem:[%s13862_s10 + $0xab] sm:$0xff]  ;;  %v10258_v61 = vld [vmem:[%s13862_s10 + $0xb3] sm:$0xff] }
  0x23   : > { %11601 = vmatpush3.bf16.msra.mxu1 %v13595_v20  ;;  %v4951_v20 = vpack.c.bf16 %v10248_v14, %v10247_v13  ;;  %v13616_v57 = vld [vmem:[%s15758_s1 + $0x398] sm:$0xff]   ;;  %v199_v59 = vld [vmem:[%s13862_s10 + $0x140] sm:$0xff]  ;;  %v200_v62 = vld [vmem:[%s13862_s10 + $0x150] sm:$0xff]  ;;  %v4956_v8 = vpack.c.bf16 %v10258_v61, %v10257_v60 }
  0x24   : > { %12177 = vmatpush3.bf16.msra.mxu0 %v13596_v21  ;;  %11634 = vmatprep.subr.bf16.mxu1 %v13597_v24  ;;  %v13608_v21 = vld [vmem:[%s15758_s1 + $0x378] sm:$0xff]   ;;  %v10260_v5 = vld [vmem:[%s13862_s10 + $0xcb] sm:$0xff]  ;;  %v13618_v6 = vld [vmem:[%s15758_s1 + $0x3a0] sm:$0xff]  }
  0x25   : > { %12210 = vmatprep.subr.bf16.mxu0 %v13598_v27  ;;  %v202_v11 = vld [vmem:[%s13862_s10 + $0x168] sm:$0xff]  ;;  %v203_v13 = vld [vmem:[%s13862_s10 + $0x170] sm:$0xff]  ;;  %v10261_v14 = vld [vmem:[%s13862_s10 + $0xdb] sm:$0xff] }
  0x26   : > { %11603 = vmatmul.mubr.bf16.vlgmr.msra.gmra.mrb[0].mxu1 %v205_v30  ;;  %v10251_v30 = vld [vmem:[%s13862_s10 + $0x63] sm:$0xff]  ;;  %v10263_v22 = vld [vmem:[%s13862_s10 + $0xf3] sm:$0xff]  ;;  %v10264_v23 = vld [vmem:[%s13862_s10 + $0xfb] sm:$0xff] }
  0x27   : > { %12179 = vmatmul.mubr.bf16.vlgmr.msra.gmra.mrb[0].mxu0 %v13903_v33  ;;  %11635 = vmatpush3.bf16.msra.mxu1 %v13597_v24  ;;  %v10249_v24 = vld [vmem:[%s13862_s10 + $0x4b] sm:$0xff]  ;;  %v4953_v38 = vpack.c.bf16 %v10252_v31, %v10251_v30  ;;  %v4959_v28 = vpack.c.bf16 %v10264_v23, %v10263_v22  ;;  %v13624_v29 = vld [vmem:[%s15758_s1 + $0x3b8] sm:$0xff]   ;;  %v480_v31 = vld [vmem:[%s13862_s10 + $0x21] sm:$0xff] }
  0x28   : > { %12211 = vmatpush3.bf16.msra.mxu0 %v13598_v27  ;;  %11606 = vmatprep.mubr.bf16.mxu1 %v206_v35  ;;  %v13610_v27 = vld [vmem:[%s15758_s1 + $0x380] sm:$0xff]   ;;  %v4952_v35 = vpack.c.bf16 %v10250_v25, %v10249_v24  ;;  %v13622_v24 = vld [vmem:[%s15758_s1 + $0x3b0] sm:$0xff]   ;;  %v14085_v25 = vpack.c.bf16 %v203_v13, %v202_v11  ;;  %v13623_v11 = vld [vmem:[%s15758_s1 + $0x98] sm:$0xff]  }
  0x29   : > { %12212 = vmatprep.subr.bf16.mxu0 %v13599_v34  ;;  %12182 = vmatprep.mubr.bf16.mxu0 %v13908_v36  ;;  %v479_v30 = vld [vmem:[%s13862_s10 + $0x19] sm:$0xff]  ;;  %v10267_v41 = vld [vmem:[%s13862_s10 + $0x123] sm:$0xff]  ;;  %v13621_v61 = vld [vmem:[%s15758_s1 + $0x90] sm:$0xff]  }
  0x2a   : > { %11636 = vmatprep.subr.bf16.mxu1 %v13600_v39  ;;  %v482_v40 = vld [vmem:[%s13862_s10 + $0x39] sm:$0xff]  ;;  %v486_v60 = vld [vmem:[%s13862_s10 + $0x69] sm:$0xff] }
  0x2b   : > { %11637 = vmatpush3.bf16.msra.mxu1 %v13600_v39  ;;  %v13612_v39 = vld [vmem:[%s15758_s1 + $0x388] sm:$0xff]   ;;  %v10274_v13 = vld [vmem:[%s13862_s10 + $0x173] sm:$0xff]  ;;  %v13625_v22 = vld [vmem:[%s15758_s1 + $0xa0] sm:$0xff]  }
  0x2c   : > { %12213 = vmatpush3.bf16.msra.mxu0 %v13599_v34  ;;  %11638 = vmatprep.subr.bf16.mxu1 %v13603_v46  ;;  %v14024_v34 = vld [vmem:[%s15758_s1 + $0x80] sm:$0xff]  }
  0x2d   : > { %12214 = vmatprep.subr.bf16.mxu0 %v13601_v43 }
  0x2e   : > { %11607 = vmatmul.mubr.bf16.gmra.mrb[4].mxu1 %v13929_v48 }
  0x2f   : > { %12183 = vmatmul.mubr.bf16.gmra.mrb[4].mxu0 %v13931_v49  ;;  %11610 = vmatprep.mubr.bf16.mxu1 %v13933_v50 }
  0x30   : > { %12215 = vmatpush3.bf16.msra.mxu0 %v13601_v43  ;;  %12186 = vmatprep.mubr.bf16.mxu0 %v13938_v52  ;;  %v10254_v43 = vld [vmem:[%s13862_s10 + $0x83] sm:$0xff] }
  0x31   : > { %12216 = vmatprep.subr.bf16.mxu0 %v13602_v51  ;;  %11639 = vmatpush3.bf16.msra.mxu1 %v13603_v46  ;;  %v10255_v46 = vld [vmem:[%s13862_s10 + $0x93] sm:$0xff]  ;;  %v4954_v54 = vpack.c.bf16 %v10254_v43, %v10253_v42  ;;  %v10268_v42 = vld [vmem:[%s13862_s10 + $0x12b] sm:$0xff]  ;;  %v14102_v43 = vld [vmem:[%s15758_s1 + $0x3c0] sm:$0xff]  }
  0x32   : > { %11640 = vmatprep.subr.bf16.mxu1 %v13606_v55  ;;  %v4955_v56 = vpack.c.bf16 %v10256_v47, %v10255_v46  ;;  %v4961_v47 = vpack.c.bf16 %v10268_v42, %v10267_v41  ;;  %v10304_v41 = vld [vmem:[%s13862_s10 + $0x3c] sm:$0xff]  ;;  %v13629_v42 = vld [vmem:[%s15758_s1 + $0xb0] sm:$0xff]  }
  0x34   : > { %12217 = vmatpush3.bf16.msra.mxu0 %v13602_v51  ;;  %v13614_v51 = vld [vmem:[%s15758_s1 + $0x390] sm:$0xff]  }
  0x35   : > { %12218 = vmatprep.subr.bf16.mxu0 %v13604_v58  ;;  %11641 = vmatpush3.bf16.msra.mxu1 %v13606_v55  ;;  %v14047_v55 = vpack.c.bf16 %v197_v45, %v196_v44  ;;  %v510_v44 = vpack.c.bf16 %v480_v31, %v479_v30  ;;  %v13627_v30 = vld [vmem:[%s15758_s1 + $0xa8] sm:$0xff]   ;;  %v10277_v31 = vld [vmem:[%s13862_s10 + $0x19b] sm:$0xff] }
  0x36   : > { %11611 = vmatmul.mubr.bf16.gmra.mrb[8].mxu1 %v13958_v63  ;;  %11642 = vmatprep.subr.bf16.mxu1 %v13609_v0 }
  0x37   : > { %12187 = vmatmul.mubr.bf16.gmra.mrb[8].mxu0 %v13963_v1  ;;  %11614 = vmatprep.mubr.bf16.mxu1 %v13965_v2 }
  0x38   : > { %12219 = vmatpush3.bf16.msra.mxu0 %v13604_v58  ;;  %12190 = vmatprep.mubr.bf16.mxu0 %v13967_v3  ;;  %v198_v58 = vld [vmem:[%s13862_s10 + $0x138] sm:$0xff] }
  0x39   : > { %12220 = vmatprep.subr.bf16.mxu0 %v13605_v4  ;;  %11643 = vmatpush3.bf16.msra.mxu1 %v13609_v0  ;;  %v201_v0 = vld [vmem:[%s13862_s10 + $0x158] sm:$0xff] }
  0x3a   : > { %11644 = vmatprep.subr.bf16.mxu1 %v13611_v7  ;;  %v14067_v9 = vpack.c.bf16 %v201_v0, %v200_v62  ;;  %v10271_v62 = vld [vmem:[%s13862_s10 + $0x153] sm:$0xff]  ;;  %v10272_v0 = vld [vmem:[%s13862_s10 + $0x15b] sm:$0xff] }
  0x3c   : > { %12221 = vmatpush3.bf16.msra.mxu0 %v13605_v4  ;;  %v10259_v4 = vld [vmem:[%s13862_s10 + $0xc3] sm:$0xff] }
  0x3d   : > { %12222 = vmatprep.subr.bf16.mxu0 %v13607_v12  ;;  %11645 = vmatpush3.bf16.msra.mxu1 %v13611_v7  ;;  %v14065_v7 = vpack.c.bf16 %v199_v59, %v198_v58  ;;  %v4957_v10 = vpack.c.bf16 %v10260_v5, %v10259_v4  ;;  %v10270_v58 = vld [vmem:[%s13862_s10 + $0x143] sm:$0xff] }
  0x3e   : > { %11615 = vmatmul.mubr.bf16.gmra.mrb[12].mxu1 %v13990_v15  ;;  %11646 = vmatprep.subr.bf16.mxu1 %v13613_v16  ;;  %v485_v59 = vld [vmem:[%s13862_s10 + $0x61] sm:$0xff] }
  0x3f   : > { %12191 = vmatmul.mubr.bf16.gmra.mrb[12].mxu0 %v13995_v18  ;;  %11618 = vmatprep.mubr.bf16.mxu1 %v13997_v19  ;;  %v14122_v5 = vpack.c.bf16 %v486_v60, %v485_v59  ;;  %v497_v59 = vld [vmem:[%s13862_s10 + $0xf1] sm:$0xff]  ;;  %v498_v60 = vld [vmem:[%s13862_s10 + $0xf9] sm:$0xff] }
  0x40   : > { %12223 = vmatpush3.bf16.msra.mxu0 %v13607_v12  ;;  %12226 = vmatprep.mubr.bf16.mxu0 %v4951_v20  ;;  %v13620_v12 = vld [vmem:[%s15758_s1 + $0x3a8] sm:$0xff]  }
  0x41   : > { %12224 = vmatprep.subr.bf16.mxu0 %v13608_v21  ;;  %11647 = vmatpush3.bf16.msra.mxu1 %v13613_v16  ;;  %v10262_v16 = vld [vmem:[%s13862_s10 + $0xe3] sm:$0xff] }
  0x42   : > { %11648 = vmatprep.subr.bf16.mxu1 %v13615_v26  ;;  %v477_v20 = vld [vmem:[%s13862_s10 + $0x1] sm:$0xff] }
  0x44   : > { %12225 = vmatpush3.bf16.msra.mxu0 %v13608_v21  ;;  %v478_v21 = vld [vmem:[%s13862_s10 + $0x9] sm:$0xff] }
  0x45   : > { %12258 = vmatprep.subr.bf16.mxu0 %v13610_v27  ;;  %11649 = vmatpush3.bf16.msra.mxu1 %v13615_v26  ;;  %v4958_v26 = vpack.c.bf16 %v10262_v16, %v10261_v14  ;;  %v489_v14 = vld [vmem:[%s13862_s10 + $0x91] sm:$0xff]  ;;  %v490_v16 = vld [vmem:[%s13862_s10 + $0x99] sm:$0xff] }
  0x46   : > { %11619 = vmatmul.mubr.bf16.gmra.mrb[16].mxu1 %v14019_v32  ;;  %11682 = vmatprep.subr.bf16.mxu1 %v14024_v34 }
  0x47   : > { %12227 = vmatmul.mubr.bf16.vlgmr.msra.gmra.mrb[0].mxu0 %v4952_v35  ;;  %11622 = vmatprep.mubr.bf16.mxu1 %v14026_v37  ;;  %v10265_v35 = vld [vmem:[%s13862_s10 + $0x10b] sm:$0xff] }
  0x48   : > { %12259 = vmatpush3.bf16.msra.mxu0 %v13610_v27  ;;  %12230 = vmatprep.mubr.bf16.mxu0 %v4953_v38  ;;  %v509_v27 = vpack.c.bf16 %v478_v21, %v477_v20  ;;  %v10266_v38 = vld [vmem:[%s13862_s10 + $0x113] sm:$0xff]  ;;  %v10275_v20 = vld [vmem:[%s13862_s10 + $0x183] sm:$0xff]  ;;  %v10276_v21 = vld [vmem:[%s13862_s10 + $0x18b] sm:$0xff] }
  0x49   : > { %12260 = vmatprep.subr.bf16.mxu0 %v13612_v39  ;;  %v4960_v45 = vpack.c.bf16 %v10266_v38, %v10265_v35  ;;  %v10278_v35 = vld [vmem:[%s13862_s10 + $0x1a3] sm:$0xff] }
  0x4a   : > { %v493_v38 = vld [vmem:[%s13862_s10 + $0xc1] sm:$0xff] }
  0x4c   : > { %12261 = vmatpush3.bf16.msra.mxu0 %v13612_v39  ;;  %v481_v39 = vld [vmem:[%s13862_s10 + $0x31] sm:$0xff] }
  0x4d   : > { %12262 = vmatprep.subr.bf16.mxu0 %v13614_v51  ;;  %v511_v46 = vpack.c.bf16 %v482_v40, %v481_v39  ;;  %v494_v39 = vld [vmem:[%s13862_s10 + $0xc9] sm:$0xff]  ;;  %v10303_v40 = vld [vmem:[%s13862_s10 + $0x34] sm:$0xff] }
  0x4e   : > { %11623 = vmatmul.mubr.bf16.gmra.mrb[20].mxu1 %v14045_v53 }
  0x4f   : > { %12231 = vmatmul.mubr.bf16.gmra.mrb[4].mxu0 %v4954_v54  ;;  %11626 = vmatprep.mubr.bf16.mxu1 %v14047_v55  ;;  %v484_v54 = vld [vmem:[%s13862_s10 + $0x51] sm:$0xff] }
  0x50   : > { %12234 = vmatprep.mubr.bf16.mxu0 %v4955_v56  ;;  %12263 = vmatpush3.bf16.msra.mxu0 %v13614_v51  ;;  %v483_v51 = vld [vmem:[%s13862_s10 + $0x49] sm:$0xff] }
  0x51   : > { %12264 = vmatprep.subr.bf16.mxu0 %v13616_v57  ;;  %v13619_v56 = vld [vmem:[%s15758_s1 + $0x88] sm:$0xff]   ;;  %v14120_v4 = vpack.c.bf16 %v484_v54, %v483_v51  ;;  %v495_v51 = vld [vmem:[%s13862_s10 + $0xd9] sm:$0xff] }
  0x52   : > { %v13631_v54 = vld [vmem:[%s15758_s1 + $0xb8] sm:$0xff]  }
  0x54   : > { %12265 = vmatpush3.bf16.msra.mxu0 %v13616_v57  ;;  %v10269_v57 = vld [vmem:[%s13862_s10 + $0x13b] sm:$0xff] }
  0x55   : > { %12266 = vmatprep.subr.bf16.mxu0 %v13618_v6 }
  0x56   : > { %11627 = vmatmul.mubr.bf16.gmra.mrb[24].mxu1 %v14065_v7 }
  0x57   : > { %12235 = vmatmul.mubr.bf16.gmra.mrb[8].mxu0 %v4956_v8  ;;  %11630 = vmatprep.mubr.bf16.mxu1 %v14067_v9  ;;  %v487_v8 = vld [vmem:[%s13862_s10 + $0x79] sm:$0xff] }
  0x58   : > { %12238 = vmatprep.mubr.bf16.mxu0 %v4957_v10  ;;  %12267 = vmatpush3.bf16.msra.mxu0 %v13618_v6  ;;  %v4963_v6 = vpack.c.bf16 %v10272_v0, %v10271_v62  ;;  %v488_v10 = vld [vmem:[%s13862_s10 + $0x81] sm:$0xff]  ;;  %v10308_v62 = vld [vmem:[%s13862_s10 + $0x6c] sm:$0xff] }
  0x59   : > { %12268 = vmatprep.subr.bf16.mxu0 %v13620_v12  ;;  %v14140_v23 = vpack.c.bf16 %v488_v10, %v487_v8  ;;  %v14180_v0 = vld [vmem:[%s15758_s1 + $0xc0] sm:$0xff]   ;;  %v14184_v8 = vpack.c.bf16 %v498_v60, %v497_v59  ;;  %v13636_v59 = vld [vmem:[%s15758_s1 + $0x3e8] sm:$0xff]  }
  0x5a   : > { %v507_v60 = vld [vmem:[%s13862_s10 + $0x169] sm:$0xff] }
  0x5c   : > { %12269 = vmatpush3.bf16.msra.mxu0 %v13620_v12  ;;  %v10273_v12 = vld [vmem:[%s13862_s10 + $0x16b] sm:$0xff] }
  0x5d   : > { %12270 = vmatprep.subr.bf16.mxu0 %v13622_v24 }
  0x5e   : > { %11631 = vmatmul.mubr.bf16.gmra.mrb[28].mxu1 %v14085_v25 }
  0x5f   : > { %12239 = vmatmul.mubr.bf16.gmra.mrb[12].mxu0 %v4958_v26  ;;  %11650 = vmatprep.mubr.bf16.mxu1 %v509_v27  ;;  %v14142_v26 = vpack.c.bf16 %v490_v16, %v489_v14  ;;  %v4965_v27 = vpack.c.bf16 %v10276_v21, %v10275_v20  ;;  %v10309_v14 = vld [vmem:[%s13862_s10 + $0x7c] sm:$0xff]  ;;  %v10310_v16 = vld [vmem:[%s13862_s10 + $0x84] sm:$0xff] }
  0x60   : > { %12242 = vmatprep.mubr.bf16.mxu0 %v4959_v28  ;;  %12271 = vmatpush3.bf16.msra.mxu0 %v13622_v24  ;;  %v4964_v24 = vpack.c.bf16 %v10274_v13, %v10273_v12  ;;  %v491_v28 = vld [vmem:[%s13862_s10 + $0xa9] sm:$0xff]  ;;  %v500_v13 = vld [vmem:[%s13862_s10 + $0x111] sm:$0xff]  ;;  %v501_v20 = vld [vmem:[%s13862_s10 + $0x121] sm:$0xff] }
  0x61   : > { %12272 = vmatprep.subr.bf16.mxu0 %v13624_v29  ;;  %v499_v12 = vld [vmem:[%s13862_s10 + $0x109] sm:$0xff] }
  0x62   : > { %v502_v21 = vld [vmem:[%s13862_s10 + $0x129] sm:$0xff] }
  0x64   : > { %12273 = vmatpush3.bf16.msra.mxu0 %v13624_v29  ;;  %v492_v29 = vld [vmem:[%s13862_s10 + $0xb1] sm:$0xff] }
  0x65   : > { %12306 = vmatprep.subr.bf16.mxu0 %v14102_v43 }
  0x66   : > { %11651 = vmatmul.mubr.bf16.vlgmr.msra.gmra.mrb[0].mxu1 %v510_v44  ;;  %v14160_v44 = vpack.c.bf16 %v492_v29, %v491_v28  ;;  %v14204_v28 = vpack.c.bf16 %v500_v13, %v499_v12  ;;  %v5324_v29 = vpack.c.bf16 %v10310_v16, %v10309_v14  ;;  %v10319_v12 = vld [vmem:[%s13862_s10 + $0xf4] sm:$0xff]  ;;  %v10320_v13 = vld [vmem:[%s13862_s10 + $0xfc] sm:$0xff] }
  0x67   : > { %12243 = vmatmul.mubr.bf16.gmra.mrb[16].mxu0 %v4960_v45  ;;  %11683 = vmatpush3.bf16.msra.mxu1 %v14024_v34  ;;  %v4962_v34 = vpack.c.bf16 %v10270_v58, %v10269_v57  ;;  %v4966_v45 = vpack.c.bf16 %v10278_v35, %v10277_v31  ;;  %v10305_v57 = vld [vmem:[%s13862_s10 + $0x4c] sm:$0xff]  ;;  %v10306_v58 = vld [vmem:[%s13862_s10 + $0x54] sm:$0xff]  ;;  %v504_v35 = vld [vmem:[%s13862_s10 + $0x141] sm:$0xff] }
  0x68   : > { %11654 = vmatprep.mubr.bf16.mxu1 %v511_v46  ;;  %12246 = vmatprep.mubr.bf16.mxu0 %v4961_v47  ;;  %v14162_v46 = vpack.c.bf16 %v494_v39, %v493_v38  ;;  %v5321_v47 = vpack.c.bf16 %v10304_v41, %v10303_v40  ;;  %v503_v31 = vld [vmem:[%s13862_s10 + $0x139] sm:$0xff]  ;;  %v10313_v39 = vld [vmem:[%s13862_s10 + $0xac] sm:$0xff] }
  0x69   : > { %11684 = vmatprep.subr.bf16.mxu1 %v13619_v56  ;;  %v13632_v38 = vld [vmem:[%s15758_s1 + $0x3d8] sm:$0xff]   ;;  %v13638_v14 = vld [vmem:[%s15758_s1 + $0x3f0] sm:$0xff]  }
  0x6a   : > { %v10314_v40 = vld [vmem:[%s13862_s10 + $0xb4] sm:$0xff] }
  0x6b   : > { %11685 = vmatpush3.bf16.msra.mxu1 %v13619_v56  ;;  %v496_v56 = vld [vmem:[%s13862_s10 + $0xe1] sm:$0xff]  ;;  %v505_v41 = vld [vmem:[%s13862_s10 + $0x151] sm:$0xff] }
  0x6c   : > { %11686 = vmatprep.subr.bf16.mxu1 %v13621_v61 }
  0x6e   : > { %11655 = vmatmul.mubr.bf16.gmra.mrb[4].mxu1 %v14120_v4 }
  0x6f   : > { %12247 = vmatmul.mubr.bf16.gmra.mrb[20].mxu0 %v4962_v34  ;;  %11658 = vmatprep.mubr.bf16.mxu1 %v14122_v5  ;;  %v14182_v34 = vpack.c.bf16 %v496_v56, %v495_v51  ;;  %v13634_v51 = vld [vmem:[%s15758_s1 + $0x3e0] sm:$0xff]   ;;  %v5326_v56 = vpack.c.bf16 %v10314_v40, %v10313_v39 }
  0x70   : > { %12250 = vmatprep.mubr.bf16.mxu0 %v4963_v6  ;;  %11687 = vmatpush3.bf16.msra.mxu1 %v13621_v61  ;;  %v10307_v61 = vld [vmem:[%s13862_s10 + $0x64] sm:$0xff]  ;;  %v5322_v6 = vpack.c.bf16 %v10306_v58, %v10305_v57 }
  0x71   : > { %11688 = vmatprep.subr.bf16.mxu1 %v13623_v11  ;;  %v5323_v10 = vpack.c.bf16 %v10308_v62, %v10307_v61  ;;  %v508_v61 = vld [vmem:[%s13862_s10 + $0x171] sm:$0xff]  ;;  %v10317_v62 = vld [vmem:[%s13862_s10 + $0xdc] sm:$0xff] }
  0x72   : > { %v14244_v16 = vpack.c.bf16 %v508_v61, %v507_v60  ;;  %v14259_v39 = vld [vmem:[%s15758_s1 + $0x400] sm:$0xff]  }
  0x74   : > { %11689 = vmatpush3.bf16.msra.mxu1 %v13623_v11  ;;  %v13628_v11 = vld [vmem:[%s15758_s1 + $0x3c8] sm:$0xff]  }
  0x75   : > { %11690 = vmatprep.subr.bf16.mxu1 %v13625_v22 }
  0x76   : > { %11659 = vmatmul.mubr.bf16.gmra.mrb[8].mxu1 %v14140_v23 }
  0x77   : > { %12251 = vmatmul.mubr.bf16.gmra.mrb[24].mxu0 %v4964_v24  ;;  %11662 = vmatprep.mubr.bf16.mxu1 %v14142_v26  ;;  %v10312_v24 = vld [vmem:[%s13862_s10 + $0x9c] sm:$0xff] }
  0x78   : > { %12254 = vmatprep.mubr.bf16.mxu0 %v4965_v27  ;;  %11691 = vmatpush3.bf16.msra.mxu1 %v13625_v22  ;;  %v10311_v22 = vld [vmem:[%s13862_s10 + $0x94] sm:$0xff] }
  0x79   : > { %11692 = vmatprep.subr.bf16.mxu1 %v13627_v30  ;;  %v13630_v27 = vld [vmem:[%s15758_s1 + $0x3d0] sm:$0xff]  }
  0x7c   : > { %11693 = vmatpush3.bf16.msra.mxu1 %v13627_v30  ;;  %v14206_v30 = vpack.c.bf16 %v502_v21, %v501_v20 }
  0x7d   : > { %11694 = vmatprep.subr.bf16.mxu1 %v13629_v42 }
  0x7e   : > { %11663 = vmatmul.mubr.bf16.gmra.mrb[12].mxu1 %v14160_v44 }
  0x7f   : > { %12255 = vmatmul.mubr.bf16.gmra.mrb[28].mxu0 %v4966_v45  ;;  %11666 = vmatprep.mubr.bf16.mxu1 %v14162_v46  ;;  %v10315_v45 = vld [vmem:[%s13862_s10 + $0xc4] sm:$0xff] }
  0x80   : > { %12274 = vmatprep.mubr.bf16.mxu0 %v5321_v47  ;;  %11695 = vmatpush3.bf16.msra.mxu1 %v13629_v42  ;;  %v506_v42 = vld [vmem:[%s13862_s10 + $0x159] sm:$0xff]  ;;  %v10316_v47 = vld [vmem:[%s13862_s10 + $0xcc] sm:$0xff] }
  0x81   : > { %11696 = vmatprep.subr.bf16.mxu1 %v13631_v54  ;;  %v14226_v57 = vpack.c.bf16 %v506_v42, %v505_v41  ;;  %v5327_v58 = vpack.c.bf16 %v10316_v47, %v10315_v45  ;;  %v13635_v42 = vld [vmem:[%s15758_s1 + $0xc8] sm:$0xff]   ;;  %v10325_v47 = vld [vmem:[%s13862_s10 + $0x13c] sm:$0xff] }
  0x84   : > { %11697 = vmatpush3.bf16.msra.mxu1 %v13631_v54  ;;  %v14224_v54 = vpack.c.bf16 %v504_v35, %v503_v31  ;;  %v10322_v31 = vld [vmem:[%s13862_s10 + $0x114] sm:$0xff]  ;;  %v10323_v35 = vld [vmem:[%s13862_s10 + $0x124] sm:$0xff] }
  0x85   : > { %11730 = vmatprep.subr.bf16.mxu1 %v14180_v0 }
  0x86   : > { %11667 = vmatmul.mubr.bf16.gmra.mrb[16].mxu1 %v14182_v34 }
  0x87   : > { %12275 = vmatmul.mubr.bf16.vlgmr.msra.gmra.mrb[0].mxu0 %v5322_v6  ;;  %11670 = vmatprep.mubr.bf16.mxu1 %v14184_v8  ;;  %v10318_v6 = vld [vmem:[%s13862_s10 + $0xe4] sm:$0xff] }
  0x88   : > { %12307 = vmatpush3.bf16.msra.mxu0 %v14102_v43  ;;  %12278 = vmatprep.mubr.bf16.mxu0 %v5323_v10  ;;  %v5325_v43 = vpack.c.bf16 %v10312_v24, %v10311_v22  ;;  %v847_v10 = vld [vmem:[%s13862_s10 + $0x2] sm:$0xff]  ;;  %v5328_v20 = vpack.c.bf16 %v10318_v6, %v10317_v62  ;;  %v13640_v22 = vld [vmem:[%s15758_s1 + $0x3f8] sm:$0xff]   ;;  %v5329_v24 = vpack.c.bf16 %v10320_v13, %v10319_v12 }
  0x89   : > { %12308 = vmatprep.subr.bf16.mxu0 %v13628_v11  ;;  %v10330_v62 = vld [vmem:[%s13862_s10 + $0x174] sm:$0xff]  ;;  %v10331_v6 = vld [vmem:[%s13862_s10 + $0x184] sm:$0xff] }
  0x8c   : > { %12309 = vmatpush3.bf16.msra.mxu0 %v13628_v11  ;;  %v848_v11 = vld [vmem:[%s13862_s10 + $0xa] sm:$0xff] }
  0x8d   : > { %12310 = vmatprep.subr.bf16.mxu0 %v13630_v27  ;;  %v879_v21 = vpack.c.bf16 %v848_v11, %v847_v10  ;;  %v10332_v10 = vld [vmem:[%s13862_s10 + $0x18c] sm:$0xff]  ;;  %v13641_v11 = vld [vmem:[%s15758_s1 + $0xe0] sm:$0xff]  }
  0x8e   : > { %11671 = vmatmul.mubr.bf16.gmra.mrb[20].mxu1 %v14204_v28  ;;  %v5335_v13 = vpack.c.bf16 %v10332_v10, %v10331_v6 }
  0x8f   : > { %12279 = vmatmul.mubr.bf16.gmra.mrb[4].mxu0 %v5324_v29  ;;  %11674 = vmatprep.mubr.bf16.mxu1 %v14206_v30  ;;  %v850_v29 = vld [vmem:[%s13862_s10 + $0x22] sm:$0xff] }
  0x90   : > { %12282 = vmatprep.mubr.bf16.mxu0 %v5325_v43  ;;  %12311 = vmatpush3.bf16.msra.mxu0 %v13630_v27  ;;  %v849_v27 = vld [vmem:[%s13862_s10 + $0x1a] sm:$0xff]  ;;  %v10321_v43 = vld [vmem:[%s13862_s10 + $0x10c] sm:$0xff] }
  0x91   : > { %12312 = vmatprep.subr.bf16.mxu0 %v13632_v38  ;;  %v880_v40 = vpack.c.bf16 %v850_v29, %v849_v27  ;;  %v5330_v41 = vpack.c.bf16 %v10322_v31, %v10321_v43  ;;  %v871_v29 = vld [vmem:[%s13862_s10 + $0x122] sm:$0xff]  ;;  %v872_v43 = vld [vmem:[%s13862_s10 + $0x12a] sm:$0xff] }
  0x94   : > { %12313 = vmatpush3.bf16.msra.mxu0 %v13632_v38  ;;  %v10324_v38 = vld [vmem:[%s13862_s10 + $0x12c] sm:$0xff] }
  0x95   : > { %12314 = vmatprep.subr.bf16.mxu0 %v13634_v51  ;;  %v5331_v45 = vpack.c.bf16 %v10324_v38, %v10323_v35  ;;  %v13648_v35 = vld [vmem:[%s15758_s1 + $0x418] sm:$0xff]   ;;  %v874_v38 = vld [vmem:[%s13862_s10 + $0x142] sm:$0xff] }
  0x96   : > { %11675 = vmatmul.mubr.bf16.gmra.mrb[24].mxu1 %v14224_v54 }
  0x97   : > { %12283 = vmatmul.mubr.bf16.gmra.mrb[8].mxu0 %v5326_v56  ;;  %11678 = vmatprep.mubr.bf16.mxu1 %v14226_v57  ;;  %v10327_v56 = vld [vmem:[%s13862_s10 + $0x154] sm:$0xff] }
  0x98   : > { %12286 = vmatprep.mubr.bf16.mxu0 %v5327_v58  ;;  %12315 = vmatpush3.bf16.msra.mxu0 %v13634_v51  ;;  %v10326_v51 = vld [vmem:[%s13862_s10 + $0x144] sm:$0xff]  ;;  %v10328_v58 = vld [vmem:[%s13862_s10 + $0x15c] sm:$0xff] }
  0x99   : > { %12316 = vmatprep.subr.bf16.mxu0 %v13636_v59  ;;  %v5332_v60 = vpack.c.bf16 %v10326_v51, %v10325_v47  ;;  %v5333_v61 = vpack.c.bf16 %v10328_v58, %v10327_v56  ;;  %v878_v47 = vld [vmem:[%s13862_s10 + $0x172] sm:$0xff]  ;;  %v1217_v51 = vld [vmem:[%s13862_s10 + $0x3] sm:$0xff] }
  0x9a   : > { %v1218_v56 = vld [vmem:[%s13862_s10 + $0xb] sm:$0xff] }
  0x9b   : > { %v13654_v58 = vld [vmem:[%s15758_s1 + $0x430] sm:$0xff]  }
  0x9c   : > { %12317 = vmatpush3.bf16.msra.mxu0 %v13636_v59  ;;  %v13637_v59 = vld [vmem:[%s15758_s1 + $0xd0] sm:$0xff]  }
  0x9d   : > { %12318 = vmatprep.subr.bf16.mxu0 %v13638_v14 }
  0x9e   : > { %11679 = vmatmul.mubr.bf16.gmra.mrb[28].mxu1 %v14244_v16 }
  0x9f   : > { %12287 = vmatmul.mubr.bf16.gmra.mrb[12].mxu0 %v5328_v20  ;;  %11698 = vmatprep.mubr.bf16.mxu1 %v879_v21  ;;  %v13645_v20 = vld [vmem:[%s15758_s1 + $0xf0] sm:$0xff]  }
  0xa0   : > { %12290 = vmatprep.mubr.bf16.mxu0 %v5329_v24  ;;  %12319 = vmatpush3.bf16.msra.mxu0 %v13638_v14  ;;  %v10334_v14 = vld [vmem:[%s13862_s10 + $0x1a4] sm:$0xff] }
  0xa1   : > { %12320 = vmatprep.subr.bf16.mxu0 %v13640_v22  ;;  %v14307_v24 = vld [vmem:[%s15758_s1 + $0x100] sm:$0xff]  }
  0xa4   : > { %12321 = vmatpush3.bf16.msra.mxu0 %v13640_v22  ;;  %v868_v22 = vld [vmem:[%s13862_s10 + $0xfa] sm:$0xff] }
  0xa5   : > { %12354 = vmatprep.subr.bf16.mxu0 %v14259_v39 }
  0xa6   : > { %11699 = vmatmul.mubr.bf16.vlgmr.msra.gmra.mrb[0].mxu1 %v880_v40  ;;  %v876_v40 = vld [vmem:[%s13862_s10 + $0x15a] sm:$0xff] }
  0xa7   : > { %12291 = vmatmul.mubr.bf16.gmra.mrb[16].mxu0 %v5330_v41  ;;  %11731 = vmatpush3.bf16.msra.mxu1 %v14180_v0  ;;  %v13639_v0 = vld [vmem:[%s15758_s1 + $0xd8] sm:$0xff]   ;;  %v13650_v41 = vld [vmem:[%s15758_s1 + $0x420] sm:$0xff]  }
  0xa8   : > { %11702 = vmatprep.mubr.bf16.mxu1 %v13874_v17  ;;  %12294 = vmatprep.mubr.bf16.mxu0 %v5331_v45  ;;  %v10329_v17 = vld [vmem:[%s13862_s10 + $0x16c] sm:$0xff] }
  0xa9   : > { %11732 = vmatprep.subr.bf16.mxu1 %v13635_v42  ;;  %v5334_v12 = vpack.c.bf16 %v10330_v62, %v10329_v17  ;;  %v13652_v45 = vld [vmem:[%s15758_s1 + $0x428] sm:$0xff]   ;;  %v1222_v17 = vld [vmem:[%s13862_s10 + $0x3b] sm:$0xff] }
  0xaa   : > { %v14378_v62 = vld [vmem:[%s15758_s1 + $0x440] sm:$0xff]  }
  0xab   : > { %11733 = vmatpush3.bf16.msra.mxu1 %v13635_v42 }
  0xac   : > { %11734 = vmatprep.subr.bf16.mxu1 %v13637_v59 }
  0xae   : > { %11703 = vmatmul.mubr.bf16.gmra.mrb[4].mxu1 %v13903_v33  ;;  %v13643_v33 = vld [vmem:[%s15758_s1 + $0xe8] sm:$0xff]  }
  0xaf   : > { %12295 = vmatmul.mubr.bf16.gmra.mrb[20].mxu0 %v5332_v60  ;;  %11706 = vmatprep.mubr.bf16.mxu1 %v13908_v36  ;;  %v10333_v36 = vld [vmem:[%s13862_s10 + $0x19c] sm:$0xff] }
  0xb0   : > { %12298 = vmatprep.mubr.bf16.mxu0 %v5333_v61  ;;  %11735 = vmatpush3.bf16.msra.mxu1 %v13637_v59  ;;  %v5336_v21 = vpack.c.bf16 %v10334_v14, %v10333_v36  ;;  %v13656_v60 = vld [vmem:[%s15758_s1 + $0x438] sm:$0xff]  }
  0xb1   : > { %11736 = vmatprep.subr.bf16.mxu1 %v13639_v0  ;;  %v1221_v61 = vld [vmem:[%s13862_s10 + $0x33] sm:$0xff] }
  0xb2   : > { %v1251_v10 = vpack.c.bf16 %v1222_v17, %v1221_v61  ;;  %v13655_v14 = vld [vmem:[%s15758_s1 + $0x118] sm:$0xff]   ;;  %v13660_v17 = vld [vmem:[%s15758_s1 + $0x448] sm:$0xff]  }
  0xb4   : > { %11737 = vmatpush3.bf16.msra.mxu1 %v13639_v0  ;;  %v1220_v0 = vld [vmem:[%s13862_s10 + $0x23] sm:$0xff] }
  0xb5   : > { %11738 = vmatprep.subr.bf16.mxu1 %v13641_v11 }
  0xb6   : > { %11707 = vmatmul.mubr.bf16.gmra.mrb[8].mxu1 %v13931_v49  ;;  %v13647_v49 = vld [vmem:[%s15758_s1 + $0xf8] sm:$0xff]  }
  0xb7   : > { %12299 = vmatmul.mubr.bf16.gmra.mrb[24].mxu0 %v5334_v12  ;;  %11710 = vmatprep.mubr.bf16.mxu1 %v13938_v52  ;;  %v867_v52 = vld [vmem:[%s13862_s10 + $0xf2] sm:$0xff]  ;;  %v1225_v12 = vld [vmem:[%s13862_s10 + $0x63] sm:$0xff] }
  0xb8   : > { %12302 = vmatprep.mubr.bf16.mxu0 %v5335_v13  ;;  %11739 = vmatpush3.bf16.msra.mxu1 %v13641_v11  ;;  %v14309_v27 = vpack.c.bf16 %v868_v22, %v867_v52  ;;  %v1224_v11 = vld [vmem:[%s13862_s10 + $0x53] sm:$0xff]  ;;  %v1226_v13 = vld [vmem:[%s13862_s10 + $0x6b] sm:$0xff]  ;;  %v1230_v22 = vld [vmem:[%s13862_s10 + $0x9b] sm:$0xff] }
  0xb9   : > { %11740 = vmatprep.subr.bf16.mxu1 %v13643_v33  ;;  %v14396_v36 = vpack.c.bf16 %v1226_v13, %v1225_v12  ;;  %v1229_v52 = vld [vmem:[%s13862_s10 + $0x93] sm:$0xff]  ;;  %v1244_v12 = vld [vmem:[%s13862_s10 + $0x143] sm:$0xff] }
  0xba   : > { %v1245_v13 = vld [vmem:[%s13862_s10 + $0x153] sm:$0xff] }
  0xbc   : > { %11741 = vmatpush3.bf16.msra.mxu1 %v13643_v33  ;;  %v13653_v33 = vld [vmem:[%s15758_s1 + $0x110] sm:$0xff]  }
  0xbd   : > { %11742 = vmatprep.subr.bf16.mxu1 %v13645_v20 }
  0xbe   : > { %11711 = vmatmul.mubr.bf16.gmra.mrb[12].mxu1 %v13963_v1  ;;  %v13644_v1 = vld [vmem:[%s15758_s1 + $0x408] sm:$0xff]  }
  0xbf   : > { %12303 = vmatmul.mubr.bf16.gmra.mrb[28].mxu0 %v5336_v21  ;;  %11714 = vmatprep.mubr.bf16.mxu1 %v13967_v3  ;;  %v870_v3 = vld [vmem:[%s13862_s10 + $0x112] sm:$0xff]  ;;  %v10385_v21 = vld [vmem:[%s13862_s10 + $0x180] sm:$0xff] }
  0xc0   : > { %12322 = vmatprep.mubr.bf16.mxu0 %v13929_v48  ;;  %11743 = vmatpush3.bf16.msra.mxu1 %v13645_v20  ;;  %v869_v48 = vld [vmem:[%s13862_s10 + $0x10a] sm:$0xff] }
  0xc1   : > { %11744 = vmatprep.subr.bf16.mxu1 %v13647_v49  ;;  %v14327_v31 = vpack.c.bf16 %v870_v3, %v869_v48  ;;  %v1228_v20 = vld [vmem:[%s13862_s10 + $0x83] sm:$0xff] }
  0xc2   : > { %v13657_v48 = vld [vmem:[%s15758_s1 + $0x120] sm:$0xff]  }
  0xc4   : > { %11745 = vmatpush3.bf16.msra.mxu1 %v13647_v49  ;;  %v10386_v49 = vld [vmem:[%s13862_s10 + $0x188] sm:$0xff] }
  0xc5   : > { %11778 = vmatprep.subr.bf16.mxu1 %v14307_v24  ;;  %v5705_v3 = vpack.c.bf16 %v10386_v49, %v10385_v21  ;;  %v1248_v21 = vld [vmem:[%s13862_s10 + $0x173] sm:$0xff]  ;;  %v1587_v49 = vld [vmem:[%s13862_s10 + $0x4] sm:$0xff] }
  0xc6   : > { %11715 = vmatmul.mubr.bf16.gmra.mrb[16].mxu1 %v13995_v18  ;;  %v13646_v18 = vld [vmem:[%s15758_s1 + $0x410] sm:$0xff]  }
  0xc7   : > { %12323 = vmatmul.mubr.bf16.vlgmr.msra.gmra.mrb[0].mxu0 %v13933_v50  ;;  %11718 = vmatprep.mubr.bf16.mxu1 %v14309_v27  ;;  %v14329_v50 = vpack.c.bf16 %v872_v43, %v871_v29  ;;  %v14418_v29 = vpack.c.bf16 %v1230_v22, %v1229_v52  ;;  %v1588_v52 = vld [vmem:[%s13862_s10 + $0xc] sm:$0xff] }
  0xc8   : > { %12355 = vmatpush3.bf16.msra.mxu0 %v14259_v39  ;;  %12326 = vmatprep.mubr.bf16.mxu0 %v13958_v63  ;;  %v873_v63 = vld [vmem:[%s13862_s10 + $0x13a] sm:$0xff]  ;;  %v875_v39 = vld [vmem:[%s13862_s10 + $0x152] sm:$0xff] }
  0xc9   : > { %12356 = vmatprep.subr.bf16.mxu0 %v13644_v1  ;;  %v14345_v42 = vpack.c.bf16 %v874_v38, %v873_v63  ;;  %v10389_v63 = vld [vmem:[%s13862_s10 + $0x1b0] sm:$0xff]  ;;  %v10390_v38 = vld [vmem:[%s13862_s10 + $0x1b8] sm:$0xff] }
  0xca   : > { %v13670_v22 = vld [vmem:[%s15758_s1 + $0x470] sm:$0xff]  }
  0xcc   : > { %12357 = vmatpush3.bf16.msra.mxu0 %v13644_v1  ;;  %v10388_v1 = vld [vmem:[%s13862_s10 + $0x1a0] sm:$0xff] }
  0xcd   : > { %12358 = vmatprep.subr.bf16.mxu0 %v13646_v18 }
  0xce   : > { %11719 = vmatmul.mubr.bf16.gmra.mrb[20].mxu1 %v14327_v31 }
  0xcf   : > { %12327 = vmatmul.mubr.bf16.gmra.mrb[4].mxu0 %v13965_v2  ;;  %11722 = vmatprep.mubr.bf16.mxu1 %v14329_v50  ;;  %v14347_v2 = vpack.c.bf16 %v876_v40, %v875_v39  ;;  %v1233_v39 = vld [vmem:[%s13862_s10 + $0xc3] sm:$0xff]  ;;  %v1234_v40 = vld [vmem:[%s13862_s10 + $0xcb] sm:$0xff] }
  0xd0   : > { %12330 = vmatprep.mubr.bf16.mxu0 %v13990_v15  ;;  %12359 = vmatpush3.bf16.msra.mxu0 %v13646_v18  ;;  %v877_v15 = vld [vmem:[%s13862_s10 + $0x16a] sm:$0xff] }
  0xd1   : > { %12360 = vmatprep.subr.bf16.mxu0 %v13648_v35  ;;  %v14363_v59 = vpack.c.bf16 %v878_v47, %v877_v15  ;;  %v1231_v18 = vld [vmem:[%s13862_s10 + $0xab] sm:$0xff]  ;;  %v5707_v15 = vpack.c.bf16 %v10390_v38, %v10389_v63  ;;  %v14436_v47 = vpack.c.bf16 %v1234_v40, %v1233_v39  ;;  %v1594_v63 = vld [vmem:[%s13862_s10 + $0x54] sm:$0xff] }
  0xd2   : > { %v1595_v38 = vld [vmem:[%s13862_s10 + $0x64] sm:$0xff]  ;;  %v1596_v39 = vld [vmem:[%s13862_s10 + $0x6c] sm:$0xff] }
  0xd3   : > { %v13669_v40 = vld [vmem:[%s15758_s1 + $0x150] sm:$0xff]  }
  0xd4   : > { %12361 = vmatpush3.bf16.msra.mxu0 %v13648_v35  ;;  %v1232_v35 = vld [vmem:[%s13862_s10 + $0xb3] sm:$0xff] }
  0xd5   : > { %12362 = vmatprep.subr.bf16.mxu0 %v13650_v41 }
  0xd6   : > { %11723 = vmatmul.mubr.bf16.gmra.mrb[24].mxu1 %v14345_v42 }
  0xd7   : > { %12331 = vmatmul.mubr.bf16.gmra.mrb[8].mxu0 %v13997_v19  ;;  %11726 = vmatprep.mubr.bf16.mxu1 %v14347_v2  ;;  %v1249_v19 = vpack.c.bf16 %v1218_v56, %v1217_v51  ;;  %v13663_v51 = vld [vmem:[%s15758_s1 + $0x138] sm:$0xff]  }
  0xd8   : > { %12334 = vmatprep.mubr.bf16.mxu0 %v14019_v32  ;;  %12363 = vmatpush3.bf16.msra.mxu0 %v13650_v41  ;;  %v1219_v32 = vld [vmem:[%s13862_s10 + $0x1b] sm:$0xff]  ;;  %v13661_v41 = vld [vmem:[%s15758_s1 + $0x130] sm:$0xff]  }
  0xd9   : > { %12364 = vmatprep.subr.bf16.mxu0 %v13652_v45  ;;  %v1250_v6 = vpack.c.bf16 %v1220_v0, %v1219_v32  ;;  %v1235_v56 = vld [vmem:[%s13862_s10 + $0xdb] sm:$0xff] }
  0xda   : > { %v14451_v32 = vld [vmem:[%s15758_s1 + $0x140] sm:$0xff]  }
  0xdc   : > { %12365 = vmatpush3.bf16.msra.mxu0 %v13652_v45  ;;  %v14434_v45 = vpack.c.bf16 %v1232_v35, %v1231_v18  ;;  %v13667_v35 = vld [vmem:[%s15758_s1 + $0x148] sm:$0xff]  }
  0xdd   : > { %12366 = vmatprep.subr.bf16.mxu0 %v13654_v58 }
  0xde   : > { %11727 = vmatmul.mubr.bf16.gmra.mrb[28].mxu1 %v14363_v59 }
  0xdf   : > { %12335 = vmatmul.mubr.bf16.gmra.mrb[12].mxu0 %v14026_v37  ;;  %11746 = vmatprep.mubr.bf16.mxu1 %v1249_v19  ;;  %v13651_v37 = vld [vmem:[%s15758_s1 + $0x108] sm:$0xff]   ;;  %v1237_v19 = vld [vmem:[%s13862_s10 + $0xf3] sm:$0xff] }
  0xe0   : > { %12338 = vmatprep.mubr.bf16.mxu0 %v14045_v53  ;;  %12367 = vmatpush3.bf16.msra.mxu0 %v13654_v58  ;;  %v1223_v53 = vld [vmem:[%s13862_s10 + $0x4b] sm:$0xff]  ;;  %v1236_v58 = vld [vmem:[%s13862_s10 + $0xe3] sm:$0xff] }
  0xe1   : > { %12368 = vmatprep.subr.bf16.mxu0 %v13656_v60  ;;  %v14453_v0 = vpack.c.bf16 %v1236_v58, %v1235_v56  ;;  %v10441_v56 = vld [vmem:[%s13862_s10 + $0x181] sm:$0xff]  ;;  %v10442_v58 = vld [vmem:[%s13862_s10 + $0x189] sm:$0xff] }
  0xe4   : > { %12369 = vmatpush3.bf16.msra.mxu0 %v13656_v60  ;;  %v1238_v60 = vld [vmem:[%s13862_s10 + $0xfb] sm:$0xff] }
  0xe5   : > { %12402 = vmatprep.subr.bf16.mxu0 %v14378_v62  ;;  %v14455_v61 = vpack.c.bf16 %v1238_v60, %v1237_v19  ;;  %v1599_v19 = vld [vmem:[%s13862_s10 + $0x94] sm:$0xff]  ;;  %v1600_v60 = vld [vmem:[%s13862_s10 + $0x9c] sm:$0xff] }
  0xe6   : > { %11747 = vmatmul.mubr.bf16.vlgmr.msra.gmra.mrb[0].mxu1 %v1250_v6  ;;  %v1240_v6 = vld [vmem:[%s13862_s10 + $0x113] sm:$0xff] }
  0xe7   : > { %12339 = vmatmul.mubr.bf16.gmra.mrb[16].mxu0 %v14047_v55  ;;  %11779 = vmatpush3.bf16.msra.mxu1 %v14307_v24  ;;  %v14394_v55 = vpack.c.bf16 %v1224_v11, %v1223_v53  ;;  %v10387_v24 = vld [vmem:[%s13862_s10 + $0x198] sm:$0xff]  ;;  %v13662_v53 = vld [vmem:[%s15758_s1 + $0x450] sm:$0xff]  }
  0xe8   : > { %11750 = vmatprep.mubr.bf16.mxu1 %v1251_v10  ;;  %12342 = vmatprep.mubr.bf16.mxu0 %v14065_v7  ;;  %v1227_v7 = vld [vmem:[%s13862_s10 + $0x7b] sm:$0xff]  ;;  %v5706_v43 = vpack.c.bf16 %v10388_v1, %v10387_v24  ;;  %v1242_v10 = vld [vmem:[%s13862_s10 + $0x12b] sm:$0xff] }
  0xe9   : > { %11780 = vmatprep.subr.bf16.mxu1 %v13651_v37  ;;  %v13672_v1 = vld [vmem:[%s15758_s1 + $0x478] sm:$0xff]  }
  0xeb   : > { %11781 = vmatpush3.bf16.msra.mxu1 %v13651_v37  ;;  %v1241_v37 = vld [vmem:[%s13862_s10 + $0x123] sm:$0xff] }
  0xec   : > { %11782 = vmatprep.subr.bf16.mxu1 %v13653_v33 }
  0xee   : > { %11751 = vmatmul.mubr.bf16.gmra.mrb[4].mxu1 %v14394_v55 }
  0xef   : > { %12343 = vmatmul.mubr.bf16.gmra.mrb[20].mxu0 %v14067_v9  ;;  %11754 = vmatprep.mubr.bf16.mxu1 %v14396_v36  ;;  %v14416_v9 = vpack.c.bf16 %v1228_v20, %v1227_v7  ;;  %v1247_v20 = vld [vmem:[%s13862_s10 + $0x16b] sm:$0xff] }
  0xf0   : > { %12346 = vmatprep.mubr.bf16.mxu0 %v14085_v25  ;;  %11783 = vmatpush3.bf16.msra.mxu1 %v13653_v33  ;;  %v13659_v25 = vld [vmem:[%s15758_s1 + $0x128] sm:$0xff]   ;;  %v1246_v33 = vld [vmem:[%s13862_s10 + $0x15b] sm:$0xff]  ;;  %v14509_v24 = vpack.c.bf16 %v1248_v21, %v1247_v20  ;;  %v13677_v20 = vld [vmem:[%s15758_s1 + $0x170] sm:$0xff]  }
  0xf1   : > { %11784 = vmatprep.subr.bf16.mxu1 %v13655_v14 }
  0xf4   : > { %11785 = vmatpush3.bf16.msra.mxu1 %v13655_v14  ;;  %v13666_v14 = vld [vmem:[%s15758_s1 + $0x460] sm:$0xff]  }
  0xf5   : > { %11786 = vmatprep.subr.bf16.mxu1 %v13657_v48 }
  0xf6   : > { %11755 = vmatmul.mubr.bf16.gmra.mrb[8].mxu1 %v14416_v9 }
  0xf7   : > { %12347 = vmatmul.mubr.bf16.gmra.mrb[24].mxu0 %v5705_v3  ;;  %11758 = vmatprep.mubr.bf16.mxu1 %v14418_v29  ;;  %v1591_v3 = vld [vmem:[%s13862_s10 + $0x34] sm:$0xff] }
  0xf8   : > { %12350 = vmatprep.mubr.bf16.mxu0 %v5706_v43  ;;  %11787 = vmatpush3.bf16.msra.mxu1 %v13657_v48  ;;  %v1590_v48 = vld [vmem:[%s13862_s10 + $0x24] sm:$0xff]  ;;  %v1592_v43 = vld [vmem:[%s13862_s10 + $0x3c] sm:$0xff] }
  0xf9   : > { %11788 = vmatprep.subr.bf16.mxu1 %v13659_v25 }
  0xfc   : > { %11789 = vmatpush3.bf16.msra.mxu1 %v13659_v25  ;;  %v14524_v25 = vld [vmem:[%s15758_s1 + $0x480] sm:$0xff]  }
  0xfd   : > { %11790 = vmatprep.subr.bf16.mxu1 %v13661_v41 }
  0xfe   : > { %11759 = vmatmul.mubr.bf16.gmra.mrb[12].mxu1 %v14434_v45 }
  0xff   : > { %12351 = vmatmul.mubr.bf16.gmra.mrb[28].mxu0 %v5707_v15  ;;  %11762 = vmatprep.mubr.bf16.mxu1 %v14436_v47  ;;  %v1597_v15 = vld [vmem:[%s13862_s10 + $0x7c] sm:$0xff] }
 0x100   : > { %12370 = vmatprep.mubr.bf16.mxu0 %v14120_v4  ;;  %11791 = vmatpush3.bf16.msra.mxu1 %v13661_v41  ;;  %v1239_v4 = vld [vmem:[%s13862_s10 + $0x10b] sm:$0xff]  ;;  %v14542_v41 = vpack.c.bf16 %v1596_v39, %v1595_v38 }
 0x101   : > { %11792 = vmatprep.subr.bf16.mxu1 %v13663_v51  ;;  %v14473_v11 = vpack.c.bf16 %v1240_v6, %v1239_v4  ;;  %v14564_v6 = vpack.c.bf16 %v1600_v60, %v1599_v19  ;;  %v1611_v19 = vld [vmem:[%s13862_s10 + $0x124] sm:$0xff]  ;;  %v1612_v60 = vld [vmem:[%s13862_s10 + $0x12c] sm:$0xff] }
 0x104   : > { %11793 = vmatpush3.bf16.msra.mxu1 %v13663_v51  ;;  %v1598_v51 = vld [vmem:[%s13862_s10 + $0x84] sm:$0xff] }
 0x105   : > { %11826 = vmatprep.subr.bf16.mxu1 %v14451_v32  ;;  %v14562_v4 = vpack.c.bf16 %v1598_v51, %v1597_v15  ;;  %v1609_v15 = vld [vmem:[%s13862_s10 + $0x10c] sm:$0xff]  ;;  %v1610_v51 = vld [vmem:[%s13862_s10 + $0x114] sm:$0xff] }
 0x106   : > { %11763 = vmatmul.mubr.bf16.gmra.mrb[16].mxu1 %v14453_v0 }
 0x107   : > { %12371 = vmatmul.mubr.bf16.vlgmr.msra.gmra.mrb[0].mxu0 %v14122_v5  ;;  %11766 = vmatprep.mubr.bf16.mxu1 %v14455_v61  ;;  %v14475_v5 = vpack.c.bf16 %v1242_v10, %v1241_v37  ;;  %v13675_v10 = vld [vmem:[%s15758_s1 + $0x168] sm:$0xff]  }
 0x108   : > { %12403 = vmatpush3.bf16.msra.mxu0 %v14378_v62  ;;  %12374 = vmatprep.mubr.bf16.mxu0 %v14140_v23  ;;  %v13664_v62 = vld [vmem:[%s15758_s1 + $0x458] sm:$0xff]  }
 0x109   : > { %12404 = vmatprep.subr.bf16.mxu0 %v13660_v17  ;;  %v1243_v23 = vld [vmem:[%s13862_s10 + $0x13b] sm:$0xff] }
 0x10a   : > { %v14491_v7 = vpack.c.bf16 %v1244_v12, %v1243_v23  ;;  %v10445_v23 = vld [vmem:[%s13862_s10 + $0x1b1] sm:$0xff]  ;;  %v10446_v12 = vld [vmem:[%s13862_s10 + $0x1b9] sm:$0xff] }
 0x10c   : > { %12405 = vmatpush3.bf16.msra.mxu0 %v13660_v17  ;;  %v10444_v17 = vld [vmem:[%s13862_s10 + $0x1a1] sm:$0xff] }
 0x10d   : > { %12406 = vmatprep.subr.bf16.mxu0 %v13662_v53 }
 0x10e   : > { %11767 = vmatmul.mubr.bf16.gmra.mrb[20].mxu1 %v14473_v11 }
 0x10f   : > { %12375 = vmatmul.mubr.bf16.gmra.mrb[4].mxu0 %v14142_v26  ;;  %11770 = vmatprep.mubr.bf16.mxu1 %v14475_v5  ;;  %v14493_v26 = vpack.c.bf16 %v1246_v33, %v1245_v13  ;;  %v1603_v13 = vld [vmem:[%s13862_s10 + $0xc4] sm:$0xff]  ;;  %v1604_v33 = vld [vmem:[%s13862_s10 + $0xcc] sm:$0xff] }
 0x110   : > { %12378 = vmatprep.mubr.bf16.mxu0 %v14160_v44  ;;  %12407 = vmatpush3.bf16.msra.mxu0 %v13662_v53  ;;  %v13668_v44 = vld [vmem:[%s15758_s1 + $0x468] sm:$0xff]  }
 0x111   : > { %12408 = vmatprep.subr.bf16.mxu0 %v13664_v62  ;;  %v1601_v53 = vld [vmem:[%s13862_s10 + $0xac] sm:$0xff] }
 0x114   : > { %12409 = vmatpush3.bf16.msra.mxu0 %v13664_v62  ;;  %v1602_v62 = vld [vmem:[%s13862_s10 + $0xb4] sm:$0xff] }
 0x115   : > { %12410 = vmatprep.subr.bf16.mxu0 %v13666_v14  ;;  %v14582_v21 = vpack.c.bf16 %v1602_v62, %v1601_v53  ;;  %v13680_v53 = vld [vmem:[%s15758_s1 + $0x498] sm:$0xff]  }
 0x116   : > { %11771 = vmatmul.mubr.bf16.gmra.mrb[24].mxu1 %v14491_v7  ;;  %v1613_v62 = vld [vmem:[%s13862_s10 + $0x13c] sm:$0xff] }
 0x117   : > { %12379 = vmatmul.mubr.bf16.gmra.mrb[8].mxu0 %v14162_v46  ;;  %11774 = vmatprep.mubr.bf16.mxu1 %v14493_v26  ;;  %v1619_v46 = vpack.c.bf16 %v1588_v52, %v1587_v49  ;;  %v6077_v49 = vpack.c.bf16 %v10446_v12, %v10445_v23  ;;  %v14584_v52 = vpack.c.bf16 %v1604_v33, %v1603_v13  ;;  %v1614_v23 = vld [vmem:[%s13862_s10 + $0x144] sm:$0xff]  ;;  %v1615_v33 = vld [vmem:[%s13862_s10 + $0x154] sm:$0xff] }
 0x118   : > { %12382 = vmatprep.mubr.bf16.mxu0 %v14182_v34  ;;  %12411 = vmatpush3.bf16.msra.mxu0 %v13666_v14  ;;  %v1589_v34 = vld [vmem:[%s13862_s10 + $0x1c] sm:$0xff]  ;;  %v10471_v14 = vld [vmem:[%s13862_s10 + $0x4a] sm:$0xff] }
 0x119   : > { %12412 = vmatprep.subr.bf16.mxu0 %v13668_v44  ;;  %v1620_v18 = vpack.c.bf16 %v1590_v48, %v1589_v34  ;;  %v1606_v34 = vld [vmem:[%s13862_s10 + $0xe4] sm:$0xff] }
 0x11a   : > { %v10473_v48 = vld [vmem:[%s13862_s10 + $0x62] sm:$0xff]  ;;  %v10482_v13 = vld [vmem:[%s13862_s10 + $0xca] sm:$0xff] }
 0x11b   : > { %v10481_v12 = vld [vmem:[%s13862_s10 + $0xc2] sm:$0xff] }
 0x11c   : > { %12413 = vmatpush3.bf16.msra.mxu0 %v13668_v44  ;;  %v10472_v44 = vld [vmem:[%s13862_s10 + $0x52] sm:$0xff] }
 0x11d   : > { %12414 = vmatprep.subr.bf16.mxu0 %v13670_v22 }
 0x11e   : > { %11775 = vmatmul.mubr.bf16.gmra.mrb[28].mxu1 %v14509_v24 }
 0x11f   : > { %12383 = vmatmul.mubr.bf16.gmra.mrb[12].mxu0 %v14184_v8  ;;  %11794 = vmatprep.mubr.bf16.mxu1 %v1619_v46  ;;  %v1621_v8 = vpack.c.bf16 %v1592_v43, %v1591_v3  ;;  %v13679_v46 = vld [vmem:[%s15758_s1 + $0x178] sm:$0xff]   ;;  %v10474_v3 = vld [vmem:[%s13862_s10 + $0x6a] sm:$0xff] }
 0x120   : > { %12386 = vmatprep.mubr.bf16.mxu0 %v14204_v28  ;;  %12415 = vmatpush3.bf16.msra.mxu0 %v13670_v22  ;;  %v1593_v28 = vld [vmem:[%s13862_s10 + $0x4c] sm:$0xff]  ;;  %v6432_v22 = vpack.c.bf16 %v10472_v44, %v10471_v14  ;;  %v1607_v43 = vld [vmem:[%s13862_s10 + $0xf4] sm:$0xff]  ;;  %v6433_v38 = vpack.c.bf16 %v10474_v3, %v10473_v48  ;;  %v1616_v14 = vld [vmem:[%s13862_s10 + $0x15c] sm:$0xff] }
 0x121   : > { %12416 = vmatprep.subr.bf16.mxu0 %v13672_v1  ;;  %v10483_v44 = vld [vmem:[%s13862_s10 + $0xda] sm:$0xff]  ;;  %v13684_v48 = vld [vmem:[%s15758_s1 + $0x4a8] sm:$0xff]  }
 0x122   : > { %v1617_v3 = vld [vmem:[%s13862_s10 + $0x16c] sm:$0xff] }
 0x124   : > { %12417 = vmatpush3.bf16.msra.mxu0 %v13672_v1  ;;  %v1605_v1 = vld [vmem:[%s13862_s10 + $0xdc] sm:$0xff] }
 0x125   : > { %12450 = vmatprep.subr.bf16.mxu0 %v14524_v25 }
 0x126   : > { %11795 = vmatmul.mubr.bf16.vlgmr.msra.gmra.mrb[0].mxu1 %v1620_v18  ;;  %v1608_v18 = vld [vmem:[%s13862_s10 + $0xfc] sm:$0xff] }
 0x127   : > { %12387 = vmatmul.mubr.bf16.gmra.mrb[16].mxu0 %v14206_v30  ;;  %11827 = vmatpush3.bf16.msra.mxu1 %v14451_v32  ;;  %v14540_v30 = vpack.c.bf16 %v1594_v63, %v1593_v28  ;;  %v10443_v32 = vld [vmem:[%s13862_s10 + $0x199] sm:$0xff]  ;;  %v14604_v63 = vpack.c.bf16 %v1606_v34, %v1605_v1  ;;  %v14606_v39 = vpack.c.bf16 %v1608_v18, %v1607_v43 }
 0x128   : > { %11798 = vmatprep.mubr.bf16.mxu1 %v1621_v8  ;;  %12390 = vmatprep.mubr.bf16.mxu0 %v14224_v54  ;;  %v13671_v54 = vld [vmem:[%s15758_s1 + $0x158] sm:$0xff]   ;;  %v6076_v37 = vpack.c.bf16 %v10444_v17, %v10443_v32  ;;  %v14602_v28 = vld [vmem:[%s15758_s1 + $0x180] sm:$0xff]   ;;  %v10479_v32 = vld [vmem:[%s13862_s10 + $0xaa] sm:$0xff]  ;;  %v14648_v1 = vpack.c.bf16 %v1616_v14, %v1615_v33 }
 0x129   : > { %11828 = vmatprep.subr.bf16.mxu1 %v13667_v35  ;;  %v10475_v8 = vld [vmem:[%s13862_s10 + $0x7a] sm:$0xff]  ;;  %v10480_v17 = vld [vmem:[%s13862_s10 + $0xb2] sm:$0xff] }
 0x12a   : > { %v1618_v43 = vld [vmem:[%s13862_s10 + $0x174] sm:$0xff] }
 0x12b   : > { %11829 = vmatpush3.bf16.msra.mxu1 %v13667_v35  ;;  %v10476_v35 = vld [vmem:[%s13862_s10 + $0x82] sm:$0xff]  ;;  %v9799_v18 = vld [vmem:[%s13862_s10 + $0x18] sm:$0xff]  ;;  %v9812_v33 = vld [vmem:[%s13862_s10 + $0xb0] sm:$0xff] }
 0x12c   : > { %11830 = vmatprep.subr.bf16.mxu1 %v13669_v40  ;;  %v10499_v14 = vld [vmem:[%s13862_s10 + $0x19a] sm:$0xff] }
 0x12e   : > { %11799 = vmatmul.mubr.bf16.gmra.mrb[4].mxu1 %v14540_v30 }
 0x12f   : > { %12391 = vmatmul.mubr.bf16.gmra.mrb[20].mxu0 %v14226_v57  ;;  %11802 = vmatprep.mubr.bf16.mxu1 %v14542_v41  ;;  %v13673_v57 = vld [vmem:[%s15758_s1 + $0x160] sm:$0xff]  }
 0x130   : > { %12394 = vmatprep.mubr.bf16.mxu0 %v14244_v16  ;;  %11831 = vmatpush3.bf16.msra.mxu1 %v13669_v40  ;;  %v6075_v16 = vpack.c.bf16 %v10442_v58, %v10441_v56  ;;  %v6434_v40 = vpack.c.bf16 %v10476_v35, %v10475_v8  ;;  %v10477_v56 = vld [vmem:[%s13862_s10 + $0x92] sm:$0xff]  ;;  %v10478_v58 = vld [vmem:[%s13862_s10 + $0x9a] sm:$0xff] }
 0x131   : > { %11832 = vmatprep.subr.bf16.mxu1 %v13671_v54  ;;  %v9800_v8 = vld [vmem:[%s13862_s10 + $0x20] sm:$0xff]  ;;  %v13686_v35 = vld [vmem:[%s15758_s1 + $0x4b0] sm:$0xff]  }
 0x134   : > { %11833 = vmatpush3.bf16.msra.mxu1 %v13671_v54  ;;  %v13676_v54 = vld [vmem:[%s15758_s1 + $0x488] sm:$0xff]  }
 0x135   : > { %11834 = vmatprep.subr.bf16.mxu1 %v13673_v57 }
 0x136   : > { %11803 = vmatmul.mubr.bf16.gmra.mrb[8].mxu1 %v14562_v4 }
 0x137   : > { %12395 = vmatmul.mubr.bf16.gmra.mrb[24].mxu0 %v6075_v16  ;;  %11806 = vmatprep.mubr.bf16.mxu1 %v14564_v6  ;;  %v14626_v16 = vpack.c.bf16 %v1610_v51, %v1609_v15  ;;  %v9801_v15 = vld [vmem:[%s13862_s10 + $0x30] sm:$0xff]  ;;  %v9802_v51 = vld [vmem:[%s13862_s10 + $0x38] sm:$0xff] }
 0x138   : > { %12398 = vmatprep.mubr.bf16.mxu0 %v6076_v37  ;;  %11835 = vmatpush3.bf16.msra.mxu1 %v13673_v57  ;;  %v13678_v57 = vld [vmem:[%s15758_s1 + $0x490] sm:$0xff]   ;;  %v6435_v37 = vpack.c.bf16 %v10478_v58, %v10477_v56  ;;  %v9803_v56 = vld [vmem:[%s13862_s10 + $0x48] sm:$0xff] }
 0x139   : > { %11836 = vmatprep.subr.bf16.mxu1 %v13675_v10  ;;  %v9804_v58 = vld [vmem:[%s13862_s10 + $0x50] sm:$0xff] }
 0x13c   : > { %11837 = vmatpush3.bf16.msra.mxu1 %v13675_v10  ;;  %v6436_v10 = vpack.c.bf16 %v10480_v17, %v10479_v32  ;;  %v13683_v32 = vld [vmem:[%s15758_s1 + $0x188] sm:$0xff]  }
 0x13d   : > { %11838 = vmatprep.subr.bf16.mxu1 %v13677_v20  ;;  %v9806_v17 = vld [vmem:[%s13862_s10 + $0x68] sm:$0xff] }
 0x13e   : > { %11807 = vmatmul.mubr.bf16.gmra.mrb[12].mxu1 %v14582_v21 }
 0x13f   : > { %12399 = vmatmul.mubr.bf16.gmra.mrb[28].mxu0 %v6077_v49  ;;  %11810 = vmatprep.mubr.bf16.mxu1 %v14584_v52  ;;  %v13682_v49 = vld [vmem:[%s15758_s1 + $0x4a0] sm:$0xff]  }
 0x140   : > { %12418 = vmatprep.mubr.bf16.mxu0 %v6432_v22  ;;  %11839 = vmatpush3.bf16.msra.mxu1 %v13677_v20  ;;  %v10484_v20 = vld [vmem:[%s13862_s10 + $0xe2] sm:$0xff]  ;;  %v14646_v22 = vpack.c.bf16 %v1614_v23, %v1613_v62  ;;  %v9810_v62 = vld [vmem:[%s13862_s10 + $0x98] sm:$0xff] }
 0x141   : > { %11840 = vmatprep.subr.bf16.mxu1 %v13679_v46  ;;  %v6438_v34 = vpack.c.bf16 %v10484_v20, %v10483_v44  ;;  %v10497_v23 = vld [vmem:[%s13862_s10 + $0x182] sm:$0xff] }
 0x142   : > { %v10500_v44 = vld [vmem:[%s13862_s10 + $0x1a2] sm:$0xff] }
 0x144   : > { %11841 = vmatpush3.bf16.msra.mxu1 %v13679_v46  ;;  %v6437_v46 = vpack.c.bf16 %v10482_v13, %v10481_v12  ;;  %v10498_v12 = vld [vmem:[%s13862_s10 + $0x18a] sm:$0xff] }
 0x145   : > { %11874 = vmatprep.subr.bf16.mxu1 %v14602_v28  ;;  %v9811_v13 = vld [vmem:[%s13862_s10 + $0xa8] sm:$0xff] }
 0x146   : > { %11811 = vmatmul.mubr.bf16.gmra.mrb[16].mxu1 %v14604_v63 }
 0x147   : > { %12419 = vmatmul.mubr.bf16.vlgmr.msra.gmra.mrb[0].mxu0 %v6433_v38  ;;  %11814 = vmatprep.mubr.bf16.mxu1 %v14606_v39  ;;  %v14662_v38 = vpack.c.bf16 %v1618_v43, %v1617_v3  ;;  %v9814_v3 = vld [vmem:[%s13862_s10 + $0xc8] sm:$0xff]  ;;  %v10501_v43 = vld [vmem:[%s13862_s10 + $0x1b2] sm:$0xff] }
 0x148   : > { %12451 = vmatpush3.bf16.msra.mxu0 %v14524_v25  ;;  %12422 = vmatprep.mubr.bf16.mxu0 %v6434_v40  ;;  %v14628_v25 = vpack.c.bf16 %v1612_v60, %v1611_v19  ;;  %v1990_v40 = vpack.c.bf16 %v9800_v8, %v9799_v18  ;;  %v14677_v19 = vld [vmem:[%s15758_s1 + $0x4c0] sm:$0xff]   ;;  %v1991_v60 = vpack.c.bf16 %v9802_v51, %v9801_v15  ;;  %v9815_v8 = vld [vmem:[%s13862_s10 + $0xd8] sm:$0xff] }
 0x149   : > { %12452 = vmatprep.subr.bf16.mxu0 %v13676_v54  ;;  %v10502_v18 = vld [vmem:[%s13862_s10 + $0x1ba] sm:$0xff] }
 0x14a   : > { %v6447_v15 = vpack.c.bf16 %v10502_v18, %v10501_v43  ;;  %v13704_v43 = vld [vmem:[%s15758_s1 + $0x4f8] sm:$0xff]  }
 0x14b   : > { %v9858_v18 = vld [vmem:[%s13862_s10 + $0x39] sm:$0xff] }
 0x14c   : > { %12453 = vmatpush3.bf16.msra.mxu0 %v13676_v54  ;;  %v13688_v54 = vld [vmem:[%s15758_s1 + $0x4b8] sm:$0xff]  }
 0x14d   : > { %12454 = vmatprep.subr.bf16.mxu0 %v13678_v57 }
 0x14e   : > { %11815 = vmatmul.mubr.bf16.gmra.mrb[20].mxu1 %v14626_v16 }
 0x14f   : > { %12423 = vmatmul.mubr.bf16.gmra.mrb[4].mxu0 %v6435_v37  ;;  %11818 = vmatprep.mubr.bf16.mxu1 %v14628_v25  ;;  %v9808_v37 = vld [vmem:[%s13862_s10 + $0x80] sm:$0xff] }
 0x150   : > { %12426 = vmatprep.mubr.bf16.mxu0 %v6436_v10  ;;  %12455 = vmatpush3.bf16.msra.mxu0 %v13678_v57  ;;  %v9807_v57 = vld [vmem:[%s13862_s10 + $0x78] sm:$0xff]  ;;  %v13685_v10 = vld [vmem:[%s15758_s1 + $0x190] sm:$0xff]  }
 0x151   : > { %12456 = vmatprep.subr.bf16.mxu0 %v13680_v53 }
 0x154   : > { %12457 = vmatpush3.bf16.msra.mxu0 %v13680_v53  ;;  %v9809_v53 = vld [vmem:[%s13862_s10 + $0x90] sm:$0xff] }
 0x155   : > { %12458 = vmatprep.subr.bf16.mxu0 %v13682_v49  ;;  %v14715_v20 = vpack.c.bf16 %v9810_v62, %v9809_v53  ;;  %v9824_v53 = vld [vmem:[%s13862_s10 + $0x140] sm:$0xff]  ;;  %v13694_v62 = vld [vmem:[%s15758_s1 + $0x4d0] sm:$0xff]  }
 0x156   : > { %11819 = vmatmul.mubr.bf16.gmra.mrb[24].mxu1 %v14646_v22 }
 0x157   : > { %12427 = vmatmul.mubr.bf16.gmra.mrb[8].mxu0 %v6437_v46  ;;  %11822 = vmatprep.mubr.bf16.mxu1 %v14648_v1  ;;  %v6446_v46 = vpack.c.bf16 %v10500_v44, %v10499_v14  ;;  %v13698_v14 = vld [vmem:[%s15758_s1 + $0x4e0] sm:$0xff]  }
 0x158   : > { %12430 = vmatprep.mubr.bf16.mxu0 %v6438_v34  ;;  %12459 = vmatpush3.bf16.msra.mxu0 %v13682_v49  ;;  %v14717_v49 = vpack.c.bf16 %v9812_v33, %v9811_v13  ;;  %v13691_v34 = vld [vmem:[%s15758_s1 + $0x1a8] sm:$0xff]   ;;  %v9828_v33 = vld [vmem:[%s13862_s10 + $0x170] sm:$0xff] }
 0x159   : > { %12460 = vmatprep.subr.bf16.mxu0 %v13684_v48  ;;  %v9827_v13 = vld [vmem:[%s13862_s10 + $0x168] sm:$0xff] }
 0x15c   : > { %12461 = vmatpush3.bf16.msra.mxu0 %v13684_v48  ;;  %v9813_v48 = vld [vmem:[%s13862_s10 + $0xc0] sm:$0xff] }
 0x15d   : > { %12462 = vmatprep.subr.bf16.mxu0 %v13686_v35 }
 0x15e   : > { %11823 = vmatmul.mubr.bf16.gmra.mrb[28].mxu1 %v14662_v38 }
 0x15f   : > { %12431 = vmatmul.mubr.bf16.gmra.mrb[12].mxu0 %v14309_v27  ;;  %11842 = vmatprep.mubr.bf16.mxu1 %v1990_v40  ;;  %v1992_v27 = vpack.c.bf16 %v9804_v58, %v9803_v56  ;;  %v13693_v40 = vld [vmem:[%s15758_s1 + $0x1b0] sm:$0xff]   ;;  %v13695_v56 = vld [vmem:[%s15758_s1 + $0x1b8] sm:$0xff]  }
 0x160   : > { %12434 = vmatprep.mubr.bf16.mxu0 %v14327_v31  ;;  %12463 = vmatpush3.bf16.msra.mxu0 %v13686_v35  ;;  %v9805_v31 = vld [vmem:[%s13862_s10 + $0x60] sm:$0xff]  ;;  %v9817_v58 = vld [vmem:[%s13862_s10 + $0xf0] sm:$0xff] }
 0x161   : > { %12464 = vmatprep.subr.bf16.mxu0 %v13688_v54  ;;  %v9816_v35 = vld [vmem:[%s13862_s10 + $0xe0] sm:$0xff] }
 0x162   : > { %v14735_v51 = vpack.c.bf16 %v9816_v35, %v9815_v8  ;;  %v9859_v8 = vld [vmem:[%s13862_s10 + $0x49] sm:$0xff]  ;;  %v9860_v35 = vld [vmem:[%s13862_s10 + $0x51] sm:$0xff] }
 0x164   : > { %12465 = vmatpush3.bf16.msra.mxu0 %v13688_v54  ;;  %v14733_v54 = vpack.c.bf16 %v9814_v3, %v9813_v48  ;;  %v13702_v48 = vld [vmem:[%s15758_s1 + $0x4f0] sm:$0xff]  }
 0x165   : > { %12498 = vmatprep.subr.bf16.mxu0 %v14677_v19 }
 0x166   : > { %11843 = vmatmul.mubr.bf16.vlgmr.msra.gmra.mrb[0].mxu1 %v1991_v60  ;;  %v9818_v60 = vld [vmem:[%s13862_s10 + $0xf8] sm:$0xff] }
 0x167   : > { %12435 = vmatmul.mubr.bf16.gmra.mrb[16].mxu0 %v14329_v50  ;;  %11875 = vmatpush3.bf16.msra.mxu1 %v14602_v28  ;;  %v14693_v50 = vpack.c.bf16 %v9806_v17, %v9805_v31  ;;  %v14695_v28 = vpack.c.bf16 %v9808_v37, %v9807_v57  ;;  %v14750_v31 = vld [vmem:[%s15758_s1 + $0x1c0] sm:$0xff]   ;;  %v14752_v17 = vpack.c.bf16 %v9818_v60, %v9817_v58  ;;  %v9862_v58 = vld [vmem:[%s13862_s10 + $0x69] sm:$0xff] }
 0x168   : > { %11846 = vmatprep.mubr.bf16.mxu1 %v1992_v27  ;;  %12438 = vmatprep.mubr.bf16.mxu0 %v14345_v42  ;;  %v13687_v42 = vld [vmem:[%s15758_s1 + $0x198] sm:$0xff]   ;;  %v9819_v27 = vld [vmem:[%s13862_s10 + $0x108] sm:$0xff]  ;;  %v9821_v37 = vld [vmem:[%s13862_s10 + $0x120] sm:$0xff] }
 0x169   : > { %11876 = vmatprep.subr.bf16.mxu1 %v13683_v32  ;;  %v9863_v60 = vld [vmem:[%s13862_s10 + $0x79] sm:$0xff] }
 0x16b   : > { %11877 = vmatpush3.bf16.msra.mxu1 %v13683_v32  ;;  %v9820_v32 = vld [vmem:[%s13862_s10 + $0x110] sm:$0xff] }
 0x16c   : > { %11878 = vmatprep.subr.bf16.mxu1 %v13685_v10  ;;  %v14754_v57 = vpack.c.bf16 %v9820_v32, %v9819_v27  ;;  %v9864_v27 = vld [vmem:[%s13862_s10 + $0x81] sm:$0xff]  ;;  %v13701_v32 = vld [vmem:[%s15758_s1 + $0x1d0] sm:$0xff]  }
 0x16e   : > { %11847 = vmatmul.mubr.bf16.gmra.mrb[4].mxu1 %v14693_v50 }
 0x16f   : > { %12439 = vmatmul.mubr.bf16.gmra.mrb[20].mxu0 %v14347_v2  ;;  %11850 = vmatprep.mubr.bf16.mxu1 %v14695_v28  ;;  %v13689_v2 = vld [vmem:[%s15758_s1 + $0x1a0] sm:$0xff]  }
 0x170   : > { %12442 = vmatprep.mubr.bf16.mxu0 %v14363_v59  ;;  %11879 = vmatpush3.bf16.msra.mxu1 %v13685_v10  ;;  %v6445_v59 = vpack.c.bf16 %v10498_v12, %v10497_v23  ;;  %v9822_v10 = vld [vmem:[%s13862_s10 + $0x128] sm:$0xff]  ;;  %v9826_v12 = vld [vmem:[%s13862_s10 + $0x158] sm:$0xff] }
 0x171   : > { %11880 = vmatprep.subr.bf16.mxu1 %v13687_v42 }
 0x174   : > { %11881 = vmatpush3.bf16.msra.mxu1 %v13687_v42  ;;  %v9823_v42 = vld [vmem:[%s13862_s10 + $0x138] sm:$0xff] }
 0x175   : > { %11882 = vmatprep.subr.bf16.mxu1 %v13689_v2  ;;  %v14774_v23 = vpack.c.bf16 %v9824_v53, %v9823_v42  ;;  %v10554_v42 = vld [vmem:[%s13862_s10 + $0x18b] sm:$0xff] }
 0x176   : > { %11851 = vmatmul.mubr.bf16.gmra.mrb[8].mxu1 %v14715_v20  ;;  %v9867_v53 = vld [vmem:[%s13862_s10 + $0xa9] sm:$0xff] }
 0x177   : > { %12443 = vmatmul.mubr.bf16.gmra.mrb[24].mxu0 %v6445_v59  ;;  %11854 = vmatprep.mubr.bf16.mxu1 %v14717_v49  ;;  %v9830_v59 = vld [vmem:[%s13862_s10 + $0x188] sm:$0xff] }
 0x178   : > { %12446 = vmatprep.mubr.bf16.mxu0 %v6446_v46  ;;  %11883 = vmatpush3.bf16.msra.mxu1 %v13689_v2  ;;  %v9829_v2 = vld [vmem:[%s13862_s10 + $0x180] sm:$0xff] }
 0x179   : > { %11884 = vmatprep.subr.bf16.mxu1 %v13691_v34  ;;  %v9855_v46 = vld [vmem:[%s13862_s10 + $0x19] sm:$0xff]  ;;  %v14808_v3 = vpack.c.bf16 %v9830_v59, %v9829_v2  ;;  %v9870_v2 = vld [vmem:[%s13862_s10 + $0xc9] sm:$0xff] }
 0x17a   : > { %v10557_v59 = vld [vmem:[%s13862_s10 + $0x1b3] sm:$0xff] }
 0x17c   : > { %11885 = vmatpush3.bf16.msra.mxu1 %v13691_v34  ;;  %v9856_v34 = vld [vmem:[%s13862_s10 + $0x21] sm:$0xff] }
 0x17d   : > { %11886 = vmatprep.subr.bf16.mxu1 %v13693_v40 }
 0x17e   : > { %11855 = vmatmul.mubr.bf16.gmra.mrb[12].mxu1 %v14733_v54 }
 0x17f   : > { %12447 = vmatmul.mubr.bf16.gmra.mrb[28].mxu0 %v6447_v15  ;;  %11858 = vmatprep.mubr.bf16.mxu1 %v14735_v51 }
 0x180   : > { %12466 = vmatprep.mubr.bf16.mxu0 %v14394_v55  ;;  %11887 = vmatpush3.bf16.msra.mxu1 %v13693_v40  ;;  %v13692_v55 = vld [vmem:[%s15758_s1 + $0x4c8] sm:$0xff]   ;;  %v14823_v40 = vld [vmem:[%s15758_s1 + $0x500] sm:$0xff]  }
 0x181   : > { %11888 = vmatprep.subr.bf16.mxu1 %v13695_v56 }
 0x184   : > { %11889 = vmatpush3.bf16.msra.mxu1 %v13695_v56  ;;  %v13699_v56 = vld [vmem:[%s15758_s1 + $0x1c8] sm:$0xff]  }
 0x185   : > { %11922 = vmatprep.subr.bf16.mxu1 %v14750_v31 }
 0x186   : > { %11859 = vmatmul.mubr.bf16.gmra.mrb[16].mxu1 %v14752_v17 }
 0x187   : > { %12467 = vmatmul.mubr.bf16.vlgmr.msra.gmra.mrb[0].mxu0 %v14396_v36  ;;  %11862 = vmatprep.mubr.bf16.mxu1 %v14754_v57  ;;  %v14772_v36 = vpack.c.bf16 %v9822_v10, %v9821_v37  ;;  %v9866_v37 = vld [vmem:[%s13862_s10 + $0x99] sm:$0xff]  ;;  %v10553_v10 = vld [vmem:[%s13862_s10 + $0x183] sm:$0xff] }
 0x188   : > { %12499 = vmatpush3.bf16.msra.mxu0 %v14677_v19  ;;  %12470 = vmatprep.mubr.bf16.mxu0 %v14416_v9  ;;  %v13696_v19 = vld [vmem:[%s15758_s1 + $0x4d8] sm:$0xff]   ;;  %v9825_v9 = vld [vmem:[%s13862_s10 + $0x150] sm:$0xff] }
 0x189   : > { %12500 = vmatprep.subr.bf16.mxu0 %v13692_v55  ;;  %v14790_v44 = vpack.c.bf16 %v9826_v12, %v9825_v9  ;;  %v10556_v9 = vld [vmem:[%s13862_s10 + $0x1a3] sm:$0xff] }
 0x18c   : > { %12501 = vmatpush3.bf16.msra.mxu0 %v13692_v55  ;;  %v9865_v55 = vld [vmem:[%s13862_s10 + $0x91] sm:$0xff] }
 0x18d   : > { %12502 = vmatprep.subr.bf16.mxu0 %v13694_v62  ;;  %v14861_v12 = vpack.c.bf16 %v9866_v37, %v9865_v55  ;;  %v9880_v55 = vld [vmem:[%s13862_s10 + $0x141] sm:$0xff]  ;;  %v13710_v37 = vld [vmem:[%s15758_s1 + $0x510] sm:$0xff]  }
 0x18e   : > { %11863 = vmatmul.mubr.bf16.gmra.mrb[20].mxu1 %v14772_v36 }
 0x18f   : > { %12471 = vmatmul.mubr.bf16.gmra.mrb[4].mxu0 %v14418_v29  ;;  %11866 = vmatprep.mubr.bf16.mxu1 %v14774_v23  ;;  %v14792_v29 = vpack.c.bf16 %v9828_v33, %v9827_v13 }
 0x190   : > { %12474 = vmatprep.mubr.bf16.mxu0 %v14434_v45  ;;  %12503 = vmatpush3.bf16.msra.mxu0 %v13694_v62  ;;  %v13700_v45 = vld [vmem:[%s15758_s1 + $0x4e8] sm:$0xff]   ;;  %v9868_v62 = vld [vmem:[%s13862_s10 + $0xb1] sm:$0xff] }
 0x191   : > { %12504 = vmatprep.subr.bf16.mxu0 %v13696_v19  ;;  %v14863_v13 = vpack.c.bf16 %v9868_v62, %v9867_v53  ;;  %v9883_v53 = vld [vmem:[%s13862_s10 + $0x169] sm:$0xff]  ;;  %v9884_v62 = vld [vmem:[%s13862_s10 + $0x171] sm:$0xff] }
 0x194   : > { %12505 = vmatpush3.bf16.msra.mxu0 %v13696_v19  ;;  %v10555_v19 = vld [vmem:[%s13862_s10 + $0x19b] sm:$0xff] }
 0x195   : > { %12506 = vmatprep.subr.bf16.mxu0 %v13698_v14  ;;  %v6816_v33 = vpack.c.bf16 %v10556_v9, %v10555_v19  ;;  %v13714_v19 = vld [vmem:[%s15758_s1 + $0x520] sm:$0xff]  }
 0x196   : > { %11867 = vmatmul.mubr.bf16.gmra.mrb[24].mxu1 %v14790_v44 }
 0x197   : > { %12475 = vmatmul.mubr.bf16.gmra.mrb[8].mxu0 %v14436_v47  ;;  %11870 = vmatprep.mubr.bf16.mxu1 %v14792_v29  ;;  %v2360_v47 = vpack.c.bf16 %v9856_v34, %v9855_v46  ;;  %v10558_v46 = vld [vmem:[%s13862_s10 + $0x1bb] sm:$0xff] }
 0x198   : > { %12478 = vmatprep.mubr.bf16.mxu0 %v14453_v0  ;;  %12507 = vmatpush3.bf16.msra.mxu0 %v13698_v14  ;;  %v9857_v0 = vld [vmem:[%s13862_s10 + $0x31] sm:$0xff]  ;;  %v13707_v14 = vld [vmem:[%s15758_s1 + $0x1e8] sm:$0xff]   ;;  %v9871_v34 = vld [vmem:[%s13862_s10 + $0xd9] sm:$0xff] }
 0x199   : > { %12508 = vmatprep.subr.bf16.mxu0 %v13700_v45  ;;  %v2361_v15 = vpack.c.bf16 %v9858_v18, %v9857_v0  ;;  %v6817_v0 = vpack.c.bf16 %v10558_v46, %v10557_v59  ;;  %v13720_v59 = vld [vmem:[%s15758_s1 + $0x538] sm:$0xff]  }
 0x19a   : > { %v9914_v46 = vld [vmem:[%s13862_s10 + $0x3a] sm:$0xff] }
 0x19c   : > { %12509 = vmatpush3.bf16.msra.mxu0 %v13700_v45  ;;  %v9869_v45 = vld [vmem:[%s13862_s10 + $0xc1] sm:$0xff] }
 0x19d   : > { %12510 = vmatprep.subr.bf16.mxu0 %v13702_v48 }
 0x19e   : > { %11871 = vmatmul.mubr.bf16.gmra.mrb[28].mxu1 %v14808_v3 }
 0x19f   : > { %12479 = vmatmul.mubr.bf16.gmra.mrb[12].mxu0 %v14455_v61  ;;  %11890 = vmatprep.mubr.bf16.mxu1 %v2360_v47  ;;  %v2362_v61 = vpack.c.bf16 %v9860_v35, %v9859_v8  ;;  %v13709_v47 = vld [vmem:[%s15758_s1 + $0x1f0] sm:$0xff]   ;;  %v13711_v8 = vld [vmem:[%s15758_s1 + $0x1f8] sm:$0xff]  }
 0x1a0   : > { %12482 = vmatprep.mubr.bf16.mxu0 %v14473_v11  ;;  %12511 = vmatpush3.bf16.msra.mxu0 %v13702_v48  ;;  %v9861_v11 = vld [vmem:[%s13862_s10 + $0x61] sm:$0xff]  ;;  %v9873_v35 = vld [vmem:[%s13862_s10 + $0xf1] sm:$0xff] }
 0x1a1   : > { %12512 = vmatprep.subr.bf16.mxu0 %v13704_v43  ;;  %v9872_v48 = vld [vmem:[%s13862_s10 + $0xe1] sm:$0xff] }
 0x1a2   : > { %v14881_v18 = vpack.c.bf16 %v9872_v48, %v9871_v34  ;;  %v9915_v34 = vld [vmem:[%s13862_s10 + $0x4a] sm:$0xff]  ;;  %v9916_v48 = vld [vmem:[%s13862_s10 + $0x52] sm:$0xff] }
 0x1a4   : > { %12513 = vmatpush3.bf16.msra.mxu0 %v13704_v43  ;;  %v14879_v43 = vpack.c.bf16 %v9870_v2, %v9869_v45  ;;  %v13718_v45 = vld [vmem:[%s15758_s1 + $0x530] sm:$0xff]  }
 0x1a5   : > { %12546 = vmatprep.subr.bf16.mxu0 %v14823_v40 }
 0x1a6   : > { %11891 = vmatmul.mubr.bf16.vlgmr.msra.gmra.mrb[0].mxu1 %v2361_v15  ;;  %v9874_v15 = vld [vmem:[%s13862_s10 + $0xf9] sm:$0xff] }
 0x1a7   : > { %12483 = vmatmul.mubr.bf16.gmra.mrb[16].mxu0 %v14475_v5  ;;  %11923 = vmatpush3.bf16.msra.mxu1 %v14750_v31  ;;  %v14839_v5 = vpack.c.bf16 %v9862_v58, %v9861_v11  ;;  %v14841_v31 = vpack.c.bf16 %v9864_v27, %v9863_v60  ;;  %v14896_v11 = vld [vmem:[%s15758_s1 + $0x200] sm:$0xff]   ;;  %v14898_v58 = vpack.c.bf16 %v9874_v15, %v9873_v35  ;;  %v9918_v35 = vld [vmem:[%s13862_s10 + $0x6a] sm:$0xff] }
 0x1a8   : > { %11894 = vmatprep.mubr.bf16.mxu1 %v2362_v61  ;;  %12486 = vmatprep.mubr.bf16.mxu0 %v14491_v7  ;;  %v13703_v7 = vld [vmem:[%s15758_s1 + $0x1d8] sm:$0xff]   ;;  %v9875_v61 = vld [vmem:[%s13862_s10 + $0x109] sm:$0xff]  ;;  %v9877_v27 = vld [vmem:[%s13862_s10 + $0x121] sm:$0xff] }
 0x1a9   : > { %11924 = vmatprep.subr.bf16.mxu1 %v13699_v56  ;;  %v9919_v15 = vld [vmem:[%s13862_s10 + $0x7a] sm:$0xff] }
 0x1ab   : > { %11925 = vmatpush3.bf16.msra.mxu1 %v13699_v56  ;;  %v9876_v56 = vld [vmem:[%s13862_s10 + $0x111] sm:$0xff] }
 0x1ac   : > { %11926 = vmatprep.subr.bf16.mxu1 %v13701_v32  ;;  %v14900_v60 = vpack.c.bf16 %v9876_v56, %v9875_v61  ;;  %v9920_v61 = vld [vmem:[%s13862_s10 + $0x82] sm:$0xff]  ;;  %v13717_v56 = vld [vmem:[%s15758_s1 + $0x210] sm:$0xff]  }
 0x1ae   : > { %11895 = vmatmul.mubr.bf16.gmra.mrb[4].mxu1 %v14839_v5 }
 0x1af   : > { %12487 = vmatmul.mubr.bf16.gmra.mrb[20].mxu0 %v14493_v26  ;;  %11898 = vmatprep.mubr.bf16.mxu1 %v14841_v31  ;;  %v13705_v26 = vld [vmem:[%s15758_s1 + $0x1e0] sm:$0xff]  }
 0x1b0   : > { %12490 = vmatprep.mubr.bf16.mxu0 %v14509_v24  ;;  %11927 = vmatpush3.bf16.msra.mxu1 %v13701_v32  ;;  %v6815_v24 = vpack.c.bf16 %v10554_v42, %v10553_v10  ;;  %v9878_v32 = vld [vmem:[%s13862_s10 + $0x129] sm:$0xff]  ;;  %v9882_v42 = vld [vmem:[%s13862_s10 + $0x159] sm:$0xff] }
 0x1b1   : > { %11928 = vmatprep.subr.bf16.mxu1 %v13703_v7 }
 0x1b4   : > { %11929 = vmatpush3.bf16.msra.mxu1 %v13703_v7  ;;  %v9879_v7 = vld [vmem:[%s13862_s10 + $0x139] sm:$0xff] }
 0x1b5   : > { %11930 = vmatprep.subr.bf16.mxu1 %v13705_v26  ;;  %v14920_v10 = vpack.c.bf16 %v9880_v55, %v9879_v7  ;;  %v10610_v7 = vld [vmem:[%s13862_s10 + $0x18c] sm:$0xff] }
 0x1b6   : > { %11899 = vmatmul.mubr.bf16.gmra.mrb[8].mxu1 %v14861_v12  ;;  %v9923_v55 = vld [vmem:[%s13862_s10 + $0xaa] sm:$0xff] }
 0x1b7   : > { %12491 = vmatmul.mubr.bf16.gmra.mrb[24].mxu0 %v6815_v24  ;;  %11902 = vmatprep.mubr.bf16.mxu1 %v14863_v13  ;;  %v9886_v24 = vld [vmem:[%s13862_s10 + $0x189] sm:$0xff] }
 0x1b8   : > { %12494 = vmatprep.mubr.bf16.mxu0 %v6816_v33  ;;  %11931 = vmatpush3.bf16.msra.mxu1 %v13705_v26  ;;  %v9885_v26 = vld [vmem:[%s13862_s10 + $0x181] sm:$0xff] }
 0x1b9   : > { %11932 = vmatprep.subr.bf16.mxu1 %v13707_v14  ;;  %v9911_v33 = vld [vmem:[%s13862_s10 + $0x1a] sm:$0xff]  ;;  %v14954_v2 = vpack.c.bf16 %v9886_v24, %v9885_v26  ;;  %v9926_v26 = vld [vmem:[%s13862_s10 + $0xca] sm:$0xff] }
 0x1ba   : > { %v10613_v24 = vld [vmem:[%s13862_s10 + $0x1b4] sm:$0xff] }
 0x1bc   : > { %11933 = vmatpush3.bf16.msra.mxu1 %v13707_v14  ;;  %v9912_v14 = vld [vmem:[%s13862_s10 + $0x22] sm:$0xff] }
 0x1bd   : > { %11934 = vmatprep.subr.bf16.mxu1 %v13709_v47 }
 0x1be   : > { %11903 = vmatmul.mubr.bf16.gmra.mrb[12].mxu1 %v14879_v43 }
 0x1bf   : > { %12495 = vmatmul.mubr.bf16.gmra.mrb[28].mxu0 %v6817_v0  ;;  %11906 = vmatprep.mubr.bf16.mxu1 %v14881_v18 }
 0x1c0   : > { %12514 = vmatprep.mubr.bf16.mxu0 %v14540_v30  ;;  %11935 = vmatpush3.bf16.msra.mxu1 %v13709_v47  ;;  %v13708_v30 = vld [vmem:[%s15758_s1 + $0x508] sm:$0xff]   ;;  %v14969_v47 = vld [vmem:[%s15758_s1 + $0x540] sm:$0xff]  }
 0x1c1   : > { %11936 = vmatprep.subr.bf16.mxu1 %v13711_v8 }
 0x1c4   : > { %11937 = vmatpush3.bf16.msra.mxu1 %v13711_v8  ;;  %v13715_v8 = vld [vmem:[%s15758_s1 + $0x208] sm:$0xff]  }
 0x1c5   : > { %11970 = vmatprep.subr.bf16.mxu1 %v14896_v11 }
 0x1c6   : > { %11907 = vmatmul.mubr.bf16.gmra.mrb[16].mxu1 %v14898_v58 }
 0x1c7   : > { %12515 = vmatmul.mubr.bf16.vlgmr.msra.gmra.mrb[0].mxu0 %v14542_v41  ;;  %11910 = vmatprep.mubr.bf16.mxu1 %v14900_v60  ;;  %v14918_v41 = vpack.c.bf16 %v9878_v32, %v9877_v27  ;;  %v9922_v27 = vld [vmem:[%s13862_s10 + $0x9a] sm:$0xff]  ;;  %v10609_v32 = vld [vmem:[%s13862_s10 + $0x184] sm:$0xff] }
 0x1c8   : > { %12547 = vmatpush3.bf16.msra.mxu0 %v14823_v40  ;;  %12518 = vmatprep.mubr.bf16.mxu0 %v14562_v4  ;;  %v13712_v40 = vld [vmem:[%s15758_s1 + $0x518] sm:$0xff]  }
 0x1c9   : > { %12548 = vmatprep.subr.bf16.mxu0 %v13708_v30  ;;  %v9881_v4 = vld [vmem:[%s13862_s10 + $0x151] sm:$0xff] }
 0x1ca   : > { %v14936_v9 = vpack.c.bf16 %v9882_v42, %v9881_v4  ;;  %v10612_v4 = vld [vmem:[%s13862_s10 + $0x1a4] sm:$0xff] }
 0x1cc   : > { %12549 = vmatpush3.bf16.msra.mxu0 %v13708_v30  ;;  %v9921_v30 = vld [vmem:[%s13862_s10 + $0x92] sm:$0xff] }
 0x1cd   : > { %12550 = vmatprep.subr.bf16.mxu0 %v13710_v37  ;;  %v15007_v42 = vpack.c.bf16 %v9922_v27, %v9921_v30  ;;  %v9936_v30 = vld [vmem:[%s13862_s10 + $0x142] sm:$0xff]  ;;  %v13726_v27 = vld [vmem:[%s15758_s1 + $0x550] sm:$0xff]  }
 0x1ce   : > { %11911 = vmatmul.mubr.bf16.gmra.mrb[20].mxu1 %v14918_v41 }
 0x1cf   : > { %12519 = vmatmul.mubr.bf16.gmra.mrb[4].mxu0 %v14564_v6  ;;  %11914 = vmatprep.mubr.bf16.mxu1 %v14920_v10  ;;  %v14938_v6 = vpack.c.bf16 %v9884_v62, %v9883_v53 }
 0x1d0   : > { %12522 = vmatprep.mubr.bf16.mxu0 %v14582_v21  ;;  %12551 = vmatpush3.bf16.msra.mxu0 %v13710_v37  ;;  %v13716_v21 = vld [vmem:[%s15758_s1 + $0x528] sm:$0xff]   ;;  %v9924_v37 = vld [vmem:[%s13862_s10 + $0xb2] sm:$0xff] }
 0x1d1   : > { %12552 = vmatprep.subr.bf16.mxu0 %v13712_v40  ;;  %v15009_v53 = vpack.c.bf16 %v9924_v37, %v9923_v55  ;;  %v9939_v55 = vld [vmem:[%s13862_s10 + $0x16a] sm:$0xff]  ;;  %v9940_v37 = vld [vmem:[%s13862_s10 + $0x172] sm:$0xff] }
 0x1d4   : > { %12553 = vmatpush3.bf16.msra.mxu0 %v13712_v40  ;;  %v10611_v40 = vld [vmem:[%s13862_s10 + $0x19c] sm:$0xff] }
 0x1d5   : > { %12554 = vmatprep.subr.bf16.mxu0 %v13714_v19  ;;  %v7186_v62 = vpack.c.bf16 %v10612_v4, %v10611_v40  ;;  %v13730_v40 = vld [vmem:[%s15758_s1 + $0x560] sm:$0xff]  }
 0x1d6   : > { %11915 = vmatmul.mubr.bf16.gmra.mrb[24].mxu1 %v14936_v9 }
 0x1d7   : > { %12523 = vmatmul.mubr.bf16.gmra.mrb[8].mxu0 %v14584_v52  ;;  %11918 = vmatprep.mubr.bf16.mxu1 %v14938_v6  ;;  %v2730_v52 = vpack.c.bf16 %v9912_v14, %v9911_v33  ;;  %v10614_v33 = vld [vmem:[%s13862_s10 + $0x1bc] sm:$0xff] }
 0x1d8   : > { %12526 = vmatprep.mubr.bf16.mxu0 %v14604_v63  ;;  %12555 = vmatpush3.bf16.msra.mxu0 %v13714_v19  ;;  %v9913_v63 = vld [vmem:[%s13862_s10 + $0x32] sm:$0xff]  ;;  %v13723_v19 = vld [vmem:[%s15758_s1 + $0x228] sm:$0xff]   ;;  %v9927_v14 = vld [vmem:[%s13862_s10 + $0xda] sm:$0xff] }
 0x1d9   : > { %12556 = vmatprep.subr.bf16.mxu0 %v13716_v21  ;;  %v2731_v0 = vpack.c.bf16 %v9914_v46, %v9913_v63  ;;  %v7187_v63 = vpack.c.bf16 %v10614_v33, %v10613_v24  ;;  %v13736_v24 = vld [vmem:[%s15758_s1 + $0x578] sm:$0xff]  }
 0x1da   : > { %v9970_v33 = vld [vmem:[%s13862_s10 + $0x3b] sm:$0xff] }
 0x1dc   : > { %12557 = vmatpush3.bf16.msra.mxu0 %v13716_v21  ;;  %v9925_v21 = vld [vmem:[%s13862_s10 + $0xc2] sm:$0xff] }
 0x1dd   : > { %12558 = vmatprep.subr.bf16.mxu0 %v13718_v45 }
 0x1de   : > { %11919 = vmatmul.mubr.bf16.gmra.mrb[28].mxu1 %v14954_v2 }
 0x1df   : > { %12527 = vmatmul.mubr.bf16.gmra.mrb[12].mxu0 %v14606_v39  ;;  %11938 = vmatprep.mubr.bf16.mxu1 %v2730_v52  ;;  %v2732_v39 = vpack.c.bf16 %v9916_v48, %v9915_v34  ;;  %v13725_v52 = vld [vmem:[%s15758_s1 + $0x230] sm:$0xff]   ;;  %v13727_v34 = vld [vmem:[%s15758_s1 + $0x238] sm:$0xff]  }
 0x1e0   : > { %12530 = vmatprep.mubr.bf16.mxu0 %v14626_v16  ;;  %12559 = vmatpush3.bf16.msra.mxu0 %v13718_v45  ;;  %v9917_v16 = vld [vmem:[%s13862_s10 + $0x62] sm:$0xff]  ;;  %v9929_v48 = vld [vmem:[%s13862_s10 + $0xf2] sm:$0xff] }
 0x1e1   : > { %12560 = vmatprep.subr.bf16.mxu0 %v13720_v59  ;;  %v9928_v45 = vld [vmem:[%s13862_s10 + $0xe2] sm:$0xff] }
 0x1e2   : > { %v15027_v46 = vpack.c.bf16 %v9928_v45, %v9927_v14  ;;  %v9971_v14 = vld [vmem:[%s13862_s10 + $0x4b] sm:$0xff]  ;;  %v9972_v45 = vld [vmem:[%s13862_s10 + $0x53] sm:$0xff] }
 0x1e4   : > { %12561 = vmatpush3.bf16.msra.mxu0 %v13720_v59  ;;  %v15025_v59 = vpack.c.bf16 %v9926_v26, %v9925_v21  ;;  %v13734_v21 = vld [vmem:[%s15758_s1 + $0x570] sm:$0xff]  }
 0x1e5   : > { %12594 = vmatprep.subr.bf16.mxu0 %v14969_v47 }
 0x1e6   : > { %11939 = vmatmul.mubr.bf16.vlgmr.msra.gmra.mrb[0].mxu1 %v2731_v0  ;;  %v9930_v0 = vld [vmem:[%s13862_s10 + $0xfa] sm:$0xff] }
 0x1e7   : > { %12531 = vmatmul.mubr.bf16.gmra.mrb[16].mxu0 %v14628_v25  ;;  %11971 = vmatpush3.bf16.msra.mxu1 %v14896_v11  ;;  %v14985_v25 = vpack.c.bf16 %v9918_v35, %v9917_v16  ;;  %v14987_v11 = vpack.c.bf16 %v9920_v61, %v9919_v15  ;;  %v15042_v16 = vld [vmem:[%s15758_s1 + $0x240] sm:$0xff]   ;;  %v15044_v35 = vpack.c.bf16 %v9930_v0, %v9929_v48  ;;  %v9974_v48 = vld [vmem:[%s13862_s10 + $0x6b] sm:$0xff] }
 0x1e8   : > { %11942 = vmatprep.mubr.bf16.mxu1 %v2732_v39  ;;  %12534 = vmatprep.mubr.bf16.mxu0 %v14646_v22  ;;  %v13719_v22 = vld [vmem:[%s15758_s1 + $0x218] sm:$0xff]   ;;  %v9931_v39 = vld [vmem:[%s13862_s10 + $0x10a] sm:$0xff]  ;;  %v9933_v61 = vld [vmem:[%s13862_s10 + $0x122] sm:$0xff] }
 0x1e9   : > { %11972 = vmatprep.subr.bf16.mxu1 %v13715_v8  ;;  %v9975_v0 = vld [vmem:[%s13862_s10 + $0x7b] sm:$0xff] }
 0x1eb   : > { %11973 = vmatpush3.bf16.msra.mxu1 %v13715_v8  ;;  %v9932_v8 = vld [vmem:[%s13862_s10 + $0x112] sm:$0xff] }
 0x1ec   : > { %11974 = vmatprep.subr.bf16.mxu1 %v13717_v56  ;;  %v15046_v15 = vpack.c.bf16 %v9932_v8, %v9931_v39  ;;  %v9976_v39 = vld [vmem:[%s13862_s10 + $0x83] sm:$0xff]  ;;  %v13733_v8 = vld [vmem:[%s15758_s1 + $0x250] sm:$0xff]  }
 0x1ee   : > { %11943 = vmatmul.mubr.bf16.gmra.mrb[4].mxu1 %v14985_v25 }
 0x1ef   : > { %12535 = vmatmul.mubr.bf16.gmra.mrb[20].mxu0 %v14648_v1  ;;  %11946 = vmatprep.mubr.bf16.mxu1 %v14987_v11  ;;  %v13721_v1 = vld [vmem:[%s15758_s1 + $0x220] sm:$0xff]  }
 0x1f0   : > { %12538 = vmatprep.mubr.bf16.mxu0 %v14662_v38  ;;  %11975 = vmatpush3.bf16.msra.mxu1 %v13717_v56  ;;  %v7185_v38 = vpack.c.bf16 %v10610_v7, %v10609_v32  ;;  %v9934_v56 = vld [vmem:[%s13862_s10 + $0x12a] sm:$0xff]  ;;  %v9938_v7 = vld [vmem:[%s13862_s10 + $0x15a] sm:$0xff] }
 0x1f1   : > { %11976 = vmatprep.subr.bf16.mxu1 %v13719_v22 }
 0x1f4   : > { %11977 = vmatpush3.bf16.msra.mxu1 %v13719_v22  ;;  %v9935_v22 = vld [vmem:[%s13862_s10 + $0x13a] sm:$0xff] }
 0x1f5   : > { %11978 = vmatprep.subr.bf16.mxu1 %v13721_v1  ;;  %v15066_v32 = vpack.c.bf16 %v9936_v30, %v9935_v22  ;;  %v10666_v22 = vld [vmem:[%s13862_s10 + $0x1a0] sm:$0xff]  ;;  %v9979_v30 = vld [vmem:[%s13862_s10 + $0xab] sm:$0xff] }
 0x1f6   : > { %11947 = vmatmul.mubr.bf16.gmra.mrb[8].mxu1 %v15007_v42 }
 0x1f7   : > { %12539 = vmatmul.mubr.bf16.gmra.mrb[24].mxu0 %v7185_v38  ;;  %11950 = vmatprep.mubr.bf16.mxu1 %v15009_v53  ;;  %v9942_v38 = vld [vmem:[%s13862_s10 + $0x18a] sm:$0xff] }
 0x1f8   : > { %12542 = vmatprep.mubr.bf16.mxu0 %v7186_v62  ;;  %11979 = vmatpush3.bf16.msra.mxu1 %v13721_v1  ;;  %v9941_v1 = vld [vmem:[%s13862_s10 + $0x182] sm:$0xff] }
 0x1f9   : > { %11980 = vmatprep.subr.bf16.mxu1 %v13723_v19  ;;  %v9967_v62 = vld [vmem:[%s13862_s10 + $0x1b] sm:$0xff]  ;;  %v15100_v26 = vpack.c.bf16 %v9942_v38, %v9941_v1  ;;  %v9982_v1 = vld [vmem:[%s13862_s10 + $0xcb] sm:$0xff] }
 0x1fa   : > { %v10669_v38 = vld [vmem:[%s13862_s10 + $0x1c8] sm:$0xff] }
 0x1fc   : > { %11981 = vmatpush3.bf16.msra.mxu1 %v13723_v19  ;;  %v9968_v19 = vld [vmem:[%s13862_s10 + $0x23] sm:$0xff] }
 0x1fd   : > { %11982 = vmatprep.subr.bf16.mxu1 %v13725_v52 }
 0x1fe   : > { %11951 = vmatmul.mubr.bf16.gmra.mrb[12].mxu1 %v15025_v59 }
 0x1ff   : > { %12543 = vmatmul.mubr.bf16.gmra.mrb[28].mxu0 %v7187_v63  ;;  %11954 = vmatprep.mubr.bf16.mxu1 %v15027_v46 }
 0x200   : > { %12562 = vmatprep.mubr.bf16.mxu0 %v14693_v50  ;;  %11983 = vmatpush3.bf16.msra.mxu1 %v13725_v52  ;;  %v13724_v50 = vld [vmem:[%s15758_s1 + $0x548] sm:$0xff]   ;;  %v15115_v52 = vld [vmem:[%s15758_s1 + $0x580] sm:$0xff]  }
 0x201   : > { %11984 = vmatprep.subr.bf16.mxu1 %v13727_v34 }
 0x204   : > { %11985 = vmatpush3.bf16.msra.mxu1 %v13727_v34  ;;  %v13731_v34 = vld [vmem:[%s15758_s1 + $0x248] sm:$0xff]  }
 0x205   : > { %12018 = vmatprep.subr.bf16.mxu1 %v15042_v16 }
 0x206   : > { %11955 = vmatmul.mubr.bf16.gmra.mrb[16].mxu1 %v15044_v35 }
 0x207   : > { %12563 = vmatmul.mubr.bf16.vlgmr.msra.gmra.mrb[0].mxu0 %v14695_v28  ;;  %11958 = vmatprep.mubr.bf16.mxu1 %v15046_v15  ;;  %v15064_v28 = vpack.c.bf16 %v9934_v56, %v9933_v61  ;;  %v9978_v61 = vld [vmem:[%s13862_s10 + $0x9b] sm:$0xff] }
 0x208   : > { %12595 = vmatpush3.bf16.msra.mxu0 %v14969_v47  ;;  %12566 = vmatprep.mubr.bf16.mxu0 %v14715_v20  ;;  %v13728_v47 = vld [vmem:[%s15758_s1 + $0x558] sm:$0xff]  }
 0x209   : > { %12596 = vmatprep.subr.bf16.mxu0 %v13724_v50  ;;  %v9937_v20 = vld [vmem:[%s13862_s10 + $0x152] sm:$0xff] }
 0x20a   : > { %v15082_v4 = vpack.c.bf16 %v9938_v7, %v9937_v20  ;;  %v10665_v56 = vld [vmem:[%s13862_s10 + $0x198] sm:$0xff] }
 0x20b   : > { %v10668_v20 = vld [vmem:[%s13862_s10 + $0x1b8] sm:$0xff] }
 0x20c   : > { %12597 = vmatpush3.bf16.msra.mxu0 %v13724_v50  ;;  %v9977_v50 = vld [vmem:[%s13862_s10 + $0x93] sm:$0xff] }
 0x20d   : > { %12598 = vmatprep.subr.bf16.mxu0 %v13726_v27  ;;  %v15153_v7 = vpack.c.bf16 %v9978_v61, %v9977_v50  ;;  %v9992_v50 = vld [vmem:[%s13862_s10 + $0x143] sm:$0xff]  ;;  %v13742_v61 = vld [vmem:[%s15758_s1 + $0x590] sm:$0xff]  }
 0x20e   : > { %11959 = vmatmul.mubr.bf16.gmra.mrb[20].mxu1 %v15064_v28 }
 0x20f   : > { %12567 = vmatmul.mubr.bf16.gmra.mrb[4].mxu0 %v14717_v49  ;;  %11962 = vmatprep.mubr.bf16.mxu1 %v15066_v32  ;;  %v15084_v49 = vpack.c.bf16 %v9940_v37, %v9939_v55 }
 0x210   : > { %12570 = vmatprep.mubr.bf16.mxu0 %v14733_v54  ;;  %12599 = vmatpush3.bf16.msra.mxu0 %v13726_v27  ;;  %v13732_v54 = vld [vmem:[%s15758_s1 + $0x568] sm:$0xff]   ;;  %v9980_v27 = vld [vmem:[%s13862_s10 + $0xb3] sm:$0xff] }
 0x211   : > { %12600 = vmatprep.subr.bf16.mxu0 %v13728_v47  ;;  %v15155_v55 = vpack.c.bf16 %v9980_v27, %v9979_v30  ;;  %v9995_v30 = vld [vmem:[%s13862_s10 + $0x16b] sm:$0xff]  ;;  %v9996_v27 = vld [vmem:[%s13862_s10 + $0x173] sm:$0xff] }
 0x214   : > { %12601 = vmatpush3.bf16.msra.mxu0 %v13728_v47  ;;  %v10667_v47 = vld [vmem:[%s13862_s10 + $0x1b0] sm:$0xff] }
 0x215   : > { %12602 = vmatprep.subr.bf16.mxu0 %v13730_v40  ;;  %v7557_v37 = vpack.c.bf16 %v10668_v20, %v10667_v47  ;;  %v13746_v47 = vld [vmem:[%s15758_s1 + $0x5a0] sm:$0xff]  }
 0x216   : > { %11963 = vmatmul.mubr.bf16.gmra.mrb[24].mxu1 %v15082_v4 }
 0x217   : > { %12571 = vmatmul.mubr.bf16.gmra.mrb[8].mxu0 %v14735_v51  ;;  %11966 = vmatprep.mubr.bf16.mxu1 %v15084_v49  ;;  %v3100_v51 = vpack.c.bf16 %v9968_v19, %v9967_v62  ;;  %v10670_v62 = vld [vmem:[%s13862_s10 + $0x1d0] sm:$0xff]  ;;  %v9983_v19 = vld [vmem:[%s13862_s10 + $0xdb] sm:$0xff] }
 0x218   : > { %12574 = vmatprep.mubr.bf16.mxu0 %v14752_v17  ;;  %12603 = vmatpush3.bf16.msra.mxu0 %v13730_v40  ;;  %v9969_v17 = vld [vmem:[%s13862_s10 + $0x33] sm:$0xff]  ;;  %v13739_v40 = vld [vmem:[%s15758_s1 + $0x268] sm:$0xff]  }
 0x219   : > { %12604 = vmatprep.subr.bf16.mxu0 %v13732_v54  ;;  %v3101_v63 = vpack.c.bf16 %v9970_v33, %v9969_v17  ;;  %v7558_v17 = vpack.c.bf16 %v10670_v62, %v10669_v38  ;;  %v13752_v38 = vld [vmem:[%s15758_s1 + $0x5b8] sm:$0xff]  }
 0x21a   : > { %v10026_v62 = vld [vmem:[%s13862_s10 + $0x3c] sm:$0xff] }
 0x21c   : > { %12605 = vmatpush3.bf16.msra.mxu0 %v13732_v54  ;;  %v9981_v54 = vld [vmem:[%s13862_s10 + $0xc3] sm:$0xff] }
 0x21d   : > { %12606 = vmatprep.subr.bf16.mxu0 %v13734_v21 }
 0x21e   : > { %11967 = vmatmul.mubr.bf16.gmra.mrb[28].mxu1 %v15100_v26 }
 0x21f   : > { %12575 = vmatmul.mubr.bf16.gmra.mrb[12].mxu0 %v14754_v57  ;;  %11986 = vmatprep.mubr.bf16.mxu1 %v3100_v51  ;;  %v3102_v57 = vpack.c.bf16 %v9972_v45, %v9971_v14  ;;  %v13741_v51 = vld [vmem:[%s15758_s1 + $0x270] sm:$0xff]   ;;  %v13743_v14 = vld [vmem:[%s15758_s1 + $0x278] sm:$0xff]  }
 0x220   : > { %12578 = vmatprep.mubr.bf16.mxu0 %v14772_v36  ;;  %12607 = vmatpush3.bf16.msra.mxu0 %v13734_v21  ;;  %v9973_v36 = vld [vmem:[%s13862_s10 + $0x63] sm:$0xff]  ;;  %v9985_v45 = vld [vmem:[%s13862_s10 + $0xf3] sm:$0xff] }
 0x221   : > { %12608 = vmatprep.subr.bf16.mxu0 %v13736_v24  ;;  %v9984_v21 = vld [vmem:[%s13862_s10 + $0xe3] sm:$0xff] }
 0x222   : > { %v15173_v33 = vpack.c.bf16 %v9984_v21, %v9983_v19  ;;  %v10027_v19 = vld [vmem:[%s13862_s10 + $0x4c] sm:$0xff]  ;;  %v10028_v21 = vld [vmem:[%s13862_s10 + $0x54] sm:$0xff] }
 0x224   : > { %12609 = vmatpush3.bf16.msra.mxu0 %v13736_v24  ;;  %v15171_v24 = vpack.c.bf16 %v9982_v1, %v9981_v54  ;;  %v13750_v54 = vld [vmem:[%s15758_s1 + $0x5b0] sm:$0xff]  }
 0x225   : > { %12642 = vmatprep.subr.bf16.mxu0 %v15115_v52 }
 0x226   : > { %11987 = vmatmul.mubr.bf16.vlgmr.msra.gmra.mrb[0].mxu1 %v3101_v63  ;;  %v9986_v63 = vld [vmem:[%s13862_s10 + $0xfb] sm:$0xff] }
 0x227   : > { %12579 = vmatmul.mubr.bf16.gmra.mrb[16].mxu0 %v14774_v23  ;;  %12019 = vmatpush3.bf16.msra.mxu1 %v15042_v16  ;;  %v15131_v23 = vpack.c.bf16 %v9974_v48, %v9973_v36  ;;  %v15133_v16 = vpack.c.bf16 %v9976_v39, %v9975_v0  ;;  %v15188_v36 = vld [vmem:[%s15758_s1 + $0x280] sm:$0xff]   ;;  %v15190_v48 = vpack.c.bf16 %v9986_v63, %v9985_v45  ;;  %v10030_v45 = vld [vmem:[%s13862_s10 + $0x6c] sm:$0xff] }
 0x228   : > { %11990 = vmatprep.mubr.bf16.mxu1 %v3102_v57  ;;  %12582 = vmatprep.mubr.bf16.mxu0 %v14790_v44  ;;  %v13735_v44 = vld [vmem:[%s15758_s1 + $0x258] sm:$0xff]   ;;  %v9987_v57 = vld [vmem:[%s13862_s10 + $0x10b] sm:$0xff]  ;;  %v9989_v39 = vld [vmem:[%s13862_s10 + $0x123] sm:$0xff] }
 0x229   : > { %12020 = vmatprep.subr.bf16.mxu1 %v13731_v34  ;;  %v10031_v63 = vld [vmem:[%s13862_s10 + $0x7c] sm:$0xff] }
 0x22b   : > { %12021 = vmatpush3.bf16.msra.mxu1 %v13731_v34  ;;  %v9988_v34 = vld [vmem:[%s13862_s10 + $0x113] sm:$0xff] }
 0x22c   : > { %12022 = vmatprep.subr.bf16.mxu1 %v13733_v8  ;;  %v15192_v0 = vpack.c.bf16 %v9988_v34, %v9987_v57  ;;  %v10032_v57 = vld [vmem:[%s13862_s10 + $0x84] sm:$0xff]  ;;  %v13749_v34 = vld [vmem:[%s15758_s1 + $0x290] sm:$0xff]  }
 0x22e   : > { %11991 = vmatmul.mubr.bf16.gmra.mrb[4].mxu1 %v15131_v23 }
 0x22f   : > { %12583 = vmatmul.mubr.bf16.gmra.mrb[20].mxu0 %v14792_v29  ;;  %11994 = vmatprep.mubr.bf16.mxu1 %v15133_v16  ;;  %v13737_v29 = vld [vmem:[%s15758_s1 + $0x260] sm:$0xff]  }
 0x230   : > { %12586 = vmatprep.mubr.bf16.mxu0 %v14808_v3  ;;  %12023 = vmatpush3.bf16.msra.mxu1 %v13733_v8  ;;  %v7556_v3 = vpack.c.bf16 %v10666_v22, %v10665_v56  ;;  %v9990_v8 = vld [vmem:[%s13862_s10 + $0x12b] sm:$0xff]  ;;  %v9994_v22 = vld [vmem:[%s13862_s10 + $0x15b] sm:$0xff] }
 0x231   : > { %12024 = vmatprep.subr.bf16.mxu1 %v13735_v44 }
 0x234   : > { %12025 = vmatpush3.bf16.msra.mxu1 %v13735_v44  ;;  %v9991_v44 = vld [vmem:[%s13862_s10 + $0x13b] sm:$0xff] }
 0x235   : > { %12026 = vmatprep.subr.bf16.mxu1 %v13737_v29  ;;  %v15212_v56 = vpack.c.bf16 %v9992_v50, %v9991_v44  ;;  %v10722_v44 = vld [vmem:[%s13862_s10 + $0x1a1] sm:$0xff]  ;;  %v10035_v50 = vld [vmem:[%s13862_s10 + $0xac] sm:$0xff] }
 0x236   : > { %11995 = vmatmul.mubr.bf16.gmra.mrb[8].mxu1 %v15153_v7 }
 0x237   : > { %12587 = vmatmul.mubr.bf16.gmra.mrb[24].mxu0 %v7556_v3  ;;  %11998 = vmatprep.mubr.bf16.mxu1 %v15155_v55  ;;  %v9998_v3 = vld [vmem:[%s13862_s10 + $0x18b] sm:$0xff] }
 0x238   : > { %12590 = vmatprep.mubr.bf16.mxu0 %v7557_v37  ;;  %12027 = vmatpush3.bf16.msra.mxu1 %v13737_v29  ;;  %v9997_v29 = vld [vmem:[%s13862_s10 + $0x183] sm:$0xff] }
 0x239   : > { %12028 = vmatprep.subr.bf16.mxu1 %v13739_v40  ;;  %v10023_v37 = vld [vmem:[%s13862_s10 + $0x1c] sm:$0xff]  ;;  %v15246_v1 = vpack.c.bf16 %v9998_v3, %v9997_v29  ;;  %v10038_v29 = vld [vmem:[%s13862_s10 + $0xcc] sm:$0xff] }
 0x23a   : > { %v10725_v3 = vld [vmem:[%s13862_s10 + $0x1c9] sm:$0xff] }
 0x23c   : > { %12029 = vmatpush3.bf16.msra.mxu1 %v13739_v40  ;;  %v10024_v40 = vld [vmem:[%s13862_s10 + $0x24] sm:$0xff] }
 0x23d   : > { %12030 = vmatprep.subr.bf16.mxu1 %v13741_v51 }
 0x23e   : > { %11999 = vmatmul.mubr.bf16.gmra.mrb[12].mxu1 %v15171_v24 }
 0x23f   : > { %12591 = vmatmul.mubr.bf16.gmra.mrb[28].mxu0 %v7558_v17  ;;  %12002 = vmatprep.mubr.bf16.mxu1 %v15173_v33 }
 0x240   : > { %12610 = vmatprep.mubr.bf16.mxu0 %v14839_v5  ;;  %12031 = vmatpush3.bf16.msra.mxu1 %v13741_v51  ;;  %v13740_v5 = vld [vmem:[%s15758_s1 + $0x588] sm:$0xff]   ;;  %v15261_v51 = vld [vmem:[%s15758_s1 + $0x5c0] sm:$0xff]  }
 0x241   : > { %12032 = vmatprep.subr.bf16.mxu1 %v13743_v14 }
 0x244   : > { %12033 = vmatpush3.bf16.msra.mxu1 %v13743_v14  ;;  %v13747_v14 = vld [vmem:[%s15758_s1 + $0x288] sm:$0xff]  }
 0x245   : > { %12066 = vmatprep.subr.bf16.mxu1 %v15188_v36 }
 0x246   : > { %12003 = vmatmul.mubr.bf16.gmra.mrb[16].mxu1 %v15190_v48 }
 0x247   : > { %12611 = vmatmul.mubr.bf16.vlgmr.msra.gmra.mrb[0].mxu0 %v14841_v31  ;;  %12006 = vmatprep.mubr.bf16.mxu1 %v15192_v0  ;;  %v15210_v31 = vpack.c.bf16 %v9990_v8, %v9989_v39  ;;  %v10034_v39 = vld [vmem:[%s13862_s10 + $0x9c] sm:$0xff] }
 0x248   : > { %12643 = vmatpush3.bf16.msra.mxu0 %v15115_v52  ;;  %12614 = vmatprep.mubr.bf16.mxu0 %v14861_v12  ;;  %v13744_v52 = vld [vmem:[%s15758_s1 + $0x598] sm:$0xff]  }
 0x249   : > { %12644 = vmatprep.subr.bf16.mxu0 %v13740_v5  ;;  %v9993_v12 = vld [vmem:[%s13862_s10 + $0x153] sm:$0xff] }
 0x24a   : > { %v15228_v20 = vpack.c.bf16 %v9994_v22, %v9993_v12  ;;  %v10721_v8 = vld [vmem:[%s13862_s10 + $0x199] sm:$0xff] }
 0x24b   : > { %v10724_v12 = vld [vmem:[%s13862_s10 + $0x1b9] sm:$0xff] }
 0x24c   : > { %12645 = vmatpush3.bf16.msra.mxu0 %v13740_v5  ;;  %v10033_v5 = vld [vmem:[%s13862_s10 + $0x94] sm:$0xff] }
 0x24d   : > { %12646 = vmatprep.subr.bf16.mxu0 %v13742_v61  ;;  %v15299_v22 = vpack.c.bf16 %v10034_v39, %v10033_v5  ;;  %v10048_v5 = vld [vmem:[%s13862_s10 + $0x144] sm:$0xff]  ;;  %v13758_v39 = vld [vmem:[%s15758_s1 + $0x5d0] sm:$0xff]  }
 0x24e   : > { %12007 = vmatmul.mubr.bf16.gmra.mrb[20].mxu1 %v15210_v31 }
 0x24f   : > { %12615 = vmatmul.mubr.bf16.gmra.mrb[4].mxu0 %v14863_v13  ;;  %12010 = vmatprep.mubr.bf16.mxu1 %v15212_v56  ;;  %v15230_v13 = vpack.c.bf16 %v9996_v27, %v9995_v30 }
 0x250   : > { %12618 = vmatprep.mubr.bf16.mxu0 %v14879_v43  ;;  %12647 = vmatpush3.bf16.msra.mxu0 %v13742_v61  ;;  %v13748_v43 = vld [vmem:[%s15758_s1 + $0x5a8] sm:$0xff]   ;;  %v10036_v61 = vld [vmem:[%s13862_s10 + $0xb4] sm:$0xff] }
 0x251   : > { %12648 = vmatprep.subr.bf16.mxu0 %v13744_v52  ;;  %v15303_v30 = vpack.c.bf16 %v10036_v61, %v10035_v50  ;;  %v10051_v50 = vld [vmem:[%s13862_s10 + $0x16c] sm:$0xff]  ;;  %v10052_v61 = vld [vmem:[%s13862_s10 + $0x174] sm:$0xff] }
 0x254   : > { %12649 = vmatpush3.bf16.msra.mxu0 %v13744_v52  ;;  %v10723_v52 = vld [vmem:[%s13862_s10 + $0x1b1] sm:$0xff] }
 0x255   : > { %12650 = vmatprep.subr.bf16.mxu0 %v13746_v47  ;;  %v7927_v27 = vpack.c.bf16 %v10724_v12, %v10723_v52  ;;  %v13762_v52 = vld [vmem:[%s15758_s1 + $0x5e0] sm:$0xff]  }
 0x256   : > { %12011 = vmatmul.mubr.bf16.gmra.mrb[24].mxu1 %v15228_v20 }
 0x257   : > { %12619 = vmatmul.mubr.bf16.gmra.mrb[8].mxu0 %v14881_v18  ;;  %12014 = vmatprep.mubr.bf16.mxu1 %v15230_v13  ;;  %v3470_v18 = vpack.c.bf16 %v10024_v40, %v10023_v37  ;;  %v10726_v37 = vld [vmem:[%s13862_s10 + $0x1d1] sm:$0xff]  ;;  %v10039_v40 = vld [vmem:[%s13862_s10 + $0xdc] sm:$0xff] }
 0x258   : > { %12622 = vmatprep.mubr.bf16.mxu0 %v14898_v58  ;;  %12651 = vmatpush3.bf16.msra.mxu0 %v13746_v47  ;;  %v10025_v58 = vld [vmem:[%s13862_s10 + $0x34] sm:$0xff]  ;;  %v13755_v47 = vld [vmem:[%s15758_s1 + $0x2a8] sm:$0xff]  }
 0x259   : > { %12652 = vmatprep.subr.bf16.mxu0 %v13748_v43  ;;  %v3471_v17 = vpack.c.bf16 %v10026_v62, %v10025_v58  ;;  %v7928_v58 = vpack.c.bf16 %v10726_v37, %v10725_v3  ;;  %v13768_v37 = vld [vmem:[%s15758_s1 + $0x5f8] sm:$0xff]  }
 0x25c   : > { %12653 = vmatpush3.bf16.msra.mxu0 %v13748_v43  ;;  %v10037_v43 = vld [vmem:[%s13862_s10 + $0xc4] sm:$0xff] }
 0x25d   : > { %12654 = vmatprep.subr.bf16.mxu0 %v13750_v54 }
 0x25e   : > { %12015 = vmatmul.mubr.bf16.gmra.mrb[28].mxu1 %v15246_v1 }
 0x25f   : > { %12623 = vmatmul.mubr.bf16.gmra.mrb[12].mxu0 %v14900_v60  ;;  %12034 = vmatprep.mubr.bf16.mxu1 %v3470_v18  ;;  %v3472_v60 = vpack.c.bf16 %v10028_v21, %v10027_v19  ;;  %v13757_v18 = vld [vmem:[%s15758_s1 + $0x2b0] sm:$0xff]   ;;  %v13759_v19 = vld [vmem:[%s15758_s1 + $0x2b8] sm:$0xff]  }
 0x260   : > { %12626 = vmatprep.mubr.bf16.mxu0 %v14918_v41  ;;  %12655 = vmatpush3.bf16.msra.mxu0 %v13750_v54  ;;  %v10029_v41 = vld [vmem:[%s13862_s10 + $0x64] sm:$0xff]  ;;  %v10041_v21 = vld [vmem:[%s13862_s10 + $0xf4] sm:$0xff] }
 0x261   : > { %12656 = vmatprep.subr.bf16.mxu0 %v13752_v38  ;;  %v10040_v54 = vld [vmem:[%s13862_s10 + $0xe4] sm:$0xff] }
 0x262   : > { %v15322_v62 = vpack.c.bf16 %v10040_v54, %v10039_v40  ;;  %v10082_v40 = vld [vmem:[%s13862_s10 + $0x50] sm:$0xff]  ;;  %v10083_v54 = vld [vmem:[%s13862_s10 + $0x60] sm:$0xff] }
 0x264   : > { %12657 = vmatpush3.bf16.msra.mxu0 %v13752_v38  ;;  %v15320_v38 = vpack.c.bf16 %v10038_v29, %v10037_v43  ;;  %v10080_v43 = vld [vmem:[%s13862_s10 + $0x38] sm:$0xff]  ;;  %v13766_v29 = vld [vmem:[%s15758_s1 + $0x5f0] sm:$0xff]  }
 0x265   : > { %12690 = vmatprep.subr.bf16.mxu0 %v15261_v51 }
 0x266   : > { %12035 = vmatmul.mubr.bf16.vlgmr.msra.gmra.mrb[0].mxu1 %v3471_v17  ;;  %v10042_v17 = vld [vmem:[%s13862_s10 + $0xfc] sm:$0xff] }
 0x267   : > { %12627 = vmatmul.mubr.bf16.gmra.mrb[16].mxu0 %v14920_v10  ;;  %12067 = vmatpush3.bf16.msra.mxu1 %v15188_v36  ;;  %v15277_v10 = vpack.c.bf16 %v10030_v45, %v10029_v41  ;;  %v15279_v36 = vpack.c.bf16 %v10032_v57, %v10031_v63  ;;  %v15337_v41 = vld [vmem:[%s15758_s1 + $0x2c0] sm:$0xff]   ;;  %v15339_v45 = vpack.c.bf16 %v10042_v17, %v10041_v21  ;;  %v13763_v21 = vld [vmem:[%s15758_s1 + $0x2c8] sm:$0xff]  }
 0x268   : > { %12038 = vmatprep.mubr.bf16.mxu1 %v3472_v60  ;;  %12630 = vmatprep.mubr.bf16.mxu0 %v14936_v9  ;;  %v13751_v9 = vld [vmem:[%s15758_s1 + $0x298] sm:$0xff]   ;;  %v10043_v60 = vld [vmem:[%s13862_s10 + $0x10c] sm:$0xff]  ;;  %v10045_v57 = vld [vmem:[%s13862_s10 + $0x124] sm:$0xff] }
 0x269   : > { %12068 = vmatprep.subr.bf16.mxu1 %v13747_v14  ;;  %v10086_v17 = vld [vmem:[%s13862_s10 + $0x80] sm:$0xff] }
 0x26b   : > { %12069 = vmatpush3.bf16.msra.mxu1 %v13747_v14  ;;  %v10044_v14 = vld [vmem:[%s13862_s10 + $0x114] sm:$0xff] }
 0x26c   : > { %12070 = vmatprep.subr.bf16.mxu1 %v13749_v34  ;;  %v15341_v63 = vpack.c.bf16 %v10044_v14, %v10043_v60  ;;  %v10087_v60 = vld [vmem:[%s13862_s10 + $0x90] sm:$0xff]  ;;  %v10088_v14 = vld [vmem:[%s13862_s10 + $0x98] sm:$0xff] }
 0x26e   : > { %12039 = vmatmul.mubr.bf16.gmra.mrb[4].mxu1 %v15277_v10 }
 0x26f   : > { %12631 = vmatmul.mubr.bf16.gmra.mrb[20].mxu0 %v14938_v6  ;;  %12042 = vmatprep.mubr.bf16.mxu1 %v15279_v36  ;;  %v13753_v6 = vld [vmem:[%s15758_s1 + $0x2a0] sm:$0xff]  }
 0x270   : > { %12634 = vmatprep.mubr.bf16.mxu0 %v14954_v2  ;;  %12071 = vmatpush3.bf16.msra.mxu1 %v13749_v34  ;;  %v15301_v2 = vpack.c.bf16 %v10722_v44, %v10721_v8  ;;  %v10046_v34 = vld [vmem:[%s13862_s10 + $0x12c] sm:$0xff]  ;;  %v10050_v44 = vld [vmem:[%s13862_s10 + $0x15c] sm:$0xff] }
 0x271   : > { %12072 = vmatprep.subr.bf16.mxu1 %v13751_v9 }
 0x274   : > { %12073 = vmatpush3.bf16.msra.mxu1 %v13751_v9  ;;  %v10047_v9 = vld [vmem:[%s13862_s10 + $0x13c] sm:$0xff] }
 0x275   : > { %12074 = vmatprep.subr.bf16.mxu1 %v13753_v6  ;;  %v15361_v8 = vpack.c.bf16 %v10048_v5, %v10047_v9  ;;  %v10777_v9 = vld [vmem:[%s13862_s10 + $0x19a] sm:$0xff]  ;;  %v10778_v5 = vld [vmem:[%s13862_s10 + $0x1a2] sm:$0xff] }
 0x276   : > { %12043 = vmatmul.mubr.bf16.gmra.mrb[8].mxu1 %v15299_v22 }
 0x277   : > { %12635 = vmatmul.mubr.bf16.gmra.mrb[24].mxu0 %v15301_v2  ;;  %12046 = vmatprep.mubr.bf16.mxu1 %v15303_v30 }
 0x278   : > { %12638 = vmatprep.mubr.bf16.mxu0 %v7927_v27  ;;  %12075 = vmatpush3.bf16.msra.mxu1 %v13753_v6  ;;  %v10053_v6 = vld [vmem:[%s13862_s10 + $0x184] sm:$0xff]  ;;  %v10054_v27 = vld [vmem:[%s13862_s10 + $0x18c] sm:$0xff] }
 0x279   : > { %12076 = vmatprep.subr.bf16.mxu1 %v13755_v47  ;;  %v15395_v3 = vpack.c.bf16 %v10054_v27, %v10053_v6  ;;  %v10093_v6 = vld [vmem:[%s13862_s10 + $0xd8] sm:$0xff]  ;;  %v10094_v27 = vld [vmem:[%s13862_s10 + $0xe0] sm:$0xff] }
 0x27c   : > { %12077 = vmatpush3.bf16.msra.mxu1 %v13755_v47  ;;  %v10079_v47 = vld [vmem:[%s13862_s10 + $0x30] sm:$0xff] }
 0x27d   : > { %12078 = vmatprep.subr.bf16.mxu1 %v13757_v18 }
 0x27e   : > { %12047 = vmatmul.mubr.bf16.gmra.mrb[12].mxu1 %v15320_v38 }
 0x27f   : > { %12639 = vmatmul.mubr.bf16.gmra.mrb[28].mxu0 %v7928_v58  ;;  %12050 = vmatprep.mubr.bf16.mxu1 %v15322_v62  ;;  %v15410_v58 = vld [vmem:[%s15758_s1 + $0x600] sm:$0xff]  }
 0x280   : > { %12658 = vmatprep.mubr.bf16.mxu0 %v14985_v25  ;;  %12079 = vmatpush3.bf16.msra.mxu1 %v13757_v18  ;;  %v13756_v25 = vld [vmem:[%s15758_s1 + $0x5c8] sm:$0xff]  }
 0x281   : > { %12080 = vmatprep.subr.bf16.mxu1 %v13759_v19  ;;  %v10084_v18 = vld [vmem:[%s13862_s10 + $0x68] sm:$0xff] }
 0x284   : > { %12081 = vmatpush3.bf16.msra.mxu1 %v13759_v19 }
 0x285   : > { %12114 = vmatprep.subr.bf16.mxu1 %v15337_v41 }
 0x286   : > { %12051 = vmatmul.mubr.bf16.gmra.mrb[16].mxu1 %v15339_v45 }
 0x287   : > { %12659 = vmatmul.mubr.bf16.vlgmr.msra.gmra.mrb[0].mxu0 %v14987_v11  ;;  %12054 = vmatprep.mubr.bf16.mxu1 %v15341_v63  ;;  %v15359_v11 = vpack.c.bf16 %v10046_v34, %v10045_v57  ;;  %v10089_v57 = vld [vmem:[%s13862_s10 + $0xa8] sm:$0xff]  ;;  %v10090_v34 = vld [vmem:[%s13862_s10 + $0xb0] sm:$0xff] }
 0x288   : > { %12691 = vmatpush3.bf16.msra.mxu0 %v15261_v51  ;;  %12662 = vmatprep.mubr.bf16.mxu0 %v15007_v42  ;;  %v13760_v51 = vld [vmem:[%s15758_s1 + $0x5d8] sm:$0xff]  }
 0x289   : > { %12692 = vmatprep.subr.bf16.mxu0 %v13756_v25  ;;  %v10049_v42 = vld [vmem:[%s13862_s10 + $0x154] sm:$0xff] }
 0x28a   : > { %v15377_v12 = vpack.c.bf16 %v10050_v44, %v10049_v42  ;;  %v10779_v42 = vld [vmem:[%s13862_s10 + $0x1b2] sm:$0xff]  ;;  %v10780_v44 = vld [vmem:[%s13862_s10 + $0x1ba] sm:$0xff] }
 0x28c   : > { %12693 = vmatpush3.bf16.msra.mxu0 %v13756_v25  ;;  %v13765_v25 = vld [vmem:[%s15758_s1 + $0x2d0] sm:$0xff]  }
 0x28d   : > { %12694 = vmatprep.subr.bf16.mxu0 %v13758_v39 }
 0x28e   : > { %12055 = vmatmul.mubr.bf16.gmra.mrb[20].mxu1 %v15359_v11 }
 0x28f   : > { %12663 = vmatmul.mubr.bf16.gmra.mrb[4].mxu0 %v15009_v53  ;;  %12058 = vmatprep.mubr.bf16.mxu1 %v15361_v8  ;;  %v15379_v53 = vpack.c.bf16 %v10052_v61, %v10051_v50  ;;  %v3846_v50 = vpack.c.bf16 %v10090_v34, %v10089_v57  ;;  %v15442_v61 = vpack.c.bf16 %v10778_v5, %v10777_v9  ;;  %v13774_v57 = vld [vmem:[%s15758_s1 + $0x610] sm:$0xff]   ;;  %v13776_v9 = vld [vmem:[%s15758_s1 + $0x618] sm:$0xff]   ;;  %v10107_v5 = vld [vmem:[%s13862_s10 + $0x180] sm:$0xff] }
 0x290   : > { %12666 = vmatprep.mubr.bf16.mxu0 %v15025_v59  ;;  %12695 = vmatpush3.bf16.msra.mxu0 %v13758_v39  ;;  %v13764_v59 = vld [vmem:[%s15758_s1 + $0x5e8] sm:$0xff]   ;;  %v10091_v39 = vld [vmem:[%s13862_s10 + $0xc0] sm:$0xff] }
 0x291   : > { %12696 = vmatprep.subr.bf16.mxu0 %v13760_v51 }
 0x294   : > { %12697 = vmatpush3.bf16.msra.mxu0 %v13760_v51  ;;  %v10092_v51 = vld [vmem:[%s13862_s10 + $0xc8] sm:$0xff] }
 0x295   : > { %12698 = vmatprep.subr.bf16.mxu0 %v13762_v52 }
 0x296   : > { %12059 = vmatmul.mubr.bf16.gmra.mrb[24].mxu1 %v15377_v12 }
 0x297   : > { %12667 = vmatmul.mubr.bf16.gmra.mrb[8].mxu0 %v15027_v46  ;;  %12062 = vmatprep.mubr.bf16.mxu1 %v15379_v53  ;;  %v3841_v46 = vpack.c.bf16 %v10080_v43, %v10079_v47  ;;  %v10781_v47 = vld [vmem:[%s13862_s10 + $0x1ca] sm:$0xff]  ;;  %v10782_v43 = vld [vmem:[%s13862_s10 + $0x1d2] sm:$0xff] }
 0x298   : > { %12670 = vmatprep.mubr.bf16.mxu0 %v15044_v35  ;;  %12699 = vmatpush3.bf16.msra.mxu0 %v13762_v52  ;;  %v10081_v35 = vld [vmem:[%s13862_s10 + $0x48] sm:$0xff]  ;;  %v8297_v52 = vpack.c.bf16 %v10780_v44, %v10779_v42 }
 0x299   : > { %12700 = vmatprep.subr.bf16.mxu0 %v13764_v59  ;;  %v3842_v19 = vpack.c.bf16 %v10082_v40, %v10081_v35  ;;  %v3848_v35 = vpack.c.bf16 %v10094_v27, %v10093_v6  ;;  %v8298_v40 = vpack.c.bf16 %v10782_v43, %v10781_v47  ;;  %v10138_v27 = vld [vmem:[%s13862_s10 + $0x51] sm:$0xff]  ;;  %v10139_v47 = vld [vmem:[%s13862_s10 + $0x61] sm:$0xff]  ;;  %v10140_v43 = vld [vmem:[%s13862_s10 + $0x69] sm:$0xff] }
 0x29c   : > { %12701 = vmatpush3.bf16.msra.mxu0 %v13764_v59  ;;  %v13771_v59 = vld [vmem:[%s15758_s1 + $0x2e8] sm:$0xff]  }
 0x29d   : > { %12702 = vmatprep.subr.bf16.mxu0 %v13766_v29 }
 0x29e   : > { %12063 = vmatmul.mubr.bf16.gmra.mrb[28].mxu1 %v15395_v3 }
 0x29f   : > { %12671 = vmatmul.mubr.bf16.gmra.mrb[12].mxu0 %v15046_v15  ;;  %12082 = vmatprep.mubr.bf16.mxu1 %v3841_v46  ;;  %v3843_v15 = vpack.c.bf16 %v10084_v18, %v10083_v54  ;;  %v10096_v46 = vld [vmem:[%s13862_s10 + $0xf8] sm:$0xff] }
 0x2a0   : > { %12674 = vmatprep.mubr.bf16.mxu0 %v15064_v28  ;;  %12703 = vmatpush3.bf16.msra.mxu0 %v13766_v29  ;;  %v10085_v28 = vld [vmem:[%s13862_s10 + $0x78] sm:$0xff]  ;;  %v10095_v29 = vld [vmem:[%s13862_s10 + $0xf0] sm:$0xff] }
 0x2a1   : > { %12704 = vmatprep.subr.bf16.mxu0 %v13768_v37  ;;  %v3849_v54 = vpack.c.bf16 %v10096_v46, %v10095_v29  ;;  %v13775_v18 = vld [vmem:[%s15758_s1 + $0x2f8] sm:$0xff]   ;;  %v4213_v46 = vpack.c.bf16 %v10140_v43, %v10139_v47  ;;  %v10161_v47 = vld [vmem:[%s13862_s10 + $0x169] sm:$0xff] }
 0x2a2   : > { %v10162_v43 = vld [vmem:[%s13862_s10 + $0x171] sm:$0xff] }
 0x2a4   : > { %12705 = vmatpush3.bf16.msra.mxu0 %v13768_v37  ;;  %v13773_v37 = vld [vmem:[%s15758_s1 + $0x2f0] sm:$0xff]  }
 0x2a5   : > { %12738 = vmatprep.subr.bf16.mxu0 %v15410_v58 }
 0x2a6   : > { %12083 = vmatmul.mubr.bf16.vlgmr.msra.gmra.mrb[0].mxu1 %v3842_v19  ;;  %v10097_v19 = vld [vmem:[%s13862_s10 + $0x108] sm:$0xff] }
 0x2a7   : > { %12675 = vmatmul.mubr.bf16.gmra.mrb[16].mxu0 %v15066_v32  ;;  %12115 = vmatpush3.bf16.msra.mxu1 %v15337_v41  ;;  %v3844_v32 = vpack.c.bf16 %v10086_v17, %v10085_v28  ;;  %v3845_v41 = vpack.c.bf16 %v10088_v14, %v10087_v60  ;;  %v10100_v28 = vld [vmem:[%s13862_s10 + $0x128] sm:$0xff] }
 0x2a8   : > { %12086 = vmatprep.mubr.bf16.mxu1 %v3843_v15  ;;  %12678 = vmatprep.mubr.bf16.mxu0 %v15082_v4  ;;  %v13767_v4 = vld [vmem:[%s15758_s1 + $0x2d8] sm:$0xff]   ;;  %v10098_v15 = vld [vmem:[%s13862_s10 + $0x110] sm:$0xff]  ;;  %v13772_v14 = vld [vmem:[%s15758_s1 + $0x608] sm:$0xff]  }
 0x2a9   : > { %12116 = vmatprep.subr.bf16.mxu1 %v13763_v21  ;;  %v3850_v17 = vpack.c.bf16 %v10098_v15, %v10097_v19  ;;  %v10146_v19 = vld [vmem:[%s13862_s10 + $0xb1] sm:$0xff]  ;;  %v10833_v15 = vld [vmem:[%s13862_s10 + $0x19b] sm:$0xff] }
 0x2ab   : > { %12117 = vmatpush3.bf16.msra.mxu1 %v13763_v21  ;;  %v10099_v21 = vld [vmem:[%s13862_s10 + $0x120] sm:$0xff] }
 0x2ac   : > { %12118 = vmatprep.subr.bf16.mxu1 %v13765_v25  ;;  %v3851_v60 = vpack.c.bf16 %v10100_v28, %v10099_v21  ;;  %v10834_v21 = vld [vmem:[%s13862_s10 + $0x1a3] sm:$0xff] }
 0x2ad   : > { %v10147_v28 = vld [vmem:[%s13862_s10 + $0xc1] sm:$0xff] }
 0x2ae   : > { %12087 = vmatmul.mubr.bf16.gmra.mrb[4].mxu1 %v3844_v32  ;;  %v10102_v32 = vld [vmem:[%s13862_s10 + $0x140] sm:$0xff] }
 0x2af   : > { %12679 = vmatmul.mubr.bf16.gmra.mrb[20].mxu0 %v15084_v49  ;;  %12090 = vmatprep.mubr.bf16.mxu1 %v3845_v41  ;;  %v13769_v49 = vld [vmem:[%s15758_s1 + $0x2e0] sm:$0xff]   ;;  %v10103_v41 = vld [vmem:[%s13862_s10 + $0x150] sm:$0xff] }
 0x2b0   : > { %12682 = vmatprep.mubr.bf16.mxu0 %v15100_v26  ;;  %12119 = vmatpush3.bf16.msra.mxu1 %v13765_v25  ;;  %v3847_v26 = vpack.c.bf16 %v10092_v51, %v10091_v39  ;;  %v15471_v25 = vld [vmem:[%s15758_s1 + $0x300] sm:$0xff]   ;;  %v10108_v39 = vld [vmem:[%s13862_s10 + $0x188] sm:$0xff] }
 0x2b1   : > { %12120 = vmatprep.subr.bf16.mxu1 %v13767_v4  ;;  %v13777_v51 = vld [vmem:[%s15758_s1 + $0x620] sm:$0xff]   ;;  %v3855_v44 = vpack.c.bf16 %v10108_v39, %v10107_v5 }
 0x2b4   : > { %12121 = vmatpush3.bf16.msra.mxu1 %v13767_v4  ;;  %v10104_v4 = vld [vmem:[%s13862_s10 + $0x158] sm:$0xff] }
 0x2b5   : > { %12122 = vmatprep.subr.bf16.mxu1 %v13769_v49 }
 0x2b6   : > { %12091 = vmatmul.mubr.bf16.gmra.mrb[8].mxu1 %v3846_v50  ;;  %v10135_v50 = vld [vmem:[%s13862_s10 + $0x31] sm:$0xff] }
 0x2b7   : > { %12683 = vmatmul.mubr.bf16.gmra.mrb[24].mxu0 %v15442_v61  ;;  %12094 = vmatprep.mubr.bf16.mxu1 %v3847_v26  ;;  %v10136_v26 = vld [vmem:[%s13862_s10 + $0x39] sm:$0xff] }
 0x2b8   : > { %12686 = vmatprep.mubr.bf16.mxu0 %v8297_v52  ;;  %12123 = vmatpush3.bf16.msra.mxu1 %v13769_v49  ;;  %v10110_v49 = vld [vmem:[%s13862_s10 + $0x1a0] sm:$0xff]  ;;  %v13779_v52 = vld [vmem:[%s15758_s1 + $0x630] sm:$0xff]   ;;  %v4211_v6 = vpack.c.bf16 %v10136_v26, %v10135_v50  ;;  %v13788_v50 = vld [vmem:[%s15758_s1 + $0x338] sm:$0xff]  }
 0x2b9   : > { %12124 = vmatprep.subr.bf16.mxu1 %v13771_v59 }
 0x2bc   : > { %12125 = vmatpush3.bf16.msra.mxu1 %v13771_v59 }
 0x2bd   : > { %12126 = vmatprep.subr.bf16.mxu1 %v13773_v37 }
 0x2be   : > { %12095 = vmatmul.mubr.bf16.gmra.mrb[12].mxu1 %v3848_v35  ;;  %v10144_v35 = vld [vmem:[%s13862_s10 + $0x99] sm:$0xff] }
 0x2bf   : > { %12687 = vmatmul.mubr.bf16.gmra.mrb[28].mxu0 %v8298_v40  ;;  %12098 = vmatprep.mubr.bf16.mxu1 %v3849_v54  ;;  %v13782_v40 = vld [vmem:[%s15758_s1 + $0x308] sm:$0xff]  }
 0x2c0   : > { %12706 = vmatprep.mubr.bf16.mxu0 %v15131_v23  ;;  %12127 = vmatpush3.bf16.msra.mxu1 %v13773_v37  ;;  %v10101_v23 = vld [vmem:[%s13862_s10 + $0x138] sm:$0xff]  ;;  %v10142_v37 = vld [vmem:[%s13862_s10 + $0x81] sm:$0xff] }
 0x2c1   : > { %12128 = vmatprep.subr.bf16.mxu1 %v13775_v18  ;;  %v3852_v34 = vpack.c.bf16 %v10102_v32, %v10101_v23  ;;  %v8666_v23 = vpack.c.bf16 %v10834_v21, %v10833_v15  ;;  %v10890_v15 = vld [vmem:[%s13862_s10 + $0x1a4] sm:$0xff] }
 0x2c2   : > { %v10219_v21 = vld [vmem:[%s13862_s10 + $0x182] sm:$0xff] }
 0x2c4   : > { %12129 = vmatpush3.bf16.msra.mxu1 %v13775_v18  ;;  %v13783_v18 = vld [vmem:[%s15758_s1 + $0x310] sm:$0xff]  }
 0x2c5   : > { %12786 = vmatprep.subr.bf16.mxu1 %v15471_v25 }
 0x2c6   : > { %12099 = vmatmul.mubr.bf16.gmra.mrb[16].mxu1 %v3850_v17  ;;  %v10148_v17 = vld [vmem:[%s13862_s10 + $0xc9] sm:$0xff] }
 0x2c7   : > { %12707 = vmatmul.mubr.bf16.vlgmr.msra.gmra.mrb[0].mxu0 %v15133_v16  ;;  %12102 = vmatprep.mubr.bf16.mxu1 %v3851_v60  ;;  %v3853_v16 = vpack.c.bf16 %v10104_v4, %v10103_v41  ;;  %v10835_v60 = vld [vmem:[%s13862_s10 + $0x1b3] sm:$0xff]  ;;  %v13785_v41 = vld [vmem:[%s15758_s1 + $0x320] sm:$0xff]  }
 0x2c8   : > { %12739 = vmatpush3.bf16.msra.mxu0 %v15410_v58  ;;  %12710 = vmatprep.mubr.bf16.mxu0 %v15153_v7  ;;  %v10105_v7 = vld [vmem:[%s13862_s10 + $0x168] sm:$0xff]  ;;  %v10106_v58 = vld [vmem:[%s13862_s10 + $0x170] sm:$0xff]  ;;  %v10149_v4 = vld [vmem:[%s13862_s10 + $0xd9] sm:$0xff] }
 0x2c9   : > { %12740 = vmatprep.subr.bf16.mxu0 %v13772_v14  ;;  %v3854_v42 = vpack.c.bf16 %v10106_v58, %v10105_v7  ;;  %v10152_v7 = vld [vmem:[%s13862_s10 + $0xf9] sm:$0xff]  ;;  %v13786_v58 = vld [vmem:[%s15758_s1 + $0x328] sm:$0xff]  }
 0x2cc   : > { %12741 = vmatpush3.bf16.msra.mxu0 %v13772_v14  ;;  %v10836_v14 = vld [vmem:[%s13862_s10 + $0x1bb] sm:$0xff] }
 0x2cd   : > { %12742 = vmatprep.subr.bf16.mxu0 %v13774_v57  ;;  %v8667_v32 = vpack.c.bf16 %v10836_v14, %v10835_v60 }
 0x2ce   : > { %12103 = vmatmul.mubr.bf16.gmra.mrb[20].mxu1 %v3852_v34  ;;  %v10837_v34 = vld [vmem:[%s13862_s10 + $0x1cb] sm:$0xff] }
 0x2cf   : > { %12711 = vmatmul.mubr.bf16.gmra.mrb[4].mxu0 %v15155_v55  ;;  %12106 = vmatprep.mubr.bf16.mxu1 %v3853_v16  ;;  %v13778_v55 = vld [vmem:[%s15758_s1 + $0x628] sm:$0xff]   ;;  %v10838_v16 = vld [vmem:[%s13862_s10 + $0x1d3] sm:$0xff] }
 0x2d0   : > { %12714 = vmatprep.mubr.bf16.mxu0 %v15171_v24  ;;  %12743 = vmatpush3.bf16.msra.mxu0 %v13774_v57  ;;  %v10109_v24 = vld [vmem:[%s13862_s10 + $0x198] sm:$0xff]  ;;  %v10150_v57 = vld [vmem:[%s13862_s10 + $0xe1] sm:$0xff]  ;;  %v8668_v39 = vpack.c.bf16 %v10838_v16, %v10837_v34 }
 0x2d1   : > { %12744 = vmatprep.subr.bf16.mxu0 %v13776_v9  ;;  %v3856_v59 = vpack.c.bf16 %v10110_v49, %v10109_v24  ;;  %v4218_v5 = vpack.c.bf16 %v10150_v57, %v10149_v4  ;;  %v10155_v24 = vld [vmem:[%s13862_s10 + $0x121] sm:$0xff]  ;;  %v10156_v49 = vld [vmem:[%s13862_s10 + $0x129] sm:$0xff] }
 0x2d4   : > { %12745 = vmatpush3.bf16.msra.mxu0 %v13776_v9  ;;  %v10151_v9 = vld [vmem:[%s13862_s10 + $0xf1] sm:$0xff] }
 0x2d5   : > { %12746 = vmatprep.subr.bf16.mxu0 %v13777_v51 }
 0x2d6   : > { %12107 = vmatmul.mubr.bf16.gmra.mrb[24].mxu1 %v3854_v42  ;;  %v13787_v42 = vld [vmem:[%s15758_s1 + $0x330] sm:$0xff]  }
 0x2d7   : > { %12715 = vmatmul.mubr.bf16.gmra.mrb[8].mxu0 %v15173_v33  ;;  %12110 = vmatprep.mubr.bf16.mxu1 %v3855_v44  ;;  %v13780_v33 = vld [vmem:[%s15758_s1 + $0x638] sm:$0xff]   ;;  %v10153_v44 = vld [vmem:[%s13862_s10 + $0x109] sm:$0xff] }
 0x2d8   : > { %12718 = vmatprep.mubr.bf16.mxu0 %v15190_v48  ;;  %12747 = vmatpush3.bf16.msra.mxu0 %v13777_v51  ;;  %v10137_v48 = vld [vmem:[%s13862_s10 + $0x49] sm:$0xff]  ;;  %v4219_v51 = vpack.c.bf16 %v10152_v7, %v10151_v9 }
 0x2d9   : > { %12748 = vmatprep.subr.bf16.mxu0 %v13778_v55  ;;  %v4212_v29 = vpack.c.bf16 %v10138_v27, %v10137_v48 }
 0x2dc   : > { %12749 = vmatpush3.bf16.msra.mxu0 %v13778_v55  ;;  %v10154_v55 = vld [vmem:[%s13862_s10 + $0x111] sm:$0xff] }
 0x2dd   : > { %12750 = vmatprep.subr.bf16.mxu0 %v13779_v52  ;;  %v4220_v26 = vpack.c.bf16 %v10154_v55, %v10153_v44 }
 0x2de   : > { %12111 = vmatmul.mubr.bf16.gmra.mrb[28].mxu1 %v3856_v59  ;;  %v10158_v59 = vld [vmem:[%s13862_s10 + $0x141] sm:$0xff] }
 0x2df   : > { %12719 = vmatmul.mubr.bf16.gmra.mrb[12].mxu0 %v15192_v0  ;;  %12130 = vmatprep.mubr.bf16.mxu1 %v4211_v6  ;;  %v10141_v0 = vld [vmem:[%s13862_s10 + $0x79] sm:$0xff]  ;;  %v10159_v6 = vld [vmem:[%s13862_s10 + $0x151] sm:$0xff] }
 0x2e0   : > { %12722 = vmatprep.mubr.bf16.mxu0 %v15210_v31  ;;  %12751 = vmatpush3.bf16.msra.mxu0 %v13779_v52  ;;  %v10143_v31 = vld [vmem:[%s13862_s10 + $0x91] sm:$0xff]  ;;  %v4221_v52 = vpack.c.bf16 %v10156_v49, %v10155_v24  ;;  %v15651_v49 = vld [vmem:[%s15759_s2] ss:$0 sm:$0xff] }
 0x2e1   : > { %12752 = vmatprep.subr.bf16.mxu0 %v13780_v33  ;;  %v4215_v54 = vpack.c.bf16 %v10144_v35, %v10143_v31  ;;  %v10210_v31 = vld [vmem:[%s13862_s10 + $0x112] sm:$0xff]  ;;  %v10212_v35 = vld [vmem:[%s13862_s10 + $0x12a] sm:$0xff] }
 0x2e4   : > { %12753 = vmatpush3.bf16.msra.mxu0 %v13780_v33  ;;  %v10160_v33 = vld [vmem:[%s13862_s10 + $0x159] sm:$0xff] }
 0x2e5   : > { %v4223_v27 = vpack.c.bf16 %v10160_v33, %v10159_v6 }
 0x2e6   : > { %12131 = vmatmul.mubr.bf16.vlgmr.msra.gmra.mrb[0].mxu1 %v4212_v29  ;;  %v10164_v29 = vld [vmem:[%s13862_s10 + $0x189] sm:$0xff] }
 0x2e7   : > { %12723 = vmatmul.mubr.bf16.gmra.mrb[16].mxu0 %v15212_v56  ;;  %12794 = vmatpush3.bf16.msra.mxu1 %v15471_v25  ;;  %v4214_v56 = vpack.c.bf16 %v10142_v37, %v10141_v0  ;;  %v13784_v25 = vld [vmem:[%s15758_s1 + $0x318] sm:$0xff]  }
 0x2e8   : > { %12134 = vmatprep.mubr.bf16.mxu1 %v4213_v46  ;;  %12726 = vmatprep.mubr.bf16.mxu0 %v15228_v20  ;;  %v10145_v20 = vld [vmem:[%s13862_s10 + $0xa9] sm:$0xff]  ;;  %v10208_v0 = vld [vmem:[%s13862_s10 + $0xfa] sm:$0xff] }
 0x2e9   : > { %12787 = vmatprep.subr.bf16.mxu1 %v13782_v40 }
 0x2eb   : > { %12795 = vmatpush3.bf16.msra.mxu1 %v13782_v40 }
 0x2ec   : > { %12788 = vmatprep.subr.bf16.mxu1 %v13783_v18 }
 0x2ee   : > { %12135 = vmatmul.mubr.bf16.gmra.mrb[4].mxu1 %v4214_v56  ;;  %v10216_v56 = vld [vmem:[%s13862_s10 + $0x15a] sm:$0xff] }
 0x2ef   : > { %12727 = vmatmul.mubr.bf16.gmra.mrb[20].mxu0 %v15230_v13  ;;  %12138 = vmatprep.mubr.bf16.mxu1 %v4215_v54  ;;  %v4216_v13 = vpack.c.bf16 %v10146_v19, %v10145_v20  ;;  %v10217_v20 = vld [vmem:[%s13862_s10 + $0x16a] sm:$0xff]  ;;  %v10889_v19 = vld [vmem:[%s13862_s10 + $0x19c] sm:$0xff] }
 0x2f0   : > { %12730 = vmatprep.mubr.bf16.mxu0 %v15246_v1  ;;  %12796 = vmatpush3.bf16.msra.mxu1 %v13783_v18  ;;  %v4217_v1 = vpack.c.bf16 %v10148_v17, %v10147_v28  ;;  %v10220_v28 = vld [vmem:[%s13862_s10 + $0x18a] sm:$0xff]  ;;  %v10892_v17 = vld [vmem:[%s13862_s10 + $0x1bc] sm:$0xff]  ;;  %v9036_v14 = vpack.c.bf16 %v10890_v15, %v10889_v19 }
 0x2f1   : > { %12789 = vmatprep.subr.bf16.mxu1 %v13784_v25 }
 0x2f4   : > { %12797 = vmatpush3.bf16.msra.mxu1 %v13784_v25  ;;  %v4595_v25 = vpack.c.bf16 %v10220_v28, %v10219_v21 }
 0x2f5   : > { %12790 = vmatprep.subr.bf16.mxu1 %v13785_v41 }
 0x2f6   : > { %12139 = vmatmul.mubr.bf16.gmra.mrb[8].mxu1 %v4216_v13 }
 0x2f7   : > { %12731 = vmatmul.mubr.bf16.gmra.mrb[24].mxu0 %v8666_v23  ;;  %12142 = vmatprep.mubr.bf16.mxu1 %v4217_v1  ;;  %v10894_v23 = vld [vmem:[%s13862_s10 + $0x1d4] sm:$0xff] }
 0x2f8   : > { %12734 = vmatprep.mubr.bf16.mxu0 %v8667_v32  ;;  %12798 = vmatpush3.bf16.msra.mxu1 %v13785_v41 }
 0x2f9   : > { %12791 = vmatprep.subr.bf16.mxu1 %v13786_v58 }
 0x2fc   : > { %12799 = vmatpush3.bf16.msra.mxu1 %v13786_v58 }
 0x2fd   : > { %12792 = vmatprep.subr.bf16.mxu1 %v13787_v42 }
 0x2fe   : > { %12143 = vmatmul.mubr.bf16.gmra.mrb[12].mxu1 %v4218_v5 }
 0x2ff   : > { %12735 = vmatmul.mubr.bf16.gmra.mrb[28].mxu0 %v8668_v39  ;;  %12146 = vmatprep.mubr.bf16.mxu1 %v4219_v51 }
 0x300   : > { %12754 = vmatprep.mubr.bf16.mxu0 %v15277_v10  ;;  %12800 = vmatpush3.bf16.msra.mxu1 %v13787_v42  ;;  %v10157_v10 = vld [vmem:[%s13862_s10 + $0x139] sm:$0xff] }
 0x301   : > { %12793 = vmatprep.subr.bf16.mxu1 %v13788_v50  ;;  %v4222_v48 = vpack.c.bf16 %v10158_v59, %v10157_v10 }
 0x304   : > { %12801 = vmatpush3.bf16.msra.mxu1 %v13788_v50 }
 0x306   : > { %12147 = vmatmul.mubr.bf16.gmra.mrb[16].mxu1 %v4220_v26 }
 0x307   : > { %12755 = vmatmul.mubr.bf16.vlgmr.msra.gmra.mrb[0].mxu0 %v15279_v36  ;;  %12150 = vmatprep.mubr.bf16.mxu1 %v4221_v52  ;;  %v10163_v36 = vld [vmem:[%s13862_s10 + $0x181] sm:$0xff] }
 0x308   : > { %12758 = vmatprep.mubr.bf16.mxu0 %v15299_v22  ;;  %v4224_v22 = vpack.c.bf16 %v10162_v43, %v10161_v47  ;;  %v4225_v46 = vpack.c.bf16 %v10164_v29, %v10163_v36 }
 0x30e   : > { %12151 = vmatmul.mubr.bf16.gmra.mrb[20].mxu1 %v4222_v48 }
 0x30f   : > { %12759 = vmatmul.mubr.bf16.gmra.mrb[4].mxu0 %v15303_v30  ;;  %12154 = vmatprep.mubr.bf16.mxu1 %v4223_v27  ;;  %v10207_v30 = vld [vmem:[%s13862_s10 + $0xf2] sm:$0xff] }
 0x310   : > { %12762 = vmatprep.mubr.bf16.mxu0 %v15320_v38  ;;  %v4589_v37 = vpack.c.bf16 %v10208_v0, %v10207_v30  ;;  %v10209_v38 = vld [vmem:[%s13862_s10 + $0x10a] sm:$0xff] }
 0x316   : > { %12155 = vmatmul.mubr.bf16.gmra.mrb[24].mxu1 %v4224_v22 }
 0x317   : > { %12763 = vmatmul.mubr.bf16.gmra.mrb[8].mxu0 %v15322_v62  ;;  %12158 = vmatprep.mubr.bf16.mxu1 %v4225_v46  ;;  %v10211_v62 = vld [vmem:[%s13862_s10 + $0x122] sm:$0xff] }
 0x318   : > { %12766 = vmatprep.mubr.bf16.mxu0 %v15339_v45  ;;  %v4590_v45 = vpack.c.bf16 %v10210_v31, %v10209_v38  ;;  %v4591_v40 = vpack.c.bf16 %v10212_v35, %v10211_v62 }
 0x31e   : > { %12159 = vmatmul.mubr.bf16.gmra.mrb[28].mxu1 %v15301_v2  ;;  %v10213_v2 = vld [vmem:[%s13862_s10 + $0x13a] sm:$0xff] }
 0x31f   : > { %12767 = vmatmul.mubr.bf16.gmra.mrb[12].mxu0 %v15341_v63  ;;  %12194 = vmatprep.mubr.bf16.mxu1 %v4589_v37  ;;  %v10214_v63 = vld [vmem:[%s13862_s10 + $0x142] sm:$0xff] }
 0x320   : > { %12770 = vmatprep.mubr.bf16.mxu0 %v15359_v11  ;;  %v10215_v11 = vld [vmem:[%s13862_s10 + $0x152] sm:$0xff]  ;;  %v4592_v54 = vpack.c.bf16 %v10214_v63, %v10213_v2 }
 0x321   : > { %v4593_v18 = vpack.c.bf16 %v10216_v56, %v10215_v11 }
 0x326   : > { %12195 = vmatmul.mubr.bf16.vlgmr.msra.gmra.mrb[16].mxu1 %v4590_v45 }
 0x327   : > { %12771 = vmatmul.mubr.bf16.gmra.mrb[16].mxu0 %v15361_v8  ;;  %12198 = vmatprep.mubr.bf16.mxu1 %v4591_v40  ;;  %v10218_v8 = vld [vmem:[%s13862_s10 + $0x172] sm:$0xff] }
 0x328   : > { %12774 = vmatprep.mubr.bf16.mxu0 %v15377_v12  ;;  %v10891_v12 = vld [vmem:[%s13862_s10 + $0x1b4] sm:$0xff]  ;;  %v4594_v60 = vpack.c.bf16 %v10218_v8, %v10217_v20 }
 0x329   : > { %v9037_v13 = vpack.c.bf16 %v10892_v17, %v10891_v12 }
 0x32e   : > { %12199 = vmatmul.mubr.bf16.gmra.mrb[20].mxu1 %v4592_v54 }
 0x32f   : > { %12775 = vmatmul.mubr.bf16.gmra.mrb[20].mxu0 %v15379_v53  ;;  %12202 = vmatprep.mubr.bf16.mxu1 %v4593_v18  ;;  %v10893_v53 = vld [vmem:[%s13862_s10 + $0x1cc] sm:$0xff] }
 0x330   : > { %12778 = vmatprep.mubr.bf16.mxu0 %v15395_v3  ;;  %v9038_v1 = vpack.c.bf16 %v10894_v23, %v10893_v53  ;;  %v13797_v3 = vmov 0.0  }
 0x331   : > { %9480 = vst [vmem:[%s15612_s28] sm:$0xff] %v13797_v3  ;;  %9481 = vst [vmem:[%s15612_s28 + $0x8] sm:$0xf] %v13797_v3 }
 0x332   : > { %9482 = vst [vmem:[%s15612_s28 + $0x10] sm:$0xff] %v13797_v3  ;;  %9483 = vst [vmem:[%s15612_s28 + $0x18] sm:$0xf] %v13797_v3 }
 0x333   : > { %9484 = vst [vmem:[%s15612_s28 + $0x20] sm:$0xff] %v13797_v3  ;;  %9500 = vst [vmem:[%s15612_s28 + $0xa0] sm:$0xff] %v13797_v3 }
 0x334   : > { %9501 = vst [vmem:[%s15612_s28 + $0xa8] sm:$0xf] %v13797_v3  ;;  %9502 = vst [vmem:[%s15612_s28 + $0xb0] sm:$0xff] %v13797_v3 }
 0x335   : > { %9503 = vst [vmem:[%s15612_s28 + $0xb8] sm:$0xf] %v13797_v3  ;;  %9485 = vst [vmem:[%s15612_s28 + $0x28] sm:$0xf] %v13797_v3 }
 0x336   : > { %12203 = vmatmul.mubr.bf16.gmra.mrb[24].mxu1 %v4594_v60  ;;  %9486 = vst [vmem:[%s15612_s28 + $0x30] sm:$0xff] %v13797_v3  ;;  %9487 = vst [vmem:[%s15612_s28 + $0x38] sm:$0xf] %v13797_v3 }
 0x337   : > { %12779 = vmatmul.mubr.bf16.gmra.mrb[24].mxu0 %v9036_v14  ;;  %12206 = vmatprep.mubr.bf16.mxu1 %v4595_v25  ;;  %9488 = vst [vmem:[%s15612_s28 + $0x40] sm:$0xff] %v13797_v3  ;;  %9489 = vst [vmem:[%s15612_s28 + $0x48] sm:$0xf] %v13797_v3 }
 0x338   : > { %12782 = vmatprep.mubr.bf16.mxu0 %v9037_v13  ;;  %9490 = vst [vmem:[%s15612_s28 + $0x50] sm:$0xff] %v13797_v3  ;;  %9491 = vst [vmem:[%s15612_s28 + $0x58] sm:$0xf] %v13797_v3 }
 0x339   : > { %9492 = vst [vmem:[%s15612_s28 + $0x60] sm:$0xff] %v13797_v3  ;;  %9493 = vst [vmem:[%s15612_s28 + $0x68] sm:$0xf] %v13797_v3 }
 0x33a   : > { %9494 = vst [vmem:[%s15612_s28 + $0x70] sm:$0xff] %v13797_v3  ;;  %9495 = vst [vmem:[%s15612_s28 + $0x78] sm:$0xf] %v13797_v3 }
 0x33b   : > { %9496 = vst [vmem:[%s15612_s28 + $0x80] sm:$0xff] %v13797_v3  ;;  %9497 = vst [vmem:[%s15612_s28 + $0x88] sm:$0xf] %v13797_v3 }
 0x33c   : > { %9498 = vst [vmem:[%s15612_s28 + $0x90] sm:$0xff] %v13797_v3  ;;  %9499 = vst [vmem:[%s15612_s28 + $0x98] sm:$0xf] %v13797_v3 }
 0x33e   : > { %12207 = vmatmul.mubr.bf16.gmra.mrb[28].mxu1 %v15442_v61 }
 0x33f   : > { %12783 = vmatmul.mubr.bf16.gmra.mrb[28].mxu0 %v9038_v1 }
 0x3b9   : > { %v12132_v61 = vpop.f32.mrb[0].mxu1 }
 0x3ba   : > { %v4326_v32 = vpop.f32.mrb[1].mxu1 }
 0x3bb   : > { %v12133_v41 = vpop.f32.mrb[2].mxu1 }
 0x3bc   : > { %v4329_v4 = vpop.f32.mrb[3].mxu1 }
 0x3c1   : > { %v12136_v57 = vpop.f32.mrb[4].mxu1 }
 0x3c2   : > { %v4342_v34 = vpop.f32.mrb[5].mxu1 }
 0x3c3   : > { %v12137_v16 = vpop.f32.mrb[6].mxu1 }
 0x3c4   : > { %v4345_v9 = vpop.f32.mrb[7].mxu1 }
 0x3c9   : > { %v12140_v7 = vpop.f32.mrb[8].mxu1 }
 0x3ca   : > { %v4358_v58 = vpop.f32.mrb[9].mxu1 }
 0x3cb   : > { %v12141_v5 = vpop.f32.mrb[10].mxu1 }
 0x3cc   : > { %v15638_v39 = vpop.f32.mrb[11].mxu1 }
 0x3d1   : > { %v15640_v51 = vpop.f32.mrb[12].mxu1 }
 0x3d2   : > { %v15642_v42 = vpop.f32.mrb[13].mxu1 }
 0x3d3   : > { %v15644_v44 = vpop.f32.mrb[14].mxu1 }
 0x3d4   : > { %v15646_v55 = vpop.f32.mrb[15].mxu1 }
 0x3da   : > { %v12756_v24 = vpop.f32.mrb[0].mxu0 }
 0x3db   : > { %v12802_v50 = vadd.f32 %v12756_v24, %v12132_v61  ;;  %v9138_v26 = vpop.f32.mrb[1].mxu0 }
 0x3dc   : > { %v12803_v52 = vadd.f32 %v9138_v26, %v4326_v32  ;;  %v12757_v10 = vpop.f32.mrb[2].mxu0 }
 0x3dd   : > { %v9402_v59 = vadd.f32 %v12802_v50, %v15651_v49  ;;  %v12804_v6 = vadd.f32 %v12757_v10, %v12133_v41  ;;  %v9141_v33 = vpop.f32.mrb[3].mxu0 }
 0x3de   : > { %v9400_v48 = vadd.f32 %v12803_v52, %v15651_v49  ;;  %v12805_v27 = vadd.f32 %v9141_v33, %v4329_v4 }
 0x3df   : > { %v9434_v47 = vmax.f32 %v9402_v59, 0.0  ;;  %v9403_v43 = vadd.f32 %v12804_v6, %v15651_v49 }
 0x3e0   : > { %v9432_v36 = vmax.f32 %v9400_v48, 0.0  ;;  %v9401_v29 = vadd.f32 %v12805_v27, %v15651_v49 }
 0x3e1   : > { %v9435_v22 = vmax.f32 %v9403_v43, 0.0 }
 0x3e2   : > { %v9464_v46 = vmax.f32 %v9432_v36, %v9434_v47  ;;  %v9433_v30 = vmax.f32 %v9401_v29, 0.0  ;;  %v12760_v0 = vpop.f32.mrb[4].mxu0 }
 0x3e3   : > { %v12806_v37 = vadd.f32 %v12760_v0, %v12136_v57  ;;  %v9154_v38 = vpop.f32.mrb[5].mxu0 }
 0x3e4   : > { %v9512_v31 = vrot.slane %v9464_v46, 1  ;;  %v9465_v62 = vmax.f32 %v9433_v30, %v9435_v22  ;;  %v12807_v35 = vadd.f32 %v9154_v38, %v4342_v34  ;;  %v12761_v45 = vpop.f32.mrb[6].mxu0 }
 0x3e5   : > { %v9406_v40 = vadd.f32 %v12806_v37, %v15651_v49  ;;  %v12808_v2 = vadd.f32 %v12761_v45, %v12137_v16  ;;  %v9157_v63 = vpop.f32.mrb[7].mxu0 }
 0x3e6   : > { %v9528_v11 = vmax.f32 %v9464_v46, %v9512_v31  ;;  %v9577_v56 = vrot.slane %v9465_v62, 1  ;;  %v9404_v54 = vadd.f32 %v12807_v35, %v15651_v49  ;;  %v12809_v18 = vadd.f32 %v9157_v63, %v4345_v9 }
 0x3e7   : > { %v9438_v20 = vmax.f32 %v9406_v40, 0.0  ;;  %v9407_v8 = vadd.f32 %v12808_v2, %v15651_v49 }
 0x3e8   : > { %10920 = vst [vmem:[%s15612_s28 + $0x22] sm:$0x1] %v9528_v11  ;;  %10928 = vst [vmem:[%s15612_s28 + $0x21] sm:$0x4] %v9528_v11  ;;  %v9593_v19 = vmax.f32 %v9465_v62, %v9577_v56  ;;  %v9436_v15 = vmax.f32 %v9404_v54, 0.0  ;;  %v9405_v21 = vadd.f32 %v12809_v18, %v15651_v49 }
 0x3e9   : > { %10936 = vst [vmem:[%s15612_s28 + $0x20] sm:$0x10] %v9528_v11  ;;  %10944 = vst [vmem:[%s15612_s28 + $0x1f] sm:$0x40] %v9528_v11  ;;  %v9439_v28 = vmax.f32 %v9407_v8, 0.0 }
 0x3ea   : > { %10952 = vst [vmem:[%s15612_s28 + $0x26] sm:$0x1] %v9593_v19  ;;  %10960 = vst [vmem:[%s15612_s28 + $0x25] sm:$0x4] %v9593_v19  ;;  %v9466_v12 = vmax.f32 %v9436_v15, %v9438_v20  ;;  %v9437_v17 = vmax.f32 %v9405_v21, 0.0  ;;  %v12764_v60 = vpop.f32.mrb[8].mxu0 }
 0x3eb   : > { %10968 = vst [vmem:[%s15612_s28 + $0x24] sm:$0x10] %v9593_v19  ;;  %10976 = vst [vmem:[%s15612_s28 + $0x23] sm:$0x40] %v9593_v19  ;;  %v12810_v14 = vadd.f32 %v12764_v60, %v12140_v7  ;;  %v9170_v25 = vpop.f32.mrb[9].mxu0 }
 0x3ec   : > { %v9513_v13 = vrot.slane %v9466_v12, 1  ;;  %v9467_v53 = vmax.f32 %v9437_v17, %v9439_v28  ;;  %v12811_v23 = vadd.f32 %v9170_v25, %v4358_v58  ;;  %v12765_v1 = vpop.f32.mrb[10].mxu0 }
 0x3ed   : > { %v9410_v3 = vadd.f32 %v12810_v14, %v15651_v49  ;;  %v12812_v61 = vadd.f32 %v12765_v1, %v12141_v5  ;;  %v9173_v32 = vpop.f32.mrb[11].mxu0 }
 0x3ee   : > { %v9529_v41 = vmax.f32 %v9466_v12, %v9513_v13  ;;  %v9578_v4 = vrot.slane %v9467_v53, 1  ;;  %v9408_v57 = vadd.f32 %v12811_v23, %v15651_v49  ;;  %v12813_v34 = vadd.f32 %v9173_v32, %v15638_v39 }
 0x3ef   : > { %v9442_v16 = vmax.f32 %v9410_v3, 0.0  ;;  %v9411_v9 = vadd.f32 %v12812_v61, %v15651_v49 }
 0x3f0   : > { %10921 = vst [vmem:[%s15612_s28 + $0x32] sm:$0x1] %v9529_v41  ;;  %10929 = vst [vmem:[%s15612_s28 + $0x31] sm:$0x4] %v9529_v41  ;;  %v9594_v7 = vmax.f32 %v9467_v53, %v9578_v4  ;;  %v9440_v58 = vmax.f32 %v9408_v57, 0.0  ;;  %v9409_v5 = vadd.f32 %v12813_v34, %v15651_v49 }
 0x3f1   : > { %10937 = vst [vmem:[%s15612_s28 + $0x30] sm:$0x10] %v9529_v41  ;;  %10945 = vst [vmem:[%s15612_s28 + $0x2f] sm:$0x40] %v9529_v41  ;;  %v9443_v24 = vmax.f32 %v9411_v9, 0.0 }
 0x3f2   : > { %10953 = vst [vmem:[%s15612_s28 + $0x36] sm:$0x1] %v9594_v7  ;;  %10961 = vst [vmem:[%s15612_s28 + $0x35] sm:$0x4] %v9594_v7  ;;  %v9468_v50 = vmax.f32 %v9440_v58, %v9442_v16  ;;  %v9441_v26 = vmax.f32 %v9409_v5, 0.0  ;;  %v12768_v52 = vpop.f32.mrb[12].mxu0 }
 0x3f3   : > { %10969 = vst [vmem:[%s15612_s28 + $0x34] sm:$0x10] %v9594_v7  ;;  %10977 = vst [vmem:[%s15612_s28 + $0x33] sm:$0x40] %v9594_v7  ;;  %v12814_v39 = vadd.f32 %v12768_v52, %v15640_v51  ;;  %v9186_v10 = vpop.f32.mrb[13].mxu0 }
 0x3f4   : > { %v9514_v59 = vrot.slane %v9468_v50, 1  ;;  %v9469_v6 = vmax.f32 %v9441_v26, %v9443_v24  ;;  %v12815_v33 = vadd.f32 %v9186_v10, %v15642_v42  ;;  %v12769_v48 = vpop.f32.mrb[14].mxu0 }
 0x3f5   : > { %v9414_v27 = vadd.f32 %v12814_v39, %v15651_v49  ;;  %v12816_v47 = vadd.f32 %v12769_v48, %v15644_v44  ;;  %v9189_v43 = vpop.f32.mrb[15].mxu0 }
 0x3f6   : > { %v9530_v36 = vmax.f32 %v9468_v50, %v9514_v59  ;;  %v9579_v29 = vrot.slane %v9469_v6, 1  ;;  %v9412_v51 = vadd.f32 %v12815_v33, %v15651_v49  ;;  %v12817_v22 = vadd.f32 %v9189_v43, %v15646_v55 }
 0x3f7   : > { %v9446_v46 = vmax.f32 %v9414_v27, 0.0  ;;  %v9415_v30 = vadd.f32 %v12816_v47, %v15651_v49 }
 0x3f8   : > { %10922 = vst [vmem:[%s15612_s28 + $0x42] sm:$0x1] %v9530_v36  ;;  %10930 = vst [vmem:[%s15612_s28 + $0x41] sm:$0x4] %v9530_v36  ;;  %v9595_v42 = vmax.f32 %v9469_v6, %v9579_v29  ;;  %v9444_v44 = vmax.f32 %v9412_v51, 0.0  ;;  %v9413_v0 = vadd.f32 %v12817_v22, %v15651_v49 }
 0x3f9   : > { %10938 = vst [vmem:[%s15612_s28 + $0x40] sm:$0x10] %v9530_v36  ;;  %10946 = vst [vmem:[%s15612_s28 + $0x3f] sm:$0x40] %v9530_v36  ;;  %v9447_v37 = vmax.f32 %v9415_v30, 0.0  ;;  %v12196_v38 = vpop.f32.mrb[16].mxu1 }
 0x3fa   : > { %10954 = vst [vmem:[%s15612_s28 + $0x46] sm:$0x1] %v9595_v42  ;;  %10962 = vst [vmem:[%s15612_s28 + $0x45] sm:$0x4] %v9595_v42  ;;  %v9470_v31 = vmax.f32 %v9444_v44, %v9446_v46  ;;  %v9445_v62 = vmax.f32 %v9413_v0, 0.0  ;;  %v12772_v55 = vpop.f32.mrb[16].mxu0 }
 0x3fb   : > { %10970 = vst [vmem:[%s15612_s28 + $0x44] sm:$0x10] %v9595_v42  ;;  %10978 = vst [vmem:[%s15612_s28 + $0x43] sm:$0x40] %v9595_v42  ;;  %v4760_v35 = vpop.f32.mrb[17].mxu1  ;;  %v12818_v45 = vadd.f32 %v12772_v55, %v12196_v38  ;;  %v9202_v40 = vpop.f32.mrb[17].mxu0 }
 0x3fc   : > { %v12197_v2 = vpop.f32.mrb[18].mxu1  ;;  %v9515_v63 = vrot.slane %v9470_v31, 1  ;;  %v9471_v11 = vmax.f32 %v9445_v62, %v9447_v37  ;;  %v12819_v56 = vadd.f32 %v9202_v40, %v4760_v35  ;;  %v12773_v54 = vpop.f32.mrb[18].mxu0 }
 0x3fd   : > { %v4763_v18 = vpop.f32.mrb[19].mxu1  ;;  %v9418_v20 = vadd.f32 %v12818_v45, %v15651_v49  ;;  %v12820_v8 = vadd.f32 %v12773_v54, %v12197_v2  ;;  %v9205_v19 = vpop.f32.mrb[19].mxu0 }
 0x3fe   : > { %v9531_v15 = vmax.f32 %v9470_v31, %v9515_v63  ;;  %v9580_v21 = vrot.slane %v9471_v11, 1  ;;  %v9416_v28 = vadd.f32 %v12819_v56, %v15651_v49  ;;  %v12821_v12 = vadd.f32 %v9205_v19, %v4763_v18 }
 0x3ff   : > { %v9450_v17 = vmax.f32 %v9418_v20, 0.0  ;;  %v9419_v60 = vadd.f32 %v12820_v8, %v15651_v49 }
 0x400   : > { %10923 = vst [vmem:[%s15612_s28 + $0x52] sm:$0x1] %v9531_v15  ;;  %10931 = vst [vmem:[%s15612_s28 + $0x51] sm:$0x4] %v9531_v15  ;;  %v9596_v14 = vmax.f32 %v9471_v11, %v9580_v21  ;;  %v9448_v25 = vmax.f32 %v9416_v28, 0.0  ;;  %v9417_v13 = vadd.f32 %v12821_v12, %v15651_v49 }
 0x401   : > { %10939 = vst [vmem:[%s15612_s28 + $0x50] sm:$0x10] %v9531_v15  ;;  %10947 = vst [vmem:[%s15612_s28 + $0x4f] sm:$0x40] %v9531_v15  ;;  %v9451_v53 = vmax.f32 %v9419_v60, 0.0  ;;  %v12200_v23 = vpop.f32.mrb[20].mxu1 }
 0x402   : > { %10955 = vst [vmem:[%s15612_s28 + $0x56] sm:$0x1] %v9596_v14  ;;  %10963 = vst [vmem:[%s15612_s28 + $0x55] sm:$0x4] %v9596_v14  ;;  %v9472_v1 = vmax.f32 %v9448_v25, %v9450_v17  ;;  %v9449_v3 = vmax.f32 %v9417_v13, 0.0  ;;  %v12776_v61 = vpop.f32.mrb[20].mxu0 }
 0x403   : > { %10971 = vst [vmem:[%s15612_s28 + $0x54] sm:$0x10] %v9596_v14  ;;  %10979 = vst [vmem:[%s15612_s28 + $0x53] sm:$0x40] %v9596_v14  ;;  %v4776_v32 = vpop.f32.mrb[21].mxu1  ;;  %v12822_v41 = vadd.f32 %v12776_v61, %v12200_v23  ;;  %v9218_v4 = vpop.f32.mrb[21].mxu0 }
 0x404   : > { %v12201_v57 = vpop.f32.mrb[22].mxu1  ;;  %v9516_v34 = vrot.slane %v9472_v1, 1  ;;  %v9473_v16 = vmax.f32 %v9449_v3, %v9451_v53  ;;  %v12823_v9 = vadd.f32 %v9218_v4, %v4776_v32  ;;  %v12777_v7 = vpop.f32.mrb[22].mxu0 }
 0x405   : > { %v4779_v58 = vpop.f32.mrb[23].mxu1  ;;  %v9422_v5 = vadd.f32 %v12822_v41, %v15651_v49  ;;  %v12824_v24 = vadd.f32 %v12777_v7, %v12201_v57  ;;  %v9221_v50 = vpop.f32.mrb[23].mxu0 }
 0x406   : > { %v9532_v26 = vmax.f32 %v9472_v1, %v9516_v34  ;;  %v9581_v52 = vrot.slane %v9473_v16, 1  ;;  %v9420_v39 = vadd.f32 %v12823_v9, %v15651_v49  ;;  %v12825_v10 = vadd.f32 %v9221_v50, %v4779_v58 }
 0x407   : > { %v9454_v59 = vmax.f32 %v9422_v5, 0.0  ;;  %v9423_v6 = vadd.f32 %v12824_v24, %v15651_v49 }
 0x408   : > { %10924 = vst [vmem:[%s15612_s28 + $0x62] sm:$0x1] %v9532_v26  ;;  %10932 = vst [vmem:[%s15612_s28 + $0x61] sm:$0x4] %v9532_v26  ;;  %v9597_v33 = vmax.f32 %v9473_v16, %v9581_v52  ;;  %v9452_v48 = vmax.f32 %v9420_v39, 0.0  ;;  %v9421_v27 = vadd.f32 %v12825_v10, %v15651_v49 }
 0x409   : > { %10940 = vst [vmem:[%s15612_s28 + $0x60] sm:$0x10] %v9532_v26  ;;  %10948 = vst [vmem:[%s15612_s28 + $0x5f] sm:$0x40] %v9532_v26  ;;  %v9455_v47 = vmax.f32 %v9423_v6, 0.0  ;;  %v12204_v43 = vpop.f32.mrb[24].mxu1 }
 0x40a   : > { %10956 = vst [vmem:[%s15612_s28 + $0x66] sm:$0x1] %v9597_v33  ;;  %10964 = vst [vmem:[%s15612_s28 + $0x65] sm:$0x4] %v9597_v33  ;;  %v9474_v36 = vmax.f32 %v9452_v48, %v9454_v59  ;;  %v9453_v29 = vmax.f32 %v9421_v27, 0.0  ;;  %v12780_v51 = vpop.f32.mrb[24].mxu0 }
 0x40b   : > { %10972 = vst [vmem:[%s15612_s28 + $0x64] sm:$0x10] %v9597_v33  ;;  %10980 = vst [vmem:[%s15612_s28 + $0x63] sm:$0x40] %v9597_v33  ;;  %v4792_v22 = vpop.f32.mrb[25].mxu1  ;;  %v12826_v46 = vadd.f32 %v12780_v51, %v12204_v43  ;;  %v9234_v30 = vpop.f32.mrb[25].mxu0 }
 0x40c   : > { %v12205_v42 = vpop.f32.mrb[26].mxu1  ;;  %v9517_v44 = vrot.slane %v9474_v36, 1  ;;  %v9475_v0 = vmax.f32 %v9453_v29, %v9455_v47  ;;  %v12827_v37 = vadd.f32 %v9234_v30, %v4792_v22  ;;  %v12781_v38 = vpop.f32.mrb[26].mxu0 }
 0x40d   : > { %v4795_v31 = vpop.f32.mrb[27].mxu1  ;;  %v9426_v62 = vadd.f32 %v12826_v46, %v15651_v49  ;;  %v12828_v55 = vadd.f32 %v12781_v38, %v12205_v42  ;;  %v9237_v35 = vpop.f32.mrb[27].mxu0 }
 0x40e   : > { %v9533_v45 = vmax.f32 %v9474_v36, %v9517_v44  ;;  %v9582_v40 = vrot.slane %v9475_v0, 1  ;;  %v9424_v2 = vadd.f32 %v12827_v37, %v15651_v49  ;;  %v12829_v63 = vadd.f32 %v9237_v35, %v4795_v31 }
 0x40f   : > { %v9458_v11 = vmax.f32 %v9426_v62, 0.0  ;;  %v9427_v56 = vadd.f32 %v12828_v55, %v15651_v49 }
 0x410   : > { %10925 = vst [vmem:[%s15612_s28 + $0x72] sm:$0x1] %v9533_v45  ;;  %10933 = vst [vmem:[%s15612_s28 + $0x71] sm:$0x4] %v9533_v45  ;;  %v9598_v54 = vmax.f32 %v9475_v0, %v9582_v40  ;;  %v9456_v18 = vmax.f32 %v9424_v2, 0.0  ;;  %v9425_v20 = vadd.f32 %v12829_v63, %v15651_v49 }
 0x411   : > { %10941 = vst [vmem:[%s15612_s28 + $0x70] sm:$0x10] %v9533_v45  ;;  %10949 = vst [vmem:[%s15612_s28 + $0x6f] sm:$0x40] %v9533_v45  ;;  %v9459_v8 = vmax.f32 %v9427_v56, 0.0  ;;  %v12208_v19 = vpop.f32.mrb[28].mxu1 }
 0x412   : > { %10957 = vst [vmem:[%s15612_s28 + $0x76] sm:$0x1] %v9598_v54  ;;  %10965 = vst [vmem:[%s15612_s28 + $0x75] sm:$0x4] %v9598_v54  ;;  %v9476_v15 = vmax.f32 %v9456_v18, %v9458_v11  ;;  %v9457_v21 = vmax.f32 %v9425_v20, 0.0  ;;  %v12784_v28 = vpop.f32.mrb[28].mxu0 }
 0x413   : > { %10973 = vst [vmem:[%s15612_s28 + $0x74] sm:$0x10] %v9598_v54  ;;  %10981 = vst [vmem:[%s15612_s28 + $0x73] sm:$0x40] %v9598_v54  ;;  %v4808_v12 = vpop.f32.mrb[29].mxu1  ;;  %v12830_v17 = vadd.f32 %v12784_v28, %v12208_v19  ;;  %v9250_v60 = vpop.f32.mrb[29].mxu0 }
 0x414   : > { %v12209_v14 = vpop.f32.mrb[30].mxu1  ;;  %v9518_v25 = vrot.slane %v9476_v15, 1  ;;  %v9477_v13 = vmax.f32 %v9457_v21, %v9459_v8  ;;  %v12831_v53 = vadd.f32 %v9250_v60, %v4808_v12  ;;  %v12785_v23 = vpop.f32.mrb[30].mxu0 }
 0x415   : > { %v4811_v1 = vpop.f32.mrb[31].mxu1  ;;  %v9430_v3 = vadd.f32 %v12830_v17, %v15651_v49  ;;  %v12832_v61 = vadd.f32 %v12785_v23, %v12209_v14  ;;  %v9253_v32 = vpop.f32.mrb[31].mxu0 }
 0x416   : > { %v9534_v41 = vmax.f32 %v9476_v15, %v9518_v25  ;;  %v9583_v4 = vrot.slane %v9477_v13, 1  ;;  %v9428_v57 = vadd.f32 %v12831_v53, %v15651_v49  ;;  %v12833_v34 = vadd.f32 %v9253_v32, %v4811_v1 }
 0x417   : > { %v9462_v16 = vmax.f32 %v9430_v3, 0.0  ;;  %v9431_v9 = vadd.f32 %v12832_v61, %v15651_v49 }
 0x418   : > { %10926 = vst [vmem:[%s15612_s28 + $0x82] sm:$0x1] %v9534_v41  ;;  %10934 = vst [vmem:[%s15612_s28 + $0x81] sm:$0x4] %v9534_v41  ;;  %v9599_v7 = vmax.f32 %v9477_v13, %v9583_v4  ;;  %v9460_v58 = vmax.f32 %v9428_v57, 0.0  ;;  %v9429_v5 = vadd.f32 %v12833_v34, %v15651_v49 }
 0x419   : > { %10942 = vst [vmem:[%s15612_s28 + $0x80] sm:$0x10] %v9534_v41  ;;  %10950 = vst [vmem:[%s15612_s28 + $0x7f] sm:$0x40] %v9534_v41  ;;  %v9463_v24 = vmax.f32 %v9431_v9, 0.0 }
 0x41a   : > { %10958 = vst [vmem:[%s15612_s28 + $0x86] sm:$0x1] %v9599_v7  ;;  %10966 = vst [vmem:[%s15612_s28 + $0x85] sm:$0x4] %v9599_v7  ;;  %v9478_v50 = vmax.f32 %v9460_v58, %v9462_v16  ;;  %v9461_v26 = vmax.f32 %v9429_v5, 0.0 }
 0x41b   : > { %10974 = vst [vmem:[%s15612_s28 + $0x84] sm:$0x10] %v9599_v7  ;;  %10982 = vst [vmem:[%s15612_s28 + $0x83] sm:$0x40] %v9599_v7 }
 0x41c   : > { %v9519_v52 = vrot.slane %v9478_v50, 1  ;;  %v9479_v39 = vmax.f32 %v9461_v26, %v9463_v24 }
 0x41e   : > { %v9535_v10 = vmax.f32 %v9478_v50, %v9519_v52  ;;  %v9584_v59 = vrot.slane %v9479_v39, 1 }
 0x420   : > { %10927 = vst [vmem:[%s15612_s28 + $0x92] sm:$0x1] %v9535_v10  ;;  %10935 = vst [vmem:[%s15612_s28 + $0x91] sm:$0x4] %v9535_v10  ;;  %v9600_v49 = vmax.f32 %v9479_v39, %v9584_v59 }
 0x421   : > { %10943 = vst [vmem:[%s15612_s28 + $0x90] sm:$0x10] %v9535_v10  ;;  %10951 = vst [vmem:[%s15612_s28 + $0x8f] sm:$0x40] %v9535_v10 }
 0x422   : > { %10959 = vst [vmem:[%s15612_s28 + $0x96] sm:$0x1] %v9600_v49  ;;  %10967 = vst [vmem:[%s15612_s28 + $0x95] sm:$0x4] %v9600_v49 }
 0x423   : > { %10975 = vst [vmem:[%s15612_s28 + $0x94] sm:$0x10] %v9600_v49  ;;  %10983 = vst [vmem:[%s15612_s28 + $0x93] sm:$0x40] %v9600_v49 }
 0x424 PF: > { %s13_s12 = sadd.s32 1, %s13795_s12  }
 0x425   : > { %p10_p4 = scmp.ge.s32.totalorder %s13_s12, 4  }
 0x427   :  { %12 = sbr.rel (!%p10_p4) target bundleno = 1 (0x1), region = 91 }

</bundles_post_ra>
